<compile_context>
chip_gen: v7x
topology: tpu7x:2x2x1
jax: 0.10.0
libtpu: 0.0.40
codegen_flags: <defaults>
</compile_context>

<pallas_src>
import jax
import jax.numpy as jnp
from jax.experimental import pallas as pl
from jax.experimental.pallas import tpu as pltpu


# ----------------------------- fused per-side kernel ------------------------------

def _mmgcn_side_kernel(nv_ref, invp_ref, cnnb_ref,
                       ag_ref, ac_ref, af_ref, x_ref, w1_ref, w2_ref, b_ref,
                       fc1w_ref, fc1b_ref, fc2w_ref, fc2b_ref, cnnw_ref,
                       o_ref):
    """One grid step = one entity side: 6 GCN layers + channel attention + 1x1 conv."""
    f32, bf16 = jnp.float32, jnp.bfloat16
    side = pl.program_id(0)
    n_pad, feat = x_ref.shape
    n_valid = nv_ref[side]                   # SMEM scalar: real node count of this side
    inv_pool = invp_ref[side]                # SMEM scalar: 1 / (n_valid * feat)

    a_gua = ag_ref[...]                      # (Np, Np) bf16
    a_cos = ac_ref[...]                      # (Np, Np) bf16
    a_fun = af_ref[...]                      # (Np, Np) bf16
    x = x_ref[...]                           # (Np, F)  bf16
    w1 = w1_ref[...]                         # (F, 2F)  bf16 = [W_f1 | W_s1]
    w2 = w2_ref[...]                         # (F, 2F)  bf16 = [W_f2 | W_s2]
    b_f1 = b_ref[0:1, :]                     # (1, F) f32
    b_s1 = b_ref[1:2, :]
    b_f2 = b_ref[2:3, :]
    b_s2 = b_ref[3:4, :]

    # ---- GCN layer 1: one 256-wide RHS; X @ W_s shared by the s and g branches ----
    xw = jnp.dot(x, w1, preferred_element_type=f32)                    # (Np, 2F)
    xw_f = xw[:, :feat].astype(bf16)
    xw_s = xw[:, feat:].astype(bf16)
    x_f1 = jnp.maximum(jnp.dot(a_gua, xw_f, preferred_element_type=f32) + b_f1, 0.0)
    x_s1 = jnp.maximum(jnp.dot(a_cos, xw_s, preferred_element_type=f32) + b_s1, 0.0)
    x_g1 = jnp.maximum(jnp.dot(a_fun, xw_s, preferred_element_type=f32) + b_s1, 0.0)

    # ---- GCN layer 2: shared 256-wide RHS; x_s1 @ W_s2 reused for s2 and g2 ----
    t_f2 = jnp.dot(x_f1.astype(bf16), w2,
                   preferred_element_type=f32)[:, :feat].astype(bf16)
    t_s2 = jnp.dot(x_s1.astype(bf16), w2,
                   preferred_element_type=f32)[:, feat:].astype(bf16)
    x_f2 = jnp.maximum(jnp.dot(a_gua, t_f2, preferred_element_type=f32) + b_f2, 0.0)
    x_s2 = jnp.maximum(jnp.dot(a_cos, t_s2, preferred_element_type=f32) + b_s2, 0.0)
    x_g2 = jnp.maximum(jnp.dot(a_fun, t_s2, preferred_element_type=f32) + b_s2, 0.0)

    # Channel order matches torch.cat((f1, f2, s1, s2, g1, g2), 1).
    stack = (x_f1, x_f2, x_s1, x_s2, x_g1, x_g2)

    # ---- channel attention: masked global average pool + 6->30->6 MLP + sigmoid ----
    rows = jax.lax.broadcasted_iota(jnp.int32, (n_pad, 1), 0)
    rmask = (rows < n_valid).astype(f32)                               # (Np, 1)
    fc1w = fc1w_ref[...]                                               # (8, 128) lane-padded
    h = fc1b_ref[...]                                                  # (1, 128) lane-padded
    for c in range(6):
        rsum = jnp.sum(stack[c], axis=1, keepdims=True)                # (Np, 1)
        pool_c = jnp.sum(rsum * rmask, axis=0, keepdims=True)          # (1, 1)
        h = h + (pool_c * inv_pool) * fc1w[c:c + 1, :]
    h = jnp.maximum(h, 0.0)                                            # (1, 128)

    att = jax.nn.sigmoid(
        jnp.dot(h, fc2w_ref[...], preferred_element_type=f32) + fc2b_ref[...])  # (1, 8)
    coeff = att * cnnw_ref[...]                                        # (1, 8)

    # relu(att * stack) == att * stack (stack >= 0, att > 0); the 1x1 conv over
    # channels is a fused weighted channel sum.
    acc = coeff[:, 0:1] * stack[0]
    for c in range(1, 6):
        acc = acc + coeff[:, c:c + 1] * stack[c]
    o_ref[...] = acc + cnnb_ref[side]


# ----------------------------- wrapper: both sides, one call -----------------------

def mmgcn_embed(p, graph):
    """Both entity sides -> (2, Np, F) float32 embeddings (padded rows included)."""
    n_pad, feat = graph['x'].shape[1], graph['x'].shape[2]
    hid_p, ch_p = 128, 8                      # lane/sublane-padded MLP dims (30->128, 6->8)
    bf16 = jnp.bfloat16

    def pad2(a, r, c):
        return jnp.pad(a, ((0, r - a.shape[0]), (0, c - a.shape[1])))

    # Per-side stacked weights (leading dim 2 = [miRNA, disease]); MXU operands in bf16.
    w1 = jnp.stack([
        jnp.concatenate([p['gcn_x1_f_w'], p['gcn_x1_s_w']], axis=1),
        jnp.concatenate([p['gcn_y1_f_w'], p['gcn_y1_s_w']], axis=1)]).astype(bf16)
    w2 = jnp.stack([
        jnp.concatenate([p['gcn_x2_f_w'], p['gcn_x2_s_w']], axis=1),
        jnp.concatenate([p['gcn_y2_f_w'], p['gcn_y2_s_w']], axis=1)]).astype(bf16)
    b = jnp.stack([
        jnp.stack([p['gcn_x1_f_b'], p['gcn_x1_s_b'], p['gcn_x2_f_b'], p['gcn_x2_s_b']]),
        jnp.stack([p['gcn_y1_f_b'], p['gcn_y1_s_b'], p['gcn_y2_f_b'], p['gcn_y2_s_b']])])
    fc1w = jnp.stack([pad2(p['fc1_x_w'].T, ch_p, hid_p),
                      pad2(p['fc1_y_w'].T, ch_p, hid_p)])              # (2, 8, 128)
    fc1b = jnp.stack([pad2(p['fc1_x_b'][None, :], 1, hid_p),
                      pad2(p['fc1_y_b'][None, :], 1, hid_p)])          # (2, 1, 128)
    fc2w = jnp.stack([pad2(p['fc2_x_w'].T, hid_p, ch_p),
                      pad2(p['fc2_y_w'].T, hid_p, ch_p)])              # (2, 128, 8)
    fc2b = jnp.stack([pad2(p['fc2_x_b'][None, :], 1, ch_p),
                      pad2(p['fc2_y_b'][None, :], 1, ch_p)])           # (2, 1, 8)
    cnnw = jnp.stack([pad2(p['cnn_x_w'][None, :], 1, ch_p),
                      pad2(p['cnn_y_w'][None, :], 1, ch_p)])           # (2, 1, 8)
    cnnb = jnp.stack([p['cnn_x_b'][0], p['cnn_y_b'][0]])               # (2,)

    def vspec(r, c):
        return pl.BlockSpec((None, r, c), lambda s: (s, 0, 0))

    sspec = pl.BlockSpec(memory_space=pltpu.MemorySpace.SMEM)

    return pl.pallas_call(
        _mmgcn_side_kernel,
        out_shape=jax.ShapeDtypeStruct((2, n_pad, feat), jnp.float32),
        grid=(2,),
        in_specs=[
            sspec, sspec, sspec,                               # n_valid, inv_pool, cnn bias
            vspec(n_pad, n_pad), vspec(n_pad, n_pad), vspec(n_pad, n_pad),   # A_gua/A_cos/A_fun
            vspec(n_pad, feat),                                # X
            vspec(feat, 2 * feat), vspec(feat, 2 * feat),      # [W_f1|W_s1], [W_f2|W_s2]
            vspec(4, feat),                                    # GCN biases
            vspec(ch_p, hid_p), vspec(1, hid_p),               # fc1 W^T, fc1 b
            vspec(hid_p, ch_p), vspec(1, ch_p), vspec(1, ch_p),  # fc2 W^T, fc2 b, cnn w
        ],
        out_specs=vspec(n_pad, feat),
        compiler_params=pltpu.CompilerParams(dimension_semantics=("parallel",)),
    )(graph['n_valid'], graph['inv_pool'], cnnb,
      graph['a_gua'], graph['a_cos'], graph['a_fun'], graph['x'],
      w1, w2, b, fc1w, fc1b, fc2w, fc2b, cnnw)


# ----------------------------- forward pass ----------------------------------------

def mmgcn_forward(p, graph, train_edges):
    emb = mmgcn_embed(p, graph)                       # (2, Np, 128) float32
    te = train_edges.T
    m_idx = te[0].astype(jnp.int32)
    d_idx = te[1].astype(jnp.int32)
    # Edge scoring head (~16 KFLOP): plain jnp — XLA fuses gather + mul + matvec +
    # sigmoid; a dedicated pallas_call here would be pure launch overhead.
    pair = emb[0][m_idx] * emb[1][d_idx]              # (E, 128)
    return jax.nn.sigmoid(pair @ p['lin_w'] + p['lin_b'][0])


# ----------------------------- deterministic setup ----------------------------------

def init_params(key, fm=128, fd=128):
    keys = iter(jax.random.split(key, 32))

    def xav(shape, gain=1.414):
        fi, fo = shape[-2], shape[-1]
        std = gain * (2.0 / (fi + fo)) ** 0.5
        return (std * jax.random.normal(next(keys), shape)).astype(jnp.float32)

    p = {}
    for name, dim in [('gcn_x1_f', fm), ('gcn_x2_f', fm), ('gcn_x1_s', fm), ('gcn_x2_s', fm),
                      ('gcn_y1_f', fd), ('gcn_y2_f', fd), ('gcn_y1_s', fd), ('gcn_y2_s', fd)]:
        p[name + '_w'] = xav((dim, dim))
        p[name + '_b'] = jnp.zeros((dim,), jnp.float32)

    p['fc1_x_w'] = xav((30, 6)); p['fc1_x_b'] = jnp.zeros((30,), jnp.float32)
    p['fc2_x_w'] = xav((6, 30)); p['fc2_x_b'] = jnp.zeros((6,), jnp.float32)
    p['fc1_y_w'] = xav((30, 6)); p['fc1_y_b'] = jnp.zeros((30,), jnp.float32)
    p['fc2_y_w'] = xav((6, 30)); p['fc2_y_b'] = jnp.zeros((6,), jnp.float32)

    p['cnn_x_w'] = xav((1, 6)).reshape(6); p['cnn_x_b'] = jnp.zeros((1,), jnp.float32)
    p['cnn_y_w'] = xav((1, 6)).reshape(6); p['cnn_y_b'] = jnp.zeros((1,), jnp.float32)

    p['lin_w'] = xav((1, 128)).reshape(128); p['lin_b'] = jnp.zeros((1,), jnp.float32)
    return p


def make_norm_adj(key, n, density=0.2):
    # dense weighted adjacency equivalent to GCNConv's edge_index/edge_weight input,
    # symmetrically normalized with self-loops:  D^-1/2 (A + I) D^-1/2
    s = jax.random.uniform(key, (n, n), dtype=jnp.float32)
    s = 0.5 * (s + s.T)
    mask = (s > (1.0 - density)).astype(jnp.float32)
    a = s * mask * (1.0 - jnp.eye(n, dtype=jnp.float32))
    a = a + jnp.eye(n, dtype=jnp.float32)
    deg = jnp.sum(a, axis=1)
    d_inv_sqrt = jax.lax.rsqrt(jnp.maximum(deg, 1e-12))
    return a * d_inv_sqrt[:, None] * d_inv_sqrt[None, :]


def prepare_graph(adj_m, adj_d, x_m, x_d, n_pad):
    """Pad both sides to one 8/128-aligned node count, stack them on a leading axis of 2
    and cast the static MXU operands to bf16 once (graph is fixed, so this stays outside
    the jitted step)."""
    bf16 = jnp.bfloat16
    feat = x_m.shape[1]

    def padn(a, r, c):
        return jnp.pad(a, ((0, r - a.shape[0]), (0, c - a.shape[1])))

    a_gua = jnp.stack([padn(adj_m[0], n_pad, n_pad), padn(adj_d[0], n_pad, n_pad)]).astype(bf16)
    a_cos = jnp.stack([padn(adj_m[1], n_pad, n_pad), padn(adj_d[1], n_pad, n_pad)]).astype(bf16)
    a_fun = jnp.stack([padn(adj_m[2], n_pad, n_pad), padn(adj_d[2], n_pad, n_pad)]).astype(bf16)
    x = jnp.stack([padn(x_m, n_pad, feat), padn(x_d, n_pad, feat)]).astype(bf16)
    nv = jnp.array([x_m.shape[0], x_d.shape[0]], jnp.int32)
    inv_pool = 1.0 / (nv.astype(jnp.float32) * feat)
    return dict(a_gua=a_gua, a_cos=a_cos, a_fun=a_fun, x=x, n_valid=nv, inv_pool=inv_pool)


if __name__ == "__main__":
    # Shapes forced by the module: fm = fd = 128 (from .view(128, ...) / Linear(128, 1)),
    # miRNA_number = 215, disease_number = 110 (from randn(215, fm) / randn(110, fd)).
    FM = FD = 128
    N_MI, N_DI = 215, 110
    N_PAD = 256                  # common 8/128-aligned padded node count for both sides
    N_EDGES = 64

    root = jax.random.PRNGKey(0)
    k_param, k_xm, k_xd, k_adj, k_edge = jax.random.split(root, 5)

    params = init_params(k_param, FM, FD)
    x_m = jax.random.normal(k_xm, (N_MI, FM), dtype=jnp.float32)
    x_d = jax.random.normal(k_xd, (N_DI, FD), dtype=jnp.float32)

    ka = jax.random.split(k_adj, 6)
    adj_m = tuple(make_norm_adj(ka[i], N_MI) for i in range(3))        # gua / cos / fun
    adj_d = tuple(make_norm_adj(ka[i + 3], N_DI) for i in range(3))    # gua / cos / sem

    graph = prepare_graph(adj_m, adj_d, x_m, x_d, N_PAD)

    ke1, ke2 = jax.random.split(k_edge)
    train_edges = jnp.stack(
        [jax.random.randint(ke1, (N_EDGES,), 0, N_MI, dtype=jnp.int32),
         jax.random.randint(ke2, (N_EDGES,), 0, N_DI, dtype=jnp.int32)],
        axis=1)                                                         # (E, 2)

    fwd = jax.jit(mmgcn_forward)
    out = jax.block_until_ready(fwd(params, graph, train_edges))
    assert out.shape == (N_EDGES,)
    assert bool(jnp.all(jnp.isfinite(out)))
    assert bool(jnp.all((out >= 0.0) & (out <= 1.0)))
    print("KERNEL_OK")
</pallas_src>

<mosaic_0001>
module attributes {stable_mosaic.version = 11 : i64} {
  func.func @_mmgcn_side_kernel(%arg0: i32, %arg1: memref<2xi32, #tpu.memory_space<smem>>, %arg2: memref<2xf32, #tpu.memory_space<smem>>, %arg3: memref<2xf32, #tpu.memory_space<smem>>, %arg4: memref<1x256x256xbf16, #tpu.memory_space<vmem>>, %arg5: memref<1x256x256xbf16, #tpu.memory_space<vmem>>, %arg6: memref<1x256x256xbf16, #tpu.memory_space<vmem>>, %arg7: memref<1x256x128xbf16, #tpu.memory_space<vmem>>, %arg8: memref<1x128x256xbf16, #tpu.memory_space<vmem>>, %arg9: memref<1x128x256xbf16, #tpu.memory_space<vmem>>, %arg10: memref<1x4x128xf32, #tpu.memory_space<vmem>>, %arg11: memref<1x8x128xf32, #tpu.memory_space<vmem>>, %arg12: memref<1x1x128xf32, #tpu.memory_space<vmem>>, %arg13: memref<1x128x8xf32, #tpu.memory_space<vmem>>, %arg14: memref<1x1x8xf32, #tpu.memory_space<vmem>>, %arg15: memref<1x1x8xf32, #tpu.memory_space<vmem>>, %arg16: memref<1x256x128xf32, #tpu.memory_space<vmem>>) attributes {dimension_semantics = [#tpu.dimension_semantics<parallel>], iteration_bounds = array<i64: 2>, scalar_prefetch = 0 : i64, scratch_operands = 0 : i64, tpu.core_type = #tpu.core_type<tc>, window_params = [{transform_indices = @transform_0, window_bounds = array<i64: 2>}, {transform_indices = @transform_1, window_bounds = array<i64: 2>}, {transform_indices = @transform_2, window_bounds = array<i64: 2>}, {transform_indices = @transform_3, window_bounds = array<i64: 1, 256, 256>}, {transform_indices = @transform_4, window_bounds = array<i64: 1, 256, 256>}, {transform_indices = @transform_5, window_bounds = array<i64: 1, 256, 256>}, {transform_indices = @transform_6, window_bounds = array<i64: 1, 256, 128>}, {transform_indices = @transform_7, window_bounds = array<i64: 1, 128, 256>}, {transform_indices = @transform_8, window_bounds = array<i64: 1, 128, 256>}, {transform_indices = @transform_9, window_bounds = array<i64: 1, 4, 128>}, {transform_indices = @transform_10, window_bounds = array<i64: 1, 8, 128>}, {transform_indices = @transform_11, window_bounds = array<i64: 1, 1, 128>}, {transform_indices = @transform_12, window_bounds = array<i64: 1, 128, 8>}, {transform_indices = @transform_13, window_bounds = array<i64: 1, 1, 8>}, {transform_indices = @transform_14, window_bounds = array<i64: 1, 1, 8>}, {transform_indices = @transform_15, window_bounds = array<i64: 1, 256, 128>}]} {
    %0 = arith.index_cast %arg0 : i32 to index
    %1 = memref.load %arg1[%0] : memref<2xi32, #tpu.memory_space<smem>>
    %2 = arith.index_cast %arg0 : i32 to index
    %3 = memref.load %arg2[%2] : memref<2xf32, #tpu.memory_space<smem>>
    %c0 = arith.constant 0 : index
    %c0_0 = arith.constant 0 : index
    %c0_1 = arith.constant 0 : index
    %4 = vector.load %arg4[%c0, %c0_0, %c0_1] : memref<1x256x256xbf16, #tpu.memory_space<vmem>>, vector<1x256x256xbf16>
    %5 = vector.shape_cast %4 : vector<1x256x256xbf16> to vector<256x256xbf16>
    %c0_2 = arith.constant 0 : index
    %c0_3 = arith.constant 0 : index
    %c0_4 = arith.constant 0 : index
    %6 = vector.load %arg5[%c0_2, %c0_3, %c0_4] : memref<1x256x256xbf16, #tpu.memory_space<vmem>>, vector<1x256x256xbf16>
    %7 = vector.shape_cast %6 : vector<1x256x256xbf16> to vector<256x256xbf16>
    %c0_5 = arith.constant 0 : index
    %c0_6 = arith.constant 0 : index
    %c0_7 = arith.constant 0 : index
    %8 = vector.load %arg6[%c0_5, %c0_6, %c0_7] : memref<1x256x256xbf16, #tpu.memory_space<vmem>>, vector<1x256x256xbf16>
    %9 = vector.shape_cast %8 : vector<1x256x256xbf16> to vector<256x256xbf16>
    %c0_8 = arith.constant 0 : index
    %c0_9 = arith.constant 0 : index
    %c0_10 = arith.constant 0 : index
    %10 = vector.load %arg7[%c0_8, %c0_9, %c0_10] : memref<1x256x128xbf16, #tpu.memory_space<vmem>>, vector<1x256x128xbf16>
    %11 = vector.shape_cast %10 : vector<1x256x128xbf16> to vector<256x128xbf16>
    %c0_11 = arith.constant 0 : index
    %c0_12 = arith.constant 0 : index
    %c0_13 = arith.constant 0 : index
    %12 = vector.load %arg8[%c0_11, %c0_12, %c0_13] : memref<1x128x256xbf16, #tpu.memory_space<vmem>>, vector<1x128x256xbf16>
    %13 = vector.shape_cast %12 : vector<1x128x256xbf16> to vector<128x256xbf16>
    %c0_14 = arith.constant 0 : index
    %c0_15 = arith.constant 0 : index
    %c0_16 = arith.constant 0 : index
    %14 = vector.load %arg9[%c0_14, %c0_15, %c0_16] : memref<1x128x256xbf16, #tpu.memory_space<vmem>>, vector<1x128x256xbf16>
    %15 = vector.shape_cast %14 : vector<1x128x256xbf16> to vector<128x256xbf16>
    %c0_17 = arith.constant 0 : index
    %c0_18 = arith.constant 0 : index
    %c0_19 = arith.constant 0 : index
    %16 = vector.load %arg10[%c0_17, %c0_18, %c0_19] : memref<1x4x128xf32, #tpu.memory_space<vmem>>, vector<1x1x128xf32>
    %17 = vector.shape_cast %16 : vector<1x1x128xf32> to vector<1x128xf32>
    %c0_20 = arith.constant 0 : index
    %c1 = arith.constant 1 : index
    %c0_21 = arith.constant 0 : index
    %18 = vector.load %arg10[%c0_20, %c1, %c0_21] : memref<1x4x128xf32, #tpu.memory_space<vmem>>, vector<1x1x128xf32>
    %19 = vector.shape_cast %18 : vector<1x1x128xf32> to vector<1x128xf32>
    %c0_22 = arith.constant 0 : index
    %c2 = arith.constant 2 : index
    %c0_23 = arith.constant 0 : index
    %20 = vector.load %arg10[%c0_22, %c2, %c0_23] : memref<1x4x128xf32, #tpu.memory_space<vmem>>, vector<1x1x128xf32>
    %21 = vector.shape_cast %20 : vector<1x1x128xf32> to vector<1x128xf32>
    %c0_24 = arith.constant 0 : index
    %c3 = arith.constant 3 : index
    %c0_25 = arith.constant 0 : index
    %22 = vector.load %arg10[%c0_24, %c3, %c0_25] : memref<1x4x128xf32, #tpu.memory_space<vmem>>, vector<1x1x128xf32>
    %23 = vector.shape_cast %22 : vector<1x1x128xf32> to vector<1x128xf32>
    %cst = arith.constant dense<0.000000e+00> : vector<256x256xf32>
    %24 = tpu.matmul %11, %13, %cst {dimension_numbers = #tpu.dot_dimension_numbers<[1], [0], [0], [1], [0, 0, 1, 1], [], []>} : vector<256x128xbf16>, vector<128x256xbf16>, vector<256x256xf32> -> vector<256x256xf32>
    %25 = vector.extract_strided_slice %24 {offsets = [0, 0], sizes = [256, 128], strides = [1, 1]} : vector<256x256xf32> to vector<256x128xf32>
    %26 = arith.truncf %25 : vector<256x128xf32> to vector<256x128xbf16>
    %27 = vector.extract_strided_slice %24 {offsets = [0, 128], sizes = [256, 128], strides = [1, 1]} : vector<256x256xf32> to vector<256x128xf32>
    %28 = arith.truncf %27 : vector<256x128xf32> to vector<256x128xbf16>
    %cst_26 = arith.constant dense<0.000000e+00> : vector<256x128xf32>
    %29 = tpu.matmul %5, %26, %cst_26 {dimension_numbers = #tpu.dot_dimension_numbers<[1], [0], [0], [1], [0, 0, 1, 1], [], []>} : vector<256x256xbf16>, vector<256x128xbf16>, vector<256x128xf32> -> vector<256x128xf32>
    %30 = vector.broadcast %17 : vector<1x128xf32> to vector<256x128xf32>
    %31 = arith.addf %29, %30 : vector<256x128xf32>
    %cst_27 = arith.constant 0.000000e+00 : f32
    %32 = vector.broadcast %cst_27 : f32 to vector<256x128xf32>
    %33 = arith.maximumf %31, %32 : vector<256x128xf32>
    %cst_28 = arith.constant dense<0.000000e+00> : vector<256x128xf32>
    %34 = tpu.matmul %7, %28, %cst_28 {dimension_numbers = #tpu.dot_dimension_numbers<[1], [0], [0], [1], [0, 0, 1, 1], [], []>} : vector<256x256xbf16>, vector<256x128xbf16>, vector<256x128xf32> -> vector<256x128xf32>
    %35 = vector.broadcast %19 : vector<1x128xf32> to vector<256x128xf32>
    %36 = arith.addf %34, %35 : vector<256x128xf32>
    %cst_29 = arith.constant 0.000000e+00 : f32
    %37 = vector.broadcast %cst_29 : f32 to vector<256x128xf32>
    %38 = arith.maximumf %36, %37 : vector<256x128xf32>
    %cst_30 = arith.constant dense<0.000000e+00> : vector<256x128xf32>
    %39 = tpu.matmul %9, %28, %cst_30 {dimension_numbers = #tpu.dot_dimension_numbers<[1], [0], [0], [1], [0, 0, 1, 1], [], []>} : vector<256x256xbf16>, vector<256x128xbf16>, vector<256x128xf32> -> vector<256x128xf32>
    %40 = vector.broadcast %19 : vector<1x128xf32> to vector<256x128xf32>
    %41 = arith.addf %39, %40 : vector<256x128xf32>
    %cst_31 = arith.constant 0.000000e+00 : f32
    %42 = vector.broadcast %cst_31 : f32 to vector<256x128xf32>
    %43 = arith.maximumf %41, %42 : vector<256x128xf32>
    %44 = arith.truncf %33 : vector<256x128xf32> to vector<256x128xbf16>
    %cst_32 = arith.constant dense<0.000000e+00> : vector<256x256xf32>
    %45 = tpu.matmul %44, %15, %cst_32 {dimension_numbers = #tpu.dot_dimension_numbers<[1], [0], [0], [1], [0, 0, 1, 1], [], []>} : vector<256x128xbf16>, vector<128x256xbf16>, vector<256x256xf32> -> vector<256x256xf32>
    %46 = vector.extract_strided_slice %45 {offsets = [0, 0], sizes = [256, 128], strides = [1, 1]} : vector<256x256xf32> to vector<256x128xf32>
    %47 = arith.truncf %46 : vector<256x128xf32> to vector<256x128xbf16>
    %48 = arith.truncf %38 : vector<256x128xf32> to vector<256x128xbf16>
    %cst_33 = arith.constant dense<0.000000e+00> : vector<256x256xf32>
    %49 = tpu.matmul %48, %15, %cst_33 {dimension_numbers = #tpu.dot_dimension_numbers<[1], [0], [0], [1], [0, 0, 1, 1], [], []>} : vector<256x128xbf16>, vector<128x256xbf16>, vector<256x256xf32> -> vector<256x256xf32>
    %50 = vector.extract_strided_slice %49 {offsets = [0, 128], sizes = [256, 128], strides = [1, 1]} : vector<256x256xf32> to vector<256x128xf32>
    %51 = arith.truncf %50 : vector<256x128xf32> to vector<256x128xbf16>
    %cst_34 = arith.constant dense<0.000000e+00> : vector<256x128xf32>
    %52 = tpu.matmul %5, %47, %cst_34 {dimension_numbers = #tpu.dot_dimension_numbers<[1], [0], [0], [1], [0, 0, 1, 1], [], []>} : vector<256x256xbf16>, vector<256x128xbf16>, vector<256x128xf32> -> vector<256x128xf32>
    %53 = vector.broadcast %21 : vector<1x128xf32> to vector<256x128xf32>
    %54 = arith.addf %52, %53 : vector<256x128xf32>
    %cst_35 = arith.constant 0.000000e+00 : f32
    %55 = vector.broadcast %cst_35 : f32 to vector<256x128xf32>
    %56 = arith.maximumf %54, %55 : vector<256x128xf32>
    %cst_36 = arith.constant dense<0.000000e+00> : vector<256x128xf32>
    %57 = tpu.matmul %7, %51, %cst_36 {dimension_numbers = #tpu.dot_dimension_numbers<[1], [0], [0], [1], [0, 0, 1, 1], [], []>} : vector<256x256xbf16>, vector<256x128xbf16>, vector<256x128xf32> -> vector<256x128xf32>
    %58 = vector.broadcast %23 : vector<1x128xf32> to vector<256x128xf32>
    %59 = arith.addf %57, %58 : vector<256x128xf32>
    %cst_37 = arith.constant 0.000000e+00 : f32
    %60 = vector.broadcast %cst_37 : f32 to vector<256x128xf32>
    %61 = arith.maximumf %59, %60 : vector<256x128xf32>
    %cst_38 = arith.constant dense<0.000000e+00> : vector<256x128xf32>
    %62 = tpu.matmul %9, %51, %cst_38 {dimension_numbers = #tpu.dot_dimension_numbers<[1], [0], [0], [1], [0, 0, 1, 1], [], []>} : vector<256x256xbf16>, vector<256x128xbf16>, vector<256x128xf32> -> vector<256x128xf32>
    %63 = vector.broadcast %23 : vector<1x128xf32> to vector<256x128xf32>
    %64 = arith.addf %62, %63 : vector<256x128xf32>
    %cst_39 = arith.constant 0.000000e+00 : f32
    %65 = vector.broadcast %cst_39 : f32 to vector<256x128xf32>
    %66 = arith.maximumf %64, %65 : vector<256x128xf32>
    %67 = tpu.iota {dimensions = array<i32: 0>} : vector<256x1xi32>
    %68 = vector.broadcast %1 : i32 to vector<256x1xi32>
    %69 = arith.cmpi slt, %67, %68 : vector<256x1xi32>
    %70 = arith.extui %69 : vector<256x1xi1> to vector<256x1xi32>
    %71 = arith.sitofp %70 : vector<256x1xi32> to vector<256x1xf32>
    %c0_40 = arith.constant 0 : index
    %c0_41 = arith.constant 0 : index
    %c0_42 = arith.constant 0 : index
    %72 = vector.load %arg11[%c0_40, %c0_41, %c0_42] : memref<1x8x128xf32, #tpu.memory_space<vmem>>, vector<1x8x128xf32>
    %73 = vector.shape_cast %72 : vector<1x8x128xf32> to vector<8x128xf32>
    %c0_43 = arith.constant 0 : index
    %c0_44 = arith.constant 0 : index
    %c0_45 = arith.constant 0 : index
    %74 = vector.load %arg12[%c0_43, %c0_44, %c0_45] : memref<1x1x128xf32, #tpu.memory_space<vmem>>, vector<1x1x128xf32>
    %75 = vector.shape_cast %74 : vector<1x1x128xf32> to vector<1x128xf32>
    %cst_46 = arith.constant dense<0.000000e+00> : vector<256xf32>
    %76 = vector.multi_reduction <add>, %33, %cst_46 [1] : vector<256x128xf32> to vector<256xf32>
    %77 = vector.shape_cast %76 : vector<256xf32> to vector<256x1xf32>
    %78 = arith.mulf %77, %71 : vector<256x1xf32>
    %cst_47 = arith.constant dense<0.000000e+00> : vector<1xf32>
    %79 = vector.multi_reduction <add>, %78, %cst_47 [0] : vector<256x1xf32> to vector<1xf32>
    %80 = vector.shape_cast %79 : vector<1xf32> to vector<1x1xf32>
    %81 = vector.broadcast %3 : f32 to vector<1x1xf32>
    %82 = arith.mulf %80, %81 : vector<1x1xf32>
    %83 = vector.extract_strided_slice %73 {offsets = [0, 0], sizes = [1, 128], strides = [1, 1]} : vector<8x128xf32> to vector<1x128xf32>
    %84 = vector.broadcast %82 : vector<1x1xf32> to vector<1x128xf32>
    %85 = arith.mulf %84, %83 : vector<1x128xf32>
    %86 = arith.addf %75, %85 : vector<1x128xf32>
    %cst_48 = arith.constant dense<0.000000e+00> : vector<256xf32>
    %87 = vector.multi_reduction <add>, %56, %cst_48 [1] : vector<256x128xf32> to vector<256xf32>
    %88 = vector.shape_cast %87 : vector<256xf32> to vector<256x1xf32>
    %89 = arith.mulf %88, %71 : vector<256x1xf32>
    %cst_49 = arith.constant dense<0.000000e+00> : vector<1xf32>
    %90 = vector.multi_reduction <add>, %89, %cst_49 [0] : vector<256x1xf32> to vector<1xf32>
    %91 = vector.shape_cast %90 : vector<1xf32> to vector<1x1xf32>
    %92 = vector.broadcast %3 : f32 to vector<1x1xf32>
    %93 = arith.mulf %91, %92 : vector<1x1xf32>
    %94 = vector.extract_strided_slice %73 {offsets = [1, 0], sizes = [1, 128], strides = [1, 1]} : vector<8x128xf32> to vector<1x128xf32>
    %95 = vector.broadcast %93 : vector<1x1xf32> to vector<1x128xf32>
    %96 = arith.mulf %95, %94 : vector<1x128xf32>
    %97 = arith.addf %86, %96 : vector<1x128xf32>
    %cst_50 = arith.constant dense<0.000000e+00> : vector<256xf32>
    %98 = vector.multi_reduction <add>, %38, %cst_50 [1] : vector<256x128xf32> to vector<256xf32>
    %99 = vector.shape_cast %98 : vector<256xf32> to vector<256x1xf32>
    %100 = arith.mulf %99, %71 : vector<256x1xf32>
    %cst_51 = arith.constant dense<0.000000e+00> : vector<1xf32>
    %101 = vector.multi_reduction <add>, %100, %cst_51 [0] : vector<256x1xf32> to vector<1xf32>
    %102 = vector.shape_cast %101 : vector<1xf32> to vector<1x1xf32>
    %103 = vector.broadcast %3 : f32 to vector<1x1xf32>
    %104 = arith.mulf %102, %103 : vector<1x1xf32>
    %105 = vector.extract_strided_slice %73 {offsets = [2, 0], sizes = [1, 128], strides = [1, 1]} : vector<8x128xf32> to vector<1x128xf32>
    %106 = vector.broadcast %104 : vector<1x1xf32> to vector<1x128xf32>
    %107 = arith.mulf %106, %105 : vector<1x128xf32>
    %108 = arith.addf %97, %107 : vector<1x128xf32>
    %cst_52 = arith.constant dense<0.000000e+00> : vector<256xf32>
    %109 = vector.multi_reduction <add>, %61, %cst_52 [1] : vector<256x128xf32> to vector<256xf32>
    %110 = vector.shape_cast %109 : vector<256xf32> to vector<256x1xf32>
    %111 = arith.mulf %110, %71 : vector<256x1xf32>
    %cst_53 = arith.constant dense<0.000000e+00> : vector<1xf32>
    %112 = vector.multi_reduction <add>, %111, %cst_53 [0] : vector<256x1xf32> to vector<1xf32>
    %113 = vector.shape_cast %112 : vector<1xf32> to vector<1x1xf32>
    %114 = vector.broadcast %3 : f32 to vector<1x1xf32>
    %115 = arith.mulf %113, %114 : vector<1x1xf32>
    %116 = vector.extract_strided_slice %73 {offsets = [3, 0], sizes = [1, 128], strides = [1, 1]} : vector<8x128xf32> to vector<1x128xf32>
    %117 = vector.broadcast %115 : vector<1x1xf32> to vector<1x128xf32>
    %118 = arith.mulf %117, %116 : vector<1x128xf32>
    %119 = arith.addf %108, %118 : vector<1x128xf32>
    %cst_54 = arith.constant dense<0.000000e+00> : vector<256xf32>
    %120 = vector.multi_reduction <add>, %43, %cst_54 [1] : vector<256x128xf32> to vector<256xf32>
    %121 = vector.shape_cast %120 : vector<256xf32> to vector<256x1xf32>
    %122 = arith.mulf %121, %71 : vector<256x1xf32>
    %cst_55 = arith.constant dense<0.000000e+00> : vector<1xf32>
    %123 = vector.multi_reduction <add>, %122, %cst_55 [0] : vector<256x1xf32> to vector<1xf32>
    %124 = vector.shape_cast %123 : vector<1xf32> to vector<1x1xf32>
    %125 = vector.broadcast %3 : f32 to vector<1x1xf32>
    %126 = arith.mulf %124, %125 : vector<1x1xf32>
    %127 = vector.extract_strided_slice %73 {offsets = [4, 0], sizes = [1, 128], strides = [1, 1]} : vector<8x128xf32> to vector<1x128xf32>
    %128 = vector.broadcast %126 : vector<1x1xf32> to vector<1x128xf32>
    %129 = arith.mulf %128, %127 : vector<1x128xf32>
    %130 = arith.addf %119, %129 : vector<1x128xf32>
    %cst_56 = arith.constant dense<0.000000e+00> : vector<256xf32>
    %131 = vector.multi_reduction <add>, %66, %cst_56 [1] : vector<256x128xf32> to vector<256xf32>
    %132 = vector.shape_cast %131 : vector<256xf32> to vector<256x1xf32>
    %133 = arith.mulf %132, %71 : vector<256x1xf32>
    %cst_57 = arith.constant dense<0.000000e+00> : vector<1xf32>
    %134 = vector.multi_reduction <add>, %133, %cst_57 [0] : vector<256x1xf32> to vector<1xf32>
    %135 = vector.shape_cast %134 : vector<1xf32> to vector<1x1xf32>
    %136 = vector.broadcast %3 : f32 to vector<1x1xf32>
    %137 = arith.mulf %135, %136 : vector<1x1xf32>
    %138 = vector.extract_strided_slice %73 {offsets = [5, 0], sizes = [1, 128], strides = [1, 1]} : vector<8x128xf32> to vector<1x128xf32>
    %139 = vector.broadcast %137 : vector<1x1xf32> to vector<1x128xf32>
    %140 = arith.mulf %139, %138 : vector<1x128xf32>
    %141 = arith.addf %130, %140 : vector<1x128xf32>
    %cst_58 = arith.constant 0.000000e+00 : f32
    %142 = vector.broadcast %cst_58 : f32 to vector<1x128xf32>
    %143 = arith.maximumf %141, %142 : vector<1x128xf32>
    %c0_59 = arith.constant 0 : index
    %c0_60 = arith.constant 0 : index
    %c0_61 = arith.constant 0 : index
    %144 = vector.load %arg13[%c0_59, %c0_60, %c0_61] : memref<1x128x8xf32, #tpu.memory_space<vmem>>, vector<1x128x8xf32>
    %145 = vector.shape_cast %144 : vector<1x128x8xf32> to vector<128x8xf32>
    %cst_62 = arith.constant dense<0.000000e+00> : vector<1x8xf32>
    %146 = tpu.matmul %143, %145, %cst_62 {dimension_numbers = #tpu.dot_dimension_numbers<[1], [0], [0], [1], [0, 0, 1, 1], [], []>} : vector<1x128xf32>, vector<128x8xf32>, vector<1x8xf32> -> vector<1x8xf32>
    %c0_63 = arith.constant 0 : index
    %c0_64 = arith.constant 0 : index
    %c0_65 = arith.constant 0 : index
    %147 = vector.load %arg14[%c0_63, %c0_64, %c0_65] : memref<1x1x8xf32, #tpu.memory_space<vmem>>, vector<1x1x8xf32>
    %148 = vector.shape_cast %147 : vector<1x1x8xf32> to vector<1x8xf32>
    %149 = arith.addf %146, %148 : vector<1x8xf32>
    %150 = arith.negf %149 : vector<1x8xf32>
    %151 = math.exp %150 : vector<1x8xf32>
    %cst_66 = arith.constant 1.000000e+00 : f32
    %152 = vector.broadcast %cst_66 : f32 to vector<1x8xf32>
    %153 = arith.addf %152, %151 : vector<1x8xf32>
    %154 = arith.divf %152, %153 : vector<1x8xf32>
    %c0_67 = arith.constant 0 : index
    %c0_68 = arith.constant 0 : index
    %c0_69 = arith.constant 0 : index
    %155 = vector.load %arg15[%c0_67, %c0_68, %c0_69] : memref<1x1x8xf32, #tpu.memory_space<vmem>>, vector<1x1x8xf32>
    %156 = vector.shape_cast %155 : vector<1x1x8xf32> to vector<1x8xf32>
    %157 = arith.mulf %154, %156 : vector<1x8xf32>
    %158 = vector.extract_strided_slice %157 {offsets = [0, 0], sizes = [1, 1], strides = [1, 1]} : vector<1x8xf32> to vector<1x1xf32>
    %159 = vector.broadcast %158 : vector<1x1xf32> to vector<256x128xf32>
    %160 = arith.mulf %159, %33 : vector<256x128xf32>
    %161 = vector.extract_strided_slice %157 {offsets = [0, 1], sizes = [1, 1], strides = [1, 1]} : vector<1x8xf32> to vector<1x1xf32>
    %162 = vector.broadcast %161 : vector<1x1xf32> to vector<256x128xf32>
    %163 = arith.mulf %162, %56 : vector<256x128xf32>
    %164 = arith.addf %160, %163 : vector<256x128xf32>
    %165 = vector.extract_strided_slice %157 {offsets = [0, 2], sizes = [1, 1], strides = [1, 1]} : vector<1x8xf32> to vector<1x1xf32>
    %166 = vector.broadcast %165 : vector<1x1xf32> to vector<256x128xf32>
    %167 = arith.mulf %166, %38 : vector<256x128xf32>
    %168 = arith.addf %164, %167 : vector<256x128xf32>
    %169 = vector.extract_strided_slice %157 {offsets = [0, 3], sizes = [1, 1], strides = [1, 1]} : vector<1x8xf32> to vector<1x1xf32>
    %170 = vector.broadcast %169 : vector<1x1xf32> to vector<256x128xf32>
    %171 = arith.mulf %170, %61 : vector<256x128xf32>
    %172 = arith.addf %168, %171 : vector<256x128xf32>
    %173 = vector.extract_strided_slice %157 {offsets = [0, 4], sizes = [1, 1], strides = [1, 1]} : vector<1x8xf32> to vector<1x1xf32>
    %174 = vector.broadcast %173 : vector<1x1xf32> to vector<256x128xf32>
    %175 = arith.mulf %174, %43 : vector<256x128xf32>
    %176 = arith.addf %172, %175 : vector<256x128xf32>
    %177 = vector.extract_strided_slice %157 {offsets = [0, 5], sizes = [1, 1], strides = [1, 1]} : vector<1x8xf32> to vector<1x1xf32>
    %178 = vector.broadcast %177 : vector<1x1xf32> to vector<256x128xf32>
    %179 = arith.mulf %178, %66 : vector<256x128xf32>
    %180 = arith.addf %176, %179 : vector<256x128xf32>
    %181 = arith.index_cast %arg0 : i32 to index
    %182 = memref.load %arg3[%181] : memref<2xf32, #tpu.memory_space<smem>>
    %183 = vector.broadcast %182 : f32 to vector<256x128xf32>
    %184 = arith.addf %180, %183 : vector<256x128xf32>
    %c0_70 = arith.constant 0 : index
    %c0_71 = arith.constant 0 : index
    %c0_72 = arith.constant 0 : index
    %185 = vector.load %arg16[%c0_70, %c0_71, %c0_72] : memref<1x256x128xf32, #tpu.memory_space<vmem>>, vector<1x256x128xf32>
    %186 = vector.shape_cast %185 : vector<1x256x128xf32> to vector<256x128xf32>
    %187 = vector.shape_cast %184 : vector<256x128xf32> to vector<1x256x128xf32>
    tpu.vector_store %arg16[%c0_70, %c0_71, %c0_72], %187 {strides = array<i32>} : memref<1x256x128xf32, #tpu.memory_space<vmem>>, vector<1x256x128xf32>,
    return
  }
  func.func @transform_0(%arg0: i32) -> i32 {
    %c0_i32 = arith.constant 0 : i32
    %c0_i32_0 = arith.constant 0 : i32
    return %c0_i32 : i32
  }
  func.func @transform_1(%arg0: i32) -> i32 {
    %c0_i32 = arith.constant 0 : i32
    %c0_i32_0 = arith.constant 0 : i32
    return %c0_i32 : i32
  }
  func.func @transform_2(%arg0: i32) -> i32 {
    %c0_i32 = arith.constant 0 : i32
    %c0_i32_0 = arith.constant 0 : i32
    return %c0_i32 : i32
  }
  func.func @transform_3(%arg0: i32) -> (i32, i32, i32) {
    %c0_i32 = arith.constant 0 : i32
    %c0_i32_0 = arith.constant 0 : i32
    %c0_i32_1 = arith.constant 0 : i32
    return %arg0, %c0_i32, %c0_i32_0 : i32, i32, i32
  }
  func.func @transform_4(%arg0: i32) -> (i32, i32, i32) {
    %c0_i32 = arith.constant 0 : i32
    %c0_i32_0 = arith.constant 0 : i32
    %c0_i32_1 = arith.constant 0 : i32
    return %arg0, %c0_i32, %c0_i32_0 : i32, i32, i32
  }
  func.func @transform_5(%arg0: i32) -> (i32, i32, i32) {
    %c0_i32 = arith.constant 0 : i32
    %c0_i32_0 = arith.constant 0 : i32
    %c0_i32_1 = arith.constant 0 : i32
    return %arg0, %c0_i32, %c0_i32_0 : i32, i32, i32
  }
  func.func @transform_6(%arg0: i32) -> (i32, i32, i32) {
    %c0_i32 = arith.constant 0 : i32
    %c0_i32_0 = arith.constant 0 : i32
    %c0_i32_1 = arith.constant 0 : i32
    return %arg0, %c0_i32, %c0_i32_0 : i32, i32, i32
  }
  func.func @transform_7(%arg0: i32) -> (i32, i32, i32) {
    %c0_i32 = arith.constant 0 : i32
    %c0_i32_0 = arith.constant 0 : i32
    %c0_i32_1 = arith.constant 0 : i32
    return %arg0, %c0_i32, %c0_i32_0 : i32, i32, i32
  }
  func.func @transform_8(%arg0: i32) -> (i32, i32, i32) {
    %c0_i32 = arith.constant 0 : i32
    %c0_i32_0 = arith.constant 0 : i32
    %c0_i32_1 = arith.constant 0 : i32
    return %arg0, %c0_i32, %c0_i32_0 : i32, i32, i32
  }
  func.func @transform_9(%arg0: i32) -> (i32, i32, i32) {
    %c0_i32 = arith.constant 0 : i32
    %c0_i32_0 = arith.constant 0 : i32
    %c0_i32_1 = arith.constant 0 : i32
    return %arg0, %c0_i32, %c0_i32_0 : i32, i32, i32
  }
  func.func @transform_10(%arg0: i32) -> (i32, i32, i32) {
    %c0_i32 = arith.constant 0 : i32
    %c0_i32_0 = arith.constant 0 : i32
    %c0_i32_1 = arith.constant 0 : i32
    return %arg0, %c0_i32, %c0_i32_0 : i32, i32, i32
  }
  func.func @transform_11(%arg0: i32) -> (i32, i32, i32) {
    %c0_i32 = arith.constant 0 : i32
    %c0_i32_0 = arith.constant 0 : i32
    %c0_i32_1 = arith.constant 0 : i32
    return %arg0, %c0_i32, %c0_i32_0 : i32, i32, i32
  }
  func.func @transform_12(%arg0: i32) -> (i32, i32, i32) {
    %c0_i32 = arith.constant 0 : i32
    %c0_i32_0 = arith.constant 0 : i32
    %c0_i32_1 = arith.constant 0 : i32
    return %arg0, %c0_i32, %c0_i32_0 : i32, i32, i32
  }
  func.func @transform_13(%arg0: i32) -> (i32, i32, i32) {
    %c0_i32 = arith.constant 0 : i32
    %c0_i32_0 = arith.constant 0 : i32
    %c0_i32_1 = arith.constant 0 : i32
    return %arg0, %c0_i32, %c0_i32_0 : i32, i32, i32
  }
  func.func @transform_14(%arg0: i32) -> (i32, i32, i32) {
    %c0_i32 = arith.constant 0 : i32
    %c0_i32_0 = arith.constant 0 : i32
    %c0_i32_1 = arith.constant 0 : i32
    return %arg0, %c0_i32, %c0_i32_0 : i32, i32, i32
  }
  func.func @transform_15(%arg0: i32) -> (i32, i32, i32) {
    %c0_i32 = arith.constant 0 : i32
    %c0_i32_0 = arith.constant 0 : i32
    %c0_i32_1 = arith.constant 0 : i32
    return %arg0, %c0_i32, %c0_i32_0 : i32, i32, i32
  }
}

</mosaic_0001>

<bundles_post_ra>
// kernel: mmgcn_forward.1
= control target key start
LH: loop header
LB: loop body
LE: loop exit
PB: predicated region body
PF: predicated region fallthrough
CT: control target
= control target key end

     0   :  { %s10460_s0 = inlined_call_operand.vmem [shape: s32[2], index: 0, kind: input, shape index: {}]   ;;  %s10461_s1 = inlined_call_operand.vmem [shape: f32[2], index: 1, kind: input, shape index: {}]   ;;  %s10462_s2 = inlined_call_operand.vmem [shape: f32[2], index: 2, kind: input, shape index: {}]   ;;  %s10463_s3 = inlined_call_operand.vmem [shape: bf16[2,256,256], index: 3, kind: input, shape index: {}]   ;;  %s10464_s4 = inlined_call_operand.vmem [shape: bf16[2,256,256], index: 4, kind: input, shape index: {}]   ;;  %s10465_s5 = inlined_call_operand.vmem [shape: bf16[2,256,256], index: 5, kind: input, shape index: {}]   ;;  %s10466_s6 = inlined_call_operand.vmem [shape: bf16[2,256,128], index: 6, kind: input, shape index: {}]   ;;  %s10467_s7 = inlined_call_operand.vmem [shape: bf16[2,128,256], index: 7, kind: input, shape index: {}]   ;;  %s10468_s8 = inlined_call_operand.vmem [shape: bf16[2,128,256], index: 8, kind: input, shape index: {}]   ;;  %s10469_s9 = inlined_call_operand.vmem [shape: f32[2,4,128], index: 9, kind: input, shape index: {}]   ;;  %s10470_s10 = inlined_call_operand.vmem [shape: f32[2,8,128], index: 10, kind: input, shape index: {}]   ;;  %s10471_s11 = inlined_call_operand.vmem [shape: f32[2,1,128], index: 11, kind: input, shape index: {}]   ;;  %s10472_s12 = inlined_call_operand.vmem [shape: f32[2,128,8], index: 12, kind: input, shape index: {}]   ;;  %s10473_s13 = inlined_call_operand.vmem [shape: f32[2,1,8], index: 13, kind: input, shape index: {}]   ;;  %s10474_s14 = inlined_call_operand.vmem [shape: f32[2,1,8], index: 14, kind: input, shape index: {}]   ;;  %s10475_s15 = inlined_call_operand.vmem [shape: f32[2,256,128], index: 15, kind: output, shape index: {}]  }
   0x1   :  { %10853 = sst [smem:[#allocation204_spill]] %s10460_s0 }
   0x2   :  { %10854 = sst [smem:[#allocation205_spill]] %s10461_s1 }
   0x3   :  { %20 = vsyncpa [#allocation3], 0 }
   0x4   :  { %21 = vsyncpa [#allocation5], 0  ;;  %s6717_s18 = smov 0  }
   0x5 LB: > { %s6723_s19 = sadd.s32 4294967295, %s6622_s18   ;;  %p5208_p0 = scmp.ge.s32.totalorder %s6622_s18, 1  ;;  %s6622_s18 = sphi %s6717_s18, %s27_s18  }
   0x6   : > { %p433_p1 = scmp.lt.s32.totalorder %s6622_s18, 3  ;;  %s10855_s1 = sld [smem:[#allocation205_spill]] }
   0x7   : > { %p10476_p3 = scmp.eq.s32.totalorder %s6723_s19, 0  ;;  %s10857_s0 = sld [smem:[#allocation204_spill]] }
   0x8   : > { %p6730_p2 = pnand %p5208_p0, %p433_p1  ;;  %s468_s29 = sshll.u32 %s10462_s2, 4  ;;  %s6749_s29 = int_to_ptr.vmem [resolvable:$true] %s468_s29 }
   0xa   : > { %s10856_s23 = scalar_select %p6730_p2, 1, 0 }
   0xb   : > { %p6214_p4 = pneg %p6730_p2 }
   0xc   : > { %s457_s22 = sshll.u32 %s10855_s1, 4  ;;  %s458_s22 = int_to_ptr.vmem [resolvable:$true] %s457_s22 }
   0xd   : > { %s446_s26 = sshll.u32 %s10857_s0, 4  ;;  %p6745_p5 = pnand %p10476_p3, %p6214_p4  ;;  %s447_s26 = int_to_ptr.vmem [resolvable:$true] %s446_s26 }
   0xe   : > { %s6563_s16 = scalar_lea.vmem %s458_s22, 16  ;;  %p6571_p10 = scmp.lt.s32.totalorder %s458_s22, %s458_s22 }
   0xf   : > { %p6564_p6 = scmp.ne.s32.totalorder %s458_s22, %s6563_s16  ;;  %p6565_p7 = pneg %p6745_p5 }
  0x10   : > { %p6572_p11 = scmp.lt.s32.totalorder %s6563_s16, %s6563_s16 }
  0x11   : > { %p6566_p8 = pnand %p6565_p7, %p6564_p6 }
  0x12   : > { %p6573_p12 = por %p6572_p11, %p6571_p10 }
  0x13   : > { %p6567_p9 = pneg %p6566_p8 }
  0x15   : > { %p6574_p13 = pnand %p6573_p12, %p6567_p9 }
  0x17   : > { %6577 = shalt.err (!%p6574_p13)
}
  0x18   : > { %s6624_s17 = smov [#allocation4]   ;;  %s6578_s20 = scalar_lea.vmem %s447_s26, 16 }
  0x19   : > { %6220 = dma.vmem_to_smem (!%p6745_p5), %s458_s22, 16, %s6624_s17, [#allocation5]  }
  0x1a   : > { %p6579_p0 = scmp.ne.s32.totalorder %s447_s26, %s6578_s20  ;;  %p6586_p3 = scmp.lt.s32.totalorder %s447_s26, %s447_s26 }
  0x1b   : > { %p6587_p2 = scmp.lt.s32.totalorder %s6578_s20, %s6578_s20 }
  0x1c   : > { %p6581_p1 = pnand %p6579_p0, %p6565_p7 }
  0x1d   : > { %p6588_p6 = por %p6587_p2, %p6586_p3 }
  0x1e   : > { %p6582_p4 = pneg %p6581_p1 }
  0x20   : > { %p6589_p8 = pnand %p6588_p6, %p6582_p4 }
  0x22   : > { %6592 = shalt.err (!%p6589_p8)
}
  0x23   : > { %s6625_s21 = smov [#allocation2]   ;;  %s6593_s22 = scalar_lea.vmem %s6749_s29, 16 }
  0x24   : > { %6217 = dma.vmem_to_smem (!%p6745_p5), %s447_s26, 16, %s6625_s21, [#allocation3]  }
  0x25   : > { %p6594_p9 = scmp.ne.s32.totalorder %s6749_s29, %s6593_s22  ;;  %p6601_p12 = scmp.lt.s32.totalorder %s6749_s29, %s6749_s29 }
  0x26   : > { %p6602_p13 = scmp.lt.s32.totalorder %s6593_s22, %s6593_s22 }
  0x27   : > { %p6596_p10 = pnand %p6594_p9, %p6565_p7 }
  0x28   : > { %p6603_p2 = por %p6602_p13, %p6601_p12 }
  0x29   : > { %p6597_p11 = pneg %p6596_p10 }
  0x2b   : > { %p6604_p3 = pnand %p6603_p2, %p6597_p11 }
  0x2d   : > { %6607 = shalt.err (!%p6604_p3)
}
  0x2e   : > { %s6626_s24 = smov [#allocation6]   ;;  %p10859_p0 = scmp.ne.s32.totalorder %s10856_s23, 0 }
  0x2f   : > { %6223 = dma.vmem_to_smem (!%p6745_p5), %s6749_s29, 16, %s6626_s24, [#allocation5]  }
  0x30   : > { %569 = sbr.rel (%p10859_p0) target bundleno = 2289 (0x8f1), region = 80 }
  0x37   : > { %p10860_p1 = scmp.eq.s32.totalorder %s6723_s19, 0 }
  0x39   : > { %6613 = dma.done.wait (%p10860_p1), [#allocation3], 16   ;;  %p10861_p7 = pmov %p10860_p1 }
  0x3a   : > { %p10862_p4 = pmov %p10860_p1 }
  0x3b   : > { %6615 = vsyncadd (%p10861_p7), [#allocation3], 4294967280 }
  0x3c   : > { %6617 = dma.done.wait (%p10862_p4), [#allocation5], 32   ;;  %p10863_p6 = pmov %p10860_p1 }
  0x3e   : > { %6619 = vsyncadd (%p10863_p6), [#allocation5], 4294967264 }
  0x3f   : > { %583 = sfence }
  0x40   : > { %p673_p8 = scmp.lt.s32.totalorder %s6723_s19, 1  ;;  %v10478_v0 = vmov 0   ;;  %s731_s0 = sld [smem:[#allocation2 + %s6723_s19]] }
  0x41   : > { %1105 = vmatprep.mubr.bf16.mxu0 %v10478_v0  ;;  %1195 = vmatprep.mubr.bf16.mxu1 %v10478_v0  ;;  %s6633_s28 = smov 127   ;;  %s6634_s30 = smov 125  }
  0x42   : > { %s6787_s23 = scalar_select %p673_p8, %s6723_s19, 1 }
  0x43   : > { %s9486_s21 = sld [smem:[#allocation6 + %s6723_s19]] }
  0x44   : > { %s6790_s25 = sshll.u32 %s6787_s23, 8  ;;  %s6793_s26 = sshll.u32 %s6787_s23, 7 }
  0x45   : > { %s6799_s29 = scalar_lea.vmem %s10463_s3, %s6790_s25  ;;  %s6805_s17 = scalar_lea.vmem %s10464_s4, %s6790_s25 }
  0x46   : > { %s6811_s22 = scalar_lea.vmem %s10466_s6, %s6793_s26  ;;  %s6817_s1 = scalar_lea.vmem %s10467_s7, %s6793_s26  ;;  %v6293_v33 = vld [vmem:[%s6799_s29 + $0x4] ss:$8 sps:$4 sm:$0xff]  }
  0x47   : > { %v6251_v1 = vld [vmem:[%s6817_s1 + $0x4] ss:$8 sps:$4 sm:$0xff]   ;;  %v6253_v2 = vld [vmem:[%s6817_s1] ss:$8 sps:$4 sm:$0xff]   ;;  %v6254_v3 = vld [vmem:[%s6817_s1 + $0x14] ss:$8 sps:$4 sm:$0xff]   ;;  %s6845_s27 = scalar_lea.vmem %s10465_s5, %s6790_s25  ;;  %s7035_s16 = scalar_lea.vmem %s10468_s8, %s6793_s26 }
  0x48   : > { %1073 = vmatprep.subr.bf16.mxu0 %v6251_v1  ;;  %6174 = vmatprep.subr.bf16.mxu1 %v6251_v1  ;;  %v6256_v4 = vld [vmem:[%s6817_s1 + $0x10] ss:$8 sps:$4 sm:$0xff]   ;;  %v6257_v5 = vld [vmem:[%s6817_s1 + $0x24] ss:$8 sps:$4 sm:$0xff]   ;;  %v6259_v6 = vld [vmem:[%s6817_s1 + $0x20] ss:$8 sps:$4 sm:$0xff]  }
  0x49   : > { %1074 = vmatpush1.bf16.msra.mxu0 %v6253_v2  ;;  %6182 = vmatpush1.bf16.msra.mxu1 %v6253_v2  ;;  %v6260_v7 = vld [vmem:[%s6817_s1 + $0x34] ss:$8 sps:$4 sm:$0xff]   ;;  %v6262_v8 = vld [vmem:[%s6817_s1 + $0x30] ss:$8 sps:$4 sm:$0xff]   ;;  %v6263_v9 = vld [vmem:[%s6817_s1 + $0x44] ss:$8 sps:$4 sm:$0xff]  }
  0x4a   : > { %1075 = vmatprep.subr.bf16.mxu0 %v6254_v3  ;;  %6175 = vmatprep.subr.bf16.mxu1 %v6254_v3  ;;  %v6265_v10 = vld [vmem:[%s6817_s1 + $0x40] ss:$8 sps:$4 sm:$0xff]   ;;  %v6266_v11 = vld [vmem:[%s6817_s1 + $0x54] ss:$8 sps:$4 sm:$0xff]   ;;  %v6268_v12 = vld [vmem:[%s6817_s1 + $0x50] ss:$8 sps:$4 sm:$0xff]  }
  0x4b   : > { %v6269_v13 = vld [vmem:[%s6817_s1 + $0x64] ss:$8 sps:$4 sm:$0xff]   ;;  %v6271_v14 = vld [vmem:[%s6817_s1 + $0x60] ss:$8 sps:$4 sm:$0xff]   ;;  %v6272_v15 = vld [vmem:[%s6817_s1 + $0x74] ss:$8 sps:$4 sm:$0xff]  }
  0x4c   : > { %v6274_v16 = vld [vmem:[%s6817_s1 + $0x70] ss:$8 sps:$4 sm:$0xff]   ;;  %v6275_v17 = vld [vmem:[%s6811_s22] sm:$0xff]   ;;  %v6281_v18 = vld [vmem:[%s6811_s22 + $0x48] sm:$0xff]   ;;  %s5229_s20 = sshll.u32 %s6787_s23, 2 }
  0x4d   : > { %1076 = vmatpush1.bf16.msra.mxu0 %v6256_v4  ;;  %6183 = vmatpush1.bf16.msra.mxu1 %v6256_v4  ;;  %v6276_v19 = vld [vmem:[%s6811_s22 + $0x8] sm:$0xff]   ;;  %v6283_v20 = vld [vmem:[%s6811_s22 + $0x50] sm:$0xff]   ;;  %v6285_v22 = vld [vmem:[%s6811_s22 + $0x58] sm:$0xff]   ;;  %s7183_s24 = scalar_lea.vmem %s10469_s9, %s5229_s20  ;;  %s6636_s20 = smov 124  }
  0x4e   : > { %1077 = vmatprep.subr.bf16.mxu0 %v6257_v5  ;;  %6176 = vmatprep.subr.bf16.mxu1 %v6257_v5  ;;  %v6277_v21 = vld [vmem:[%s6811_s22 + $0x10] sm:$0xff]   ;;  %v6278_v23 = vld [vmem:[%s6811_s22 + $0x18] sm:$0xff]   ;;  %v6287_v24 = vld [vmem:[%s6811_s22 + $0x60] sm:$0xff]  }
  0x4f   : > { %v6279_v25 = vld [vmem:[%s6811_s22 + $0x20] sm:$0xff]   ;;  %v6288_v26 = vld [vmem:[%s6811_s22 + $0x68] sm:$0xff]   ;;  %v6289_v28 = vld [vmem:[%s6811_s22 + $0x70] sm:$0xff]  }
  0x50   : > { %v6280_v27 = vld [vmem:[%s6811_s22 + $0x28] sm:$0xff]   ;;  %v6282_v29 = vld [vmem:[%s6811_s22 + $0x30] sm:$0xff]   ;;  %v6290_v30 = vld [vmem:[%s6811_s22 + $0x78] sm:$0xff]  }
  0x51   : > { %1078 = vmatpush1.bf16.msra.mxu0 %v6259_v6  ;;  %6184 = vmatpush1.bf16.msra.mxu1 %v6259_v6  ;;  %v6284_v31 = vld [vmem:[%s6811_s22 + $0x38] sm:$0xff]   ;;  %v6286_v32 = vld [vmem:[%s6811_s22 + $0x40] sm:$0xff]   ;;  %s713_s22 = scalar_lea.vmem %s10471_s11, %s6787_s23 }
  0x52   : > { %1079 = vmatprep.subr.bf16.mxu0 %v6260_v7  ;;  %6177 = vmatprep.subr.bf16.mxu1 %v6260_v7  ;;  %v6296_v34 = vld [vmem:[%s6805_s17 + $0x4] ss:$8 sps:$4 sm:$0xff]  }
  0x55   : > { %1080 = vmatpush1.bf16.msra.mxu0 %v6262_v8  ;;  %6185 = vmatpush1.bf16.msra.mxu1 %v6262_v8 }
  0x56   : > { %1081 = vmatprep.subr.bf16.mxu0 %v6263_v9  ;;  %6178 = vmatprep.subr.bf16.mxu1 %v6263_v9 }
  0x59   : > { %1082 = vmatpush1.bf16.msra.mxu0 %v6265_v10  ;;  %6186 = vmatpush1.bf16.msra.mxu1 %v6265_v10 }
  0x5a   : > { %1083 = vmatprep.subr.bf16.mxu0 %v6266_v11  ;;  %6179 = vmatprep.subr.bf16.mxu1 %v6266_v11 }
  0x5d   : > { %1084 = vmatpush1.bf16.msra.mxu0 %v6268_v12  ;;  %6187 = vmatpush1.bf16.msra.mxu1 %v6268_v12 }
  0x5e   : > { %1085 = vmatprep.subr.bf16.mxu0 %v6269_v13  ;;  %6180 = vmatprep.subr.bf16.mxu1 %v6269_v13 }
  0x61   : > { %1086 = vmatpush1.bf16.msra.mxu0 %v6271_v14  ;;  %6188 = vmatpush1.bf16.msra.mxu1 %v6271_v14 }
  0x62   : > { %1087 = vmatprep.subr.bf16.mxu0 %v6272_v15  ;;  %6181 = vmatprep.subr.bf16.mxu1 %v6272_v15 }
  0x65   : > { %1088 = vmatpush1.bf16.msra.mxu0 %v6274_v16  ;;  %6189 = vmatpush1.bf16.msra.mxu1 %v6274_v16 }
  0x68   : > { %1106 = vmatmul.mubr.bf16.vlgmr.msra.gmra.mrb[0].mxu0 %v6275_v17  ;;  %1196 = vmatmul.mubr.bf16.vlgmr.msra.gmra.mrb[0].mxu1 %v6281_v18 }
  0x69   : > { %1115 = vmatprep.mubr.bf16.mxu0 %v10478_v0  ;;  %1205 = vmatprep.mubr.bf16.mxu1 %v10478_v0 }
  0x70   : > { %1116 = vmatmul.mubr.bf16.gmra.mrb[4].mxu0 %v6276_v19  ;;  %1206 = vmatmul.mubr.bf16.gmra.mrb[4].mxu1 %v6283_v20 }
  0x71   : > { %1125 = vmatprep.mubr.bf16.mxu0 %v10478_v0  ;;  %1215 = vmatprep.mubr.bf16.mxu1 %v10478_v0 }
  0x78   : > { %1126 = vmatmul.mubr.bf16.gmra.mrb[8].mxu0 %v6277_v21  ;;  %1216 = vmatmul.mubr.bf16.gmra.mrb[8].mxu1 %v6285_v22 }
  0x79   : > { %1135 = vmatprep.mubr.bf16.mxu0 %v10478_v0  ;;  %1225 = vmatprep.mubr.bf16.mxu1 %v10478_v0 }
  0x80   : > { %1136 = vmatmul.mubr.bf16.gmra.mrb[12].mxu0 %v6278_v23  ;;  %1226 = vmatmul.mubr.bf16.gmra.mrb[12].mxu1 %v6287_v24 }
  0x81   : > { %1145 = vmatprep.mubr.bf16.mxu0 %v10478_v0  ;;  %1235 = vmatprep.mubr.bf16.mxu1 %v10478_v0 }
  0x88   : > { %1146 = vmatmul.mubr.bf16.gmra.mrb[16].mxu0 %v6279_v25  ;;  %1236 = vmatmul.mubr.bf16.gmra.mrb[16].mxu1 %v6288_v26 }
  0x89   : > { %1155 = vmatprep.mubr.bf16.mxu0 %v10478_v0  ;;  %1245 = vmatprep.mubr.bf16.mxu1 %v10478_v0 }
  0x90   : > { %1156 = vmatmul.mubr.bf16.gmra.mrb[20].mxu0 %v6280_v27  ;;  %1246 = vmatmul.mubr.bf16.gmra.mrb[20].mxu1 %v6289_v28 }
  0x91   : > { %1165 = vmatprep.mubr.bf16.mxu0 %v10478_v0  ;;  %1255 = vmatprep.mubr.bf16.mxu1 %v10478_v0 }
  0x98   : > { %1166 = vmatmul.mubr.bf16.gmra.mrb[24].mxu0 %v6282_v29  ;;  %1256 = vmatmul.mubr.bf16.gmra.mrb[24].mxu1 %v6290_v30 }
  0x99   : > { %1175 = vmatprep.mubr.bf16.mxu0 %v10478_v0  ;;  %1494 = vmatprep.mubr.bf16.mxu1 %v6293_v33 }
  0xa0   : > { %1176 = vmatmul.mubr.bf16.gmra.mrb[28].mxu0 %v6284_v31 }
  0xa1   : > { %1185 = vmatprep.mubr.bf16.mxu0 %v10478_v0 }
  0xa8   : > { %1186 = vmatmul.mubr.bf16.gmra.mrb[32].mxu0 %v6286_v32 }
  0xa9   : > { %1851 = vmatprep.mubr.bf16.mxu0 %v6296_v34 }
 0x13b   : > { %v6873_v35 = vpop.f32.mrb[0].mxu0  ;;  %v6875_v36 = vpop.f32.mrb[0].mxu1 }
 0x13c   : > { %v1109_v37 = vpop.f32.mrb[1].mxu0  ;;  %v1199_v38 = vpop.f32.mrb[1].mxu1 }
 0x13d   : > { %v6877_v39 = vpop.f32.mrb[2].mxu0  ;;  %v6879_v40 = vpop.f32.mrb[2].mxu1 }
 0x13e   : > { %v1266_v41 = vpack.c.bf16 %v6877_v39, %v6873_v35  ;;  %v1113_v42 = vpop.f32.mrb[3].mxu0  ;;  %v1275_v43 = vpack.c.bf16 %v6879_v40, %v6875_v36  ;;  %v1203_v44 = vpop.f32.mrb[3].mxu1  ;;  %v6291_v35 = vld [vmem:[%s6799_s29] ss:$8 sps:$4 sm:$0xff]   ;;  %v6297_v39 = vld [vmem:[%s6799_s29 + $0x14] ss:$8 sps:$4 sm:$0xff]  }
 0x13f   : > { %v6885_v45 = vpack.c.bf16 %v1113_v42, %v1109_v37  ;;  %v6887_v46 = vpack.c.bf16 %v1203_v44, %v1199_v38  ;;  %v6294_v36 = vld [vmem:[%s6805_s17] ss:$8 sps:$4 sm:$0xff]   ;;  %v6300_v40 = vld [vmem:[%s6805_s17 + $0x14] ss:$8 sps:$4 sm:$0xff]  }
 0x143   : > { %v6889_v47 = vpop.f32.mrb[4].mxu0  ;;  %v6891_v48 = vpop.f32.mrb[4].mxu1 }
 0x144   : > { %v1119_v49 = vpop.f32.mrb[5].mxu0  ;;  %v1209_v50 = vpop.f32.mrb[5].mxu1 }
 0x145   : > { %v6893_v51 = vpop.f32.mrb[6].mxu0  ;;  %v6895_v52 = vpop.f32.mrb[6].mxu1 }
 0x146   : > { %v1267_v53 = vpack.c.bf16 %v6893_v51, %v6889_v47  ;;  %v1123_v54 = vpop.f32.mrb[7].mxu0  ;;  %v1276_v55 = vpack.c.bf16 %v6895_v52, %v6891_v48  ;;  %v1213_v56 = vpop.f32.mrb[7].mxu1  ;;  %v6303_v47 = vld [vmem:[%s6799_s29 + $0x24] ss:$8 sps:$4 sm:$0xff]   ;;  %v6311_v51 = vld [vmem:[%s6805_s17 + $0x20] ss:$8 sps:$4 sm:$0xff]  }
 0x147   : > { %v6901_v57 = vpack.c.bf16 %v1123_v54, %v1119_v49  ;;  %v6903_v58 = vpack.c.bf16 %v1213_v56, %v1209_v50  ;;  %v6309_v48 = vld [vmem:[%s6805_s17 + $0x24] ss:$8 sps:$4 sm:$0xff]   ;;  %v6318_v52 = vld [vmem:[%s6805_s17 + $0x34] ss:$8 sps:$4 sm:$0xff]  }
 0x14b   : > { %v6905_v59 = vpop.f32.mrb[8].mxu0  ;;  %v6907_v60 = vpop.f32.mrb[8].mxu1 }
 0x14c   : > { %v1129_v61 = vpop.f32.mrb[9].mxu0  ;;  %v1219_v62 = vpop.f32.mrb[9].mxu1 }
 0x14d   : > { %v6909_v63 = vpop.f32.mrb[10].mxu0  ;;  %v6911_v1 = vpop.f32.mrb[10].mxu1 }
 0x14e   : > { %v1268_v2 = vpack.c.bf16 %v6909_v63, %v6905_v59  ;;  %v1133_v3 = vpop.f32.mrb[11].mxu0  ;;  %v1277_v4 = vpack.c.bf16 %v6911_v1, %v6907_v60  ;;  %v1223_v5 = vpop.f32.mrb[11].mxu1  ;;  %v6314_v59 = vld [vmem:[%s6799_s29 + $0x40] ss:$8 sps:$4 sm:$0xff]   ;;  %v6315_v60 = vld [vmem:[%s6799_s29 + $0x54] ss:$8 sps:$4 sm:$0xff]  }
 0x14f   : > { %v6917_v6 = vpack.c.bf16 %v1133_v3, %v1129_v61  ;;  %v6919_v7 = vpack.c.bf16 %v1223_v5, %v1219_v62  ;;  %v6329_v63 = vld [vmem:[%s6805_s17 + $0x40] ss:$8 sps:$4 sm:$0xff]   ;;  %v6335_v1 = vld [vmem:[%s6805_s17 + $0x54] ss:$8 sps:$4 sm:$0xff]  }
 0x153   : > { %v6921_v8 = vpop.f32.mrb[12].mxu0  ;;  %v6923_v9 = vpop.f32.mrb[12].mxu1 }
 0x154   : > { %v1139_v10 = vpop.f32.mrb[13].mxu0  ;;  %v1229_v11 = vpop.f32.mrb[13].mxu1 }
 0x155   : > { %v6925_v12 = vpop.f32.mrb[14].mxu0  ;;  %v6927_v13 = vpop.f32.mrb[14].mxu1 }
 0x156   : > { %v1269_v14 = vpack.c.bf16 %v6925_v12, %v6921_v8  ;;  %v1143_v15 = vpop.f32.mrb[15].mxu0  ;;  %v1278_v16 = vpack.c.bf16 %v6927_v13, %v6923_v9  ;;  %v1233_v17 = vpop.f32.mrb[15].mxu1  ;;  %v6338_v8 = vld [vmem:[%s6805_s17 + $0x50] ss:$8 sps:$4 sm:$0xff]   ;;  %v6341_v9 = vld [vmem:[%s6805_s17 + $0x64] ss:$8 sps:$4 sm:$0xff]  }
 0x157   : > { %v6933_v18 = vpack.c.bf16 %v1143_v15, %v1139_v10  ;;  %v6935_v19 = vpack.c.bf16 %v1233_v17, %v1229_v11  ;;  %v6323_v12 = vld [vmem:[%s6799_s29 + $0x60] ss:$8 sps:$4 sm:$0xff]   ;;  %v6324_v13 = vld [vmem:[%s6799_s29 + $0x74] ss:$8 sps:$4 sm:$0xff]  }
 0x15b   : > { %v6937_v20 = vpop.f32.mrb[16].mxu0  ;;  %v6939_v21 = vpop.f32.mrb[16].mxu1 }
 0x15c   : > { %v1149_v22 = vpop.f32.mrb[17].mxu0  ;;  %v1239_v23 = vpop.f32.mrb[17].mxu1 }
 0x15d   : > { %v1151_v24 = vpop.f32.mrb[18].mxu0  ;;  %v1241_v25 = vpop.f32.mrb[18].mxu1 }
 0x15e   : > { %v1270_v26 = vpack.c.bf16 %v1151_v24, %v6937_v20  ;;  %v1153_v27 = vpop.f32.mrb[19].mxu0  ;;  %v1279_v28 = vpack.c.bf16 %v1241_v25, %v6939_v21  ;;  %v1243_v29 = vpop.f32.mrb[19].mxu1 }
 0x15f   : > { %v6943_v30 = vpack.c.bf16 %v1153_v27, %v1149_v22  ;;  %v6945_v31 = vpack.c.bf16 %v1243_v29, %v1239_v23 }
 0x163   : > { %v1157_v32 = vpop.f32.mrb[20].mxu0  ;;  %v1247_v33 = vpop.f32.mrb[20].mxu1 }
 0x164   : > { %v1159_v34 = vpop.f32.mrb[21].mxu0  ;;  %v1249_v37 = vpop.f32.mrb[21].mxu1 }
 0x165   : > { %v1161_v38 = vpop.f32.mrb[22].mxu0  ;;  %v1251_v42 = vpop.f32.mrb[22].mxu1 }
 0x166   : > { %v1271_v44 = vpack.c.bf16 %v1161_v38, %v1157_v32  ;;  %v1163_v49 = vpop.f32.mrb[23].mxu0  ;;  %v1280_v50 = vpack.c.bf16 %v1251_v42, %v1247_v33  ;;  %v1253_v54 = vpop.f32.mrb[23].mxu1 }
 0x167   : > { %v6947_v56 = vpack.c.bf16 %v1163_v49, %v1159_v34  ;;  %v6949_v61 = vpack.c.bf16 %v1253_v54, %v1249_v37 }
 0x16b   : > { %v1167_v62 = vpop.f32.mrb[24].mxu0  ;;  %v1257_v3 = vpop.f32.mrb[24].mxu1 }
 0x16c   : > { %v1169_v5 = vpop.f32.mrb[25].mxu0  ;;  %v1259_v10 = vpop.f32.mrb[25].mxu1 }
 0x16d   : > { %v1171_v11 = vpop.f32.mrb[26].mxu0  ;;  %v1261_v15 = vpop.f32.mrb[26].mxu1 }
 0x16e   : > { %v1272_v17 = vpack.c.bf16 %v1171_v11, %v1167_v62  ;;  %v1173_v20 = vpop.f32.mrb[27].mxu0  ;;  %v1281_v21 = vpack.c.bf16 %v1261_v15, %v1257_v3  ;;  %v1263_v22 = vpop.f32.mrb[27].mxu1  ;;  %v7067_v3 = vld [vmem:[%s7035_s16 + $0x20] ss:$8 sps:$4 sm:$0xff]   ;;  %v6339_v11 = vld [vmem:[%s6799_s29 + $0xa4] ss:$8 sps:$4 sm:$0xff]  }
 0x16f   : > { %v6951_v23 = vpack.c.bf16 %v1173_v20, %v1169_v5  ;;  %v6953_v24 = vpack.c.bf16 %v1263_v22, %v1259_v10  ;;  %v7070_v5 = vld [vmem:[%s7035_s16 + $0x24] ss:$8 sps:$4 sm:$0xff]   ;;  %v6337_v10 = vld [vmem:[%s6799_s29 + $0x90] ss:$8 sps:$4 sm:$0xff]  }
 0x170   : > { %v6362_v15 = vld [vmem:[%s6805_s17 + $0x90] ss:$8 sps:$4 sm:$0xff]   ;;  %v7085_v22 = vld [vmem:[%s7035_s16 + $0x44] ss:$8 sps:$4 sm:$0xff]  }
 0x171   : > { %v7079_v20 = vld [vmem:[%s7035_s16 + $0x30] ss:$8 sps:$4 sm:$0xff]  }
 0x173   : > { %v1177_v25 = vpop.f32.mrb[28].mxu0 }
 0x174   : > { %v1179_v27 = vpop.f32.mrb[29].mxu0 }
 0x175   : > { %v1181_v29 = vpop.f32.mrb[30].mxu0 }
 0x176   : > { %v1273_v32 = vpack.c.bf16 %v1181_v29, %v1177_v25  ;;  %v1183_v33 = vpop.f32.mrb[31].mxu0  ;;  %v6345_v25 = vld [vmem:[%s6799_s29 + $0xb4] ss:$8 sps:$4 sm:$0xff]  }
 0x177   : > { %v6955_v34 = vpack.c.bf16 %v1183_v33, %v1179_v27  ;;  %v6368_v27 = vld [vmem:[%s6805_s17 + $0xa0] ss:$8 sps:$4 sm:$0xff]   ;;  %v6372_v29 = vld [vmem:[%s6805_s17 + $0xb4] ss:$8 sps:$4 sm:$0xff]   ;;  %v7102_v33 = vld [vmem:[%s7035_s16 + $0x50] ss:$8 sps:$4 sm:$0xff]  }
 0x17b   : > { %v1187_v37 = vpop.f32.mrb[32].mxu0 }
 0x17c   : > { %v1189_v38 = vpop.f32.mrb[33].mxu0 }
 0x17d   : > { %v1191_v42 = vpop.f32.mrb[34].mxu0 }
 0x17e   : > { %v1274_v49 = vpack.c.bf16 %v1191_v42, %v1187_v37  ;;  %v1193_v54 = vpop.f32.mrb[35].mxu0  ;;  %v6351_v37 = vld [vmem:[%s6799_s29 + $0xc4] ss:$8 sps:$4 sm:$0xff]   ;;  %v6374_v42 = vld [vmem:[%s6805_s17 + $0xb0] ss:$8 sps:$4 sm:$0xff]  }
 0x17f   : > { %v1290_v62 = vpack.c.bf16 %v1193_v54, %v1189_v38  ;;  %v7109_v38 = vld [vmem:[%s7035_s16 + $0x64] ss:$8 sps:$4 sm:$0xff]  }
 0x180   : > { %5426 = vmatprep.subr.bf16.mxu1 %v1274_v49  ;;  %v7113_v49 = vld [vmem:[%s7035_s16 + $0x60] ss:$8 sps:$4 sm:$0xff]   ;;  %v6378_v54 = vld [vmem:[%s6805_s17 + $0xc4] ss:$8 sps:$4 sm:$0xff]  }
 0x181   : > { %5427 = vmatpush3.bf16.msra.mxu1 %v1266_v41  ;;  %5538 = vmatprep.subr.bf16.mxu0 %v1290_v62  ;;  %v6299_v41 = vld [vmem:[%s6799_s29 + $0x10] ss:$8 sps:$4 sm:$0xff]  }
 0x182   : > { %5428 = vmatprep.subr.bf16.mxu1 %v1275_v43  ;;  %5539 = vmatpush3.bf16.msra.mxu0 %v6885_v45  ;;  %v6302_v43 = vld [vmem:[%s6805_s17 + $0x10] ss:$8 sps:$4 sm:$0xff]  }
 0x183   : > { %5540 = vmatprep.subr.bf16.mxu0 %v6887_v46 }
 0x185   : > { %5429 = vmatpush3.bf16.msra.mxu1 %v1267_v53  ;;  %v6308_v53 = vld [vmem:[%s6799_s29 + $0x30] ss:$8 sps:$4 sm:$0xff]  }
 0x186   : > { %5430 = vmatprep.subr.bf16.mxu1 %v1276_v55  ;;  %5541 = vmatpush3.bf16.msra.mxu0 %v6901_v57  ;;  %v6312_v55 = vld [vmem:[%s6799_s29 + $0x44] ss:$8 sps:$4 sm:$0xff]  }
 0x187   : > { %5542 = vmatprep.subr.bf16.mxu0 %v6903_v58 }
 0x189   : > { %5431 = vmatpush3.bf16.msra.mxu1 %v1268_v2  ;;  %v7038_v2 = vld [vmem:[%s7035_s16] ss:$8 sps:$4 sm:$0xff]  }
 0x18a   : > { %5432 = vmatprep.subr.bf16.mxu1 %v1277_v4  ;;  %5543 = vmatpush3.bf16.msra.mxu0 %v6917_v6  ;;  %v6317_v4 = vld [vmem:[%s6799_s29 + $0x50] ss:$8 sps:$4 sm:$0xff]  }
 0x18b   : > { %5544 = vmatprep.subr.bf16.mxu0 %v6919_v7 }
 0x18d   : > { %5433 = vmatpush3.bf16.msra.mxu1 %v1269_v14  ;;  %v6344_v14 = vld [vmem:[%s6805_s17 + $0x60] ss:$8 sps:$4 sm:$0xff]  }
 0x18e   : > { %5434 = vmatprep.subr.bf16.mxu1 %v1278_v16  ;;  %5545 = vmatpush3.bf16.msra.mxu0 %v6933_v18  ;;  %v6347_v16 = vld [vmem:[%s6805_s17 + $0x74] ss:$8 sps:$4 sm:$0xff]  }
 0x18f   : > { %5546 = vmatprep.subr.bf16.mxu0 %v6935_v19 }
 0x191   : > { %5435 = vmatpush3.bf16.msra.mxu1 %v1270_v26  ;;  %v6326_v26 = vld [vmem:[%s6799_s29 + $0x70] ss:$8 sps:$4 sm:$0xff]  }
 0x192   : > { %5436 = vmatprep.subr.bf16.mxu1 %v1279_v28  ;;  %5547 = vmatpush3.bf16.msra.mxu0 %v6943_v30  ;;  %v6330_v28 = vld [vmem:[%s6799_s29 + $0x84] ss:$8 sps:$4 sm:$0xff]  }
 0x193   : > { %5548 = vmatprep.subr.bf16.mxu0 %v6945_v31 }
 0x195   : > { %5437 = vmatpush3.bf16.msra.mxu1 %v1271_v44  ;;  %v6332_v44 = vld [vmem:[%s6799_s29 + $0x80] ss:$8 sps:$4 sm:$0xff]  }
 0x196   : > { %5438 = vmatprep.subr.bf16.mxu1 %v1280_v50  ;;  %5549 = vmatpush3.bf16.msra.mxu0 %v6947_v56  ;;  %v6333_v50 = vld [vmem:[%s6799_s29 + $0x94] ss:$8 sps:$4 sm:$0xff]  }
 0x197   : > { %5550 = vmatprep.subr.bf16.mxu0 %v6949_v61 }
 0x199   : > { %5439 = vmatpush3.bf16.msra.mxu1 %v1272_v17  ;;  %v6366_v17 = vld [vmem:[%s6805_s17 + $0xa4] ss:$8 sps:$4 sm:$0xff]  }
 0x19a   : > { %5440 = vmatprep.subr.bf16.mxu1 %v1281_v21  ;;  %5551 = vmatpush3.bf16.msra.mxu0 %v6951_v23  ;;  %v7082_v21 = vld [vmem:[%s7035_s16 + $0x34] ss:$8 sps:$4 sm:$0xff]  }
 0x19b   : > { %5552 = vmatprep.subr.bf16.mxu0 %v6953_v24 }
 0x19d   : > { %5441 = vmatpush3.bf16.msra.mxu1 %v1273_v32  ;;  %v7099_v32 = vld [vmem:[%s7035_s16 + $0x54] ss:$8 sps:$4 sm:$0xff]  }
 0x19e   : > { %5553 = vmatpush3.bf16.msra.mxu0 %v6955_v34  ;;  %5650 = vmatprep.subr.bf16.mxu1 %v1290_v62  ;;  %v7119_v62 = vld [vmem:[%s7035_s16 + $0x74] ss:$8 sps:$4 sm:$0xff]  }
 0x1a0   : > { %1495 = vmatmul.mubr.bf16.vlgmr.msra.gmra.mrb[28].mxu1 %v6291_v35  ;;  %v7122_v35 = vld [vmem:[%s7035_s16 + $0x70] ss:$8 sps:$4 sm:$0xff]  }
 0x1a1   : > { %5651 = vmatpush3.bf16.msra.mxu1 %v6885_v45  ;;  %1852 = vmatmul.mubr.bf16.vlgmr.msra.gmra.mrb[36].mxu0 %v6294_v36  ;;  %v6305_v45 = vld [vmem:[%s6799_s29 + $0x20] ss:$8 sps:$4 sm:$0xff]  }
 0x1a2   : > { %5652 = vmatprep.subr.bf16.mxu1 %v6887_v46  ;;  %1502 = vmatprep.mubr.bf16.mxu1 %v6297_v39  ;;  %v6306_v46 = vld [vmem:[%s6799_s29 + $0x34] ss:$8 sps:$4 sm:$0xff]   ;;  %v6355_v36 = vld [vmem:[%s6799_s29 + $0xc0] ss:$8 sps:$4 sm:$0xff]  }
 0x1a3   : > { %1859 = vmatprep.mubr.bf16.mxu0 %v6300_v40  ;;  %v6357_v39 = vld [vmem:[%s6799_s29 + $0xd4] ss:$8 sps:$4 sm:$0xff]   ;;  %v6380_v40 = vld [vmem:[%s6805_s17 + $0xc0] ss:$8 sps:$4 sm:$0xff]  }
 0x1a5   : > { %5653 = vmatpush3.bf16.msra.mxu1 %v6901_v57  ;;  %v6320_v57 = vld [vmem:[%s6805_s17 + $0x30] ss:$8 sps:$4 sm:$0xff]  }
 0x1a6   : > { %5654 = vmatprep.subr.bf16.mxu1 %v6903_v58  ;;  %v6327_v58 = vld [vmem:[%s6805_s17 + $0x44] ss:$8 sps:$4 sm:$0xff]  }
 0x1a8   : > { %1503 = vmatmul.mubr.bf16.gmra.mrb[32].mxu1 %v6299_v41  ;;  %v6383_v41 = vld [vmem:[%s6805_s17 + $0xd4] ss:$8 sps:$4 sm:$0xff]  }
 0x1a9   : > { %5655 = vmatpush3.bf16.msra.mxu1 %v6917_v6  ;;  %1860 = vmatmul.mubr.bf16.gmra.mrb[40].mxu0 %v6302_v43  ;;  %v6404_v6 = vld [vmem:[%s7035_s16 + $0x4] ss:$8 sps:$4 sm:$0xff]   ;;  %v6359_v43 = vld [vmem:[%s6799_s29 + $0xd0] ss:$8 sps:$4 sm:$0xff]  }
 0x1aa   : > { %5656 = vmatprep.subr.bf16.mxu1 %v6919_v7  ;;  %1510 = vmatprep.mubr.bf16.mxu1 %v6303_v47  ;;  %v6321_v7 = vld [vmem:[%s6799_s29 + $0x64] ss:$8 sps:$4 sm:$0xff]  }
 0x1ab   : > { %1867 = vmatprep.mubr.bf16.mxu0 %v6309_v48  ;;  %2461 = vmatprep.subr.bf16.mxu0 %v6404_v6  ;;  %v6363_v47 = vld [vmem:[%s6799_s29 + $0xe4] ss:$8 sps:$4 sm:$0xff]   ;;  %v6386_v48 = vld [vmem:[%s6805_s17 + $0xd0] ss:$8 sps:$4 sm:$0xff]  }
 0x1ac   : > { %2462 = vmatpush1.bf16.msra.mxu0 %v7038_v2 }
 0x1ad   : > { %5657 = vmatpush3.bf16.msra.mxu1 %v6933_v18  ;;  %v7051_v18 = vld [vmem:[%s7035_s16 + $0x10] ss:$8 sps:$4 sm:$0xff]  }
 0x1ae   : > { %5658 = vmatprep.subr.bf16.mxu1 %v6935_v19  ;;  %v7054_v19 = vld [vmem:[%s7035_s16 + $0x14] ss:$8 sps:$4 sm:$0xff]  }
 0x1af   : > { %2463 = vmatprep.subr.bf16.mxu0 %v7054_v19 }
 0x1b0   : > { %1511 = vmatmul.mubr.bf16.gmra.mrb[36].mxu1 %v6305_v45  ;;  %2464 = vmatpush1.bf16.msra.mxu0 %v7051_v18  ;;  %v6389_v45 = vld [vmem:[%s6805_s17 + $0xe4] ss:$8 sps:$4 sm:$0xff]  }
 0x1b1   : > { %5659 = vmatpush3.bf16.msra.mxu1 %v6943_v30  ;;  %1518 = vmatprep.mubr.bf16.mxu1 %v6306_v46  ;;  %v6350_v30 = vld [vmem:[%s6805_s17 + $0x70] ss:$8 sps:$4 sm:$0xff]   ;;  %v6365_v46 = vld [vmem:[%s6799_s29 + $0xe0] ss:$8 sps:$4 sm:$0xff]  }
 0x1b2   : > { %5660 = vmatprep.subr.bf16.mxu1 %v6945_v31  ;;  %1868 = vmatmul.mubr.bf16.gmra.mrb[44].mxu0 %v6311_v51  ;;  %v6353_v31 = vld [vmem:[%s6805_s17 + $0x84] ss:$8 sps:$4 sm:$0xff]   ;;  %v6369_v51 = vld [vmem:[%s6799_s29 + $0xf4] ss:$8 sps:$4 sm:$0xff]  }
 0x1b3   : > { %1875 = vmatprep.mubr.bf16.mxu0 %v6318_v52  ;;  %2465 = vmatprep.subr.bf16.mxu0 %v7070_v5  ;;  %v6392_v52 = vld [vmem:[%s6805_s17 + $0xe0] ss:$8 sps:$4 sm:$0xff]  }
 0x1b4   : > { %2466 = vmatpush1.bf16.msra.mxu0 %v7067_v3 }
 0x1b5   : > { %5661 = vmatpush3.bf16.msra.mxu1 %v6947_v56  ;;  %v6356_v56 = vld [vmem:[%s6805_s17 + $0x80] ss:$8 sps:$4 sm:$0xff]   ;;  %2467 = vmatprep.subr.bf16.mxu0 %v7082_v21 }
 0x1b6   : > { %5662 = vmatprep.subr.bf16.mxu1 %v6949_v61  ;;  %v6360_v61 = vld [vmem:[%s6805_s17 + $0x94] ss:$8 sps:$4 sm:$0xff]  }
 0x1b8   : > { %1519 = vmatmul.mubr.bf16.gmra.mrb[40].mxu1 %v6308_v53  ;;  %2468 = vmatpush1.bf16.msra.mxu0 %v7079_v20  ;;  %v6395_v53 = vld [vmem:[%s6805_s17 + $0xf4] ss:$8 sps:$4 sm:$0xff]  }
 0x1b9   : > { %5663 = vmatpush3.bf16.msra.mxu1 %v6951_v23  ;;  %1526 = vmatprep.mubr.bf16.mxu1 %v6312_v55  ;;  %v7090_v23 = vld [vmem:[%s7035_s16 + $0x40] ss:$8 sps:$4 sm:$0xff]   ;;  %v6371_v55 = vld [vmem:[%s6799_s29 + $0xf0] ss:$8 sps:$4 sm:$0xff]  }
 0x1ba   : > { %5664 = vmatprep.subr.bf16.mxu1 %v6953_v24  ;;  %1876 = vmatmul.mubr.bf16.gmra.mrb[48].mxu0 %v6320_v57  ;;  %v6343_v24 = vld [vmem:[%s6799_s29 + $0xa0] ss:$8 sps:$4 sm:$0xff]   ;;  %v6377_v57 = vld [vmem:[%s6845_s27 + $0x4] ss:$8 sps:$4 sm:$0xff]  }
 0x1bb   : > { %1883 = vmatprep.mubr.bf16.mxu0 %v6327_v58  ;;  %2469 = vmatprep.subr.bf16.mxu0 %v7085_v22  ;;  %v6398_v58 = vld [vmem:[%s6805_s17 + $0xf0] ss:$8 sps:$4 sm:$0xff]  }
 0x1bc   : > { %2470 = vmatpush1.bf16.msra.mxu0 %v7090_v23 }
 0x1bd   : > { %5665 = vmatpush3.bf16.msra.mxu1 %v6955_v34  ;;  %2471 = vmatprep.subr.bf16.mxu0 %v7099_v32  ;;  %v6349_v34 = vld [vmem:[%s6799_s29 + $0xb0] ss:$8 sps:$4 sm:$0xff]  }
 0x1be   : > { %2654 = vmatprep.subr.bf16.mxu1 %v6404_v6  ;;  %v6393_v6 = vld [vmem:[%s6845_s27 + $0x34] ss:$8 sps:$4 sm:$0xff]  }
 0x1c0   : > { %1527 = vmatmul.mubr.bf16.gmra.mrb[44].mxu1 %v6314_v59  ;;  %2472 = vmatpush1.bf16.msra.mxu0 %v7102_v33  ;;  %v6375_v59 = vld [vmem:[%s6845_s27] ss:$8 sps:$4 sm:$0xff]  }
 0x1c1   : > { %1534 = vmatprep.mubr.bf16.mxu1 %v6315_v60  ;;  %2473 = vmatprep.subr.bf16.mxu0 %v7109_v38  ;;  %v6381_v60 = vld [vmem:[%s6845_s27 + $0x14] ss:$8 sps:$4 sm:$0xff]  }
 0x1c2   : > { %1884 = vmatmul.mubr.bf16.gmra.mrb[52].mxu0 %v6329_v63  ;;  %v6385_v63 = vld [vmem:[%s6845_s27 + $0x10] ss:$8 sps:$4 sm:$0xff]  }
 0x1c3   : > { %1891 = vmatprep.mubr.bf16.mxu0 %v6335_v1  ;;  %v6387_v1 = vld [vmem:[%s6845_s27 + $0x24] ss:$8 sps:$4 sm:$0xff]  }
 0x1c4   : > { %2474 = vmatpush1.bf16.msra.mxu0 %v7113_v49 }
 0x1c5   : > { %2475 = vmatprep.subr.bf16.mxu0 %v7119_v62 }
 0x1c8   : > { %1535 = vmatmul.mubr.bf16.gmra.mrb[48].mxu1 %v6317_v4  ;;  %2476 = vmatpush1.bf16.msra.mxu0 %v7122_v35  ;;  %v6391_v4 = vld [vmem:[%s6845_s27 + $0x20] ss:$8 sps:$4 sm:$0xff]  }
 0x1c9   : > { %1542 = vmatprep.mubr.bf16.mxu1 %v6321_v7  ;;  %v6399_v7 = vld [vmem:[%s6845_s27 + $0x44] ss:$8 sps:$4 sm:$0xff]  }
 0x1ca   : > { %1892 = vmatmul.mubr.bf16.gmra.mrb[56].mxu0 %v6338_v8  ;;  %v6401_v8 = vld [vmem:[%s6845_s27 + $0x40] ss:$8 sps:$4 sm:$0xff]  }
 0x1cb   : > { %1899 = vmatprep.mubr.bf16.mxu0 %v6341_v9  ;;  %v6405_v9 = vld [vmem:[%s6845_s27 + $0x54] ss:$8 sps:$4 sm:$0xff]  }
 0x1d0   : > { %1543 = vmatmul.mubr.bf16.gmra.mrb[52].mxu1 %v6323_v12  ;;  %v6407_v12 = vld [vmem:[%s6845_s27 + $0x50] ss:$8 sps:$4 sm:$0xff]  }
 0x1d1   : > { %1550 = vmatprep.mubr.bf16.mxu1 %v6324_v13  ;;  %v6408_v13 = vld [vmem:[%s6845_s27 + $0x64] ss:$8 sps:$4 sm:$0xff]  }
 0x1d2   : > { %1900 = vmatmul.mubr.bf16.gmra.mrb[60].mxu0 %v6344_v14  ;;  %v6410_v14 = vld [vmem:[%s6845_s27 + $0x60] ss:$8 sps:$4 sm:$0xff]  }
 0x1d3   : > { %1907 = vmatprep.mubr.bf16.mxu0 %v6347_v16  ;;  %v6414_v16 = vld [vmem:[%s6845_s27 + $0x74] ss:$8 sps:$4 sm:$0xff]  }
 0x1d8   : > { %1551 = vmatmul.mubr.bf16.gmra.mrb[56].mxu1 %v6326_v26  ;;  %v6419_v26 = vld [vmem:[%s6845_s27 + $0x80] ss:$8 sps:$4 sm:$0xff]  }
 0x1d9   : > { %1558 = vmatprep.mubr.bf16.mxu1 %v6330_v28  ;;  %v6423_v28 = vld [vmem:[%s6845_s27 + $0x94] ss:$8 sps:$4 sm:$0xff]  }
 0x1da   : > { %1908 = vmatmul.mubr.bf16.gmra.mrb[64].mxu0 %v6350_v30  ;;  %v6425_v30 = vld [vmem:[%s6845_s27 + $0x90] ss:$8 sps:$4 sm:$0xff]  }
 0x1db   : > { %1915 = vmatprep.mubr.bf16.mxu0 %v6353_v31  ;;  %v6429_v31 = vld [vmem:[%s6845_s27 + $0xa4] ss:$8 sps:$4 sm:$0xff]  }
 0x1e0   : > { %1559 = vmatmul.mubr.bf16.gmra.mrb[60].mxu1 %v6332_v44  ;;  %v6434_v44 = vld [vmem:[%s6845_s27 + $0xa0] ss:$8 sps:$4 sm:$0xff]  }
 0x1e1   : > { %1566 = vmatprep.mubr.bf16.mxu1 %v6333_v50  ;;  %v6438_v50 = vld [vmem:[%s6845_s27 + $0xb4] ss:$8 sps:$4 sm:$0xff]  }
 0x1e2   : > { %1916 = vmatmul.mubr.bf16.gmra.mrb[68].mxu0 %v6356_v56 }
 0x1e3   : > { %1923 = vmatprep.mubr.bf16.mxu0 %v6360_v61  ;;  %v7186_v61 = vld [vmem:[%s7183_s24] ss:$0 sm:$0xff] }
 0x1e8   : > { %1567 = vmatmul.mubr.bf16.gmra.mrb[64].mxu1 %v6337_v10  ;;  %v6443_v10 = vld [vmem:[%s6845_s27 + $0xb0] ss:$8 sps:$4 sm:$0xff]  }
 0x1e9   : > { %1574 = vmatprep.mubr.bf16.mxu1 %v6339_v11 }
 0x1ea   : > { %1924 = vmatmul.mubr.bf16.gmra.mrb[72].mxu0 %v6362_v15 }
 0x1eb   : > { %1931 = vmatprep.mubr.bf16.mxu0 %v6366_v17 }
 0x1f0   : > { %1575 = vmatmul.mubr.bf16.gmra.mrb[68].mxu1 %v6343_v24  ;;  %v7191_v24 = vld [vmem:[%s7183_s24 + $0x1] ss:$0 sm:$0xff] }
 0x1f1   : > { %1582 = vmatprep.mubr.bf16.mxu1 %v6345_v25 }
 0x1f2   : > { %1932 = vmatmul.mubr.bf16.gmra.mrb[76].mxu0 %v6368_v27 }
 0x1f3   : > { %1939 = vmatprep.mubr.bf16.mxu0 %v6372_v29 }
 0x1f8   : > { %1583 = vmatmul.mubr.bf16.gmra.mrb[72].mxu1 %v6349_v34 }
 0x1f9   : > { %1590 = vmatprep.mubr.bf16.mxu1 %v6351_v37 }
 0x1fa   : > { %1940 = vmatmul.mubr.bf16.gmra.mrb[80].mxu0 %v6374_v42 }
 0x1fb   : > { %1947 = vmatprep.mubr.bf16.mxu0 %v6378_v54 }
 0x200   : > { %1591 = vmatmul.mubr.bf16.gmra.mrb[76].mxu1 %v6355_v36 }
 0x201   : > { %1598 = vmatprep.mubr.bf16.mxu1 %v6357_v39 }
 0x202   : > { %1948 = vmatmul.mubr.bf16.gmra.mrb[84].mxu0 %v6380_v40 }
 0x203   : > { %1955 = vmatprep.mubr.bf16.mxu0 %v6383_v41 }
 0x208   : > { %1599 = vmatmul.mubr.bf16.gmra.mrb[80].mxu1 %v6359_v43 }
 0x209   : > { %1606 = vmatprep.mubr.bf16.mxu1 %v6363_v47 }
 0x20a   : > { %1956 = vmatmul.mubr.bf16.gmra.mrb[88].mxu0 %v6386_v48  ;;  %v6450_v48 = vld [vmem:[%s6845_s27 + $0xd4] ss:$8 sps:$4 sm:$0xff]  }
 0x20b   : > { %1963 = vmatprep.mubr.bf16.mxu0 %v6389_v45 }
 0x210   : > { %1607 = vmatmul.mubr.bf16.gmra.mrb[84].mxu1 %v6365_v46 }
 0x211   : > { %1614 = vmatprep.mubr.bf16.mxu1 %v6369_v51 }
 0x212   : > { %1964 = vmatmul.mubr.bf16.gmra.mrb[92].mxu0 %v6392_v52 }
 0x213   : > { %1971 = vmatprep.mubr.bf16.mxu0 %v6395_v53 }
 0x218   : > { %1615 = vmatmul.mubr.bf16.gmra.mrb[88].mxu1 %v6371_v55 }
 0x219   : > { %2204 = vmatprep.mubr.bf16.mxu1 %v6377_v57 }
 0x21a   : > { %1972 = vmatmul.mubr.bf16.gmra.mrb[96].mxu0 %v6398_v58 }
 0x21b   : > { %2493 = vmatprep.mubr.bf16.mxu0 %v10478_v0 }
 0x220   : > { %2205 = vmatmul.mubr.bf16.vlgmr.msra.gmra.mrb[92].mxu1 %v6375_v59 }
 0x221   : > { %2212 = vmatprep.mubr.bf16.mxu1 %v6381_v60  ;;  %2655 = vmatpush1.bf16.msra.mxu1 %v7038_v2  ;;  %v6397_v2 = vld [vmem:[%s6845_s27 + $0x30] ss:$8 sps:$4 sm:$0xff]  }
 0x222   : > { %2656 = vmatprep.subr.bf16.mxu1 %v7054_v19  ;;  %v6417_v19 = vld [vmem:[%s6845_s27 + $0x84] ss:$8 sps:$4 sm:$0xff]  }
 0x225   : > { %2657 = vmatpush1.bf16.msra.mxu1 %v7051_v18  ;;  %v6416_v18 = vld [vmem:[%s6845_s27 + $0x70] ss:$8 sps:$4 sm:$0xff]  }
 0x226   : > { %2658 = vmatprep.subr.bf16.mxu1 %v7070_v5 }
 0x228   : > { %2213 = vmatmul.mubr.bf16.gmra.mrb[96].mxu1 %v6385_v63 }
 0x229   : > { %2220 = vmatprep.mubr.bf16.mxu1 %v6387_v1  ;;  %2659 = vmatpush1.bf16.msra.mxu1 %v7067_v3 }
 0x22a   : > { %2660 = vmatprep.subr.bf16.mxu1 %v7082_v21 }
 0x22d   : > { %2661 = vmatpush1.bf16.msra.mxu1 %v7079_v20  ;;  %v6447_v20 = vld [vmem:[%s6845_s27 + $0xc4] ss:$8 sps:$4 sm:$0xff]  }
 0x22e   : > { %2662 = vmatprep.subr.bf16.mxu1 %v7085_v22 }
 0x230   : > { %2221 = vmatmul.mubr.bf16.gmra.mrb[100].mxu1 %v6391_v4 }
 0x231   : > { %2228 = vmatprep.mubr.bf16.mxu1 %v6393_v6  ;;  %2663 = vmatpush1.bf16.msra.mxu1 %v7090_v23  ;;  %v6452_v6 = vld [vmem:[%s6845_s27 + $0xd0] ss:$8 sps:$4 sm:$0xff]  }
 0x232   : > { %2664 = vmatprep.subr.bf16.mxu1 %v7099_v32 }
 0x235   : > { %2665 = vmatpush1.bf16.msra.mxu1 %v7102_v33 }
 0x236   : > { %2666 = vmatprep.subr.bf16.mxu1 %v7109_v38 }
 0x238   : > { %2229 = vmatmul.mubr.bf16.gmra.mrb[104].mxu1 %v6397_v2 }
 0x239   : > { %2236 = vmatprep.mubr.bf16.mxu1 %v6399_v7  ;;  %2667 = vmatpush1.bf16.msra.mxu1 %v7113_v49 }
 0x23a   : > { %2668 = vmatprep.subr.bf16.mxu1 %v7119_v62 }
 0x23d   : > { %2669 = vmatpush1.bf16.msra.mxu1 %v7122_v35  ;;  %v6449_v35 = vld [vmem:[%s6845_s27 + $0xc0] ss:$8 sps:$4 sm:$0xff]  }
 0x240   : > { %2237 = vmatmul.mubr.bf16.gmra.mrb[108].mxu1 %v6401_v8 }
 0x241   : > { %2244 = vmatprep.mubr.bf16.mxu1 %v6405_v9 }
 0x248   : > { %2245 = vmatmul.mubr.bf16.gmra.mrb[112].mxu1 %v6407_v12  ;;  %v6453_v12 = vld [vmem:[%s6845_s27 + $0xe4] ss:$8 sps:$4 sm:$0xff]  }
 0x249   : > { %2252 = vmatprep.mubr.bf16.mxu1 %v6408_v13 }
 0x250   : > { %2253 = vmatmul.mubr.bf16.gmra.mrb[116].mxu1 %v6410_v14 }
 0x251   : > { %2260 = vmatprep.mubr.bf16.mxu1 %v6414_v16 }
 0x258   : > { %2261 = vmatmul.mubr.bf16.gmra.mrb[120].mxu1 %v6416_v18 }
 0x259   : > { %2268 = vmatprep.mubr.bf16.mxu1 %v6417_v19 }
 0x260   : > { %2269 = vmatmul.mubr.bf16.gmra.mrb[124].mxu1 %v6419_v26 }
 0x261   : > { %2276 = vmatprep.mubr.bf16.mxu1 %v6423_v28 }
 0x268   : > { %2277 = vmatmul.mubr.bf16.gmra.mrb[128].mxu1 %v6425_v30 }
 0x269   : > { %2284 = vmatprep.mubr.bf16.mxu1 %v6429_v31 }
 0x270   : > { %2285 = vmatmul.mubr.bf16.gmra.mrb[132].mxu1 %v6434_v44 }
 0x271   : > { %2292 = vmatprep.mubr.bf16.mxu1 %v6438_v50 }
 0x273   : > { %v5442_v56 = vpop.f32.mrb[28].mxu1 }
 0x274   : > { %v5443_v3 = vpop.f32.mrb[29].mxu1  ;;  %v5554_v5 = vpop.f32.mrb[36].mxu0 }
 0x275   : > { %v5444_v11 = vadd.f32 %v5443_v3, %v5442_v56  ;;  %v5445_v15 = vpop.f32.mrb[30].mxu1  ;;  %v5555_v17 = vpop.f32.mrb[37].mxu0 }
 0x276   : > { %v5446_v21 = vpop.f32.mrb[31].mxu1  ;;  %v5556_v22 = vadd.f32 %v5555_v17, %v5554_v5  ;;  %v5557_v23 = vpop.f32.mrb[38].mxu0 }
 0x277   : > { %v5447_v25 = vadd.f32 %v5446_v21, %v5445_v15  ;;  %v5558_v27 = vpop.f32.mrb[39].mxu0  ;;  %v1497_v29 = vadd.f32 %v5444_v11, %v7186_v61  ;;  %v6455_v11 = vld [vmem:[%s6845_s27 + $0xe0] ss:$8 sps:$4 sm:$0xff]  }
 0x278   : > { %v1854_v32 = vadd.f32 %v5556_v22, %v7191_v24  ;;  %2293 = vmatmul.mubr.bf16.gmra.mrb[136].mxu1 %v6443_v10  ;;  %v5559_v33 = vadd.f32 %v5558_v27, %v5557_v23  ;;  %v6456_v22 = vld [vmem:[%s6845_s27 + $0xf4] ss:$8 sps:$4 sm:$0xff]  }
 0x279   : > { %v1500_v34 = vadd.f32 %v5447_v25, %v7186_v61  ;;  %v7196_v37 = vmax.f32 %v1497_v29, 0.0  ;;  %2300 = vmatprep.mubr.bf16.mxu1 %v6447_v20 }
 0x27a   : > { %v1857_v38 = vadd.f32 %v5559_v33, %v7191_v24  ;;  %v7201_v49 = vmax.f32 %v1854_v32, 0.0 }
 0x27b   : > { %10864 = vst [vmem:[#allocation9_spill] sm:$0xff] %v7196_v37  ;;  %v7199_v42 = vmax.f32 %v1500_v34, 0.0  ;;  %v5448_v54 = vpop.f32.mrb[32].mxu1  ;;  %3550 = vadd.xlane.f32.xlu1 %v7196_v37 }
 0x27c   : > { %10866 = vst [vmem:[#allocation11_spill] sm:$0xff] %v7201_v49  ;;  %v5449_v62 = vpop.f32.mrb[33].mxu1  ;;  %v5560_v36 = vpop.f32.mrb[40].mxu0  ;;  %v7205_v39 = vmax.f32 %v1857_v38, 0.0 }
 0x27d   : > { %10865 = vst [vmem:[#allocation10_spill] sm:$0xff] %v7199_v42  ;;  %v2365_v40 = vpack.c.bf16 %v7199_v42, %v7196_v37  ;;  %v5450_v41 = vadd.f32 %v5449_v62, %v5448_v54  ;;  %v5451_v43 = vpop.f32.mrb[34].mxu1  ;;  %3552 = vadd.xlane.f32.xlu0 %v7199_v42  ;;  %v5561_v47 = vpop.f32.mrb[41].mxu0 }
 0x27e   : > { %10867 = vst [vmem:[#allocation12_spill] sm:$0xff] %v7205_v39  ;;  %v5452_v45 = vpop.f32.mrb[35].mxu1  ;;  %v5562_v46 = vadd.f32 %v5561_v47, %v5560_v36  ;;  %v5563_v51 = vpop.f32.mrb[42].mxu0  ;;  %v6458_v47 = vld [vmem:[%s6845_s27 + $0xf0] ss:$8 sps:$4 sm:$0xff]  }
 0x27f   : > { %v1505_v52 = vadd.f32 %v5450_v41, %v7186_v61  ;;  %v5453_v53 = vadd.f32 %v5452_v45, %v5451_v43  ;;  %2494 = vmatmul.mubr.bf16.vlgmr.msra.gmra.mrb[100].mxu0 %v2365_v40  ;;  %v5564_v55 = vpop.f32.mrb[43].mxu0  ;;  %3840 = vadd.xlane.f32.xlu1 %v7201_v49 }
 0x280   : > { %2301 = vmatmul.mubr.bf16.gmra.mrb[140].mxu1 %v6449_v35  ;;  %2501 = vmatprep.mubr.bf16.mxu0 %v10478_v0  ;;  %v5565_v57 = vadd.f32 %v5564_v55, %v5563_v51  ;;  %v1862_v59 = vadd.f32 %v5562_v46, %v7191_v24 }
 0x281   : > { %v1508_v58 = vadd.f32 %v5453_v53, %v7186_v61  ;;  %3842 = vadd.xlane.f32.xlu0 %v7205_v39  ;;  %2308 = vmatprep.mubr.bf16.mxu1 %v6450_v48  ;;  %v7217_v60 = vmax.f32 %v1505_v52, 0.0 }
 0x282   : > { %v7222_v2 = vmax.f32 %v1862_v59, 0.0  ;;  %v1865_v44 = vadd.f32 %v5565_v57, %v7191_v24 }
 0x283   : > { %10868 = vst [vmem:[#allocation13_spill] sm:$0xff] %v7217_v60  ;;  %v7219_v63 = vmax.f32 %v1508_v58, 0.0  ;;  %v5454_v1 = vpop.f32.mrb[36].mxu1 }
 0x284   : > { %v5455_v4 = vpop.f32.mrb[37].mxu1  ;;  %10870 = vst [vmem:[#allocation15_spill] sm:$0xff] %v7222_v2  ;;  %v7238_v15 = vmax.f32 %v1865_v44, 0.0 }
 0x285   : > { %10869 = vst [vmem:[#allocation14_spill] sm:$0xff] %v7219_v63  ;;  %v5456_v7 = vadd.f32 %v5455_v4, %v5454_v1  ;;  %v5457_v8 = vpop.f32.mrb[38].mxu1  ;;  %3554 = vadd.xlane.f32.xlu0 %v7217_v60  ;;  %v2366_v9 = vpack.c.bf16 %v7219_v63, %v7217_v60  ;;  %v5566_v13 = vpop.f32.mrb[44].mxu0 }
 0x286   : > { %v5458_v14 = vpop.f32.mrb[39].mxu1  ;;  %v5567_v16 = vpop.f32.mrb[45].mxu0  ;;  %10873 = vst [vmem:[#allocation18_spill] sm:$0xff] %v7238_v15 }
 0x287   : > { %v1513_v18 = vadd.f32 %v5456_v7, %v7186_v61  ;;  %v5459_v19 = vadd.f32 %v5458_v14, %v5457_v8  ;;  %2502 = vmatmul.mubr.bf16.gmra.mrb[104].mxu0 %v2366_v9  ;;  %v5568_v26 = vadd.f32 %v5567_v16, %v5566_v13  ;;  %v5569_v28 = vpop.f32.mrb[46].mxu0  ;;  %v2638_v14 = vpack.c.bf16 %v7205_v39, %v7201_v49 }
 0x288   : > { %2309 = vmatmul.mubr.bf16.gmra.mrb[144].mxu1 %v6452_v6  ;;  %2509 = vmatprep.mubr.bf16.mxu0 %v10478_v0  ;;  %v5570_v30 = vpop.f32.mrb[47].mxu0 }
 0x289   : > { %v1516_v31 = vadd.f32 %v5459_v19, %v7186_v61  ;;  %3844 = vadd.xlane.f32.xlu0 %v7222_v2  ;;  %2316 = vmatprep.mubr.bf16.mxu1 %v6453_v12  ;;  %v5571_v50 = vadd.f32 %v5570_v30, %v5569_v28  ;;  %v7233_v56 = vmax.f32 %v1513_v18, 0.0  ;;  %v1870_v62 = vadd.f32 %v5568_v26, %v7191_v24 }
 0x28b   : > { %10871 = vst [vmem:[#allocation16_spill] sm:$0xff] %v7233_v56  ;;  %v7235_v3 = vmax.f32 %v1516_v31, 0.0  ;;  %v5460_v5 = vpop.f32.mrb[40].mxu1  ;;  %v7256_v48 = vmax.f32 %v1870_v62, 0.0  ;;  %v1873_v7 = vadd.f32 %v5571_v50, %v7191_v24 }
 0x28c   : > { %v5461_v10 = vpop.f32.mrb[41].mxu1 }
 0x28d   : > { %10872 = vst [vmem:[#allocation17_spill] sm:$0xff] %v7235_v3  ;;  %v5462_v17 = vadd.f32 %v5461_v10, %v5460_v5  ;;  %v5463_v20 = vpop.f32.mrb[42].mxu1  ;;  %3556 = vadd.xlane.f32.xlu0 %v7219_v63  ;;  %v2367_v21 = vpack.c.bf16 %v7235_v3, %v7233_v56  ;;  %v5572_v23 = vpop.f32.mrb[48].mxu0  ;;  %10876 = vst [vmem:[#allocation21_spill] sm:$0xff] %v7256_v48  ;;  %v7277_v18 = vmax.f32 %v1873_v7, 0.0 }
 0x28e   : > { %v5464_v25 = vpop.f32.mrb[43].mxu1  ;;  %v5573_v27 = vpop.f32.mrb[49].mxu0 }
 0x28f   : > { %v1521_v29 = vadd.f32 %v5462_v17, %v7186_v61  ;;  %v5465_v32 = vadd.f32 %v5464_v25, %v5463_v20  ;;  %2510 = vmatmul.mubr.bf16.gmra.mrb[108].mxu0 %v2367_v21  ;;  %v5574_v33 = vadd.f32 %v5573_v27, %v5572_v23  ;;  %v5575_v34 = vpop.f32.mrb[50].mxu0  ;;  %10879 = vst [vmem:[#allocation24_spill] sm:$0xff] %v7277_v18 }
 0x290   : > { %2317 = vmatmul.mubr.bf16.gmra.mrb[148].mxu1 %v6455_v11  ;;  %2517 = vmatprep.mubr.bf16.mxu0 %v10478_v0  ;;  %v5576_v38 = vpop.f32.mrb[51].mxu0  ;;  %v2640_v7 = vpack.c.bf16 %v7277_v18, %v7256_v48 }
 0x291   : > { %v1524_v54 = vadd.f32 %v5465_v32, %v7186_v61  ;;  %3846 = vadd.xlane.f32.xlu0 %v7238_v15  ;;  %2324 = vmatprep.mubr.bf16.mxu1 %v6456_v22  ;;  %v7249_v35 = vadd.f32 %v5576_v38, %v5575_v34  ;;  %v7251_v36 = vmax.f32 %v1521_v29, 0.0  ;;  %v1878_v21 = vadd.f32 %v5574_v33, %v7191_v24 }
 0x292   : > { %v2639_v32 = vpack.c.bf16 %v7238_v15, %v7222_v2 }
 0x293   : > { %10874 = vst [vmem:[#allocation19_spill] sm:$0xff] %v7251_v36  ;;  %v7253_v40 = vmax.f32 %v1524_v54, 0.0  ;;  %v5466_v41 = vpop.f32.mrb[44].mxu1  ;;  %v7298_v34 = vmax.f32 %v1878_v21, 0.0 }
 0x294   : > { %v5467_v43 = vpop.f32.mrb[45].mxu1 }
 0x295   : > { %10875 = vst [vmem:[#allocation20_spill] sm:$0xff] %v7253_v40  ;;  %v5468_v45 = vadd.f32 %v5467_v43, %v5466_v41  ;;  %v5469_v46 = vpop.f32.mrb[46].mxu1  ;;  %3558 = vadd.xlane.f32.xlu0 %v7233_v56  ;;  %v2368_v51 = vpack.c.bf16 %v7253_v40, %v7251_v36  ;;  %v5578_v52 = vpop.f32.mrb[52].mxu0  ;;  %10882 = vst [vmem:[#allocation27_spill] sm:$0xff] %v7298_v34 }
 0x296   : > { %v5470_v53 = vpop.f32.mrb[47].mxu1  ;;  %v5579_v55 = vpop.f32.mrb[53].mxu0 }
 0x297   : > { %v1529_v57 = vadd.f32 %v5468_v45, %v7186_v61  ;;  %v5471_v58 = vadd.f32 %v5470_v53, %v5469_v46  ;;  %2518 = vmatmul.mubr.bf16.gmra.mrb[112].mxu0 %v2368_v51  ;;  %v7262_v59 = vadd.f32 %v5579_v55, %v5578_v52  ;;  %v5581_v1 = vpop.f32.mrb[54].mxu0  ;;  %v1881_v55 = vadd.f32 %v7249_v35, %v7191_v24 }
 0x298   : > { %2325 = vmatmul.mubr.bf16.gmra.mrb[152].mxu1 %v6458_v47  ;;  %2525 = vmatprep.mubr.bf16.mxu0 %v10478_v0  ;;  %v5582_v4 = vpop.f32.mrb[55].mxu0 }
 0x299   : > { %v1532_v6 = vadd.f32 %v5471_v58, %v7186_v61  ;;  %3848 = vadd.xlane.f32.xlu0 %v7256_v48  ;;  %2686 = vmatprep.mubr.bf16.mxu1 %v10478_v0  ;;  %v7269_v8 = vadd.f32 %v5582_v4, %v5581_v1  ;;  %v7271_v9 = vmax.f32 %v1529_v57, 0.0 }
 0x29b   : > { %10877 = vst [vmem:[#allocation22_spill] sm:$0xff] %v7271_v9  ;;  %v7273_v12 = vmax.f32 %v1532_v6, 0.0  ;;  %v5472_v13 = vpop.f32.mrb[48].mxu1 }
 0x29c   : > { %v5473_v16 = vpop.f32.mrb[49].mxu1 }
 0x29d   : > { %10878 = vst [vmem:[#allocation23_spill] sm:$0xff] %v7273_v12  ;;  %v5474_v19 = vadd.f32 %v5473_v16, %v5472_v13  ;;  %v5475_v26 = vpop.f32.mrb[50].mxu1  ;;  %3560 = vadd.xlane.f32.xlu0 %v7235_v3  ;;  %v2369_v28 = vpack.c.bf16 %v7273_v12, %v7271_v9  ;;  %v5584_v30 = vpop.f32.mrb[56].mxu0  ;;  %v7320_v13 = vmax.f32 %v1881_v55, 0.0 }
 0x29e   : > { %v5476_v31 = vpop.f32.mrb[51].mxu1  ;;  %v5585_v44 = vpop.f32.mrb[57].mxu0 }
 0x29f   : > { %v1537_v50 = vadd.f32 %v5474_v19, %v7186_v61  ;;  %v5477_v5 = vadd.f32 %v5476_v31, %v5475_v26  ;;  %2526 = vmatmul.mubr.bf16.gmra.mrb[116].mxu0 %v2369_v28  ;;  %v7283_v10 = vadd.f32 %v5585_v44, %v5584_v30  ;;  %v5587_v11 = vpop.f32.mrb[58].mxu0  ;;  %10885 = vst [vmem:[#allocation30_spill] sm:$0xff] %v7320_v13 }
 0x2a0   : > { %2687 = vmatmul.mubr.bf16.vlgmr.msra.gmra.mrb[156].mxu1 %v2638_v14  ;;  %2533 = vmatprep.mubr.bf16.mxu0 %v10478_v0  ;;  %v5588_v17 = vpop.f32.mrb[59].mxu0 }
 0x2a1   : > { %v1540_v20 = vadd.f32 %v5477_v5, %v7186_v61  ;;  %3850 = vadd.xlane.f32.xlu0 %v7277_v18  ;;  %2694 = vmatprep.mubr.bf16.mxu1 %v10478_v0  ;;  %v7290_v22 = vadd.f32 %v5588_v17, %v5587_v11  ;;  %v7292_v23 = vmax.f32 %v1537_v50, 0.0  ;;  %v1886_v17 = vadd.f32 %v7262_v59, %v7191_v24 }
 0x2a3   : > { %10880 = vst [vmem:[#allocation25_spill] sm:$0xff] %v7292_v23  ;;  %v7294_v25 = vmax.f32 %v1540_v20, 0.0  ;;  %v5478_v27 = vpop.f32.mrb[52].mxu1 }
 0x2a4   : > { %v5479_v29 = vpop.f32.mrb[53].mxu1 }
 0x2a5   : > { %10881 = vst [vmem:[#allocation26_spill] sm:$0xff] %v7294_v25  ;;  %v5480_v38 = vadd.f32 %v5479_v29, %v5478_v27  ;;  %v5481_v54 = vpop.f32.mrb[54].mxu1  ;;  %3562 = vadd.xlane.f32.xlu0 %v7251_v36  ;;  %v2370_v33 = vpack.c.bf16 %v7294_v25, %v7292_v23  ;;  %v5590_v62 = vpop.f32.mrb[60].mxu0 }
 0x2a6   : > { %v5482_v41 = vpop.f32.mrb[55].mxu1  ;;  %v5591_v43 = vpop.f32.mrb[61].mxu0 }
 0x2a7   : > { %v1545_v47 = vadd.f32 %v5480_v38, %v7186_v61  ;;  %v5483_v45 = vadd.f32 %v5482_v41, %v5481_v54  ;;  %2534 = vmatmul.mubr.bf16.gmra.mrb[120].mxu0 %v2370_v33  ;;  %v7304_v46 = vadd.f32 %v5591_v43, %v5590_v62  ;;  %v5593_v51 = vpop.f32.mrb[62].mxu0  ;;  %v1889_v38 = vadd.f32 %v7269_v8, %v7191_v24 }
 0x2a8   : > { %2695 = vmatmul.mubr.bf16.gmra.mrb[160].mxu1 %v2639_v32  ;;  %2541 = vmatprep.mubr.bf16.mxu0 %v10478_v0  ;;  %v5594_v52 = vpop.f32.mrb[63].mxu0  ;;  %v2641_v54 = vpack.c.bf16 %v7320_v13, %v7298_v34  ;;  %v7344_v33 = vmax.f32 %v1886_v17, 0.0 }
 0x2a9   : > { %v1548_v53 = vadd.f32 %v5483_v45, %v7186_v61  ;;  %3852 = vadd.xlane.f32.xlu0 %v7298_v34  ;;  %2702 = vmatprep.mubr.bf16.mxu1 %v10478_v0  ;;  %v7312_v57 = vadd.f32 %v5594_v52, %v5593_v51  ;;  %v7314_v58 = vmax.f32 %v1545_v47, 0.0  ;;  %v7352_v55 = vmax.f32 %v1889_v38, 0.0 }
 0x2aa   : > { %10888 = vst [vmem:[#allocation33_spill] sm:$0xff] %v7344_v33 }
 0x2ab   : > { %10883 = vst [vmem:[#allocation28_spill] sm:$0xff] %v7314_v58  ;;  %v7316_v1 = vmax.f32 %v1548_v53, 0.0  ;;  %v5484_v4 = vpop.f32.mrb[56].mxu1  ;;  %10889 = vst [vmem:[#allocation34_spill] sm:$0xff] %v7352_v55 }
 0x2ac   : > { %v5485_v6 = vpop.f32.mrb[57].mxu1 }
 0x2ad   : > { %10884 = vst [vmem:[#allocation29_spill] sm:$0xff] %v7316_v1  ;;  %v5486_v14 = vadd.f32 %v5485_v6, %v5484_v4  ;;  %v5487_v16 = vpop.f32.mrb[58].mxu1  ;;  %3564 = vadd.xlane.f32.xlu0 %v7253_v40  ;;  %v2371_v35 = vpack.c.bf16 %v7316_v1, %v7314_v58  ;;  %v5596_v19 = vpop.f32.mrb[64].mxu0 }
 0x2ae   : > { %v5488_v26 = vpop.f32.mrb[59].mxu1  ;;  %v5597_v28 = vpop.f32.mrb[65].mxu0 }
 0x2af   : > { %v1553_v30 = vadd.f32 %v5486_v14, %v7186_v61  ;;  %v5489_v31 = vadd.f32 %v5488_v26, %v5487_v16  ;;  %2542 = vmatmul.mubr.bf16.gmra.mrb[124].mxu0 %v2371_v35  ;;  %v7326_v44 = vadd.f32 %v5597_v28, %v5596_v19  ;;  %v5599_v50 = vpop.f32.mrb[66].mxu0  ;;  %v1894_v26 = vadd.f32 %v7283_v10, %v7191_v24 }
 0x2b0   : > { %2703 = vmatmul.mubr.bf16.gmra.mrb[164].mxu1 %v2640_v7  ;;  %2549 = vmatprep.mubr.bf16.mxu0 %v10478_v0  ;;  %v5600_v5 = vpop.f32.mrb[67].mxu0  ;;  %v1897_v28 = vadd.f32 %v7290_v22, %v7191_v24 }
 0x2b1   : > { %v1556_v11 = vadd.f32 %v5489_v31, %v7186_v61  ;;  %3854 = vadd.xlane.f32.xlu0 %v7320_v13  ;;  %2710 = vmatprep.mubr.bf16.mxu1 %v10478_v0  ;;  %v7334_v20 = vadd.f32 %v5600_v5, %v5599_v50  ;;  %v7336_v21 = vmax.f32 %v1553_v30, 0.0  ;;  %v2642_v30 = vpack.c.bf16 %v7352_v55, %v7344_v33 }
 0x2b3   : > { %10886 = vst [vmem:[#allocation31_spill] sm:$0xff] %v7336_v21  ;;  %v7338_v27 = vmax.f32 %v1556_v11, 0.0  ;;  %v5490_v29 = vpop.f32.mrb[60].mxu1 }
 0x2b4   : > { %v5491_v32 = vpop.f32.mrb[61].mxu1 }
 0x2b5   : > { %10887 = vst [vmem:[#allocation32_spill] sm:$0xff] %v7338_v27  ;;  %v5492_v62 = vadd.f32 %v5491_v32, %v5490_v29  ;;  %v5493_v59 = vpop.f32.mrb[62].mxu1  ;;  %3566 = vadd.xlane.f32.xlu0 %v7271_v9  ;;  %v2372_v41 = vpack.c.bf16 %v7338_v27, %v7336_v21  ;;  %v5602_v43 = vpop.f32.mrb[68].mxu0 }
 0x2b6   : > { %v5494_v47 = vpop.f32.mrb[63].mxu1  ;;  %v5603_v45 = vpop.f32.mrb[69].mxu0 }
 0x2b7   : > { %v1561_v51 = vadd.f32 %v5492_v62, %v7186_v61  ;;  %v5495_v52 = vadd.f32 %v5494_v47, %v5493_v59  ;;  %2550 = vmatmul.mubr.bf16.gmra.mrb[128].mxu0 %v2372_v41  ;;  %v7350_v8 = vadd.f32 %v5603_v45, %v5602_v43  ;;  %v5605_v53 = vpop.f32.mrb[70].mxu0  ;;  %v7378_v62 = vmax.f32 %v1897_v28, 0.0 }
 0x2b8   : > { %2711 = vmatmul.mubr.bf16.gmra.mrb[168].mxu1 %v2641_v54  ;;  %2557 = vmatprep.mubr.bf16.mxu0 %v10478_v0  ;;  %v5606_v4 = vpop.f32.mrb[71].mxu0  ;;  %v7376_v54 = vmax.f32 %v1894_v26, 0.0 }
 0x2b9   : > { %v1564_v6 = vadd.f32 %v5495_v52, %v7186_v61  ;;  %3856 = vadd.xlane.f32.xlu0 %v7344_v33  ;;  %2718 = vmatprep.mubr.bf16.mxu1 %v10478_v0  ;;  %v7358_v7 = vadd.f32 %v5606_v4, %v5605_v53  ;;  %v7360_v14 = vmax.f32 %v1561_v51, 0.0  ;;  %10893 = vst [vmem:[#allocation38_spill] sm:$0xff] %v7378_v62 }
 0x2ba   : > { %10892 = vst [vmem:[#allocation37_spill] sm:$0xff] %v7376_v54  ;;  %v1902_v53 = vadd.f32 %v7304_v46, %v7191_v24  ;;  %v1905_v4 = vadd.f32 %v7312_v57, %v7191_v24 }
 0x2bb   : > { %10890 = vst [vmem:[#allocation35_spill] sm:$0xff] %v7360_v14  ;;  %v7362_v16 = vmax.f32 %v1564_v6, 0.0  ;;  %v5496_v35 = vpop.f32.mrb[64].mxu1  ;;  %v2643_v6 = vpack.c.bf16 %v7378_v62, %v7376_v54 }
 0x2bc   : > { %v5497_v19 = vpop.f32.mrb[65].mxu1 }
 0x2bd   : > { %10891 = vst [vmem:[#allocation36_spill] sm:$0xff] %v7362_v16  ;;  %v5498_v31 = vadd.f32 %v5497_v19, %v5496_v35  ;;  %v5499_v50 = vpop.f32.mrb[66].mxu1  ;;  %3568 = vadd.xlane.f32.xlu0 %v7273_v12  ;;  %v2373_v5 = vpack.c.bf16 %v7362_v16, %v7360_v14  ;;  %v5608_v11 = vpop.f32.mrb[72].mxu0 }
 0x2be   : > { %v5500_v17 = vpop.f32.mrb[67].mxu1  ;;  %v5609_v29 = vpop.f32.mrb[73].mxu0 }
 0x2bf   : > { %v1569_v32 = vadd.f32 %v5498_v31, %v7186_v61  ;;  %v5501_v38 = vadd.f32 %v5500_v17, %v5499_v50  ;;  %2558 = vmatmul.mubr.bf16.gmra.mrb[132].mxu0 %v2373_v5  ;;  %v7374_v10 = vadd.f32 %v5609_v29, %v5608_v11  ;;  %v5611_v22 = vpop.f32.mrb[74].mxu0  ;;  %v7402_v11 = vmax.f32 %v1902_v53, 0.0 }
 0x2c0   : > { %2719 = vmatmul.mubr.bf16.gmra.mrb[172].mxu1 %v2642_v30  ;;  %2565 = vmatprep.mubr.bf16.mxu0 %v10478_v0  ;;  %v5612_v59 = vpop.f32.mrb[75].mxu0  ;;  %v7404_v17 = vmax.f32 %v1905_v4, 0.0  ;;  %v1913_v53 = vadd.f32 %v7334_v20, %v7191_v24 }
 0x2c1   : > { %v1572_v41 = vadd.f32 %v5501_v38, %v7186_v61  ;;  %3858 = vadd.xlane.f32.xlu0 %v7352_v55  ;;  %2726 = vmatprep.mubr.bf16.mxu1 %v10478_v0  ;;  %v7384_v43 = vadd.f32 %v5612_v59, %v5611_v22  ;;  %v7386_v47 = vmax.f32 %v1569_v32, 0.0  ;;  %10896 = vst [vmem:[#allocation41_spill] sm:$0xff] %v7402_v11 }
 0x2c2   : > { %10897 = vst [vmem:[#allocation42_spill] sm:$0xff] %v7404_v17  ;;  %v2644_v4 = vpack.c.bf16 %v7404_v17, %v7402_v11 }
 0x2c3   : > { %10894 = vst [vmem:[#allocation39_spill] sm:$0xff] %v7386_v47  ;;  %v7388_v45 = vmax.f32 %v1572_v41, 0.0  ;;  %v5502_v51 = vpop.f32.mrb[68].mxu1 }
 0x2c4   : > { %v5503_v52 = vpop.f32.mrb[69].mxu1 }
 0x2c5   : > { %10895 = vst [vmem:[#allocation40_spill] sm:$0xff] %v7388_v45  ;;  %v5504_v35 = vadd.f32 %v5503_v52, %v5502_v51  ;;  %v5505_v19 = vpop.f32.mrb[70].mxu1  ;;  %3570 = vadd.xlane.f32.xlu0 %v7292_v23  ;;  %v2374_v26 = vpack.c.bf16 %v7388_v45, %v7386_v47  ;;  %v5614_v28 = vpop.f32.mrb[76].mxu0  ;;  %v1910_v52 = vadd.f32 %v7326_v44, %v7191_v24 }
 0x2c6   : > { %v5506_v30 = vpop.f32.mrb[71].mxu1  ;;  %v5615_v31 = vpop.f32.mrb[77].mxu0 }
 0x2c7   : > { %v1577_v50 = vadd.f32 %v5504_v35, %v7186_v61  ;;  %v5507_v5 = vadd.f32 %v5506_v30, %v5505_v19  ;;  %2566 = vmatmul.mubr.bf16.gmra.mrb[136].mxu0 %v2374_v26  ;;  %v7400_v46 = vadd.f32 %v5615_v31, %v5614_v28  ;;  %v5617_v57 = vpop.f32.mrb[78].mxu0 }
 0x2c8   : > { %2727 = vmatmul.mubr.bf16.gmra.mrb[176].mxu1 %v2643_v6  ;;  %2573 = vmatprep.mubr.bf16.mxu0 %v10478_v0  ;;  %v5618_v29 = vpop.f32.mrb[79].mxu0 }
 0x2c9   : > { %v1580_v32 = vadd.f32 %v5507_v5, %v7186_v61  ;;  %3860 = vadd.xlane.f32.xlu0 %v7376_v54  ;;  %2734 = vmatprep.mubr.bf16.mxu1 %v10478_v0  ;;  %v7410_v38 = vadd.f32 %v5618_v29, %v5617_v57  ;;  %v7412_v22 = vmax.f32 %v1577_v50, 0.0  ;;  %v7428_v5 = vmax.f32 %v1910_v52, 0.0 }
 0x2ca   : > { %v7430_v57 = vmax.f32 %v1913_v53, 0.0  ;;  %v1918_v53 = vadd.f32 %v7350_v8, %v7191_v24 }
 0x2cb   : > { %10898 = vst [vmem:[#allocation43_spill] sm:$0xff] %v7412_v22  ;;  %v7414_v59 = vmax.f32 %v1580_v32, 0.0  ;;  %v5508_v41 = vpop.f32.mrb[72].mxu1  ;;  %10900 = vst [vmem:[#allocation45_spill] sm:$0xff] %v7428_v5 }
 0x2cc   : > { %v5509_v51 = vpop.f32.mrb[73].mxu1  ;;  %10901 = vst [vmem:[#allocation46_spill] sm:$0xff] %v7430_v57 }
 0x2cd   : > { %10899 = vst [vmem:[#allocation44_spill] sm:$0xff] %v7414_v59  ;;  %v5510_v6 = vadd.f32 %v5509_v51, %v5508_v41  ;;  %v5511_v35 = vpop.f32.mrb[74].mxu1  ;;  %3572 = vadd.xlane.f32.xlu0 %v7294_v25  ;;  %v2375_v19 = vpack.c.bf16 %v7414_v59, %v7412_v22  ;;  %v5620_v26 = vpop.f32.mrb[80].mxu0 }
 0x2ce   : > { %v5512_v28 = vpop.f32.mrb[75].mxu1  ;;  %v5621_v30 = vpop.f32.mrb[81].mxu0 }
 0x2cf   : > { %v1585_v31 = vadd.f32 %v5510_v6, %v7186_v61  ;;  %v5513_v50 = vadd.f32 %v5512_v28, %v5511_v35  ;;  %2574 = vmatmul.mubr.bf16.gmra.mrb[140].mxu0 %v2375_v19  ;;  %v7426_v44 = vadd.f32 %v5621_v30, %v5620_v26  ;;  %v5623_v20 = vpop.f32.mrb[82].mxu0  ;;  %v2645_v19 = vpack.c.bf16 %v7430_v57, %v7428_v5 }
 0x2d0   : > { %2735 = vmatmul.mubr.bf16.gmra.mrb[180].mxu1 %v2644_v4  ;;  %2581 = vmatprep.mubr.bf16.mxu0 %v10478_v0  ;;  %v5624_v29 = vpop.f32.mrb[83].mxu0  ;;  %v1921_v4 = vadd.f32 %v7358_v7, %v7191_v24 }
 0x2d1   : > { %v1588_v32 = vadd.f32 %v5513_v50, %v7186_v61  ;;  %3862 = vadd.xlane.f32.xlu0 %v7378_v62  ;;  %2742 = vmatprep.mubr.bf16.mxu1 %v10478_v0  ;;  %v7436_v41 = vadd.f32 %v5624_v29, %v5623_v20  ;;  %v7438_v51 = vmax.f32 %v1585_v31, 0.0  ;;  %v7454_v0 = vmax.f32 %v1918_v53, 0.0 }
 0x2d2   : > { %v7456_v62 = vmax.f32 %v1921_v4, 0.0  ;;  %v1926_v4 = vadd.f32 %v7374_v10, %v7191_v24 }
 0x2d3   : > { %10902 = vst [vmem:[#allocation47_spill] sm:$0xff] %v7438_v51  ;;  %v7440_v6 = vmax.f32 %v1588_v32, 0.0  ;;  %v5514_v52 = vpop.f32.mrb[76].mxu1  ;;  %10904 = vst [vmem:[#allocation49_spill] sm:$0xff] %v7454_v0 }
 0x2d4   : > { %v5515_v35 = vpop.f32.mrb[77].mxu1  ;;  %10905 = vst [vmem:[#allocation50_spill] sm:$0xff] %v7456_v62  ;;  %v7480_v33 = vmax.f32 %v1926_v4, 0.0 }
 0x2d5   : > { %10903 = vst [vmem:[#allocation48_spill] sm:$0xff] %v7440_v6  ;;  %v5516_v26 = vadd.f32 %v5515_v35, %v5514_v52  ;;  %v5517_v28 = vpop.f32.mrb[78].mxu1  ;;  %3574 = vadd.xlane.f32.xlu0 %v7314_v58  ;;  %v2376_v30 = vpack.c.bf16 %v7440_v6, %v7438_v51  ;;  %v5626_v31 = vpop.f32.mrb[84].mxu0  ;;  %v10906_v52 = vmov 0  }
 0x2d6   : > { %v5518_v50 = vpop.f32.mrb[79].mxu1  ;;  %v5627_v20 = vpop.f32.mrb[85].mxu0  ;;  %10909 = vst [vmem:[#allocation53_spill] sm:$0xff] %v7480_v33 }
 0x2d7   : > { %v1593_v29 = vadd.f32 %v5516_v26, %v7186_v61  ;;  %v5519_v32 = vadd.f32 %v5518_v50, %v5517_v28  ;;  %2582 = vmatmul.mubr.bf16.gmra.mrb[144].mxu0 %v2376_v30  ;;  %v7452_v8 = vadd.f32 %v5627_v20, %v5626_v31  ;;  %v5629_v7 = vpop.f32.mrb[86].mxu0  ;;  %v2646_v50 = vpack.c.bf16 %v7456_v62, %v7454_v0 }
 0x2d8   : > { %2743 = vmatmul.mubr.bf16.gmra.mrb[184].mxu1 %v2645_v19  ;;  %2589 = vmatprep.mubr.bf16.mxu0 %v10906_v52  ;;  %v5630_v35 = vpop.f32.mrb[87].mxu0  ;;  %v1929_v19 = vadd.f32 %v7384_v43, %v7191_v24 }
 0x2d9   : > { %v1596_v54 = vadd.f32 %v5519_v32, %v7186_v61  ;;  %3864 = vadd.xlane.f32.xlu0 %v7402_v11  ;;  %2750 = vmatprep.mubr.bf16.mxu1 %v10906_v52  ;;  %v7462_v26 = vadd.f32 %v5630_v35, %v5629_v7  ;;  %v7464_v28 = vmax.f32 %v1593_v29, 0.0 }
 0x2da   : > { %v7482_v13 = vmax.f32 %v1929_v19, 0.0  ;;  %v1934_v19 = vadd.f32 %v7400_v46, %v7191_v24 }
 0x2db   : > { %10907 = vst [vmem:[#allocation51_spill] sm:$0xff] %v7464_v28  ;;  %v7466_v30 = vmax.f32 %v1596_v54, 0.0  ;;  %v5520_v53 = vpop.f32.mrb[80].mxu1 }
 0x2dc   : > { %v5521_v31 = vpop.f32.mrb[81].mxu1  ;;  %10910 = vst [vmem:[#allocation54_spill] sm:$0xff] %v7482_v13  ;;  %v7506_v18 = vmax.f32 %v1934_v19, 0.0 }
 0x2dd   : > { %10908 = vst [vmem:[#allocation52_spill] sm:$0xff] %v7466_v30  ;;  %v5522_v20 = vadd.f32 %v5521_v31, %v5520_v53  ;;  %v5523_v32 = vpop.f32.mrb[82].mxu1  ;;  %3576 = vadd.xlane.f32.xlu0 %v7316_v1  ;;  %v2377_v29 = vpack.c.bf16 %v7466_v30, %v7464_v28  ;;  %v5632_v54 = vpop.f32.mrb[88].mxu0 }
 0x2de   : > { %v5524_v7 = vpop.f32.mrb[83].mxu1  ;;  %v5633_v35 = vpop.f32.mrb[89].mxu0  ;;  %10913 = vst [vmem:[#allocation57_spill] sm:$0xff] %v7506_v18 }
 0x2df   : > { %v1601_v11 = vadd.f32 %v5522_v20, %v7186_v61  ;;  %v5525_v55 = vadd.f32 %v5524_v7, %v5523_v32  ;;  %2590 = vmatmul.mubr.bf16.gmra.mrb[148].mxu0 %v2377_v29  ;;  %v7478_v10 = vadd.f32 %v5633_v35, %v5632_v54  ;;  %v5635_v43 = vpop.f32.mrb[90].mxu0 }
 0x2e0   : > { %2751 = vmatmul.mubr.bf16.gmra.mrb[188].mxu1 %v2646_v50  ;;  %2597 = vmatprep.mubr.bf16.mxu0 %v10906_v52  ;;  %v5636_v53 = vpop.f32.mrb[91].mxu0  ;;  %v1937_v50 = vadd.f32 %v7410_v38, %v7191_v24 }
 0x2e1   : > { %v1604_v31 = vadd.f32 %v5525_v55, %v7186_v61  ;;  %3866 = vadd.xlane.f32.xlu0 %v7404_v17  ;;  %2758 = vmatprep.mubr.bf16.mxu1 %v10906_v52  ;;  %v7488_v20 = vadd.f32 %v5636_v53, %v5635_v43  ;;  %v7490_v32 = vmax.f32 %v1601_v11, 0.0  ;;  %v2647_v55 = vpack.c.bf16 %v7482_v13, %v7480_v33 }
 0x2e2   : > { %v7508_v48 = vmax.f32 %v1937_v50, 0.0  ;;  %v1942_v50 = vadd.f32 %v7426_v44, %v7191_v24 }
 0x2e3   : > { %10911 = vst [vmem:[#allocation55_spill] sm:$0xff] %v7490_v32  ;;  %v7492_v29 = vmax.f32 %v1604_v31, 0.0  ;;  %v5526_v4 = vpop.f32.mrb[84].mxu1 }
 0x2e4   : > { %v5527_v54 = vpop.f32.mrb[85].mxu1  ;;  %10914 = vst [vmem:[#allocation58_spill] sm:$0xff] %v7508_v48  ;;  %v7532_v2 = vmax.f32 %v1942_v50, 0.0 }
 0x2e5   : > { %10912 = vst [vmem:[#allocation56_spill] sm:$0xff] %v7492_v29  ;;  %v5528_v7 = vadd.f32 %v5527_v54, %v5526_v4  ;;  %v5529_v35 = vpop.f32.mrb[86].mxu1  ;;  %3578 = vadd.xlane.f32.xlu0 %v7336_v21  ;;  %v2378_v11 = vpack.c.bf16 %v7492_v29, %v7490_v32  ;;  %v5638_v43 = vpop.f32.mrb[92].mxu0 }
 0x2e6   : > { %v5530_v53 = vpop.f32.mrb[87].mxu1  ;;  %v5639_v31 = vpop.f32.mrb[93].mxu0  ;;  %10917 = vst [vmem:[#allocation61_spill] sm:$0xff] %v7532_v2 }
 0x2e7   : > { %v1609_v17 = vadd.f32 %v5528_v7, %v7186_v61  ;;  %v5531_v34 = vadd.f32 %v5530_v53, %v5529_v35  ;;  %2598 = vmatmul.mubr.bf16.gmra.mrb[152].mxu0 %v2378_v11  ;;  %v7504_v46 = vadd.f32 %v5639_v31, %v5638_v43  ;;  %v5641_v38 = vpop.f32.mrb[94].mxu0 }
 0x2e8   : > { %2759 = vmatmul.mubr.bf16.gmra.mrb[192].mxu1 %v2647_v55  ;;  %2605 = vmatprep.mubr.bf16.mxu0 %v10906_v52  ;;  %v5642_v4 = vpop.f32.mrb[95].mxu0  ;;  %v1945_v55 = vadd.f32 %v7436_v41, %v7191_v24 }
 0x2e9   : > { %v1612_v54 = vadd.f32 %v5531_v34, %v7186_v61  ;;  %3868 = vadd.xlane.f32.xlu0 %v7428_v5  ;;  %2766 = vmatprep.mubr.bf16.mxu1 %v10906_v52  ;;  %v7514_v7 = vadd.f32 %v5642_v4, %v5641_v38  ;;  %v7516_v35 = vmax.f32 %v1609_v17, 0.0  ;;  %v2648_v34 = vpack.c.bf16 %v7508_v48, %v7506_v18 }
 0x2ea   : > { %v7534_v39 = vmax.f32 %v1945_v55, 0.0 }
 0x2eb   : > { %10915 = vst [vmem:[#allocation59_spill] sm:$0xff] %v7516_v35  ;;  %v7518_v11 = vmax.f32 %v1612_v54, 0.0  ;;  %v5532_v19 = vpop.f32.mrb[88].mxu1 }
 0x2ec   : > { %v5533_v43 = vpop.f32.mrb[89].mxu1  ;;  %10918 = vst [vmem:[#allocation62_spill] sm:$0xff] %v7534_v39 }
 0x2ed   : > { %10916 = vst [vmem:[#allocation60_spill] sm:$0xff] %v7518_v11  ;;  %v5534_v53 = vadd.f32 %v5533_v43, %v5532_v19  ;;  %v5535_v31 = vpop.f32.mrb[90].mxu1  ;;  %3580 = vadd.xlane.f32.xlu0 %v7338_v27  ;;  %v2379_v17 = vpack.c.bf16 %v7518_v11, %v7516_v35  ;;  %v5644_v38 = vpop.f32.mrb[96].mxu0 }
 0x2ee   : > { %v5536_v4 = vpop.f32.mrb[91].mxu1  ;;  %v5645_v54 = vpop.f32.mrb[97].mxu0 }
 0x2ef   : > { %v1617_v5 = vadd.f32 %v5534_v53, %v7186_v61  ;;  %v5537_v15 = vadd.f32 %v5536_v4, %v5535_v31  ;;  %2606 = vmatmul.mubr.bf16.gmra.mrb[156].mxu0 %v2379_v17  ;;  %v7530_v44 = vadd.f32 %v5645_v54, %v5644_v38  ;;  %v5647_v41 = vpop.f32.mrb[98].mxu0  ;;  %v1953_v38 = vadd.f32 %v7462_v26, %v7191_v24  ;;  %v6463_v26 = vld [vmem:[%s6799_s29 + $0x4] ss:$8 sps:$4 sm:$0xff]  }
 0x2f0   : > { %2767 = vmatmul.mubr.bf16.gmra.mrb[196].mxu1 %v2648_v34  ;;  %2613 = vmatprep.mubr.bf16.mxu0 %v10906_v52  ;;  %v5648_v19 = vpop.f32.mrb[99].mxu0  ;;  %v1950_v34 = vadd.f32 %v7452_v8, %v7191_v24 }
 0x2f1   : > { %v1620_v43 = vadd.f32 %v5537_v15, %v7186_v61  ;;  %3870 = vadd.xlane.f32.xlu0 %v7430_v57  ;;  %2774 = vmatprep.mubr.bf16.mxu1 %v10906_v52  ;;  %v7540_v53 = vadd.f32 %v5648_v19, %v5647_v41  ;;  %v7542_v31 = vmax.f32 %v1617_v5, 0.0  ;;  %v2649_v61 = vpack.c.bf16 %v7534_v39, %v7532_v2 }
 0x2f2   : > { %v7557_v19 = vmax.f32 %v1950_v34, 0.0  ;;  %v7559_v8 = vmax.f32 %v1953_v38, 0.0  ;;  %v1958_v34 = vadd.f32 %v7478_v10, %v7191_v24  ;;  %v1961_v38 = vadd.f32 %v7488_v20, %v7191_v24 }
 0x2f3   : > { %10919 = vst [vmem:[#allocation63_spill] sm:$0xff] %v7542_v31  ;;  %v7544_v17 = vmax.f32 %v1620_v43, 0.0  ;;  %v5666_v50 = vpop.f32.mrb[92].mxu1 }
 0x2f4   : > { %v5667_v55 = vpop.f32.mrb[93].mxu1  ;;  %10921 = vst [vmem:[#allocation65_spill] sm:$0xff] %v7557_v19  ;;  %10922 = vst [vmem:[#allocation66_spill] sm:$0xff] %v7559_v8  ;;  %v7581_v57 = vmax.f32 %v1958_v34, 0.0  ;;  %v7583_v10 = vmax.f32 %v1961_v38, 0.0 }
 0x2f5   : > { %10920 = vst [vmem:[#allocation64_spill] sm:$0xff] %v7544_v17  ;;  %v7552_v15 = vadd.f32 %v5667_v55, %v5666_v50  ;;  %v5669_v4 = vpop.f32.mrb[94].mxu1  ;;  %3582 = vadd.xlane.f32.xlu0 %v7360_v14  ;;  %v2380_v5 = vpack.c.bf16 %v7544_v17, %v7542_v31 }
 0x2f6   : > { %v5670_v54 = vpop.f32.mrb[95].mxu1  ;;  %10924 = vst [vmem:[#allocation68_spill] sm:$0xff] %v7581_v57  ;;  %10925 = vst [vmem:[#allocation69_spill] sm:$0xff] %v7583_v10  ;;  %v2651_v34 = vpack.c.bf16 %v7583_v10, %v7581_v57 }
 0x2f7   : > { %v5671_v41 = vadd.f32 %v5670_v54, %v5669_v4  ;;  %2614 = vmatmul.mubr.bf16.gmra.mrb[160].mxu0 %v2380_v5 }
 0x2f8   : > { %2775 = vmatmul.mubr.bf16.gmra.mrb[200].mxu1 %v2649_v61  ;;  %2867 = vmatprep.mubr.bf16.mxu0 %v6463_v26  ;;  %v2650_v61 = vpack.c.bf16 %v7559_v8, %v7557_v19 }
 0x2f9   : > { %3872 = vadd.xlane.f32.xlu0 %v7454_v0  ;;  %v7564_v43 = vadd.f32 %v5671_v41, %v7191_v24  ;;  %2782 = vmatprep.mubr.bf16.mxu1 %v10906_v52  ;;  %v3418_v41 = vlaneseq }
 0x2fb   : > { %10923 = vst [vmem:[#allocation67_spill] sm:$0xff] %v7564_v43  ;;  %v5672_v50 = vpop.f32.mrb[96].mxu1  ;;  %v10496_v55 = vmax.f32 %v7564_v43, 0.0  ;;  %v7588_v20 = vshrl.u32 %v3418_v41, 7 }
 0x2fc   : > { %v5673_v4 = vpop.f32.mrb[97].mxu1 }
 0x2fd   : > { %v7574_v5 = vadd.f32 %v5673_v4, %v5672_v50  ;;  %v5675_v54 = vpop.f32.mrb[98].mxu1  ;;  %3584 = vadd.xlane.f32.xlu0 %v7362_v16  ;;  %4149 = vadd.xlane.f32.xlu1 %v10496_v55  ;;  %10926 = vst [vmem:[#allocation70_spill] sm:$0xff] %v7588_v20  ;;  %v1966_v55 = vadd.f32 %v7504_v46, %v7191_v24  ;;  %v7606_v46 = vstv %s731_s0 }
 0x2fe   : > { %v5676_v26 = vpop.f32.mrb[99].mxu1  ;;  %10929 = vst [vmem:[#allocation73_spill] sm:$0xff] %v7606_v46  ;;  %vm3452_vm1 = vcmp.lt.s32.totalorder %v7588_v20, %v7606_v46 }
 0x2ff   : > { %v7579_v0 = vadd.f32 %v5676_v26, %v5675_v54  ;;  %v1969_v54 = vadd.f32 %v7514_v7, %v7191_v24  ;;  %v3420_v26 = vadd.s32 8, %v7588_v20 }
 0x300   : > { %2783 = vmatmul.mubr.bf16.gmra.mrb[204].mxu1 %v2650_v61 }
 0x301   : > { %3874 = vadd.xlane.f32.xlu0 %v7456_v62  ;;  %2790 = vmatprep.mubr.bf16.mxu1 %v10906_v52  ;;  %v7602_v62 = vmax.f32 %v1966_v55, 0.0  ;;  %v7604_v49 = vmax.f32 %v1969_v54, 0.0  ;;  %vm3453_vm0 = vcmp.lt.s32.totalorder %v3420_v26, %v7606_v46  ;;  %v1977_v26 = vadd.f32 %v7540_v53, %v7191_v24 }
 0x303   : > { %v5678_v50 = vpop.f32.mrb[100].mxu1  ;;  %10927 = vst [vmem:[#allocation71_spill] sm:$0xff] %v7602_v62  ;;  %10928 = vst [vmem:[#allocation72_spill] sm:$0xff] %v7604_v49  ;;  %v7635_v53 = vmax.f32 %v1977_v26, 0.0 }
 0x304   : > { %v5679_v4 = vpop.f32.mrb[101].mxu1 }
 0x305   : > { %v7596_v38 = vadd.f32 %v5679_v4, %v5678_v50  ;;  %v5681_v61 = vpop.f32.mrb[102].mxu1  ;;  %3586 = vadd.xlane.f32.xlu0 %v7386_v47  ;;  %v3421_v50 = vadd.s32 16, %v7588_v20  ;;  %10931 = vst [vmem:[#allocation75_spill] sm:$0xff] %v7635_v53 }
 0x306   : > { %v5682_v41 = vpop.f32.mrb[103].mxu1 }
 0x307   : > { %v7600_v43 = vadd.f32 %v5682_v41, %v5681_v61  ;;  %v10509_v61 = vmov 0.0   ;;  %v1974_v41 = vadd.f32 %v7530_v44, %v7191_v24  ;;  %vm3454_vm2 = vcmp.lt.s32.totalorder %v3421_v50, %v7606_v46 }
 0x308   : > { %2791 = vmatmul.mubr.bf16.gmra.mrb[208].mxu1 %v2651_v34  ;;  %v3551_v7 = vpop.xlane.xlu1 %3550  ;;  %v7615_v54 = vsel %vm3453_vm0, 1.0, %v10509_v61  ;;  %v7628_v27 = vsel %vm3452_vm1, 1.0, %v10509_v61 }
 0x309   : > { %3876 = vadd.xlane.f32.xlu0 %v7480_v33  ;;  %2798 = vmatprep.mubr.bf16.mxu1 %v10906_v52  ;;  %v2652_v33 = vpack.c.bf16 %v7604_v49, %v7602_v62  ;;  %v7633_v24 = vmax.f32 %v1974_v41, 0.0  ;;  %v3614_v50 = vmul.f32 %v7628_v27, %v3551_v7 }
 0x30a   : > { %v3553_v4 = vpop.xlane.xlu0 %3552 }
 0x30b   : > { %v5684_v55 = vpop.f32.mrb[104].mxu1  ;;  %v3615_v44 = vmul.f32 %v7615_v54, %v3553_v4  ;;  %10930 = vst [vmem:[#allocation74_spill] sm:$0xff] %v7633_v24  ;;  %v3422_v4 = vadd.s32 24, %v7588_v20 }
 0x30c   : > { %v5685_v34 = vpop.f32.mrb[105].mxu1  ;;  %v3841_v14 = vpop.xlane.xlu1 %3840 }
 0x30d   : > { %v7623_v47 = vadd.f32 %v5685_v34, %v5684_v55  ;;  %v5687_v16 = vpop.f32.mrb[106].mxu1  ;;  %3588 = vadd.xlane.f32.xlu0 %v7388_v45  ;;  %v7638_v55 = vsel %vm3454_vm2, 1.0, %v10509_v61  ;;  %v3646_v41 = vadd.f32 %v3615_v44, %v3614_v50  ;;  %v2653_v61 = vpack.c.bf16 %v7635_v53, %v7633_v24 }
 0x30e   : > { %v5688_v21 = vpop.f32.mrb[107].mxu1  ;;  %v3843_v1 = vpop.xlane.xlu0 %3842  ;;  %vm3455_vm3 = vcmp.lt.s32.totalorder %v3422_v4, %v7606_v46 }
 0x30f   : > { %v7631_v58 = vadd.f32 %v5688_v21, %v5687_v16  ;;  %v3905_v34 = vmul.f32 %v7615_v54, %v3843_v1  ;;  %v3904_v21 = vmul.f32 %v7628_v27, %v3841_v14 }
 0x310   : > { %2799 = vmatmul.mubr.bf16.gmra.mrb[212].mxu1 %v2652_v33 }
 0x311   : > { %3878 = vadd.xlane.f32.xlu0 %v7482_v13  ;;  %2806 = vmatprep.mubr.bf16.mxu1 %v10906_v52  ;;  %v3936_v52 = vadd.f32 %v3905_v34, %v3904_v21 }
 0x312   : > { %v3555_v16 = vpop.xlane.xlu0 %3554 }
 0x313   : > { %v3616_v26 = vmul.f32 %v7638_v55, %v3555_v16  ;;  %v5690_v33 = vpop.f32.mrb[108].mxu1  ;;  %v10932_v16 = vmov 0.0  }
 0x314   : > { %v5691_v45 = vpop.f32.mrb[109].mxu1  ;;  %v7657_v23 = vsel %vm3455_vm3, 1.0, %v10932_v16 }
 0x315   : > { %v3647_v7 = vadd.f32 %v3646_v41, %v3616_v26  ;;  %v7649_v1 = vadd.f32 %v5691_v45, %v5690_v33  ;;  %v5693_v13 = vpop.f32.mrb[110].mxu1  ;;  %3590 = vadd.xlane.f32.xlu0 %v7412_v22  ;;  %v3423_v45 = vadd.s32 32, %v7588_v20  ;;  %v6464_v26 = vld [vmem:[%s6805_s17 + $0x4] ss:$8 sps:$4 sm:$0xff]  }
 0x316   : > { %v5694_v14 = vpop.f32.mrb[111].mxu1  ;;  %v3845_v25 = vpop.xlane.xlu0 %3844 }
 0x317   : > { %v7653_v44 = vadd.f32 %v5694_v14, %v5693_v13  ;;  %v3906_v50 = vmul.f32 %v7638_v55, %v3845_v25  ;;  %vm3456_vm4 = vcmp.lt.s32.totalorder %v3423_v45, %v7606_v46 }
 0x318   : > { %2807 = vmatmul.mubr.bf16.gmra.mrb[216].mxu1 %v2653_v61 }
 0x319   : > { %3880 = vadd.xlane.f32.xlu0 %v7506_v18  ;;  %v3937_v41 = vadd.f32 %v3936_v52, %v3906_v50  ;;  %3064 = vmatprep.mubr.bf16.mxu1 %v6464_v26  ;;  %v7671_v50 = vsel %vm3456_vm4, 1.0, %v10932_v16 }
 0x31a   : > { %v3557_v33 = vpop.xlane.xlu0 %3556 }
 0x31b   : > { %v3617_v34 = vmul.f32 %v7657_v23, %v3557_v33  ;;  %v5696_v4 = vpop.f32.mrb[112].mxu1 }
 0x31c   : > { %v5697_v21 = vpop.f32.mrb[113].mxu1 }
 0x31d   : > { %v3648_v13 = vadd.f32 %v3647_v7, %v3617_v34  ;;  %v7663_v14 = vadd.f32 %v5697_v21, %v5696_v4  ;;  %v5699_v25 = vpop.f32.mrb[114].mxu1  ;;  %3592 = vadd.xlane.f32.xlu0 %v7414_v59  ;;  %v3424_v7 = vadd.s32 40, %v7588_v20 }
 0x31e   : > { %v5700_v61 = vpop.f32.mrb[115].mxu1  ;;  %v3847_v18 = vpop.xlane.xlu0 %3846 }
 0x31f   : > { %v7667_v22 = vadd.f32 %v5700_v61, %v5699_v25  ;;  %v3907_v52 = vmul.f32 %v7657_v23, %v3847_v18  ;;  %vm3457_vm5 = vcmp.lt.s32.totalorder %v3424_v7, %v7606_v46 }
 0x321   : > { %3882 = vadd.xlane.f32.xlu0 %v7508_v48  ;;  %v3938_v26 = vadd.f32 %v3937_v41, %v3907_v52  ;;  %v7684_v41 = vsel %vm3457_vm5, 1.0, %v10932_v16 }
 0x322   : > { %v3559_v33 = vpop.xlane.xlu0 %3558 }
 0x323   : > { %v3618_v34 = vmul.f32 %v7671_v50, %v3559_v33  ;;  %v5702_v4 = vpop.f32.mrb[116].mxu1 }
 0x324   : > { %v5703_v21 = vpop.f32.mrb[117].mxu1 }
 0x325   : > { %v3649_v45 = vadd.f32 %v3648_v13, %v3618_v34  ;;  %v7676_v59 = vadd.f32 %v5703_v21, %v5702_v4  ;;  %v5705_v25 = vpop.f32.mrb[118].mxu1  ;;  %3594 = vadd.xlane.f32.xlu0 %v7438_v51  ;;  %v3425_v13 = vadd.s32 48, %v7588_v20 }
 0x326   : > { %v5706_v18 = vpop.f32.mrb[119].mxu1  ;;  %v3849_v61 = vpop.xlane.xlu0 %3848 }
 0x327   : > { %v7680_v12 = vadd.f32 %v5706_v18, %v5705_v25  ;;  %v3908_v48 = vmul.f32 %v7671_v50, %v3849_v61  ;;  %vm3458_vm6 = vcmp.lt.s32.totalorder %v3425_v13, %v7606_v46 }
 0x329   : > { %3884 = vadd.xlane.f32.xlu0 %v7532_v2  ;;  %v3939_v52 = vadd.f32 %v3938_v26, %v3908_v48  ;;  %v7697_v26 = vsel %vm3458_vm6, 1.0, %v10932_v16 }
 0x32a   : > { %v3561_v33 = vpop.xlane.xlu0 %3560 }
 0x32b   : > { %v3619_v34 = vmul.f32 %v7684_v41, %v3561_v33  ;;  %v5708_v4 = vpop.f32.mrb[120].mxu1 }
 0x32c   : > { %v5709_v21 = vpop.f32.mrb[121].mxu1 }
 0x32d   : > { %v3650_v7 = vadd.f32 %v3649_v45, %v3619_v34  ;;  %v7689_v51 = vadd.f32 %v5709_v21, %v5708_v4  ;;  %v5711_v25 = vpop.f32.mrb[122].mxu1  ;;  %3596 = vadd.xlane.f32.xlu0 %v7440_v6  ;;  %v3426_v45 = vadd.s32 56, %v7588_v20 }
 0x32e   : > { %v5712_v18 = vpop.f32.mrb[123].mxu1  ;;  %v3851_v61 = vpop.xlane.xlu0 %3850 }
 0x32f   : > { %v7693_v9 = vadd.f32 %v5712_v18, %v5711_v25  ;;  %v3909_v48 = vmul.f32 %v7684_v41, %v3851_v61  ;;  %vm3459_vm7 = vcmp.lt.s32.totalorder %v3426_v45, %v7606_v46 }
 0x331   : > { %v3940_v33 = vadd.f32 %v3939_v52, %v3909_v48  ;;  %3886 = vadd.xlane.f32.xlu0 %v7534_v39  ;;  %v7710_v39 = vsel %vm3459_vm7, 1.0, %v10932_v16 }
 0x332   : > { %v3563_v34 = vpop.xlane.xlu0 %3562 }
 0x333   : > { %v3620_v4 = vmul.f32 %v7697_v26, %v3563_v34  ;;  %v5714_v21 = vpop.f32.mrb[124].mxu1 }
 0x334   : > { %v5715_v2 = vpop.f32.mrb[125].mxu1 }
 0x335   : > { %v3651_v13 = vadd.f32 %v3650_v7, %v3620_v4  ;;  %v7702_v6 = vadd.f32 %v5715_v2, %v5714_v21  ;;  %v5717_v25 = vpop.f32.mrb[126].mxu1  ;;  %3598 = vadd.xlane.f32.xlu0 %v7464_v28  ;;  %v3427_v2 = vadd.s32 64, %v7588_v20 }
 0x336   : > { %v5718_v18 = vpop.f32.mrb[127].mxu1  ;;  %v3853_v61 = vpop.xlane.xlu0 %3852 }
 0x337   : > { %v7706_v52 = vadd.f32 %v5718_v18, %v5717_v25  ;;  %v3910_v48 = vmul.f32 %v7697_v26, %v3853_v61  ;;  %vm3460_vm8 = vcmp.lt.s32.totalorder %v3427_v2, %v7606_v46 }
 0x339   : > { %v3941_v34 = vadd.f32 %v3940_v33, %v3910_v48  ;;  %3888 = vadd.xlane.f32.xlu0 %v7557_v19  ;;  %v7723_v19 = vsel %vm3460_vm8, 1.0, %v10932_v16 }
 0x33a   : > { %v3565_v7 = vpop.xlane.xlu0 %3564 }
 0x33b   : > { %v3621_v4 = vmul.f32 %v7710_v39, %v3565_v7  ;;  %v5720_v21 = vpop.f32.mrb[128].mxu1 }
 0x33c   : > { %v5721_v28 = vpop.f32.mrb[129].mxu1 }
 0x33d   : > { %v3652_v45 = vadd.f32 %v3651_v13, %v3621_v4  ;;  %v7715_v40 = vadd.f32 %v5721_v28, %v5720_v21  ;;  %v5723_v25 = vpop.f32.mrb[130].mxu1  ;;  %3600 = vadd.xlane.f32.xlu0 %v7466_v30  ;;  %v3428_v28 = vadd.s32 72, %v7588_v20 }
 0x33e   : > { %v5724_v18 = vpop.f32.mrb[131].mxu1  ;;  %v3855_v61 = vpop.xlane.xlu0 %3854 }
 0x33f   : > { %v7719_v33 = vadd.f32 %v5724_v18, %v5723_v25  ;;  %v3911_v48 = vmul.f32 %v7710_v39, %v3855_v61  ;;  %vm3461_vm9 = vcmp.lt.s32.totalorder %v3428_v28, %v7606_v46 }
 0x341   : > { %v3942_v7 = vadd.f32 %v3941_v34, %v3911_v48  ;;  %3890 = vadd.xlane.f32.xlu0 %v7559_v8  ;;  %v7736_v8 = vsel %vm3461_vm9, 1.0, %v10932_v16 }
 0x342   : > { %v3567_v13 = vpop.xlane.xlu0 %3566 }
 0x343   : > { %v3622_v4 = vmul.f32 %v7723_v19, %v3567_v13  ;;  %v5726_v21 = vpop.f32.mrb[132].mxu1 }
 0x344   : > { %v5727_v2 = vpop.f32.mrb[133].mxu1 }
 0x345   : > { %v3653_v30 = vadd.f32 %v3652_v45, %v3622_v4  ;;  %v7728_v36 = vadd.f32 %v5727_v2, %v5726_v21  ;;  %v5729_v25 = vpop.f32.mrb[134].mxu1  ;;  %3602 = vadd.xlane.f32.xlu0 %v7490_v32  ;;  %v3429_v45 = vadd.s32 80, %v7588_v20  ;;  %v7741_v21 = vld [vmem:[%s7183_s24 + $0x1] ss:$0 sm:$0xff] }
 0x346   : > { %v5730_v18 = vpop.f32.mrb[135].mxu1  ;;  %v3857_v34 = vpop.xlane.xlu0 %3856  ;;  %v7745_v28 = vadd.f32 %v7741_v21, %v7552_v15  ;;  %v7755_v15 = vadd.f32 %v7741_v21, %v7574_v5  ;;  %v7786_v37 = vadd.f32 %v7741_v21, %v7596_v38  ;;  %v7817_v31 = vadd.f32 %v7741_v21, %v7623_v47 }
 0x347   : > { %v7732_v61 = vadd.f32 %v5730_v18, %v5729_v25  ;;  %v3912_v48 = vmul.f32 %v7723_v19, %v3857_v34  ;;  %vm3462_vm10 = vcmp.lt.s32.totalorder %v3429_v45, %v7606_v46  ;;  %v3430_v45 = vadd.s32 88, %v7588_v20 }
 0x348   : > { %10933 = vst [vmem:[#allocation76_spill] sm:$0xff] %v7745_v28  ;;  %10934 = vst [vmem:[#allocation77_spill] sm:$0xff] %v7755_v15  ;;  %v7833_v47 = vadd.f32 %v7741_v21, %v7631_v58  ;;  %v7848_v49 = vadd.f32 %v7741_v21, %v7649_v1 }
 0x349   : > { %v3943_v13 = vadd.f32 %v3942_v7, %v3912_v48  ;;  %3892 = vadd.xlane.f32.xlu0 %v7581_v57  ;;  %v10536_v57 = vmax.f32 %v7745_v28, 0.0  ;;  %vm3463_vm11 = vcmp.lt.s32.totalorder %v3430_v45, %v7606_v46  ;;  %10936 = vst [vmem:[#allocation79_spill] sm:$0xff] %v7786_v37  ;;  %v10551_v28 = vmax.f32 %v7786_v37, 0.0  ;;  %10941 = vst [vmem:[#allocation84_spill] sm:$0xff] %v7817_v31 }
 0x34a   : > { %v3569_v4 = vpop.xlane.xlu0 %3568  ;;  %10944 = vst [vmem:[#allocation87_spill] sm:$0xff] %v7833_v47  ;;  %10946 = vst [vmem:[#allocation89_spill] sm:$0xff] %v7848_v49 }
 0x34b   : > { %v3623_v2 = vmul.f32 %v7736_v8, %v3569_v4  ;;  %v5732_v25 = vpop.f32.mrb[136].mxu1 }
 0x34c   : > { %v5733_v18 = vpop.f32.mrb[137].mxu1 }
 0x34d   : > { %v3654_v34 = vadd.f32 %v3653_v30, %v3623_v2  ;;  %v7748_v32 = vadd.f32 %v5733_v18, %v5732_v25  ;;  %v5735_v3 = vpop.f32.mrb[138].mxu1  ;;  %3894 = vadd.xlane.f32.xlu0 %v7583_v10  ;;  %v7761_v30 = vsel %vm3462_vm10, 1.0, %v10932_v16  ;;  %v10541_v10 = vmax.f32 %v7755_v15, 0.0 }
 0x34e   : > { %v5736_v7 = vpop.f32.mrb[139].mxu1  ;;  %v3859_v48 = vpop.xlane.xlu0 %3858 }
 0x34f   : > { %v7757_v56 = vadd.f32 %v5736_v7, %v5735_v3  ;;  %v3913_v4 = vmul.f32 %v7736_v8, %v3859_v48  ;;  %v7771_v3 = vadd.f32 %v7741_v21, %v7579_v0 }
 0x351   : > { %v3944_v2 = vadd.f32 %v3943_v13, %v3913_v4  ;;  %4147 = vadd.xlane.f32.xlu0 %v10536_v57  ;;  %10935 = vst [vmem:[#allocation78_spill] sm:$0xff] %v7771_v3 }
 0x352   : > { %v3571_v25 = vpop.xlane.xlu0 %3570  ;;  %v7766_v18 = vpop.f32.mrb[100].mxu0 }
 0x353   : > { %v3624_v5 = vmul.f32 %v7761_v30, %v3571_v25  ;;  %v5738_v7 = vpop.f32.mrb[140].mxu1  ;;  %v2497_v48 = vpop.f32.mrb[101].mxu0 }
 0x354   : > { %v5739_v63 = vpop.f32.mrb[141].mxu1  ;;  %v7774_v13 = vpop.f32.mrb[102].mxu0  ;;  %v10543_v48 = vmax.f32 %v7771_v3, 0.0  ;;  %v10561_v3 = vmax.f32 %v7817_v31, 0.0 }
 0x355   : > { %v3655_v4 = vadd.f32 %v3654_v34, %v3624_v5  ;;  %v7776_v57 = vadd.f32 %v5739_v63, %v5738_v7  ;;  %v5741_v60 = vpop.f32.mrb[142].mxu1  ;;  %4151 = vadd.xlane.f32.xlu0 %v10541_v10  ;;  %v2500_v42 = vpop.f32.mrb[103].mxu0  ;;  %v7792_v5 = vsel %vm3463_vm11, 1.0, %v10932_v16 }
 0x356   : > { %v5742_v0 = vpop.f32.mrb[143].mxu1  ;;  %v3861_v25 = vpop.xlane.xlu0 %3860  ;;  %10938 = vst [vmem:[#allocation81_spill] sm:$0xff] %v7792_v5  ;;  %v3431_v42 = vadd.s32 96, %v7588_v20 }
 0x357   : > { %v7788_v63 = vadd.f32 %v5742_v0, %v5741_v60  ;;  %v3914_v34 = vmul.f32 %v7761_v30, %v3861_v25  ;;  %v7802_v60 = vadd.f32 %v7741_v21, %v7600_v43 }
 0x358   : > { %vm3464_vm12 = vcmp.lt.s32.totalorder %v3431_v42, %v7606_v46 }
 0x359   : > { %10937 = vst [vmem:[#allocation80_spill] sm:$0xff] %v7788_v63  ;;  %v3945_v7 = vadd.f32 %v3944_v2, %v3914_v34  ;;  %4153 = vadd.xlane.f32.xlu0 %v10543_v48  ;;  %10939 = vst [vmem:[#allocation82_spill] sm:$0xff] %v7802_v60 }
 0x35a   : > { %v3573_v45 = vpop.xlane.xlu0 %3572  ;;  %v7797_v10 = vpop.f32.mrb[104].mxu0 }
 0x35b   : > { %v3625_v38 = vmul.f32 %v7792_v5, %v3573_v45  ;;  %v5744_v0 = vpop.f32.mrb[144].mxu1  ;;  %v2505_v25 = vpop.f32.mrb[105].mxu0 }
 0x35c   : > { %v5745_v15 = vpop.f32.mrb[145].mxu1  ;;  %v7805_v2 = vpop.f32.mrb[106].mxu0  ;;  %v10553_v25 = vmax.f32 %v7802_v60, 0.0  ;;  %v10565_v60 = vmax.f32 %v7848_v49, 0.0 }
 0x35d   : > { %v3656_v34 = vadd.f32 %v3655_v4, %v3625_v38  ;;  %v7807_v48 = vadd.f32 %v5745_v15, %v5744_v0  ;;  %v5747_v17 = vpop.f32.mrb[146].mxu1  ;;  %4155 = vadd.xlane.f32.xlu0 %v10551_v28  ;;  %v2508_v53 = vpop.f32.mrb[107].mxu0  ;;  %v7823_v38 = vsel %vm3464_vm12, 1.0, %v10932_v16 }
 0x35e   : > { %v5748_v43 = vpop.f32.mrb[147].mxu1  ;;  %v3863_v45 = vpop.xlane.xlu0 %3862  ;;  %10943 = vst [vmem:[#allocation86_spill] sm:$0xff] %v7823_v38  ;;  %v3432_v53 = vadd.s32 104, %v7588_v20 }
 0x35f   : > { %10940 = vst [vmem:[#allocation83_spill] sm:$0xff] %v7807_v48  ;;  %v7819_v15 = vadd.f32 %v5748_v43, %v5747_v17  ;;  %v3915_v4 = vmul.f32 %v7792_v5, %v3863_v45 }
 0x360   : > { %vm3465_vm13 = vcmp.lt.s32.totalorder %v3432_v53, %v7606_v46 }
 0x361   : > { %10942 = vst [vmem:[#allocation85_spill] sm:$0xff] %v7819_v15  ;;  %v3946_v0 = vadd.f32 %v3945_v7, %v3915_v4  ;;  %4157 = vadd.xlane.f32.xlu0 %v10553_v25  ;;  %v7879_v15 = vadd.f32 %v7741_v21, %v7663_v14  ;;  %v7894_v14 = vadd.f32 %v7741_v21, %v7667_v22 }
 0x362   : > { %v3575_v42 = vpop.xlane.xlu0 %3574  ;;  %v7828_v28 = vpop.f32.mrb[108].mxu0 }
 0x363   : > { %v3626_v17 = vmul.f32 %v7823_v38, %v3575_v42  ;;  %v5750_v43 = vpop.f32.mrb[148].mxu1  ;;  %v2513_v45 = vpop.f32.mrb[109].mxu0  ;;  %10951 = vst [vmem:[#allocation94_spill] sm:$0xff] %v7879_v15  ;;  %10954 = vst [vmem:[#allocation97_spill] sm:$0xff] %v7894_v14 }
 0x364   : > { %v5751_v37 = vpop.f32.mrb[149].mxu1  ;;  %v7836_v7 = vpop.f32.mrb[110].mxu0  ;;  %v10563_v45 = vmax.f32 %v7833_v47, 0.0 }
 0x365   : > { %v3657_v4 = vadd.f32 %v3656_v34, %v3626_v17  ;;  %v7838_v25 = vadd.f32 %v5751_v37, %v5750_v43  ;;  %v5753_v24 = vpop.f32.mrb[150].mxu1  ;;  %4159 = vadd.xlane.f32.xlu0 %v10561_v3  ;;  %v2516_v11 = vpop.f32.mrb[111].mxu0  ;;  %v7854_v17 = vsel %vm3465_vm13, 1.0, %v10932_v16 }
 0x366   : > { %v5754_v58 = vpop.f32.mrb[151].mxu1  ;;  %v3865_v42 = vpop.xlane.xlu0 %3864  ;;  %10948 = vst [vmem:[#allocation91_spill] sm:$0xff] %v7854_v17  ;;  %v3433_v11 = vadd.s32 112, %v7588_v20 }
 0x367   : > { %10945 = vst [vmem:[#allocation88_spill] sm:$0xff] %v7838_v25  ;;  %v7850_v37 = vadd.f32 %v5754_v58, %v5753_v24  ;;  %v3916_v34 = vmul.f32 %v7823_v38, %v3865_v42  ;;  %v7864_v24 = vadd.f32 %v7741_v21, %v7653_v44  ;;  %v8007_v38 = vadd.f32 %v7741_v21, %v7728_v36 }
 0x368   : > { %vm3466_vm14 = vcmp.lt.s32.totalorder %v3433_v11, %v7606_v46  ;;  %v8021_v36 = vadd.f32 %v7741_v21, %v7732_v61 }
 0x369   : > { %10947 = vst [vmem:[#allocation90_spill] sm:$0xff] %v7850_v37  ;;  %v3947_v43 = vadd.f32 %v3946_v0, %v3916_v34  ;;  %4161 = vadd.xlane.f32.xlu0 %v10563_v45  ;;  %10949 = vst [vmem:[#allocation92_spill] sm:$0xff] %v7864_v24 }
 0x36a   : > { %v3577_v53 = vpop.xlane.xlu0 %3576  ;;  %v7859_v3 = vpop.f32.mrb[112].mxu0  ;;  %10963 = vst [vmem:[#allocation106_spill] sm:$0xff] %v8007_v38  ;;  %10965 = vst [vmem:[#allocation107_spill] sm:$0xff] %v8021_v36 }
 0x36b   : > { %v3627_v1 = vmul.f32 %v7854_v17, %v3577_v53  ;;  %v5756_v58 = vpop.f32.mrb[152].mxu1  ;;  %v2521_v42 = vpop.f32.mrb[113].mxu0 }
 0x36c   : > { %v5757_v31 = vpop.f32.mrb[153].mxu1  ;;  %v7867_v0 = vpop.f32.mrb[114].mxu0  ;;  %v10567_v42 = vmax.f32 %v7864_v24, 0.0 }
 0x36d   : > { %v3658_v34 = vadd.f32 %v3657_v4, %v3627_v1  ;;  %v7869_v45 = vadd.f32 %v5757_v31, %v5756_v58  ;;  %v5759_v37 = vpop.f32.mrb[154].mxu1  ;;  %4163 = vadd.xlane.f32.xlu0 %v10565_v60  ;;  %v2524_v25 = vpop.f32.mrb[115].mxu0  ;;  %v7885_v1 = vsel %vm3466_vm14, 1.0, %v10932_v16  ;;  %v10569_v60 = vmax.f32 %v7879_v15, 0.0 }
 0x36e   : > { %v5760_v44 = vpop.f32.mrb[155].mxu1  ;;  %v3867_v53 = vpop.xlane.xlu0 %3866  ;;  %10953 = vst [vmem:[#allocation96_spill] sm:$0xff] %v7885_v1 }
 0x36f   : > { %10950 = vst [vmem:[#allocation93_spill] sm:$0xff] %v7869_v45  ;;  %v7881_v31 = vadd.f32 %v5760_v44, %v5759_v37  ;;  %v3917_v4 = vmul.f32 %v7854_v17, %v3867_v53  ;;  %v10570_v45 = vmax.f32 %v7894_v14, 0.0 }
 0x371   : > { %10952 = vst [vmem:[#allocation95_spill] sm:$0xff] %v7881_v31  ;;  %v3948_v58 = vadd.f32 %v3947_v43, %v3917_v4  ;;  %4165 = vadd.xlane.f32.xlu0 %v10567_v42 }
 0x372   : > { %v3579_v25 = vpop.xlane.xlu0 %3578  ;;  %v7889_v11 = vpop.f32.mrb[116].mxu0 }
 0x373   : > { %v3628_v37 = vmul.f32 %v7885_v1, %v3579_v25  ;;  %v2529_v44 = vpop.f32.mrb[117].mxu0  ;;  %v2688_v53 = vpop.f32.mrb[156].mxu1  ;;  %v7908_v25 = vadd.f32 %v7741_v21, %v7676_v59 }
 0x374   : > { %v7897_v47 = vpop.f32.mrb[118].mxu0  ;;  %v2689_v49 = vpop.f32.mrb[157].mxu1 }
 0x375   : > { %v7899_v43 = vadd.f32 %v3658_v34, %v3628_v37  ;;  %v2691_v42 = vpop.f32.mrb[158].mxu1  ;;  %4167 = vadd.xlane.f32.xlu0 %v10569_v60  ;;  %v2532_v24 = vpop.f32.mrb[119].mxu0  ;;  %10955 = vst [vmem:[#allocation98_spill] sm:$0xff] %v7908_v25  ;;  %v10573_v53 = vmax.f32 %v7908_v25, 0.0  ;;  %v7924_v60 = vadd.f32 %v7741_v21, %v7680_v12  ;;  %v7937_v12 = vadd.f32 %v7741_v21, %v7689_v51 }
 0x376   : > { %v2692_v31 = vpop.f32.mrb[159].mxu1  ;;  %v3869_v22 = vpop.xlane.xlu0 %3868 }
 0x377   : > { %v7910_v44 = vpack.c.bf16 %v2692_v31, %v2689_v49  ;;  %v3918_v34 = vmul.f32 %v7885_v1, %v3869_v22  ;;  %10956 = vst [vmem:[#allocation99_spill] sm:$0xff] %v7924_v60  ;;  %v10577_v15 = vmax.f32 %v7924_v60, 0.0  ;;  %10957 = vst [vmem:[#allocation100_spill] sm:$0xff] %v7937_v12 }
 0x379   : > { %v7913_v37 = vadd.f32 %v3948_v58, %v3918_v34  ;;  %4169 = vadd.xlane.f32.xlu0 %v10570_v45 }
 0x37a   : > { %v7917_v42 = vpop.xlane.xlu0 %3580  ;;  %v7919_v24 = vpop.f32.mrb[120].mxu0 }
 0x37b   : > { %v2537_v59 = vpop.f32.mrb[121].mxu0  ;;  %v2696_v49 = vpop.f32.mrb[160].mxu1 }
 0x37c   : > { %v7926_v31 = vpop.f32.mrb[122].mxu0  ;;  %v2697_v22 = vpop.f32.mrb[161].mxu1 }
 0x37d   : > { %v2699_v34 = vpop.f32.mrb[162].mxu1  ;;  %4171 = vadd.xlane.f32.xlu0 %v10573_v53  ;;  %v2540_v45 = vpop.f32.mrb[123].mxu0  ;;  %v7950_v53 = vadd.f32 %v7741_v21, %v7693_v9  ;;  %v7963_v9 = vadd.f32 %v7741_v21, %v7702_v6 }
 0x37e   : > { %v2700_v4 = vpop.f32.mrb[163].mxu1  ;;  %v7932_v14 = vpop.xlane.xlu0 %3870  ;;  %v10581_v45 = vmax.f32 %v7937_v12, 0.0 }
 0x37f   : > { %v7939_v59 = vpack.c.bf16 %v2700_v4, %v2697_v22  ;;  %10958 = vst [vmem:[#allocation101_spill] sm:$0xff] %v7950_v53  ;;  %v10585_v48 = vmax.f32 %v7950_v53, 0.0  ;;  %10959 = vst [vmem:[#allocation102_spill] sm:$0xff] %v7963_v9 }
 0x381   : > { %4173 = vadd.xlane.f32.xlu0 %v10577_v15 }
 0x382   : > { %v7943_v49 = vpop.xlane.xlu0 %3582  ;;  %v7945_v34 = vpop.f32.mrb[124].mxu0 }
 0x383   : > { %v2545_v58 = vpop.f32.mrb[125].mxu0  ;;  %v2704_v25 = vpop.f32.mrb[164].mxu1 }
 0x384   : > { %v7952_v35 = vpop.f32.mrb[126].mxu0  ;;  %v2705_v51 = vpop.f32.mrb[165].mxu1 }
 0x385   : > { %v2707_v22 = vpop.f32.mrb[166].mxu1  ;;  %4175 = vadd.xlane.f32.xlu0 %v10581_v45  ;;  %v2548_v15 = vpop.f32.mrb[127].mxu0 }
 0x386   : > { %v2708_v60 = vpop.f32.mrb[167].mxu1  ;;  %v7958_v62 = vpop.xlane.xlu0 %3872  ;;  %v10587_v22 = vmax.f32 %v7963_v9, 0.0  ;;  %v7974_v15 = vadd.f32 %v7741_v21, %v7706_v52  ;;  %v7987_v52 = vadd.f32 %v7741_v21, %v7715_v40 }
 0x387   : > { %v7965_v25 = vpack.c.bf16 %v2708_v60, %v2705_v51 }
 0x388   : > { %10960 = vst [vmem:[#allocation103_spill] sm:$0xff] %v7974_v15  ;;  %v10594_v63 = vmax.f32 %v7974_v15, 0.0  ;;  %10961 = vst [vmem:[#allocation104_spill] sm:$0xff] %v7987_v52 }
 0x389   : > { %4177 = vadd.xlane.f32.xlu0 %v10585_v48 }
 0x38a   : > { %v7969_v58 = vpop.xlane.xlu0 %3584  ;;  %v7976_v45 = vpop.f32.mrb[128].mxu0 }
 0x38b   : > { %v2712_v4 = vpop.f32.mrb[168].mxu1  ;;  %v2553_v12 = vpop.f32.mrb[129].mxu0 }
 0x38c   : > { %v2713_v29 = vpop.f32.mrb[169].mxu1  ;;  %v7978_v6 = vpop.f32.mrb[130].mxu0 }
 0x38d   : > { %v2715_v60 = vpop.f32.mrb[170].mxu1  ;;  %4179 = vadd.xlane.f32.xlu0 %v10587_v22  ;;  %v2556_v48 = vpop.f32.mrb[131].mxu0  ;;  %v10599_v22 = vmax.f32 %v7987_v52, 0.0 }
 0x38e   : > { %v2716_v53 = vpop.f32.mrb[171].mxu1  ;;  %v7991_v12 = vpop.xlane.xlu0 %3874  ;;  %v7998_v48 = vadd.f32 %v7741_v21, %v7719_v33 }
 0x38f   : > { %v7989_v4 = vpack.c.bf16 %v2716_v53, %v2713_v29 }
 0x390   : > { %10962 = vst [vmem:[#allocation105_spill] sm:$0xff] %v7998_v48 }
 0x391   : > { %4181 = vadd.xlane.f32.xlu0 %v10594_v63  ;;  %v10600_v63 = vmax.f32 %v7998_v48, 0.0 }
 0x392   : > { %v2559_v60 = vpop.f32.mrb[132].mxu0  ;;  %v8000_v51 = vpop.xlane.xlu0 %3586 }
 0x393   : > { %v2561_v9 = vpop.f32.mrb[133].mxu0  ;;  %v2720_v1 = vpop.f32.mrb[172].mxu1 }
 0x394   : > { %v2562_v40 = vpop.f32.mrb[134].mxu0  ;;  %v2721_v29 = vpop.f32.mrb[173].mxu1  ;;  %v10964_v1 = vpack.c.bf16 %v7774_v13, %v7766_v18 }
 0x395   : > { %v2630_v17 = vpack.c.bf16 %v2562_v40, %v2559_v60  ;;  %4183 = vadd.xlane.f32.xlu0 %v10599_v22  ;;  %v2564_v53 = vpop.f32.mrb[135].mxu0  ;;  %v2723_v15 = vpop.f32.mrb[174].mxu1  ;;  %v10602_v60 = vmax.f32 %v8007_v38, 0.0 }
 0x396   : > { %v2724_v33 = vpop.f32.mrb[175].mxu1  ;;  %v8009_v5 = vpop.xlane.xlu0 %3876 }
 0x397   : > { %5762 = vmatprep.subr.bf16.mxu0 %v2630_v17  ;;  %v8011_v9 = vpack.c.bf16 %v2724_v33, %v2721_v29 }
 0x398   : > { %5763 = vmatpush3.bf16.msra.mxu0 %v10964_v1  ;;  %v10603_v1 = vmax.f32 %v8021_v36, 0.0 }
 0x399   : > { %4185 = vadd.xlane.f32.xlu0 %v10600_v63  ;;  %v8030_v63 = vadd.f32 %v7741_v21, %v7748_v32  ;;  %v8044_v32 = vadd.f32 %v7741_v21, %v7757_v56 }
 0x39a   : > { %v2567_v15 = vpop.f32.mrb[136].mxu0  ;;  %v8023_v40 = vpop.xlane.xlu0 %3588 }
 0x39b   : > { %v2569_v53 = vpop.f32.mrb[137].mxu0  ;;  %v2728_v17 = vpop.f32.mrb[176].mxu1  ;;  %10966 = vst [vmem:[#allocation108_spill] sm:$0xff] %v8030_v63  ;;  %10968 = vst [vmem:[#allocation109_spill] sm:$0xff] %v8044_v32 }
 0x39c   : > { %v2570_v29 = vpop.f32.mrb[138].mxu0  ;;  %v2729_v22 = vpop.f32.mrb[177].mxu1 }
 0x39d   : > { %v2631_v33 = vpack.c.bf16 %v2570_v29, %v2567_v15  ;;  %4187 = vadd.xlane.f32.xlu0 %v10602_v60  ;;  %v2572_v18 = vpop.f32.mrb[139].mxu0  ;;  %v2731_v13 = vpop.f32.mrb[178].mxu1  ;;  %v10967_v15 = vpack.c.bf16 %v7805_v2, %v7797_v10  ;;  %v10605_v29 = vmax.f32 %v8030_v63, 0.0 }
 0x39e   : > { %v2732_v61 = vpop.f32.mrb[179].mxu1  ;;  %v8032_v48 = vpop.xlane.xlu0 %3878 }
 0x39f   : > { %5764 = vmatprep.subr.bf16.mxu0 %v2631_v33  ;;  %v8034_v53 = vpack.c.bf16 %v2732_v61, %v2729_v22 }
 0x3a0   : > { %5765 = vmatpush3.bf16.msra.mxu0 %v10967_v15  ;;  %v10608_v15 = vmax.f32 %v8044_v32, 0.0 }
 0x3a1   : > { %4189 = vadd.xlane.f32.xlu0 %v10603_v1  ;;  %v8053_v1 = vadd.f32 %v7741_v21, %v7776_v57 }
 0x3a2   : > { %v2575_v17 = vpop.f32.mrb[140].mxu0  ;;  %v8046_v18 = vpop.xlane.xlu0 %3590 }
 0x3a3   : > { %v2577_v13 = vpop.f32.mrb[141].mxu0  ;;  %v2736_v33 = vpop.f32.mrb[180].mxu1  ;;  %10969 = vst [vmem:[#allocation110_spill] sm:$0xff] %v8053_v1 }
 0x3a4   : > { %v2578_v22 = vpop.f32.mrb[142].mxu0  ;;  %v2737_v60 = vpop.f32.mrb[181].mxu1 }
 0x3a5   : > { %v2632_v61 = vpack.c.bf16 %v2578_v22, %v2575_v17  ;;  %4191 = vadd.xlane.f32.xlu0 %v10605_v29  ;;  %v2580_v10 = vpop.f32.mrb[143].mxu0  ;;  %v2739_v2 = vpop.f32.mrb[182].mxu1  ;;  %v10970_v17 = vpack.c.bf16 %v7836_v7, %v7828_v28  ;;  %v10607_v22 = vmax.f32 %v8053_v1, 0.0 }
 0x3a6   : > { %v2740_v56 = vpop.f32.mrb[183].mxu1  ;;  %v8055_v36 = vpop.xlane.xlu0 %3880 }
 0x3a7   : > { %5766 = vmatprep.subr.bf16.mxu0 %v2632_v61  ;;  %v8057_v13 = vpack.c.bf16 %v2740_v56, %v2737_v60 }
 0x3a8   : > { %5767 = vmatpush3.bf16.msra.mxu0 %v10970_v17  ;;  %v10971_v17 = vpack.c.bf16 %v7867_v0, %v7859_v3  ;;  %v3437_v3 = vadd.s32 144, %v7588_v20 }
 0x3a9   : > { %4193 = vadd.xlane.f32.xlu0 %v10608_v15 }
 0x3aa   : > { %v2583_v33 = vpop.f32.mrb[144].mxu0  ;;  %v8065_v10 = vpop.xlane.xlu0 %3592  ;;  %vm3470_vm2 = vcmp.lt.s32.totalorder %v3437_v3, %v7606_v46 }
 0x3ab   : > { %v2585_v57 = vpop.f32.mrb[145].mxu0  ;;  %v2744_v21 = vpop.f32.mrb[184].mxu1 }
 0x3ac   : > { %v2586_v2 = vpop.f32.mrb[146].mxu0  ;;  %v2745_v63 = vpop.f32.mrb[185].mxu1  ;;  %v3434_v57 = vadd.s32 120, %v7588_v20 }
 0x3ad   : > { %v2633_v29 = vpack.c.bf16 %v2586_v2, %v2583_v33  ;;  %4195 = vadd.xlane.f32.xlu0 %v10607_v22  ;;  %v2588_v60 = vpop.f32.mrb[147].mxu0  ;;  %v2747_v61 = vpop.f32.mrb[186].mxu1  ;;  %v3435_v33 = vadd.s32 128, %v7588_v20 }
 0x3ae   : > { %v2748_v28 = vpop.f32.mrb[187].mxu1  ;;  %v8069_v7 = vpop.xlane.xlu0 %3882  ;;  %vm3467_vm15 = vcmp.lt.s32.totalorder %v3434_v57, %v7606_v46 }
 0x3af   : > { %5768 = vmatprep.subr.bf16.mxu0 %v2633_v29  ;;  %v8071_v56 = vpack.c.bf16 %v2748_v28, %v2745_v63  ;;  %v3436_v29 = vadd.s32 136, %v7588_v20  ;;  %vm3468_vm0 = vcmp.lt.s32.totalorder %v3435_v33, %v7606_v46 }
 0x3b0   : > { %5769 = vmatpush3.bf16.msra.mxu0 %v10971_v17  ;;  %v3438_v17 = vadd.s32 152, %v7588_v20  ;;  %v8099_v33 = vsel %vm3468_vm0, 1.0, %v10932_v16  ;;  %vm6631_vm0 = vmmov 0  }
 0x3b1   : > { %vm3469_vm1 = vcmp.lt.s32.totalorder %v3436_v29, %v7606_v46  ;;  %10974 = vst [vmem:[#allocation112_spill] sm:$0xff] %v8099_v33  ;;  %v3920_v29 = vmul.f32 %v8099_v33, %v7958_v62 }
 0x3b2   : > { %v2591_v21 = vpop.f32.mrb[148].mxu0  ;;  %v8078_v2 = vpop.xlane.xlu0 %3594  ;;  %vm3471_vm3 = vcmp.lt.s32.totalorder %v3438_v17, %v7606_v46 }
 0x3b3   : > { %v2593_v22 = vpop.f32.mrb[149].mxu0  ;;  %v2752_v60 = vpop.f32.mrb[188].mxu1  ;;  %v8127_v62 = vsel %vm3471_vm3, 1.0, %v10932_v16 }
 0x3b4   : > { %v2594_v61 = vpop.f32.mrb[150].mxu0  ;;  %v2753_v28 = vpop.f32.mrb[189].mxu1  ;;  %v8088_v22 = vsel %vm3467_vm15, 1.0, %v10932_v16  ;;  %v3439_v60 = vadd.s32 160, %v7588_v20  ;;  %10976 = vst [vmem:[#allocation114_spill] sm:$0xff] %v8127_v62 }
 0x3b5   : > { %v2634_v63 = vpack.c.bf16 %v2594_v61, %v2591_v21  ;;  %v2596_v15 = vpop.f32.mrb[151].mxu0  ;;  %v2755_v0 = vpop.f32.mrb[190].mxu1  ;;  %10972 = vst [vmem:[#allocation111_spill] sm:$0xff] %v8088_v22  ;;  %v10973_v21 = vpack.c.bf16 %v7897_v47, %v7889_v11  ;;  %v3629_v61 = vmul.f32 %v8088_v22, %v7917_v42  ;;  %v3440_v47 = vadd.s32 168, %v7588_v20 }
 0x3b6   : > { %v2756_v1 = vpop.f32.mrb[191].mxu1  ;;  %v8085_v32 = vpop.xlane.xlu0 %3884  ;;  %v3919_v15 = vmul.f32 %v8088_v22, %v7932_v14  ;;  %v3630_v42 = vmul.f32 %v8099_v33, %v7943_v49  ;;  %v8119_v0 = vsel %vm3470_vm2, 1.0, %v10932_v16  ;;  %vm3472_vm4 = vcmp.lt.s32.totalorder %v3439_v60, %v7606_v46 }
 0x3b7   : > { %5770 = vmatprep.subr.bf16.mxu0 %v2634_v63  ;;  %v8090_v57 = vpack.c.bf16 %v2756_v1, %v2753_v28  ;;  %v8114_v63 = vsel %vm3469_vm1, 1.0, %v10932_v16  ;;  %10975 = vst [vmem:[#allocation113_spill] sm:$0xff] %v8119_v0  ;;  %v3660_v49 = vadd.f32 %v7899_v43, %v3629_v61  ;;  %vm3473_vm5 = vcmp.lt.s32.totalorder %v3440_v47, %v7606_v46 }
 0x3b8   : > { %5771 = vmatpush3.bf16.msra.mxu0 %v10973_v21  ;;  %v3950_v22 = vadd.f32 %v7913_v37, %v3919_v15  ;;  %v3441_v37 = vadd.s32 176, %v7588_v20  ;;  %v3922_v17 = vmul.f32 %v8119_v0, %v8009_v5  ;;  %v10977_v43 = vpack.c.bf16 %v7926_v31, %v7919_v24 }
 0x3b9   : > { %5874 = vmatprep.subr.bf16.mxu1 %v8090_v57  ;;  %v3632_v61 = vmul.f32 %v8119_v0, %v8000_v51  ;;  %v8150_v5 = vsel %vm3472_vm4, 1.0, %v10932_v16  ;;  %v3633_v24 = vmul.f32 %v8127_v62, %v8023_v40  ;;  %v8158_v31 = vsel %vm3473_vm5, 1.0, %v10932_v16 }
 0x3ba   : > { %v2599_v1 = vpop.f32.mrb[152].mxu0  ;;  %5875 = vmatpush3.bf16.msra.mxu1 %v7910_v44  ;;  %v8109_v11 = vpop.xlane.xlu0 %3596  ;;  %10978 = vst [vmem:[#allocation115_spill] sm:$0xff] %v8150_v5  ;;  %10979 = vst [vmem:[#allocation116_spill] sm:$0xff] %v8158_v31  ;;  %vm3474_vm6 = vcmp.lt.s32.totalorder %v3441_v37, %v7606_v46  ;;  %v3634_v47 = vmul.f32 %v8150_v5, %v8046_v18 }
 0x3bb   : > { %v2601_v14 = vpop.f32.mrb[153].mxu0  ;;  %v2760_v28 = vpop.f32.mrb[192].mxu1 }
 0x3bc   : > { %v2602_v3 = vpop.f32.mrb[154].mxu0  ;;  %v2761_v38 = vpop.f32.mrb[193].mxu1  ;;  %v3921_v14 = vmul.f32 %v8114_v63, %v7991_v12  ;;  %v3951_v12 = vadd.f32 %v3950_v22, %v3920_v29  ;;  %v3924_v29 = vmul.f32 %v8150_v5, %v8055_v36  ;;  %v8173_v36 = vsel %vm3474_vm6, 1.0, %v10932_v16 }
 0x3bd   : > { %v2635_v21 = vpack.c.bf16 %v2602_v3, %v2599_v1  ;;  %v2604_v52 = vpop.f32.mrb[155].mxu0  ;;  %v2763_v28 = vpop.f32.mrb[194].mxu1  ;;  %v3631_v1 = vmul.f32 %v8114_v63, %v7969_v58  ;;  %v3442_v3 = vadd.s32 184, %v7588_v20  ;;  %v3661_v58 = vadd.f32 %v3660_v49, %v3630_v42  ;;  %10980 = vst [vmem:[#allocation117_spill] sm:$0xff] %v8173_v36 }
 0x3be   : > { %v2764_v52 = vpop.f32.mrb[195].mxu1  ;;  %v3887_v15 = vpop.xlane.xlu0 %3886  ;;  %v3952_v28 = vadd.f32 %v3951_v12, %v3921_v14  ;;  %v3443_v42 = vadd.s32 192, %v7588_v20  ;;  %v3926_v37 = vmul.f32 %v8173_v36, %v8085_v32 }
 0x3bf   : > { %5772 = vmatprep.subr.bf16.mxu0 %v2635_v21  ;;  %v8138_v33 = vpack.c.bf16 %v2764_v52, %v2761_v38  ;;  %v3923_v21 = vmul.f32 %v8127_v62, %v8032_v48  ;;  %v3662_v22 = vadd.f32 %v3661_v58, %v3631_v1  ;;  %vm3475_vm7 = vcmp.lt.s32.totalorder %v3442_v3, %v7606_v46 }
 0x3c0   : > { %5773 = vmatpush3.bf16.msra.mxu0 %v10977_v43  ;;  %v3953_v60 = vadd.f32 %v3952_v28, %v3922_v17  ;;  %v3925_v17 = vmul.f32 %v8158_v31, %v8069_v7  ;;  %v3444_v28 = vadd.s32 200, %v7588_v20  ;;  %v8181_v18 = vsel %vm3475_vm7, 1.0, %v10932_v16 }
 0x3c1   : > { %5876 = vmatprep.subr.bf16.mxu1 %v8138_v33  ;;  %v3663_v49 = vadd.f32 %v3662_v22, %v3632_v61  ;;  %v3635_v61 = vmul.f32 %v8158_v31, %v8065_v10  ;;  %10981 = vst [vmem:[#allocation118_spill] sm:$0xff] %v8181_v18  ;;  %vm3476_vm8 = vcmp.lt.s32.totalorder %v3443_v42, %v7606_v46 }
 0x3c2   : > { %v2607_v38 = vpop.f32.mrb[156].mxu0  ;;  %5877 = vmatpush3.bf16.msra.mxu1 %v7939_v59  ;;  %v3599_v51 = vpop.xlane.xlu0 %3598  ;;  %v3954_v43 = vadd.f32 %v3953_v60, %v3923_v21  ;;  %v3636_v3 = vmul.f32 %v8173_v36, %v8078_v2  ;;  %vm3477_vm9 = vcmp.lt.s32.totalorder %v3444_v28, %v7606_v46 }
 0x3c3   : > { %v2609_v48 = vpop.f32.mrb[157].mxu0  ;;  %v2768_v40 = vpop.f32.mrb[196].mxu1 }
 0x3c4   : > { %v2610_v14 = vpop.f32.mrb[158].mxu0  ;;  %v2769_v52 = vpop.f32.mrb[197].mxu1  ;;  %v3664_v48 = vadd.f32 %v3663_v49, %v3633_v24  ;;  %v3955_v7 = vadd.f32 %v3954_v43, %v3924_v29  ;;  %v10982_v24 = vpack.c.bf16 %v7952_v35, %v7945_v34  ;;  %v3927_v40 = vmul.f32 %v8181_v18, %v3887_v15 }
 0x3c5   : > { %v2636_v1 = vpack.c.bf16 %v2610_v14, %v2607_v38  ;;  %v2612_v12 = vpop.f32.mrb[159].mxu0  ;;  %v2771_v58 = vpop.f32.mrb[198].mxu1  ;;  %v3445_v29 = vadd.s32 208, %v7588_v20  ;;  %v3637_v14 = vmul.f32 %v8181_v18, %v8109_v11  ;;  %v8200_v35 = vsel %vm3476_vm8, 1.0, %v10932_v16 }
 0x3c6   : > { %v2772_v21 = vpop.f32.mrb[199].mxu1  ;;  %v3889_v38 = vpop.xlane.xlu0 %3888  ;;  %v3665_v10 = vadd.f32 %v3664_v48, %v3634_v47  ;;  %v3956_v60 = vadd.f32 %v3955_v7, %v3925_v17  ;;  %10983 = vst [vmem:[#allocation119_spill] sm:$0xff] %v8200_v35  ;;  %v8205_v12 = vsel %vm3477_vm9, 1.0, %v10932_v16  ;;  %v3638_v28 = vmul.f32 %v8200_v35, %v3599_v51 }
 0x3c7   : > { %5774 = vmatprep.subr.bf16.mxu0 %v2636_v1  ;;  %v8186_v22 = vpack.c.bf16 %v2772_v21, %v2769_v52  ;;  %v3928_v15 = vmul.f32 %v8200_v35, %v3889_v38  ;;  %10984 = vst [vmem:[#allocation120_spill] sm:$0xff] %v8205_v12  ;;  %vm3478_vm10 = vcmp.lt.s32.totalorder %v3445_v29, %v7606_v46 }
 0x3c8   : > { %5775 = vmatpush3.bf16.msra.mxu0 %v10982_v24  ;;  %v3666_v42 = vadd.f32 %v3665_v10, %v3635_v61  ;;  %v3957_v49 = vadd.f32 %v3956_v60, %v3926_v37  ;;  %v8216_v51 = vsel %vm3478_vm10, 1.0, %v10932_v16 }
 0x3c9   : > { %5878 = vmatprep.subr.bf16.mxu1 %v8186_v22  ;;  %10986 = vst [vmem:[#allocation121_spill] sm:$0xff] %v8216_v51 }
 0x3ca   : > { %v2615_v32 = vpop.f32.mrb[160].mxu0  ;;  %5879 = vmatpush3.bf16.msra.mxu1 %v7965_v25  ;;  %v3601_v34 = vpop.xlane.xlu0 %3600  ;;  %v3667_v52 = vadd.f32 %v3666_v42, %v3636_v3  ;;  %v3958_v11 = vadd.f32 %v3957_v49, %v3927_v40  ;;  %v10985_v3 = vpack.c.bf16 %v7978_v6, %v7976_v45 }
 0x3cb   : > { %v2617_v2 = vpop.f32.mrb[161].mxu0  ;;  %v2776_v47 = vpop.f32.mrb[200].mxu1  ;;  %v3639_v37 = vmul.f32 %v8205_v12, %v3601_v34 }
 0x3cc   : > { %v2618_v1 = vpop.f32.mrb[162].mxu0  ;;  %v2777_v17 = vpop.f32.mrb[201].mxu1  ;;  %v3668_v61 = vadd.f32 %v3667_v52, %v3637_v14  ;;  %v3959_v38 = vadd.f32 %v3958_v11, %v3928_v15  ;;  %v6466_v14 = vld [vmem:[%s6799_s29] ss:$8 sps:$4 sm:$0xff]  }
 0x3cd   : > { %v2637_v43 = vpack.c.bf16 %v2618_v1, %v2615_v32  ;;  %v2620_v58 = vpop.f32.mrb[163].mxu0  ;;  %v2779_v48 = vpop.f32.mrb[202].mxu1  ;;  %v3446_v32 = vadd.s32 216, %v7588_v20 }
 0x3ce   : > { %v2780_v21 = vpop.f32.mrb[203].mxu1  ;;  %v3891_v7 = vpop.xlane.xlu0 %3890  ;;  %v3669_v60 = vadd.f32 %v3668_v61, %v3638_v28  ;;  %v6468_v58 = vld [vmem:[%s6799_s29 + $0x10] ss:$8 sps:$4 sm:$0xff]   ;;  %v6469_v48 = vld [vmem:[%s6799_s29 + $0x24] ss:$8 sps:$4 sm:$0xff]  }
 0x3cf   : > { %5776 = vmatprep.subr.bf16.mxu0 %v2637_v43  ;;  %v2826_v24 = vpack.c.bf16 %v2780_v21, %v2777_v17  ;;  %v3929_v10 = vmul.f32 %v8205_v12, %v3891_v7  ;;  %vm3479_vm11 = vcmp.lt.s32.totalorder %v3446_v32, %v7606_v46  ;;  %v4150_v21 = vpop.xlane.xlu1 %4149 }
 0x3d0   : > { %5777 = vmatpush3.bf16.msra.mxu0 %v10985_v3  ;;  %v3670_v34 = vadd.f32 %v3669_v60, %v3639_v37 }
 0x3d1   : > { %5986 = vmatprep.subr.bf16.mxu0 %v8090_v57  ;;  %v3960_v40 = vadd.f32 %v3959_v38, %v3929_v10  ;;  %5880 = vmatprep.subr.bf16.mxu1 %v2826_v24  ;;  %v6467_v57 = vld [vmem:[%s6799_s29 + $0x14] ss:$8 sps:$4 sm:$0xff]  }
 0x3d2   : > { %5881 = vmatpush3.bf16.msra.mxu1 %v7989_v4  ;;  %v3603_v29 = vpop.xlane.xlu0 %3602 }
 0x3d3   : > { %v2784_v42 = vpop.f32.mrb[204].mxu1  ;;  %2868 = vmatmul.mubr.bf16.vlgmr.msra.gmra.mrb[164].mxu0 %v6466_v14  ;;  %v3640_v45 = vmul.f32 %v8216_v51, %v3603_v29  ;;  %v6471_v29 = vld [vmem:[%s6799_s29 + $0x34] ss:$8 sps:$4 sm:$0xff]  }
 0x3d4   : > { %v2785_v6 = vpop.f32.mrb[205].mxu1  ;;  %5987 = vmatpush3.bf16.msra.mxu0 %v7910_v44  ;;  %2875 = vmatprep.mubr.bf16.mxu0 %v6467_v57  ;;  %v8232_v44 = vsel %vm3479_vm11, 1.0, %v10932_v16 }
 0x3d5   : > { %v2787_v2 = vpop.f32.mrb[206].mxu1  ;;  %5988 = vmatprep.subr.bf16.mxu0 %v8138_v33  ;;  %v8225_v49 = vadd.f32 %v3670_v34, %v3640_v45  ;;  %10988 = vst [vmem:[#allocation123_spill] sm:$0xff] %v8232_v44 }
 0x3d6   : > { %v2788_v15 = vpop.f32.mrb[207].mxu1  ;;  %v3893_v1 = vpop.xlane.xlu0 %3892 }
 0x3d7   : > { %10987 = vst [vmem:[#allocation122_spill] sm:$0xff] %v8225_v49  ;;  %v2827_v47 = vpack.c.bf16 %v2788_v15, %v2785_v6  ;;  %v3930_v52 = vmul.f32 %v8216_v51, %v3893_v1  ;;  %v6472_v15 = vld [vmem:[%s6799_s29 + $0x30] ss:$8 sps:$4 sm:$0xff]  }
 0x3d8   : > { %5989 = vmatpush3.bf16.msra.mxu0 %v7939_v59 }
 0x3d9   : > { %5882 = vmatprep.subr.bf16.mxu1 %v2827_v47  ;;  %5990 = vmatprep.subr.bf16.mxu0 %v8186_v22  ;;  %v3961_v43 = vadd.f32 %v3960_v40, %v3930_v52  ;;  %v6473_v52 = vld [vmem:[%s6799_s29 + $0x44] ss:$8 sps:$4 sm:$0xff]  }
 0x3da   : > { %5883 = vmatpush3.bf16.msra.mxu1 %v8011_v9  ;;  %v3895_v33 = vpop.xlane.xlu0 %3894 }
 0x3db   : > { %v2792_v17 = vpop.f32.mrb[208].mxu1  ;;  %2876 = vmatmul.mubr.bf16.gmra.mrb[168].mxu0 %v6468_v58  ;;  %v3931_v11 = vmul.f32 %v8232_v44, %v3895_v33 }
 0x3dc   : > { %v2793_v28 = vpop.f32.mrb[209].mxu1  ;;  %5991 = vmatpush3.bf16.msra.mxu0 %v7965_v25  ;;  %2883 = vmatprep.mubr.bf16.mxu0 %v6469_v48  ;;  %v4212_v25 = vmul.f32 %v7615_v54, %v4150_v21  ;;  %v6474_v48 = vld [vmem:[%s6799_s29 + $0x40] ss:$8 sps:$4 sm:$0xff]  }
 0x3dd   : > { %v2795_v59 = vpop.f32.mrb[210].mxu1  ;;  %5992 = vmatprep.subr.bf16.mxu0 %v2826_v24  ;;  %v8239_v22 = vadd.f32 %v3961_v43, %v3931_v11  ;;  %v6470_v24 = vld [vmem:[%s6799_s29 + $0x20] ss:$8 sps:$4 sm:$0xff]  }
 0x3de   : > { %v2796_v61 = vpop.f32.mrb[211].mxu1  ;;  %v4148_v38 = vpop.xlane.xlu0 %4147  ;;  %v6476_v21 = vld [vmem:[%s6805_s17] ss:$8 sps:$4 sm:$0xff]  }
 0x3df   : > { %10989 = vst [vmem:[#allocation124_spill] sm:$0xff] %v8239_v22  ;;  %v2828_v7 = vpack.c.bf16 %v2796_v61, %v2793_v28  ;;  %v4211_v37 = vmul.f32 %v7628_v27, %v4148_v38  ;;  %v6475_v61 = vld [vmem:[%s6799_s29 + $0x54] ss:$8 sps:$4 sm:$0xff]  }
 0x3e0   : > { %5993 = vmatpush3.bf16.msra.mxu0 %v7989_v4  ;;  %v6477_v38 = vld [vmem:[%s6805_s17 + $0x14] ss:$8 sps:$4 sm:$0xff]  }
 0x3e1   : > { %5884 = vmatprep.subr.bf16.mxu1 %v2828_v7  ;;  %5994 = vmatprep.subr.bf16.mxu0 %v2827_v47  ;;  %v4243_v60 = vadd.f32 %v4212_v25, %v4211_v37 }
 0x3e2   : > { %5885 = vmatpush3.bf16.msra.mxu1 %v8034_v53  ;;  %v4152_v10 = vpop.xlane.xlu0 %4151 }
 0x3e3   : > { %v2800_v3 = vpop.f32.mrb[212].mxu1  ;;  %2884 = vmatmul.mubr.bf16.gmra.mrb[172].mxu0 %v6470_v24  ;;  %v4213_v40 = vmul.f32 %v7638_v55, %v4152_v10 }
 0x3e4   : > { %v2801_v32 = vpop.f32.mrb[213].mxu1  ;;  %5995 = vmatpush3.bf16.msra.mxu0 %v8011_v9  ;;  %2891 = vmatprep.mubr.bf16.mxu0 %v6471_v29  ;;  %v6478_v3 = vld [vmem:[%s6799_s29 + $0x50] ss:$8 sps:$4 sm:$0xff]   ;;  %v6481_v29 = vld [vmem:[%s6805_s17 + $0x24] ss:$8 sps:$4 sm:$0xff]  }
 0x3e5   : > { %v2803_v4 = vpop.f32.mrb[214].mxu1  ;;  %5996 = vmatprep.subr.bf16.mxu0 %v2828_v7  ;;  %v4244_v42 = vadd.f32 %v4243_v60, %v4213_v40  ;;  %v6479_v60 = vld [vmem:[%s6799_s29 + $0x64] ss:$8 sps:$4 sm:$0xff]   ;;  %v6480_v40 = vld [vmem:[%s6805_s17 + $0x10] ss:$8 sps:$4 sm:$0xff]  }
 0x3e6   : > { %v2804_v14 = vpop.f32.mrb[215].mxu1  ;;  %v4154_v45 = vpop.xlane.xlu0 %4153 }
 0x3e7   : > { %v2829_v34 = vpack.c.bf16 %v2804_v14, %v2801_v32  ;;  %v4214_v6 = vmul.f32 %v7657_v23, %v4154_v45  ;;  %v6482_v45 = vld [vmem:[%s6799_s29 + $0x60] ss:$8 sps:$4 sm:$0xff]  }
 0x3e8   : > { %5997 = vmatpush3.bf16.msra.mxu0 %v8034_v53 }
 0x3e9   : > { %5886 = vmatprep.subr.bf16.mxu1 %v2829_v34  ;;  %5998 = vmatprep.subr.bf16.mxu0 %v2829_v34  ;;  %v4245_v57 = vadd.f32 %v4244_v42, %v4214_v6 }
 0x3ea   : > { %5887 = vmatpush3.bf16.msra.mxu1 %v8057_v13  ;;  %v4156_v9 = vpop.xlane.xlu0 %4155 }
 0x3eb   : > { %v2808_v2 = vpop.f32.mrb[216].mxu1  ;;  %2892 = vmatmul.mubr.bf16.gmra.mrb[176].mxu0 %v6472_v15  ;;  %v4215_v47 = vmul.f32 %v7671_v50, %v4156_v9  ;;  %v6484_v9 = vld [vmem:[%s6805_s17 + $0x20] ss:$8 sps:$4 sm:$0xff]   ;;  %v6485_v15 = vld [vmem:[%s6805_s17 + $0x34] ss:$8 sps:$4 sm:$0xff]  }
 0x3ec   : > { %v2809_v1 = vpop.f32.mrb[217].mxu1  ;;  %5999 = vmatpush3.bf16.msra.mxu0 %v8057_v13  ;;  %2899 = vmatprep.mubr.bf16.mxu0 %v6473_v52 }
 0x3ed   : > { %v2811_v43 = vpop.f32.mrb[218].mxu1  ;;  %v4246_v53 = vadd.f32 %v4245_v57, %v4215_v47  ;;  %v6483_v57 = vld [vmem:[%s6799_s29 + $0x74] ss:$8 sps:$4 sm:$0xff]  }
 0x3ee   : > { %v2812_v33 = vpop.f32.mrb[219].mxu1  ;;  %v4158_v58 = vpop.xlane.xlu0 %4157 }
 0x3ef   : > { %v2830_v17 = vpack.c.bf16 %v2812_v33, %v2809_v1  ;;  %v4216_v11 = vmul.f32 %v7684_v41, %v4158_v58  ;;  %v10990_v1 = vld [vmem:[#allocation81_spill] sm:$0xff]  ;;  %v6486_v33 = vld [vmem:[%s6799_s29 + $0x70] ss:$8 sps:$4 sm:$0xff]  }
 0x3f1   : > { %5888 = vmatprep.subr.bf16.mxu1 %v2830_v17  ;;  %6000 = vmatprep.subr.bf16.mxu0 %v2830_v17  ;;  %v4247_v28 = vadd.f32 %v4246_v53, %v4216_v11  ;;  %v10991_v17 = vld [vmem:[#allocation86_spill] sm:$0xff] }
 0x3f2   : > { %5889 = vmatpush3.bf16.msra.mxu1 %v8071_v56  ;;  %6001 = vmatpush3.bf16.msra.mxu0 %v8071_v56  ;;  %v4160_v13 = vpop.xlane.xlu0 %4159  ;;  %v6487_v11 = vld [vmem:[%s6799_s29 + $0x84] ss:$8 sps:$4 sm:$0xff]  }
 0x3f3   : > { %2900 = vmatmul.mubr.bf16.gmra.mrb[180].mxu0 %v6474_v48  ;;  %v4217_v59 = vmul.f32 %v7697_v26, %v4160_v13  ;;  %v6489_v48 = vld [vmem:[%s6805_s17 + $0x44] ss:$8 sps:$4 sm:$0xff]  }
 0x3f4   : > { %2907 = vmatprep.mubr.bf16.mxu0 %v6475_v61  ;;  %v10992_v61 = vld [vmem:[#allocation91_spill] sm:$0xff] }
 0x3f5   : > { %3065 = vmatmul.mubr.bf16.vlgmr.msra.gmra.mrb[220].mxu1 %v6476_v21  ;;  %v4248_v7 = vadd.f32 %v4247_v28, %v4217_v59  ;;  %v6488_v28 = vld [vmem:[%s6805_s17 + $0x30] ss:$8 sps:$4 sm:$0xff]  }
 0x3f6   : > { %3072 = vmatprep.mubr.bf16.mxu1 %v6477_v38  ;;  %v4162_v37 = vpop.xlane.xlu0 %4161 }
 0x3f7   : > { %v4218_v25 = vmul.f32 %v7710_v39, %v4162_v37  ;;  %v6490_v37 = vld [vmem:[%s6799_s29 + $0x80] ss:$8 sps:$4 sm:$0xff]  }
 0x3f9   : > { %v4249_v56 = vadd.f32 %v4248_v7, %v4218_v25  ;;  %v10993_v25 = vld [vmem:[#allocation96_spill] sm:$0xff] }
 0x3fa   : > { %v4164_v10 = vpop.xlane.xlu0 %4163 }
 0x3fb   : > { %2908 = vmatmul.mubr.bf16.gmra.mrb[184].mxu0 %v6478_v3  ;;  %v4219_v24 = vmul.f32 %v7723_v19, %v4164_v10  ;;  %v6491_v10 = vld [vmem:[%s6799_s29 + $0x94] ss:$8 sps:$4 sm:$0xff]   ;;  %v6492_v3 = vld [vmem:[%s6805_s17 + $0x40] ss:$8 sps:$4 sm:$0xff]  }
 0x3fc   : > { %2915 = vmatprep.mubr.bf16.mxu0 %v6479_v60  ;;  %v6493_v60 = vld [vmem:[%s6805_s17 + $0x54] ss:$8 sps:$4 sm:$0xff]  }
 0x3fd   : > { %3073 = vmatmul.mubr.bf16.gmra.mrb[224].mxu1 %v6480_v40  ;;  %v4250_v32 = vadd.f32 %v4249_v56, %v4219_v24 }
 0x3fe   : > { %3080 = vmatprep.mubr.bf16.mxu1 %v6481_v29  ;;  %v4166_v4 = vpop.xlane.xlu0 %4165 }
 0x3ff   : > { %v4220_v42 = vmul.f32 %v7736_v8, %v4166_v4 }
 0x401   : > { %v4251_v14 = vadd.f32 %v4250_v32, %v4220_v42  ;;  %v10994_v32 = vld [vmem:[#allocation111_spill] sm:$0xff] }
 0x402   : > { %v4168_v34 = vpop.xlane.xlu0 %4167 }
 0x403   : > { %2916 = vmatmul.mubr.bf16.gmra.mrb[188].mxu0 %v6482_v45  ;;  %v4221_v6 = vmul.f32 %v7761_v30, %v4168_v34  ;;  %v10995_v34 = vld [vmem:[#allocation112_spill] sm:$0xff] }
 0x404   : > { %2923 = vmatprep.mubr.bf16.mxu0 %v6483_v57  ;;  %v6496_v57 = vld [vmem:[%s6805_s17 + $0x50] ss:$8 sps:$4 sm:$0xff]  }
 0x405   : > { %3081 = vmatmul.mubr.bf16.gmra.mrb[228].mxu1 %v6484_v9  ;;  %v4252_v2 = vadd.f32 %v4251_v14, %v4221_v6  ;;  %v6494_v14 = vld [vmem:[%s6799_s29 + $0x90] ss:$8 sps:$4 sm:$0xff]   ;;  %v6495_v6 = vld [vmem:[%s6799_s29 + $0xa4] ss:$8 sps:$4 sm:$0xff]  }
 0x406   : > { %3088 = vmatprep.mubr.bf16.mxu1 %v6485_v15  ;;  %v4170_v47 = vpop.xlane.xlu0 %4169 }
 0x407   : > { %v4222_v52 = vmul.f32 %v10990_v1, %v4170_v47 }
 0x409   : > { %v4253_v43 = vadd.f32 %v4252_v2, %v4222_v52  ;;  %v6497_v2 = vld [vmem:[%s6805_s17 + $0x64] ss:$8 sps:$4 sm:$0xff]  }
 0x40a   : > { %v4172_v53 = vpop.xlane.xlu0 %4171 }
 0x40b   : > { %2924 = vmatmul.mubr.bf16.gmra.mrb[192].mxu0 %v6486_v33  ;;  %v4223_v58 = vmul.f32 %v10991_v17, %v4172_v53  ;;  %v6498_v53 = vld [vmem:[%s6799_s29 + $0xa0] ss:$8 sps:$4 sm:$0xff]  }
 0x40c   : > { %2931 = vmatprep.mubr.bf16.mxu0 %v6487_v11  ;;  %v6500_v11 = vld [vmem:[%s6805_s17 + $0x60] ss:$8 sps:$4 sm:$0xff]  }
 0x40d   : > { %3089 = vmatmul.mubr.bf16.gmra.mrb[232].mxu1 %v6488_v28  ;;  %v4254_v13 = vadd.f32 %v4253_v43, %v4223_v58  ;;  %v6499_v58 = vld [vmem:[%s6799_s29 + $0xb4] ss:$8 sps:$4 sm:$0xff]  }
 0x40e   : > { %3096 = vmatprep.mubr.bf16.mxu1 %v6489_v48  ;;  %v4174_v59 = vpop.xlane.xlu0 %4173 }
 0x40f   : > { %v4224_v21 = vmul.f32 %v10992_v61, %v4174_v59 }
 0x411   : > { %v4255_v7 = vadd.f32 %v4254_v13, %v4224_v21  ;;  %v6501_v13 = vld [vmem:[%s6805_s17 + $0x74] ss:$8 sps:$4 sm:$0xff]  }
 0x412   : > { %v4176_v38 = vpop.xlane.xlu0 %4175 }
 0x413   : > { %2932 = vmatmul.mubr.bf16.gmra.mrb[196].mxu0 %v6490_v37  ;;  %v4225_v56 = vmul.f32 %v10993_v25, %v4176_v38  ;;  %v6502_v38 = vld [vmem:[%s6799_s29 + $0xb0] ss:$8 sps:$4 sm:$0xff]  }
 0x414   : > { %2939 = vmatprep.mubr.bf16.mxu0 %v6491_v10  ;;  %v6504_v10 = vld [vmem:[%s6805_s17 + $0x70] ss:$8 sps:$4 sm:$0xff]  }
 0x415   : > { %3097 = vmatmul.mubr.bf16.gmra.mrb[236].mxu1 %v6492_v3  ;;  %v4256_v24 = vadd.f32 %v4255_v7, %v4225_v56  ;;  %v6503_v56 = vld [vmem:[%s6799_s29 + $0xc4] ss:$8 sps:$4 sm:$0xff]  }
 0x416   : > { %3104 = vmatprep.mubr.bf16.mxu1 %v6493_v60  ;;  %v4178_v40 = vpop.xlane.xlu0 %4177 }
 0x417   : > { %v4226_v29 = vmul.f32 %v10994_v32, %v4178_v40 }
 0x419   : > { %v4257_v4 = vadd.f32 %v4256_v24, %v4226_v29  ;;  %v6505_v24 = vld [vmem:[%s6805_s17 + $0x84] ss:$8 sps:$4 sm:$0xff]  }
 0x41a   : > { %v4180_v42 = vpop.xlane.xlu0 %4179 }
 0x41b   : > { %2940 = vmatmul.mubr.bf16.gmra.mrb[200].mxu0 %v6494_v14  ;;  %v4227_v45 = vmul.f32 %v10995_v34, %v4180_v42  ;;  %v6506_v42 = vld [vmem:[%s6799_s29 + $0xc0] ss:$8 sps:$4 sm:$0xff]  }
 0x41c   : > { %2947 = vmatprep.mubr.bf16.mxu0 %v6495_v6  ;;  %v6508_v6 = vld [vmem:[%s6805_s17 + $0x80] ss:$8 sps:$4 sm:$0xff]  }
 0x41d   : > { %3105 = vmatmul.mubr.bf16.gmra.mrb[240].mxu1 %v6496_v57  ;;  %v4258_v9 = vadd.f32 %v4257_v4, %v4227_v45  ;;  %v6507_v45 = vld [vmem:[%s6799_s29 + $0xd4] ss:$8 sps:$4 sm:$0xff]  }
 0x41e   : > { %3112 = vmatprep.mubr.bf16.mxu1 %v6497_v2  ;;  %v4182_v15 = vpop.xlane.xlu0 %4181 }
 0x41f   : > { %v4228_v47 = vmul.f32 %v8114_v63, %v4182_v15 }
 0x421   : > { %v4259_v52 = vadd.f32 %v4258_v9, %v4228_v47  ;;  %v6509_v9 = vld [vmem:[%s6805_s17 + $0x94] ss:$8 sps:$4 sm:$0xff]  }
 0x422   : > { %v4184_v43 = vpop.xlane.xlu0 %4183 }
 0x423   : > { %2948 = vmatmul.mubr.bf16.gmra.mrb[204].mxu0 %v6498_v53  ;;  %v4229_v33 = vmul.f32 %v8119_v0, %v4184_v43  ;;  %v6511_v43 = vld [vmem:[%s6799_s29 + $0xe4] ss:$8 sps:$4 sm:$0xff]   ;;  %v6512_v53 = vld [vmem:[%s6805_s17 + $0x90] ss:$8 sps:$4 sm:$0xff]  }
 0x424   : > { %2955 = vmatprep.mubr.bf16.mxu0 %v6499_v58  ;;  %v6514_v58 = vld [vmem:[%s6799_s29 + $0xe0] ss:$8 sps:$4 sm:$0xff]  }
 0x425   : > { %3113 = vmatmul.mubr.bf16.gmra.mrb[244].mxu1 %v6500_v11  ;;  %v4260_v28 = vadd.f32 %v4259_v52, %v4229_v33  ;;  %v6510_v52 = vld [vmem:[%s6799_s29 + $0xd0] ss:$8 sps:$4 sm:$0xff]   ;;  %v6513_v33 = vld [vmem:[%s6805_s17 + $0xa4] ss:$8 sps:$4 sm:$0xff]   ;;  %v6515_v11 = vld [vmem:[%s6799_s29 + $0xf4] ss:$8 sps:$4 sm:$0xff]  }
 0x426   : > { %3120 = vmatprep.mubr.bf16.mxu1 %v6501_v13  ;;  %v4186_v48 = vpop.xlane.xlu0 %4185  ;;  %v6517_v13 = vld [vmem:[%s6805_s17 + $0xb4] ss:$8 sps:$4 sm:$0xff]  }
 0x427   : > { %v4230_v59 = vmul.f32 %v8127_v62, %v4186_v48  ;;  %v6518_v48 = vld [vmem:[%s6799_s29 + $0xf0] ss:$8 sps:$4 sm:$0xff]   ;;  %s9313_s29 = sld [smem:[#allocation4 + %s6723_s19]] }
 0x429   : > { %v4261_v21 = vadd.f32 %v4260_v28, %v4230_v59  ;;  %v6516_v28 = vld [vmem:[%s6805_s17 + $0xa0] ss:$8 sps:$4 sm:$0xff]   ;;  %v6519_v59 = vld [vmem:[%s6845_s27 + $0x4] ss:$8 sps:$4 sm:$0xff]  }
 0x42a   : > { %v4188_v7 = vpop.xlane.xlu0 %4187 }
 0x42b   : > { %2956 = vmatmul.mubr.bf16.gmra.mrb[208].mxu0 %v6502_v38  ;;  %v4231_v37 = vmul.f32 %v8150_v5, %v4188_v7  ;;  %v6521_v7 = vld [vmem:[%s6805_s17 + $0xc4] ss:$8 sps:$4 sm:$0xff]   ;;  %v6522_v38 = vld [vmem:[%s6845_s27] ss:$8 sps:$4 sm:$0xff]  }
 0x42c   : > { %2963 = vmatprep.mubr.bf16.mxu0 %v6503_v56  ;;  %v6524_v56 = vld [vmem:[%s6805_s17 + $0xc0] ss:$8 sps:$4 sm:$0xff]  }
 0x42d   : > { %3121 = vmatmul.mubr.bf16.gmra.mrb[248].mxu1 %v6504_v10  ;;  %v4262_v3 = vadd.f32 %v4261_v21, %v4231_v37  ;;  %v6520_v21 = vld [vmem:[%s6805_s17 + $0xb0] ss:$8 sps:$4 sm:$0xff]   ;;  %v6523_v37 = vld [vmem:[%s6845_s27 + $0x14] ss:$8 sps:$4 sm:$0xff]  }
 0x42e   : > { %3128 = vmatprep.mubr.bf16.mxu1 %v6505_v24  ;;  %v4190_v60 = vpop.xlane.xlu0 %4189  ;;  %v6525_v10 = vld [vmem:[%s6805_s17 + $0xd4] ss:$8 sps:$4 sm:$0xff]   ;;  %v6527_v24 = vld [vmem:[%s6845_s27 + $0x24] ss:$8 sps:$4 sm:$0xff]  }
 0x42f   : > { %v4232_v40 = vmul.f32 %v8158_v31, %v4190_v60  ;;  %v6528_v60 = vld [vmem:[%s6805_s17 + $0xd0] ss:$8 sps:$4 sm:$0xff]  }
 0x431   : > { %v4263_v29 = vadd.f32 %v4262_v3, %v4232_v40  ;;  %v6526_v3 = vld [vmem:[%s6845_s27 + $0x10] ss:$8 sps:$4 sm:$0xff]   ;;  %v6529_v40 = vld [vmem:[%s6805_s17 + $0xe4] ss:$8 sps:$4 sm:$0xff]  }
 0x432   : > { %v4192_v4 = vpop.xlane.xlu0 %4191 }
 0x433   : > { %2964 = vmatmul.mubr.bf16.gmra.mrb[212].mxu0 %v6506_v42  ;;  %v4233_v14 = vmul.f32 %v8173_v36, %v4192_v4  ;;  %v6531_v4 = vld [vmem:[%s6845_s27 + $0x34] ss:$8 sps:$4 sm:$0xff]   ;;  %v6532_v42 = vld [vmem:[%s6805_s17 + $0xe0] ss:$8 sps:$4 sm:$0xff]  }
 0x434   : > { %2971 = vmatprep.mubr.bf16.mxu0 %v6507_v45  ;;  %v6534_v45 = vld [vmem:[%s6845_s27 + $0x30] ss:$8 sps:$4 sm:$0xff]  }
 0x435   : > { %3129 = vmatmul.mubr.bf16.gmra.mrb[252].mxu1 %v6508_v6  ;;  %v4264_v57 = vadd.f32 %v4263_v29, %v4233_v14  ;;  %v6530_v29 = vld [vmem:[%s6845_s27 + $0x20] ss:$8 sps:$4 sm:$0xff]   ;;  %v6533_v14 = vld [vmem:[%s6805_s17 + $0xf4] ss:$8 sps:$4 sm:$0xff]   ;;  %v6535_v6 = vld [vmem:[%s6845_s27 + $0x44] ss:$8 sps:$4 sm:$0xff]  }
 0x436   : > { %3136 = vmatprep.mubr.bf16.mxu1 %v6509_v9  ;;  %v4194_v2 = vpop.xlane.xlu0 %4193  ;;  %v6537_v9 = vld [vmem:[%s6845_s27 + $0x40] ss:$8 sps:$4 sm:$0xff]  }
 0x437   : > { %v4234_v15 = vmul.f32 %v8181_v18, %v4194_v2  ;;  %v6538_v2 = vld [vmem:[%s6845_s27 + $0x54] ss:$8 sps:$4 sm:$0xff]   ;;  %v8649_v18 = vld [vmem:[%s7183_s24 + $0x1] ss:$0 sm:$0xff] }
 0x439   : > { %v8313_v47 = vadd.f32 %v4264_v57, %v4234_v15  ;;  %v6536_v57 = vld [vmem:[%s6805_s17 + $0xf0] ss:$8 sps:$4 sm:$0xff]  }
 0x43a   : > { %v6539_v15 = vld [vmem:[%s6845_s27 + $0x50] ss:$8 sps:$4 sm:$0xff]  }
 0x43b   : > { %10996 = vst [vmem:[#allocation81_spill] sm:$0xff] %v8313_v47  ;;  %2972 = vmatmul.mubr.bf16.gmra.mrb[216].mxu0 %v6510_v52  ;;  %v6540_v52 = vld [vmem:[%s6845_s27 + $0x64] ss:$8 sps:$4 sm:$0xff]  }
 0x43c   : > { %2979 = vmatprep.mubr.bf16.mxu0 %v6511_v43  ;;  %v6541_v43 = vld [vmem:[%s6845_s27 + $0x60] ss:$8 sps:$4 sm:$0xff]  }
 0x43d   : > { %3137 = vmatmul.mubr.bf16.gmra.mrb[0].mxu1 %v6512_v53  ;;  %v6542_v53 = vld [vmem:[%s6845_s27 + $0x74] ss:$8 sps:$4 sm:$0xff]  }
 0x43e   : > { %3144 = vmatprep.mubr.bf16.mxu1 %v6513_v33  ;;  %v6543_v33 = vld [vmem:[%s6845_s27 + $0x70] ss:$8 sps:$4 sm:$0xff]  }
 0x443   : > { %2980 = vmatmul.mubr.bf16.gmra.mrb[220].mxu0 %v6514_v58  ;;  %v6544_v58 = vld [vmem:[%s6845_s27 + $0x84] ss:$8 sps:$4 sm:$0xff]  }
 0x444   : > { %2987 = vmatprep.mubr.bf16.mxu0 %v6515_v11  ;;  %v6545_v11 = vld [vmem:[%s6845_s27 + $0x80] ss:$8 sps:$4 sm:$0xff]  }
 0x445   : > { %3145 = vmatmul.mubr.bf16.gmra.mrb[4].mxu1 %v6516_v28  ;;  %v6546_v28 = vld [vmem:[%s6845_s27 + $0x94] ss:$8 sps:$4 sm:$0xff]  }
 0x446   : > { %3152 = vmatprep.mubr.bf16.mxu1 %v6517_v13  ;;  %v6547_v13 = vld [vmem:[%s6845_s27 + $0x90] ss:$8 sps:$4 sm:$0xff]  }
 0x44b   : > { %2988 = vmatmul.mubr.bf16.gmra.mrb[224].mxu0 %v6518_v48  ;;  %v6548_v48 = vld [vmem:[%s6845_s27 + $0xa4] ss:$8 sps:$4 sm:$0xff]  }
 0x44c   : > { %3257 = vmatprep.mubr.bf16.mxu0 %v6519_v59  ;;  %v6549_v59 = vld [vmem:[%s6845_s27 + $0xa0] ss:$8 sps:$4 sm:$0xff]  }
 0x44d   : > { %3153 = vmatmul.mubr.bf16.gmra.mrb[8].mxu1 %v6520_v21  ;;  %v6550_v21 = vld [vmem:[%s6845_s27 + $0xb4] ss:$8 sps:$4 sm:$0xff]  }
 0x44e   : > { %3160 = vmatprep.mubr.bf16.mxu1 %v6521_v7 }
 0x453   : > { %3258 = vmatmul.mubr.bf16.vlgmr.msra.gmra.mrb[228].mxu0 %v6522_v38  ;;  %v8357_v38 = vld [vmem:[%s7183_s24 + $0x2] ss:$0 sm:$0xff] }
 0x454   : > { %3265 = vmatprep.mubr.bf16.mxu0 %v6523_v37 }
 0x455   : > { %3161 = vmatmul.mubr.bf16.gmra.mrb[12].mxu1 %v6524_v56 }
 0x456   : > { %3168 = vmatprep.mubr.bf16.mxu1 %v6525_v10 }
 0x45b   : > { %3266 = vmatmul.mubr.bf16.gmra.mrb[232].mxu0 %v6526_v3 }
 0x45c   : > { %3273 = vmatprep.mubr.bf16.mxu0 %v6527_v24 }
 0x45d   : > { %3169 = vmatmul.mubr.bf16.gmra.mrb[16].mxu1 %v6528_v60 }
 0x45e   : > { %3176 = vmatprep.mubr.bf16.mxu1 %v6529_v40  ;;  %v6551_v40 = vld [vmem:[%s6845_s27 + $0xb0] ss:$8 sps:$4 sm:$0xff]  }
 0x463   : > { %3274 = vmatmul.mubr.bf16.gmra.mrb[236].mxu0 %v6530_v29 }
 0x464   : > { %3281 = vmatprep.mubr.bf16.mxu0 %v6531_v4 }
 0x465   : > { %3177 = vmatmul.mubr.bf16.gmra.mrb[20].mxu1 %v6532_v42  ;;  %v6552_v42 = vld [vmem:[%s6845_s27 + $0xc4] ss:$8 sps:$4 sm:$0xff]  }
 0x466   : > { %3184 = vmatprep.mubr.bf16.mxu1 %v6533_v14 }
 0x46b   : > { %3282 = vmatmul.mubr.bf16.gmra.mrb[240].mxu0 %v6534_v45 }
 0x46c   : > { %3289 = vmatprep.mubr.bf16.mxu0 %v6535_v6 }
 0x46d   : > { %3185 = vmatmul.mubr.bf16.gmra.mrb[24].mxu1 %v6536_v57 }
 0x473   : > { %3290 = vmatmul.mubr.bf16.gmra.mrb[244].mxu0 %v6537_v9 }
 0x474   : > { %3297 = vmatprep.mubr.bf16.mxu0 %v6538_v2 }
 0x47b   : > { %3298 = vmatmul.mubr.bf16.gmra.mrb[248].mxu0 %v6539_v15 }
 0x47c   : > { %3305 = vmatprep.mubr.bf16.mxu0 %v6540_v52 }
 0x483   : > { %3306 = vmatmul.mubr.bf16.gmra.mrb[252].mxu0 %v6541_v43  ;;  %v6553_v43 = vld [vmem:[%s6845_s27 + $0xc0] ss:$8 sps:$4 sm:$0xff]  }
 0x484   : > { %3313 = vmatprep.mubr.bf16.mxu0 %v6542_v53 }
 0x48b   : > { %3314 = vmatmul.mubr.bf16.gmra.mrb[0].mxu0 %v6543_v33  ;;  %v6554_v33 = vld [vmem:[%s6845_s27 + $0xd4] ss:$8 sps:$4 sm:$0xff]  }
 0x48c   : > { %3321 = vmatprep.mubr.bf16.mxu0 %v6544_v58 }
 0x493   : > { %3322 = vmatmul.mubr.bf16.gmra.mrb[4].mxu0 %v6545_v11 }
 0x494   : > { %3329 = vmatprep.mubr.bf16.mxu0 %v6546_v28 }
 0x49b   : > { %3330 = vmatmul.mubr.bf16.gmra.mrb[8].mxu0 %v6547_v13 }
 0x49c   : > { %3337 = vmatprep.mubr.bf16.mxu0 %v6548_v48 }
 0x4a3   : > { %3338 = vmatmul.mubr.bf16.gmra.mrb[12].mxu0 %v6549_v59 }
 0x4a4   : > { %3345 = vmatprep.mubr.bf16.mxu0 %v6550_v21 }
 0x4a6   : > { %v5778_v7 = vpop.f32.mrb[164].mxu0 }
 0x4a7   : > { %v5779_v37 = vpop.f32.mrb[165].mxu0 }
 0x4a8   : > { %v5780_v56 = vadd.f32 %v5779_v37, %v5778_v7  ;;  %v5781_v10 = vpop.f32.mrb[166].mxu0 }
 0x4a9   : > { %v5782_v3 = vpop.f32.mrb[167].mxu0 }
 0x4aa   : > { %v8360_v24 = vadd.f32 %v5780_v56, %v8357_v38  ;;  %v5783_v60 = vadd.f32 %v5782_v3, %v5781_v10  ;;  %v6555_v56 = vld [vmem:[%s6845_s27 + $0xd0] ss:$8 sps:$4 sm:$0xff]   ;;  %v6556_v3 = vld [vmem:[%s6845_s27 + $0xe4] ss:$8 sps:$4 sm:$0xff]  }
 0x4ab   : > { %3346 = vmatmul.mubr.bf16.gmra.mrb[16].mxu0 %v6551_v40 }
 0x4ac   : > { %10997 = vst [vmem:[#allocation86_spill] sm:$0xff] %v8360_v24  ;;  %v10626_v29 = vmax.f32 %v8360_v24, 0.0  ;;  %v8365_v4 = vadd.f32 %v5783_v60, %v8357_v38  ;;  %3353 = vmatprep.mubr.bf16.mxu0 %v6552_v42 }
 0x4ae   : > { %10998 = vst [vmem:[#allocation91_spill] sm:$0xff] %v8365_v4  ;;  %v5784_v14 = vpop.f32.mrb[168].mxu0  ;;  %3687 = vadd.xlane.f32.xlu0 %v10626_v29  ;;  %v10624_v6 = vmax.f32 %v8365_v4, 0.0 }
 0x4af   : > { %v5785_v45 = vpop.f32.mrb[169].mxu0 }
 0x4b0   : > { %v5786_v57 = vadd.f32 %v5785_v45, %v5784_v14  ;;  %v5787_v9 = vpop.f32.mrb[170].mxu0 }
 0x4b1   : > { %v5788_v2 = vpop.f32.mrb[171].mxu0 }
 0x4b2   : > { %v5789_v15 = vadd.f32 %v5788_v2, %v5787_v9  ;;  %v8372_v52 = vadd.f32 %v5786_v57, %v8357_v38  ;;  %3689 = vadd.xlane.f32.xlu0 %v10624_v6 }
 0x4b3   : > { %3354 = vmatmul.mubr.bf16.gmra.mrb[20].mxu0 %v6553_v43  ;;  %v6557_v43 = vld [vmem:[%s6845_s27 + $0xe0] ss:$8 sps:$4 sm:$0xff]  }
 0x4b4   : > { %10999 = vst [vmem:[#allocation96_spill] sm:$0xff] %v8372_v52  ;;  %v10623_v53 = vmax.f32 %v8372_v52, 0.0  ;;  %3361 = vmatprep.mubr.bf16.mxu0 %v6554_v33  ;;  %v8380_v58 = vadd.f32 %v5789_v15, %v8357_v38 }
 0x4b6   : > { %11000 = vst [vmem:[#allocation111_spill] sm:$0xff] %v8380_v58  ;;  %v5790_v11 = vpop.f32.mrb[172].mxu0  ;;  %3691 = vadd.xlane.f32.xlu1 %v10623_v53  ;;  %v10621_v59 = vmax.f32 %v8380_v58, 0.0 }
 0x4b7   : > { %v5791_v28 = vpop.f32.mrb[173].mxu0 }
 0x4b8   : > { %v5792_v13 = vadd.f32 %v5791_v28, %v5790_v11  ;;  %v5793_v48 = vpop.f32.mrb[174].mxu0  ;;  %v6558_v28 = vld [vmem:[%s6845_s27 + $0xf4] ss:$8 sps:$4 sm:$0xff]  }
 0x4b9   : > { %v5794_v21 = vpop.f32.mrb[175].mxu0 }
 0x4ba   : > { %3693 = vadd.xlane.f32.xlu1 %v10621_v59  ;;  %v5795_v7 = vadd.f32 %v5794_v21, %v5793_v48  ;;  %v8388_v37 = vadd.f32 %v5792_v13, %v8357_v38 }
 0x4bb   : > { %3362 = vmatmul.mubr.bf16.gmra.mrb[24].mxu0 %v6555_v56 }
 0x4bc   : > { %11001 = vst [vmem:[#allocation112_spill] sm:$0xff] %v8388_v37  ;;  %v10619_v10 = vmax.f32 %v8388_v37, 0.0  ;;  %3369 = vmatprep.mubr.bf16.mxu0 %v6556_v3  ;;  %v8394_v60 = vadd.f32 %v5795_v7, %v8357_v38 }
 0x4be   : > { %11002 = vst [vmem:[#allocation125_spill] sm:$0xff] %v8394_v60  ;;  %v5796_v40 = vpop.f32.mrb[176].mxu0  ;;  %3695 = vadd.xlane.f32.xlu1 %v10619_v10  ;;  %v10618_v57 = vmax.f32 %v8394_v60, 0.0 }
 0x4bf   : > { %v5797_v42 = vpop.f32.mrb[177].mxu0 }
 0x4c0   : > { %v5798_v14 = vadd.f32 %v5797_v42, %v5796_v40  ;;  %v5799_v45 = vpop.f32.mrb[178].mxu0  ;;  %v8414_v40 = vld [vmem:[%s7183_s24 + $0x3] ss:$0 sm:$0xff] }
 0x4c1   : > { %v5800_v9 = vpop.f32.mrb[179].mxu0 }
 0x4c2   : > { %3697 = vadd.xlane.f32.xlu1 %v10618_v57  ;;  %v5801_v2 = vadd.f32 %v5800_v9, %v5799_v45  ;;  %v8402_v15 = vadd.f32 %v5798_v14, %v8357_v38 }
 0x4c3   : > { %3370 = vmatmul.mubr.bf16.gmra.mrb[28].mxu0 %v6557_v43 }
 0x4c4   : > { %11003 = vst [vmem:[#allocation126_spill] sm:$0xff] %v8402_v15  ;;  %v10617_v33 = vmax.f32 %v8402_v15, 0.0  ;;  %v8407_v11 = vadd.f32 %v5801_v2, %v8357_v38  ;;  %3377 = vmatprep.mubr.bf16.mxu0 %v6558_v28 }
 0x4c6   : > { %11004 = vst [vmem:[#allocation127_spill] sm:$0xff] %v8407_v11  ;;  %v5802_v13 = vpop.f32.mrb[180].mxu0  ;;  %3699 = vadd.xlane.f32.xlu1 %v10617_v33  ;;  %v10620_v56 = vmax.f32 %v8407_v11, 0.0  ;;  %v6559_v33 = vld [vmem:[%s6845_s27 + $0xf0] ss:$8 sps:$4 sm:$0xff]   ;;  %s9325_s27 = scalar_lea.vmem %s10472_s12, %s6793_s26  ;;  %s5230_s26 = sshll.u32 %s6787_s23, 3 }
 0x4c7   : > { %v5803_v48 = vpop.f32.mrb[181].mxu0  ;;  %s710_s16 = scalar_lea.vmem %s10470_s10, %s5230_s26  ;;  %s6632_s26 = smov 126  }
 0x4c8   : > { %v5804_v21 = vadd.f32 %v5803_v48, %v5802_v13  ;;  %v5890_v7 = vpop.f32.mrb[220].mxu1  ;;  %v5805_v3 = vpop.f32.mrb[182].mxu0 }
 0x4c9   : > { %v5891_v42 = vpop.f32.mrb[221].mxu1  ;;  %v5806_v14 = vpop.f32.mrb[183].mxu0 }
 0x4ca   : > { %3701 = vadd.xlane.f32.xlu1 %v10620_v56  ;;  %v5892_v45 = vadd.f32 %v5891_v42, %v5890_v7  ;;  %v8419_v9 = vadd.f32 %v5804_v21, %v8357_v38  ;;  %v5807_v2 = vadd.f32 %v5806_v14, %v5805_v3  ;;  %v5893_v43 = vpop.f32.mrb[222].mxu1 }
 0x4cb   : > { %v5894_v28 = vpop.f32.mrb[223].mxu1  ;;  %3378 = vmatmul.mubr.bf16.gmra.mrb[32].mxu0 %v6559_v33 }
 0x4cc   : > { %11005 = vst [vmem:[#allocation128_spill] sm:$0xff] %v8419_v9  ;;  %v10622_v13 = vmax.f32 %v8419_v9, 0.0  ;;  %v8424_v48 = vadd.f32 %v5892_v45, %v8414_v40  ;;  %v5895_v57 = vadd.f32 %v5894_v28, %v5893_v43  ;;  %v8434_v56 = vadd.f32 %v5807_v2, %v8357_v38 }
 0x4ce   : > { %11006 = vst [vmem:[#allocation129_spill] sm:$0xff] %v8424_v48  ;;  %3703 = vadd.xlane.f32.xlu1 %v10622_v13  ;;  %v5808_v10 = vpop.f32.mrb[184].mxu0  ;;  %v10625_v7 = vmax.f32 %v8424_v48, 0.0  ;;  %v8430_v21 = vadd.f32 %v5895_v57, %v8414_v40  ;;  %11008 = vst [vmem:[#allocation131_spill] sm:$0xff] %v8434_v56 }
 0x4cf   : > { %v5809_v3 = vpop.f32.mrb[185].mxu0 }
 0x4d0   : > { %11007 = vst [vmem:[#allocation130_spill] sm:$0xff] %v8430_v21  ;;  %v5810_v42 = vadd.f32 %v5809_v3, %v5808_v10  ;;  %v10628_v14 = vmax.f32 %v8430_v21, 0.0  ;;  %v5896_v33 = vpop.f32.mrb[224].mxu1  ;;  %v5811_v45 = vpop.f32.mrb[186].mxu0  ;;  %v10629_v3 = vmax.f32 %v8434_v56, 0.0 }
 0x4d1   : > { %v5897_v59 = vpop.f32.mrb[225].mxu1  ;;  %v5812_v43 = vpop.f32.mrb[187].mxu0 }
 0x4d2   : > { %3993 = vadd.xlane.f32.xlu1 %v10625_v7  ;;  %v5898_v28 = vadd.f32 %v5897_v59, %v5896_v33  ;;  %v8439_v13 = vadd.f32 %v5810_v42, %v8357_v38  ;;  %v5813_v57 = vadd.f32 %v5812_v43, %v5811_v45  ;;  %v5899_v53 = vpop.f32.mrb[226].mxu1  ;;  %3995 = vadd.xlane.f32.xlu0 %v10628_v14 }
 0x4d3   : > { %v5900_v10 = vpop.f32.mrb[227].mxu1 }
 0x4d4   : > { %11009 = vst [vmem:[#allocation132_spill] sm:$0xff] %v8439_v13  ;;  %v5901_v2 = vadd.f32 %v5900_v10, %v5899_v53  ;;  %v10634_v6 = vmax.f32 %v8439_v13, 0.0  ;;  %v8448_v7 = vadd.f32 %v5898_v28, %v8414_v40  ;;  %v8454_v56 = vadd.f32 %v5813_v57, %v8357_v38 }
 0x4d6   : > { %3705 = vadd.xlane.f32.xlu1 %v10629_v3  ;;  %11010 = vst [vmem:[#allocation133_spill] sm:$0xff] %v8448_v7  ;;  %v5814_v59 = vpop.f32.mrb[188].mxu0  ;;  %v10636_v53 = vmax.f32 %v8448_v7, 0.0  ;;  %11011 = vst [vmem:[#allocation134_spill] sm:$0xff] %v8454_v56  ;;  %v10639_v9 = vmax.f32 %v8454_v56, 0.0  ;;  %v8460_v13 = vadd.f32 %v5901_v2, %v8414_v40 }
 0x4d7   : > { %v5815_v42 = vpop.f32.mrb[189].mxu0 }
 0x4d8   : > { %v5816_v33 = vadd.f32 %v5815_v42, %v5814_v59  ;;  %v5902_v45 = vpop.f32.mrb[228].mxu1  ;;  %v5817_v43 = vpop.f32.mrb[190].mxu0  ;;  %11012 = vst [vmem:[#allocation135_spill] sm:$0xff] %v8460_v13  ;;  %v10642_v7 = vmax.f32 %v8460_v13, 0.0 }
 0x4d9   : > { %v5903_v29 = vpop.f32.mrb[229].mxu1  ;;  %v5818_v21 = vpop.f32.mrb[191].mxu0 }
 0x4da   : > { %3707 = vadd.xlane.f32.xlu1 %v10634_v6  ;;  %v5904_v10 = vadd.f32 %v5903_v29, %v5902_v45  ;;  %v5819_v14 = vadd.f32 %v5818_v21, %v5817_v43  ;;  %v5905_v3 = vpop.f32.mrb[230].mxu1 }
 0x4db   : > { %v5906_v48 = vpop.f32.mrb[231].mxu1 }
 0x4dc   : > { %v5907_v28 = vadd.f32 %v5906_v48, %v5905_v3  ;;  %v8465_v48 = vadd.f32 %v5816_v33, %v8357_v38 }
 0x4de   : > { %3997 = vadd.xlane.f32.xlu1 %v10636_v53  ;;  %v5820_v59 = vpop.f32.mrb[192].mxu0  ;;  %11013 = vst [vmem:[#allocation136_spill] sm:$0xff] %v8465_v48  ;;  %v10645_v2 = vmax.f32 %v8465_v48, 0.0 }
 0x4df   : > { %v5821_v42 = vpop.f32.mrb[193].mxu0 }
 0x4e0   : > { %v5822_v6 = vadd.f32 %v5821_v42, %v5820_v59  ;;  %v5908_v11 = vpop.f32.mrb[232].mxu1  ;;  %v5823_v29 = vpop.f32.mrb[194].mxu0  ;;  %v8472_v59 = vadd.f32 %v5904_v10, %v8414_v40  ;;  %v8480_v10 = vadd.f32 %v5819_v14, %v8357_v38 }
 0x4e1   : > { %v5909_v21 = vpop.f32.mrb[233].mxu1  ;;  %v5824_v45 = vpop.f32.mrb[195].mxu0 }
 0x4e2   : > { %3709 = vadd.xlane.f32.xlu1 %v10639_v9  ;;  %v5910_v57 = vadd.f32 %v5909_v21, %v5908_v11  ;;  %v5825_v3 = vadd.f32 %v5824_v45, %v5823_v29  ;;  %v5911_v43 = vpop.f32.mrb[234].mxu1  ;;  %11014 = vst [vmem:[#allocation137_spill] sm:$0xff] %v8472_v59  ;;  %11015 = vst [vmem:[#allocation138_spill] sm:$0xff] %v8480_v10  ;;  %v10649_v48 = vmax.f32 %v8480_v10, 0.0 }
 0x4e3   : > { %v5912_v53 = vpop.f32.mrb[235].mxu1 }
 0x4e4   : > { %v5913_v15 = vadd.f32 %v5912_v53, %v5911_v43  ;;  %v10647_v53 = vmax.f32 %v8472_v59, 0.0  ;;  %v8520_v52 = vadd.f32 %v5825_v3, %v8357_v38 }
 0x4e6   : > { %3999 = vadd.xlane.f32.xlu1 %v10642_v7  ;;  %v5826_v42 = vpop.f32.mrb[196].mxu0  ;;  %11019 = vst [vmem:[#allocation142_spill] sm:$0xff] %v8520_v52 }
 0x4e7   : > { %v5827_v9 = vpop.f32.mrb[197].mxu0 }
 0x4e8   : > { %v5828_v56 = vadd.f32 %v5827_v9, %v5826_v42  ;;  %v5914_v33 = vpop.f32.mrb[236].mxu1  ;;  %v5829_v60 = vpop.f32.mrb[198].mxu0 }
 0x4e9   : > { %v5915_v11 = vpop.f32.mrb[237].mxu1  ;;  %v5830_v29 = vpop.f32.mrb[199].mxu0 }
 0x4ea   : > { %3711 = vadd.xlane.f32.xlu1 %v10645_v2  ;;  %v5916_v21 = vadd.f32 %v5915_v11, %v5914_v33  ;;  %v8477_v45 = vadd.f32 %v5830_v29, %v5829_v60  ;;  %v5917_v43 = vpop.f32.mrb[238].mxu1  ;;  %v8488_v2 = vadd.f32 %v5907_v28, %v8414_v40  ;;  %v8535_v3 = vadd.f32 %v5828_v56, %v8357_v38 }
 0x4eb   : > { %v5918_v7 = vpop.f32.mrb[239].mxu1 }
 0x4ec   : > { %v8482_v13 = vadd.f32 %v5918_v7, %v5917_v43  ;;  %11016 = vst [vmem:[#allocation139_spill] sm:$0xff] %v8488_v2  ;;  %v8495_v7 = vadd.f32 %v5822_v6, %v8357_v38  ;;  %v10652_v28 = vmax.f32 %v8488_v2, 0.0  ;;  %11021 = vst [vmem:[#allocation144_spill] sm:$0xff] %v8535_v3  ;;  %v8561_v22 = vadd.f32 %v8477_v45, %v8357_v38 }
 0x4ee   : > { %4001 = vadd.xlane.f32.xlu1 %v10647_v53  ;;  %v5832_v9 = vpop.f32.mrb[200].mxu0  ;;  %11017 = vst [vmem:[#allocation140_spill] sm:$0xff] %v8495_v7  ;;  %11023 = vst [vmem:[#allocation146_spill] sm:$0xff] %v8561_v22 }
 0x4ef   : > { %v5833_v42 = vpop.f32.mrb[201].mxu0 }
 0x4f0   : > { %v8490_v33 = vadd.f32 %v5833_v42, %v5832_v9  ;;  %v5835_v60 = vpop.f32.mrb[202].mxu0  ;;  %v5920_v11 = vpop.f32.mrb[240].mxu1  ;;  %v10656_v42 = vmax.f32 %v8495_v7, 0.0  ;;  %v8528_v7 = vadd.f32 %v5913_v15, %v8414_v40 }
 0x4f1   : > { %v5836_v29 = vpop.f32.mrb[203].mxu0  ;;  %v5921_v37 = vpop.f32.mrb[241].mxu1 }
 0x4f2   : > { %3713 = vadd.xlane.f32.xlu1 %v10649_v48  ;;  %v8497_v14 = vadd.f32 %v5836_v29, %v5835_v60  ;;  %v8499_v43 = vadd.f32 %v5921_v37, %v5920_v11  ;;  %v5923_v53 = vpop.f32.mrb[242].mxu1  ;;  %v8508_v48 = vadd.f32 %v5910_v57, %v8414_v40  ;;  %11020 = vst [vmem:[#allocation143_spill] sm:$0xff] %v8528_v7  ;;  %v10663_v15 = vmax.f32 %v8528_v7, 0.0 }
 0x4f3   : > { %v5924_v59 = vpop.f32.mrb[243].mxu1 }
 0x4f4   : > { %v8502_v9 = vadd.f32 %v5924_v59, %v5923_v53  ;;  %11018 = vst [vmem:[#allocation141_spill] sm:$0xff] %v8508_v48  ;;  %v10659_v59 = vmax.f32 %v8508_v48, 0.0 }
 0x4f6   : > { %4003 = vadd.xlane.f32.xlu1 %v10652_v28  ;;  %v5838_v6 = vpop.f32.mrb[204].mxu0 }
 0x4f7   : > { %v5839_v10 = vpop.f32.mrb[205].mxu0 }
 0x4f8   : > { %v8510_v60 = vadd.f32 %v5839_v10, %v5838_v6  ;;  %v5841_v37 = vpop.f32.mrb[206].mxu0  ;;  %v5926_v11 = vpop.f32.mrb[244].mxu1 }
 0x4f9   : > { %v5842_v29 = vpop.f32.mrb[207].mxu0  ;;  %v5927_v58 = vpop.f32.mrb[245].mxu1 }
 0x4fa   : > { %3715 = vadd.xlane.f32.xlu1 %v10656_v42  ;;  %v8515_v53 = vadd.f32 %v5842_v29, %v5841_v37  ;;  %v8517_v28 = vadd.f32 %v5927_v58, %v5926_v11  ;;  %v5929_v2 = vpop.f32.mrb[246].mxu1  ;;  %v10661_v42 = vmax.f32 %v8520_v52, 0.0 }
 0x4fb   : > { %v5930_v57 = vpop.f32.mrb[247].mxu1 }
 0x4fc   : > { %v8522_v10 = vadd.f32 %v5930_v57, %v5929_v2 }
 0x4fe   : > { %4005 = vadd.xlane.f32.xlu1 %v10659_v59  ;;  %v5844_v6 = vpop.f32.mrb[208].mxu0 }
 0x4ff   : > { %v5845_v4 = vpop.f32.mrb[209].mxu0 }
 0x500   : > { %v8530_v37 = vadd.f32 %v5845_v4, %v5844_v6  ;;  %v5847_v58 = vpop.f32.mrb[210].mxu0  ;;  %v5932_v11 = vpop.f32.mrb[248].mxu1  ;;  %v10666_v6 = vmax.f32 %v8535_v3, 0.0 }
 0x501   : > { %v5848_v29 = vpop.f32.mrb[211].mxu0  ;;  %v5933_v24 = vpop.f32.mrb[249].mxu1 }
 0x502   : > { %3717 = vadd.xlane.f32.xlu1 %v10661_v42  ;;  %v8537_v2 = vadd.f32 %v5848_v29, %v5847_v58  ;;  %v8539_v57 = vadd.f32 %v5933_v24, %v5932_v11  ;;  %v5935_v59 = vpop.f32.mrb[250].mxu1  ;;  %v8548_v42 = vadd.f32 %v5916_v21, %v8414_v40 }
 0x503   : > { %v5936_v48 = vpop.f32.mrb[251].mxu1 }
 0x504   : > { %v8542_v4 = vadd.f32 %v5936_v48, %v5935_v59  ;;  %11022 = vst [vmem:[#allocation145_spill] sm:$0xff] %v8548_v42  ;;  %v10667_v48 = vmax.f32 %v8548_v42, 0.0 }
 0x506   : > { %4007 = vadd.xlane.f32.xlu1 %v10663_v15  ;;  %v5850_v56 = vpop.f32.mrb[212].mxu0 }
 0x507   : > { %v5851_v52 = vpop.f32.mrb[213].mxu0 }
 0x508   : > { %v8550_v58 = vadd.f32 %v5851_v52, %v5850_v56  ;;  %v5853_v24 = vpop.f32.mrb[214].mxu0  ;;  %v5938_v11 = vpop.f32.mrb[252].mxu1 }
 0x509   : > { %v5854_v29 = vpop.f32.mrb[215].mxu0  ;;  %v5939_v49 = vpop.f32.mrb[253].mxu1 }
 0x50a   : > { %3719 = vadd.xlane.f32.xlu1 %v10666_v6  ;;  %v8555_v59 = vadd.f32 %v5854_v29, %v5853_v24  ;;  %v8557_v15 = vadd.f32 %v5939_v49, %v5938_v11  ;;  %v5941_v7 = vpop.f32.mrb[254].mxu1  ;;  %v10670_v6 = vmax.f32 %v8561_v22, 0.0  ;;  %v8570_v24 = vadd.f32 %v8482_v13, %v8414_v40 }
 0x50b   : > { %v5942_v21 = vpop.f32.mrb[255].mxu1 }
 0x50c   : > { %v8563_v52 = vadd.f32 %v5942_v21, %v5941_v7  ;;  %11024 = vst [vmem:[#allocation147_spill] sm:$0xff] %v8570_v24  ;;  %v8578_v7 = vadd.f32 %v8490_v33, %v8357_v38  ;;  %v8592_v33 = vadd.f32 %v8499_v43, %v8414_v40  ;;  %v8605_v43 = vadd.f32 %v8497_v14, %v8357_v38 }
 0x50e   : > { %4009 = vadd.xlane.f32.xlu1 %v10667_v48  ;;  %v5856_v56 = vpop.f32.mrb[216].mxu0  ;;  %11025 = vst [vmem:[#allocation148_spill] sm:$0xff] %v8578_v7  ;;  %v10679_v22 = vmax.f32 %v8578_v7, 0.0  ;;  %11026 = vst [vmem:[#allocation149_spill] sm:$0xff] %v8592_v33 }
 0x50f   : > { %v5857_v3 = vpop.f32.mrb[217].mxu0  ;;  %11027 = vst [vmem:[#allocation150_spill] sm:$0xff] %v8605_v43 }
 0x510   : > { %v8572_v49 = vadd.f32 %v5857_v3, %v5856_v56  ;;  %v5859_v11 = vpop.f32.mrb[218].mxu0  ;;  %v5944_v29 = vpop.f32.mrb[0].mxu1  ;;  %v10674_v3 = vmax.f32 %v8570_v24, 0.0 }
 0x511   : > { %v5860_v47 = vpop.f32.mrb[219].mxu0  ;;  %v5945_v45 = vpop.f32.mrb[1].mxu1 }
 0x512   : > { %3721 = vadd.xlane.f32.xlu1 %v10670_v6  ;;  %v8580_v21 = vadd.f32 %v5860_v47, %v5859_v11  ;;  %v8582_v48 = vadd.f32 %v5945_v45, %v5944_v29  ;;  %v5947_v42 = vpop.f32.mrb[2].mxu1 }
 0x513   : > { %v5948_v13 = vpop.f32.mrb[3].mxu1 }
 0x514   : > { %v8585_v56 = vadd.f32 %v5948_v13, %v5947_v42  ;;  %v10682_v42 = vmax.f32 %v8592_v33, 0.0 }
 0x516   : > { %4011 = vadd.xlane.f32.xlu1 %v10674_v3  ;;  %v5862_v6 = vpop.f32.mrb[220].mxu0 }
 0x517   : > { %v5863_v47 = vpop.f32.mrb[221].mxu0 }
 0x518   : > { %v8594_v11 = vadd.f32 %v5863_v47, %v5862_v6  ;;  %v5865_v29 = vpop.f32.mrb[222].mxu0  ;;  %v5950_v45 = vpop.f32.mrb[4].mxu1 }
 0x519   : > { %v5866_v16 = vpop.f32.mrb[223].mxu0  ;;  %v5951_v46 = vpop.f32.mrb[5].mxu1 }
 0x51a   : > { %3723 = vadd.xlane.f32.xlu1 %v10679_v22  ;;  %v8599_v13 = vadd.f32 %v5866_v16, %v5865_v29  ;;  %v8601_v3 = vadd.f32 %v5951_v46, %v5950_v45  ;;  %v5953_v24 = vpop.f32.mrb[6].mxu1  ;;  %v10686_v22 = vmax.f32 %v8605_v43, 0.0  ;;  %v8616_v46 = vadd.f32 %v8502_v9, %v8414_v40 }
 0x51b   : > { %v5954_v20 = vpop.f32.mrb[7].mxu1 }
 0x51c   : > { %v8607_v6 = vadd.f32 %v5954_v20, %v5953_v24  ;;  %11028 = vst [vmem:[#allocation151_spill] sm:$0xff] %v8616_v46  ;;  %v8624_v24 = vadd.f32 %v8510_v60, %v8357_v38  ;;  %v10690_v33 = vmax.f32 %v8616_v46, 0.0 }
 0x51e   : > { %4013 = vadd.xlane.f32.xlu1 %v10682_v42  ;;  %v5868_v47 = vpop.f32.mrb[224].mxu0  ;;  %11029 = vst [vmem:[#allocation152_spill] sm:$0xff] %v8624_v24 }
 0x51f   : > { %v5869_v7 = vpop.f32.mrb[225].mxu0 }
 0x520   : > { %v8612_v44 = vadd.f32 %v5869_v7, %v5868_v47  ;;  %v5871_v16 = vpop.f32.mrb[226].mxu0  ;;  %v5956_v29 = vpop.f32.mrb[8].mxu1 }
 0x521   : > { %v5872_v45 = vpop.f32.mrb[227].mxu0  ;;  %v5957_v14 = vpop.f32.mrb[9].mxu1 }
 0x522   : > { %3725 = vadd.xlane.f32.xlu1 %v10686_v22  ;;  %v8620_v20 = vadd.f32 %v5872_v45, %v5871_v16  ;;  %v8626_v42 = vadd.f32 %v5957_v14, %v5956_v29  ;;  %v5959_v7 = vpop.f32.mrb[10].mxu1  ;;  %v10697_v16 = vmax.f32 %v8624_v24, 0.0  ;;  %v8636_v45 = vadd.f32 %v8517_v28, %v8414_v40 }
 0x523   : > { %v5960_v47 = vpop.f32.mrb[11].mxu1  ;;  %v8658_v24 = vadd.f32 %v8515_v53, %v8357_v38 }
 0x524   : > { %v8629_v9 = vadd.f32 %v5960_v47, %v5959_v7  ;;  %11030 = vst [vmem:[#allocation153_spill] sm:$0xff] %v8636_v45  ;;  %v10702_v47 = vmax.f32 %v8636_v45, 0.0 }
 0x525   : > { %11034 = vst [vmem:[#allocation155_spill] sm:$0xff] %v8658_v24 }
 0x526   : > { %v6002_v51 = vpop.f32.mrb[228].mxu0  ;;  %4015 = vadd.xlane.f32.xlu1 %v10690_v33 }
 0x527   : > { %v6003_v60 = vpop.f32.mrb[229].mxu0 }
 0x528   : > { %v6004_v29 = vadd.f32 %v6003_v60, %v6002_v51  ;;  %v6005_v14 = vpop.f32.mrb[230].mxu0  ;;  %v5962_v22 = vpop.f32.mrb[12].mxu1  ;;  %v11032_v51 = vld [vmem:[#allocation80_spill] sm:$0xff] }
 0x529   : > { %v6006_v43 = vpop.f32.mrb[231].mxu0  ;;  %v5963_v12 = vpop.f32.mrb[13].mxu1  ;;  %v8653_v60 = vadd.f32 %v8649_v18, %v11032_v51  ;;  %v8670_v51 = vadd.f32 %v8522_v10, %v8414_v40 }
 0x52a   : > { %v8639_v7 = vadd.f32 %v6004_v29, %v8414_v40  ;;  %3727 = vadd.xlane.f32.xlu1 %v10697_v16  ;;  %v8644_v33 = vadd.f32 %v6006_v43, %v6005_v14  ;;  %v8646_v46 = vadd.f32 %v5963_v12, %v5962_v22  ;;  %v5965_v28 = vpop.f32.mrb[14].mxu1  ;;  %v10706_v14 = vmax.f32 %v8658_v24, 0.0 }
 0x52b   : > { %v5966_v35 = vpop.f32.mrb[15].mxu1  ;;  %11033 = vst [vmem:[#allocation80_spill] sm:$0xff] %v8653_v60  ;;  %v10707_v43 = vmax.f32 %v8653_v60, 0.0  ;;  %11035 = vst [vmem:[#allocation156_spill] sm:$0xff] %v8670_v51 }
 0x52c   : > { %11031 = vst [vmem:[#allocation154_spill] sm:$0xff] %v8639_v7  ;;  %v10701_v29 = vmax.f32 %v8639_v7, 0.0  ;;  %v8660_v16 = vadd.f32 %v5966_v35, %v5965_v28  ;;  %v10709_v7 = vmax.f32 %v8670_v51, 0.0 }
 0x52e   : > { %4017 = vadd.xlane.f32.xlu1 %v10702_v47  ;;  %4300 = vadd.xlane.f32.xlu0 %v10701_v29  ;;  %v6008_v12 = vpop.f32.mrb[232].mxu0  ;;  %v8680_v29 = vadd.f32 %v8530_v37, %v8357_v38  ;;  %v8695_v37 = vadd.f32 %v8539_v57, %v8414_v40 }
 0x52f   : > { %v6009_v22 = vpop.f32.mrb[233].mxu0 }
 0x530   : > { %v8672_v53 = vadd.f32 %v6009_v22, %v6008_v12  ;;  %v6011_v35 = vpop.f32.mrb[234].mxu0  ;;  %v5968_v28 = vpop.f32.mrb[16].mxu1  ;;  %11036 = vst [vmem:[#allocation157_spill] sm:$0xff] %v8680_v29  ;;  %11038 = vst [vmem:[#allocation158_spill] sm:$0xff] %v8695_v37  ;;  %v10720_v57 = vmax.f32 %v8695_v37, 0.0 }
 0x531   : > { %v6012_v36 = vpop.f32.mrb[235].mxu0  ;;  %v5969_v45 = vpop.f32.mrb[17].mxu1 }
 0x532   : > { %3729 = vadd.xlane.f32.xlu1 %v10706_v14  ;;  %4197 = vadd.xlane.f32.xlu0 %v10707_v43  ;;  %v8682_v47 = vadd.f32 %v6012_v36, %v6011_v35  ;;  %v8684_v10 = vadd.f32 %v5969_v45, %v5968_v28  ;;  %v5971_v12 = vpop.f32.mrb[18].mxu1  ;;  %v11037_v14 = vld [vmem:[#allocation56_spill] sm:$0xff]  ;;  %v10718_v43 = vmax.f32 %v8680_v29, 0.0  ;;  %v8697_v45 = vpop.xlane.xlu0 %4195  ;;  %v11040_v28 = vld [vmem:[#allocation83_spill] sm:$0xff] }
 0x533   : > { %v5972_v22 = vpop.f32.mrb[19].mxu1  ;;  %11039 = vst [vmem:[#allocation159_spill] sm:$0xff] %v8697_v45  ;;  %v8701_v60 = vadd.f32 %v8649_v18, %v11040_v28 }
 0x534   : > { %v8687_v31 = vadd.f32 %v5972_v22, %v5971_v12 }
 0x535   : > { %11041 = vst [vmem:[#allocation83_spill] sm:$0xff] %v8701_v60 }
 0x536   : > { %4019 = vadd.xlane.f32.xlu1 %v10709_v7  ;;  %3604 = vadd.xlane.f32.xlu0 %v11037_v14  ;;  %v6014_v36 = vpop.f32.mrb[236].mxu0  ;;  %v11043_v14 = vld [vmem:[#allocation71_spill] sm:$0xff] }
 0x537   : > { %v6015_v35 = vpop.f32.mrb[237].mxu0 }
 0x538   : > { %v8703_v12 = vadd.f32 %v6015_v35, %v6014_v36  ;;  %v6017_v22 = vpop.f32.mrb[238].mxu0  ;;  %v5974_v7 = vpop.f32.mrb[20].mxu1  ;;  %v10721_v36 = vmax.f32 %v8701_v60, 0.0  ;;  %v8716_v35 = vadd.f32 %v8537_v2, %v8357_v38 }
 0x539   : > { %v6018_v51 = vpop.f32.mrb[239].mxu0  ;;  %v5975_v24 = vpop.f32.mrb[21].mxu1 }
 0x53a   : > { %11042 = vst [vmem:[#allocation160_spill] sm:$0xff] %v8703_v12  ;;  %3731 = vadd.xlane.f32.xlu1 %v10718_v43  ;;  %3896 = vadd.xlane.f32.xlu0 %v11043_v14  ;;  %v8709_v5 = vadd.f32 %v6018_v51, %v6017_v22  ;;  %v8711_v45 = vadd.f32 %v5975_v24, %v5974_v7  ;;  %v5977_v62 = vpop.f32.mrb[22].mxu1  ;;  %11045 = vst [vmem:[#allocation162_spill] sm:$0xff] %v8716_v35  ;;  %v10725_v22 = vmax.f32 %v8716_v35, 0.0 }
 0x53b   : > { %v3688_v28 = vpop.xlane.xlu0 %3687  ;;  %v5978_v0 = vpop.f32.mrb[23].mxu1  ;;  %v8727_v43 = vadd.f32 %v8542_v4, %v8414_v40 }
 0x53c   : > { %11044 = vst [vmem:[#allocation161_spill] sm:$0xff] %v8711_v45  ;;  %v8718_v12 = vadd.f32 %v5978_v0, %v5977_v62 }
 0x53d   : > { %11047 = vst [vmem:[#allocation164_spill] sm:$0xff] %v8727_v43 }
 0x53e   : > { %11046 = vst [vmem:[#allocation163_spill] sm:$0xff] %v8718_v12  ;;  %4021 = vadd.xlane.f32.xlu1 %v10720_v57  ;;  %4199 = vadd.xlane.f32.xlu0 %v10721_v36  ;;  %v6020_v51 = vpop.f32.mrb[240].mxu0  ;;  %v11049_v57 = vld [vmem:[#allocation59_spill] sm:$0xff]  ;;  %v8736_v36 = vadd.f32 %v8550_v58, %v8357_v38  ;;  %v3751_v58 = vmul.f32 %v7628_v27, %v3688_v28 }
 0x53f   : > { %v6021_v24 = vpop.f32.mrb[241].mxu0  ;;  %v3690_v7 = vpop.xlane.xlu0 %3689 }
 0x540   : > { %v8729_v14 = vadd.f32 %v6021_v24, %v6020_v51  ;;  %v6023_v2 = vpop.f32.mrb[242].mxu0  ;;  %v5980_v0 = vpop.f32.mrb[24].mxu1  ;;  %11050 = vst [vmem:[#allocation166_spill] sm:$0xff] %v8736_v36  ;;  %v3752_v4 = vmul.f32 %v7615_v54, %v3690_v7  ;;  %v11052_v51 = vld [vmem:[#allocation85_spill] sm:$0xff]  ;;  %v11055_v7 = vld [vmem:[#allocation72_spill] sm:$0xff] }
 0x541   : > { %v6024_v62 = vpop.f32.mrb[243].mxu0  ;;  %v5981_v29 = vpop.f32.mrb[25].mxu1  ;;  %v8743_v24 = vadd.f32 %v8649_v18, %v11052_v51 }
 0x542   : > { %11048 = vst [vmem:[#allocation165_spill] sm:$0xff] %v8729_v14  ;;  %3733 = vadd.xlane.f32.xlu1 %v10725_v22  ;;  %3606 = vadd.xlane.f32.xlu0 %v11049_v57  ;;  %v8738_v60 = vadd.f32 %v6024_v62, %v6023_v2  ;;  %v5983_v37 = vpop.f32.mrb[26].mxu1  ;;  %v8745_v12 = vadd.f32 %v5981_v29, %v5980_v0  ;;  %v10726_v57 = vmax.f32 %v8727_v43, 0.0  ;;  %v10730_v2 = vmax.f32 %v8736_v36, 0.0 }
 0x543   : > { %11053 = vst [vmem:[#allocation85_spill] sm:$0xff] %v8743_v24  ;;  %v3692_v14 = vpop.xlane.xlu1 %3691  ;;  %v5984_v35 = vpop.f32.mrb[27].mxu1  ;;  %v8758_v29 = vadd.f32 %v8557_v15, %v8414_v40  ;;  %v3783_v62 = vadd.f32 %v3752_v4, %v3751_v58 }
 0x544   : > { %11051 = vst [vmem:[#allocation167_spill] sm:$0xff] %v8738_v60  ;;  %11054 = vst [vmem:[#allocation168_spill] sm:$0xff] %v8745_v12  ;;  %v3753_v22 = vmul.f32 %v7638_v55, %v3692_v14  ;;  %v8750_v45 = vadd.f32 %v5984_v35, %v5983_v37  ;;  %v10728_v12 = vmax.f32 %v8743_v24, 0.0 }
 0x545   : > { %11056 = vst [vmem:[#allocation169_spill] sm:$0xff] %v8758_v29  ;;  %v10729_v15 = vmax.f32 %v8758_v29, 0.0  ;;  %v11065_v29 = vld [vmem:[#allocation93_spill] sm:$0xff] }
 0x546   : > { %4023 = vadd.xlane.f32.xlu1 %v10726_v57  ;;  %3898 = vadd.xlane.f32.xlu0 %v11055_v7  ;;  %v6026_v0 = vpop.f32.mrb[244].mxu0  ;;  %v3784_v57 = vadd.f32 %v3783_v62, %v3753_v22  ;;  %v11058_v22 = vld [vmem:[#allocation60_spill] sm:$0xff] }
 0x547   : > { %v3694_v14 = vpop.xlane.xlu1 %3693  ;;  %v6027_v51 = vpop.f32.mrb[245].mxu0 }
 0x548   : > { %v3754_v37 = vmul.f32 %v7657_v23, %v3694_v14  ;;  %v8762_v28 = vadd.f32 %v6027_v51, %v6026_v0  ;;  %v6029_v35 = vpop.f32.mrb[246].mxu0  ;;  %v8774_v0 = vadd.f32 %v8555_v59, %v8357_v38  ;;  %v11059_v51 = vld [vmem:[#allocation88_spill] sm:$0xff]  ;;  %v8787_v59 = vadd.f32 %v8563_v52, %v8414_v40 }
 0x549   : > { %v6030_v43 = vpop.f32.mrb[247].mxu0 }
 0x54a   : > { %3735 = vadd.xlane.f32.xlu1 %v10730_v2  ;;  %4201 = vadd.xlane.f32.xlu0 %v10728_v12  ;;  %v8769_v4 = vadd.f32 %v6030_v43, %v6029_v35  ;;  %v3785_v58 = vadd.f32 %v3784_v57, %v3754_v37  ;;  %11057 = vst [vmem:[#allocation170_spill] sm:$0xff] %v8774_v0  ;;  %11061 = vst [vmem:[#allocation171_spill] sm:$0xff] %v8787_v59 }
 0x54b   : > { %v3696_v7 = vpop.xlane.xlu1 %3695  ;;  %v8781_v12 = vadd.f32 %v8649_v18, %v11059_v51 }
 0x54c   : > { %v3755_v60 = vmul.f32 %v7671_v50, %v3696_v7  ;;  %v10732_v7 = vmax.f32 %v8774_v0, 0.0 }
 0x54d   : > { %11060 = vst [vmem:[#allocation88_spill] sm:$0xff] %v8781_v12  ;;  %v10737_v52 = vmax.f32 %v8781_v12, 0.0 }
 0x54e   : > { %4025 = vadd.xlane.f32.xlu1 %v10729_v15  ;;  %3608 = vadd.xlane.f32.xlu0 %v11058_v22  ;;  %v6032_v62 = vpop.f32.mrb[248].mxu0  ;;  %v3786_v14 = vadd.f32 %v3785_v58, %v3755_v60  ;;  %v11062_v60 = vld [vmem:[#allocation74_spill] sm:$0xff]  ;;  %v8796_v58 = vadd.f32 %v8572_v49, %v8357_v38  ;;  %v8810_v49 = vadd.f32 %v8582_v48, %v8414_v40 }
 0x54f   : > { %v3698_v43 = vpop.xlane.xlu1 %3697  ;;  %v6033_v57 = vpop.f32.mrb[249].mxu0 }
 0x550   : > { %v3756_v37 = vmul.f32 %v7684_v41, %v3698_v43  ;;  %v8789_v35 = vadd.f32 %v6033_v57, %v6032_v62  ;;  %v6035_v15 = vpop.f32.mrb[250].mxu0  ;;  %11063 = vst [vmem:[#allocation172_spill] sm:$0xff] %v8796_v58  ;;  %v10735_v57 = vmax.f32 %v8787_v59, 0.0  ;;  %11064 = vst [vmem:[#allocation173_spill] sm:$0xff] %v8810_v49  ;;  %v10743_v48 = vmax.f32 %v8810_v49, 0.0 }
 0x551   : > { %v6036_v2 = vpop.f32.mrb[251].mxu0 }
 0x552   : > { %3737 = vadd.xlane.f32.xlu1 %v10732_v7  ;;  %3900 = vadd.xlane.f32.xlu0 %v11062_v60  ;;  %v8798_v51 = vadd.f32 %v6036_v2, %v6035_v15  ;;  %v3787_v43 = vadd.f32 %v3786_v14, %v3756_v37  ;;  %v10739_v7 = vmax.f32 %v8796_v58, 0.0  ;;  %v11067_v60 = vld [vmem:[#allocation63_spill] sm:$0xff] }
 0x553   : > { %v3700_v24 = vpop.xlane.xlu1 %3699 }
 0x554   : > { %v3757_v62 = vmul.f32 %v7697_v26, %v3700_v24  ;;  %v8814_v24 = vadd.f32 %v8649_v18, %v11065_v29  ;;  %v8827_v29 = vadd.f32 %v8750_v45, %v8414_v40 }
 0x556   : > { %4027 = vadd.xlane.f32.xlu1 %v10735_v57  ;;  %4203 = vadd.xlane.f32.xlu0 %v10737_v52  ;;  %v6038_v2 = vpop.f32.mrb[252].mxu0  ;;  %v3788_v15 = vadd.f32 %v3787_v43, %v3757_v62  ;;  %11066 = vst [vmem:[#allocation93_spill] sm:$0xff] %v8814_v24  ;;  %11068 = vst [vmem:[#allocation174_spill] sm:$0xff] %v8827_v29  ;;  %v10746_v45 = vmax.f32 %v8827_v29, 0.0 }
 0x557   : > { %v3702_v14 = vpop.xlane.xlu1 %3701  ;;  %v6039_v37 = vpop.f32.mrb[253].mxu0 }
 0x558   : > { %v3758_v59 = vmul.f32 %v7710_v39, %v3702_v14  ;;  %v8817_v57 = vadd.f32 %v6039_v37, %v6038_v2  ;;  %v6041_v12 = vpop.f32.mrb[254].mxu0  ;;  %v10742_v2 = vmax.f32 %v8814_v24, 0.0  ;;  %v8833_v37 = vadd.f32 %v8580_v21, %v8357_v38 }
 0x559   : > { %v6042_v52 = vpop.f32.mrb[255].mxu0 }
 0x55a   : > { %3739 = vadd.xlane.f32.xlu1 %v10739_v7  ;;  %3610 = vadd.xlane.f32.xlu0 %v11067_v60  ;;  %v8823_v43 = vadd.f32 %v6042_v52, %v6041_v12  ;;  %v3789_v62 = vadd.f32 %v3788_v15, %v3758_v59  ;;  %11069 = vst [vmem:[#allocation175_spill] sm:$0xff] %v8833_v37  ;;  %v10744_v7 = vmax.f32 %v8833_v37, 0.0 }
 0x55b   : > { %v3704_v0 = vpop.xlane.xlu1 %3703 }
 0x55c   : > { %v3759_v14 = vmul.f32 %v7723_v19, %v3704_v0  ;;  %v8843_v0 = vadd.f32 %v8585_v56, %v8414_v40 }
 0x55e   : > { %4029 = vadd.xlane.f32.xlu1 %v10743_v48  ;;  %4207 = vadd.xlane.f32.xlu0 %v10742_v2  ;;  %v6044_v12 = vpop.f32.mrb[0].mxu0  ;;  %v3790_v59 = vadd.f32 %v3789_v62, %v3759_v14  ;;  %11070 = vst [vmem:[#allocation176_spill] sm:$0xff] %v8843_v0  ;;  %v8851_v62 = vadd.f32 %v8594_v11, %v8357_v38 }
 0x55f   : > { %v3994_v52 = vpop.xlane.xlu1 %3993  ;;  %v6045_v15 = vpop.f32.mrb[1].mxu0  ;;  %v8863_v48 = vadd.f32 %v8601_v3, %v8414_v40 }
 0x560   : > { %v8845_v21 = vadd.f32 %v6045_v15, %v6044_v12  ;;  %v6047_v58 = vpop.f32.mrb[2].mxu0  ;;  %11071 = vst [vmem:[#allocation177_spill] sm:$0xff] %v8851_v62  ;;  %v10750_v12 = vmax.f32 %v8843_v0, 0.0  ;;  %v3996_v15 = vpop.xlane.xlu0 %3995  ;;  %v10752_v11 = vmax.f32 %v8851_v62, 0.0 }
 0x561   : > { %v6048_v49 = vpop.f32.mrb[3].mxu0  ;;  %11072 = vst [vmem:[#allocation178_spill] sm:$0xff] %v8863_v48  ;;  %v4058_v0 = vmul.f32 %v7615_v54, %v3996_v15  ;;  %v10754_v36 = vmax.f32 %v8863_v48, 0.0  ;;  %v8885_v15 = vadd.f32 %v8626_v42, %v8414_v40 }
 0x562   : > { %3741 = vadd.xlane.f32.xlu1 %v10744_v7  ;;  %v8853_v14 = vadd.f32 %v6048_v49, %v6047_v58  ;;  %4055 = vadd.xlane.f32.xlu0 %v10746_v45  ;;  %v4057_v45 = vmul.f32 %v7628_v27, %v3994_v52  ;;  %v8878_v52 = vadd.f32 %v8607_v6, %v8414_v40 }
 0x563   : > { %v3706_v2 = vpop.xlane.xlu1 %3705  ;;  %11074 = vst [vmem:[#allocation180_spill] sm:$0xff] %v8885_v15 }
 0x564   : > { %v3760_v56 = vmul.f32 %v7736_v8, %v3706_v2  ;;  %11073 = vst [vmem:[#allocation179_spill] sm:$0xff] %v8878_v52 }
 0x566   : > { %4031 = vadd.xlane.f32.xlu1 %v10750_v12  ;;  %v6050_v58 = vpop.f32.mrb[4].mxu0  ;;  %v3791_v49 = vadd.f32 %v3790_v59, %v3760_v56 }
 0x567   : > { %v3708_v7 = vpop.xlane.xlu1 %3707  ;;  %v6051_v24 = vpop.f32.mrb[5].mxu0 }
 0x568   : > { %v3761_v2 = vmul.f32 %v7761_v30, %v3708_v7  ;;  %v8868_v29 = vadd.f32 %v6051_v24, %v6050_v58  ;;  %v6053_v37 = vpop.f32.mrb[6].mxu0  ;;  %v4089_v24 = vadd.f32 %v4058_v0, %v4057_v45  ;;  %v10757_v45 = vmax.f32 %v8885_v15, 0.0 }
 0x569   : > { %v6054_v12 = vpop.f32.mrb[7].mxu0 }
 0x56a   : > { %3743 = vadd.xlane.f32.xlu1 %v10752_v11  ;;  %v8874_v3 = vadd.f32 %v6054_v12, %v6053_v37  ;;  %v3792_v59 = vadd.f32 %v3791_v49, %v3761_v2  ;;  %v10756_v49 = vmax.f32 %v8878_v52, 0.0  ;;  %v6561_v52 = vld [vmem:[%s7183_s24 + $0x2] ss:$0 sm:$0xff] }
 0x56b   : > { %v3998_v56 = vpop.xlane.xlu1 %3997 }
 0x56c   : > { %v4059_v7 = vmul.f32 %v7638_v55, %v3998_v56 }
 0x56e   : > { %4033 = vadd.xlane.f32.xlu1 %v10754_v36  ;;  %v6056_v58 = vpop.f32.mrb[8].mxu0  ;;  %v4090_v11 = vadd.f32 %v4089_v24, %v4059_v7  ;;  %v8898_v7 = vadd.f32 %v8629_v9, %v8414_v40 }
 0x56f   : > { %v3710_v37 = vpop.xlane.xlu1 %3709  ;;  %v6057_v12 = vpop.f32.mrb[9].mxu0 }
 0x570   : > { %v3762_v2 = vmul.f32 %v10990_v1, %v3710_v37  ;;  %v8889_v6 = vadd.f32 %v6057_v12, %v6056_v58  ;;  %v6059_v62 = vpop.f32.mrb[10].mxu0  ;;  %11075 = vst [vmem:[#allocation181_spill] sm:$0xff] %v8898_v7 }
 0x571   : > { %v6060_v56 = vpop.f32.mrb[11].mxu0 }
 0x572   : > { %4035 = vadd.xlane.f32.xlu1 %v10756_v49  ;;  %v8894_v0 = vadd.f32 %v6060_v56, %v6059_v62  ;;  %v3793_v42 = vadd.f32 %v3792_v59, %v3762_v2  ;;  %v8905_v49 = vadd.f32 %v8599_v13, %v8357_v38  ;;  %v10760_v62 = vmax.f32 %v8898_v7, 0.0 }
 0x573   : > { %v4000_v36 = vpop.xlane.xlu1 %3999  ;;  %v8913_v56 = vadd.f32 %v8612_v44, %v8357_v38 }
 0x574   : > { %v4060_v24 = vmul.f32 %v7657_v23, %v4000_v36  ;;  %11076 = vst [vmem:[#allocation182_spill] sm:$0xff] %v8905_v49 }
 0x575   : > { %11077 = vst [vmem:[#allocation183_spill] sm:$0xff] %v8913_v56 }
 0x576   : > { %4037 = vadd.xlane.f32.xlu1 %v10757_v45  ;;  %v6062_v58 = vpop.f32.mrb[12].mxu0  ;;  %v4091_v37 = vadd.f32 %v4090_v11, %v4060_v24  ;;  %v10762_v45 = vmax.f32 %v8905_v49, 0.0 }
 0x577   : > { %v3712_v12 = vpop.xlane.xlu1 %3711  ;;  %v6063_v48 = vpop.f32.mrb[13].mxu0 }
 0x578   : > { %v3763_v59 = vmul.f32 %v10991_v17, %v3712_v12  ;;  %v8909_v2 = vadd.f32 %v6063_v48, %v6062_v58  ;;  %v6065_v9 = vpop.f32.mrb[14].mxu0  ;;  %v10764_v48 = vmax.f32 %v8913_v56, 0.0  ;;  %v11081_v56 = vld [vmem:[#allocation75_spill] sm:$0xff] }
 0x579   : > { %v6066_v36 = vpop.f32.mrb[15].mxu0 }
 0x57a   : > { %4039 = vadd.xlane.f32.xlu1 %v10760_v62  ;;  %v3794_v11 = vadd.f32 %v3793_v42, %v3763_v59  ;;  %v8917_v24 = vadd.f32 %v6066_v36, %v6065_v9  ;;  %v8926_v62 = vadd.f32 %v6561_v52, %v8620_v20 }
 0x57b   : > { %v4002_v13 = vpop.xlane.xlu1 %4001 }
 0x57c   : > { %v4061_v12 = vmul.f32 %v7671_v50, %v4002_v13  ;;  %11078 = vst [vmem:[#allocation184_spill] sm:$0xff] %v8926_v62 }
 0x57e   : > { %3745 = vadd.xlane.f32.xlu1 %v10762_v45  ;;  %v6068_v58 = vpop.f32.mrb[16].mxu0  ;;  %v4092_v15 = vadd.f32 %v4091_v37, %v4061_v12  ;;  %v10766_v37 = vmax.f32 %v8926_v62, 0.0 }
 0x57f   : > { %v3714_v44 = vpop.xlane.xlu1 %3713  ;;  %v6069_v38 = vpop.f32.mrb[17].mxu0 }
 0x580   : > { %v3764_v42 = vmul.f32 %v10992_v61, %v3714_v44  ;;  %v8929_v59 = vadd.f32 %v6069_v38, %v6068_v58  ;;  %v6071_v9 = vpop.f32.mrb[18].mxu0  ;;  %v11079_v38 = vld [vmem:[#allocation90_spill] sm:$0xff] }
 0x581   : > { %v6072_v36 = vpop.f32.mrb[19].mxu0  ;;  %v8941_v49 = vadd.f32 %v8649_v18, %v11079_v38 }
 0x582   : > { %3747 = vadd.xlane.f32.xlu1 %v10764_v48  ;;  %v3795_v13 = vadd.f32 %v3794_v11, %v3764_v42  ;;  %v8933_v7 = vadd.f32 %v6072_v36, %v6071_v9 }
 0x583   : > { %v4004_v45 = vpop.xlane.xlu1 %4003  ;;  %11080 = vst [vmem:[#allocation90_spill] sm:$0xff] %v8941_v49 }
 0x584   : > { %v4062_v12 = vmul.f32 %v7684_v41, %v4004_v45 }
 0x586   : > { %3749 = vadd.xlane.f32.xlu1 %v10766_v37  ;;  %v6074_v20 = vpop.f32.mrb[20].mxu0  ;;  %v4093_v52 = vadd.f32 %v4092_v15, %v4062_v12  ;;  %v10769_v15 = vmax.f32 %v8941_v49, 0.0 }
 0x587   : > { %v3716_v58 = vpop.xlane.xlu1 %3715  ;;  %v6075_v44 = vpop.f32.mrb[21].mxu0 }
 0x588   : > { %v3765_v11 = vmul.f32 %v10993_v25, %v3716_v58  ;;  %v8944_v42 = vadd.f32 %v6075_v44, %v6074_v20  ;;  %v6077_v9 = vpop.f32.mrb[22].mxu0  ;;  %v8955_v44 = vadd.f32 %v8644_v33, %v8414_v40 }
 0x589   : > { %v6078_v36 = vpop.f32.mrb[23].mxu0 }
 0x58a   : > { %v3796_v48 = vadd.f32 %v3795_v13, %v3765_v11  ;;  %3902 = vadd.xlane.f32.xlu1 %v11081_v56  ;;  %v8947_v45 = vadd.f32 %v6078_v36, %v6077_v9  ;;  %11082 = vst [vmem:[#allocation185_spill] sm:$0xff] %v8955_v44  ;;  %v10771_v56 = vmax.f32 %v8955_v44, 0.0 }
 0x58b   : > { %v4006_v37 = vpop.xlane.xlu1 %4005 }
 0x58c   : > { %v4063_v12 = vmul.f32 %v7697_v26, %v4006_v37  ;;  %v8962_v37 = vadd.f32 %v8646_v46, %v8414_v40 }
 0x58e   : > { %4205 = vadd.xlane.f32.xlu1 %v10769_v15  ;;  %v6080_v38 = vpop.f32.mrb[24].mxu0  ;;  %v4094_v62 = vadd.f32 %v4093_v52, %v4063_v12  ;;  %11083 = vst [vmem:[#allocation186_spill] sm:$0xff] %v8962_v37  ;;  %v11084_v15 = vld [vmem:[#allocation64_spill] sm:$0xff] }
 0x58f   : > { %v3718_v58 = vpop.xlane.xlu1 %3717  ;;  %v6081_v20 = vpop.f32.mrb[25].mxu0 }
 0x590   : > { %v3766_v13 = vmul.f32 %v10994_v32, %v3718_v58  ;;  %v8958_v11 = vadd.f32 %v6081_v20, %v6080_v38  ;;  %v6083_v9 = vpop.f32.mrb[26].mxu0  ;;  %v8981_v58 = vadd.f32 %v8672_v53, %v8414_v40 }
 0x591   : > { %v6084_v36 = vpop.f32.mrb[27].mxu0 }
 0x592   : > { %v3797_v49 = vadd.f32 %v3796_v48, %v3766_v13  ;;  %3612 = vadd.xlane.f32.xlu1 %v11084_v15  ;;  %v8965_v52 = vadd.f32 %v6084_v36, %v6083_v9  ;;  %v8974_v48 = vadd.f32 %v8660_v16, %v8414_v40  ;;  %11086 = vst [vmem:[#allocation188_spill] sm:$0xff] %v8981_v58  ;;  %v8987_v16 = vld [vmem:[%s7183_s24 + $0x3] ss:$0 sm:$0xff] }
 0x593   : > { %v4008_v12 = vpop.xlane.xlu1 %4007 }
 0x594   : > { %v4064_v33 = vmul.f32 %v7710_v39, %v4008_v12  ;;  %11085 = vst [vmem:[#allocation187_spill] sm:$0xff] %v8974_v48 }
 0x596   : > { %v6086_v38 = vpop.f32.mrb[28].mxu0  ;;  %4302 = vadd.xlane.f32.xlu1 %v10771_v56  ;;  %v4095_v20 = vadd.f32 %v4094_v62, %v4064_v33  ;;  %v11087_v62 = vmax.f32 %v8962_v37, 0.0  ;;  %v10772_v56 = vmax.f32 %v8974_v48, 0.0 }
 0x597   : > { %v6087_v46 = vpop.f32.mrb[29].mxu0  ;;  %v3720_v60 = vpop.xlane.xlu1 %3719 }
 0x598   : > { %v8976_v13 = vadd.f32 %v6087_v46, %v6086_v38  ;;  %v3767_v9 = vmul.f32 %v10995_v34, %v3720_v60  ;;  %v6089_v36 = vpop.f32.mrb[30].mxu0  ;;  %v11089_v46 = vld [vmem:[#allocation95_spill] sm:$0xff] }
 0x599   : > { %v6090_v12 = vpop.f32.mrb[31].mxu0  ;;  %v8995_v22 = vadd.f32 %v8649_v18, %v11089_v46 }
 0x59a   : > { %v3798_v44 = vadd.f32 %v3797_v49, %v3767_v9  ;;  %v6091_v15 = vadd.f32 %v6090_v12, %v6089_v36  ;;  %4041 = vadd.xlane.f32.xlu1 %v11087_v62 }
 0x59b   : > { %v4010_v33 = vpop.xlane.xlu1 %4009  ;;  %11090 = vst [vmem:[#allocation95_spill] sm:$0xff] %v8995_v22  ;;  %v10775_v40 = vmax.f32 %v8995_v22, 0.0 }
 0x59c   : > { %v8990_v38 = vadd.f32 %v8987_v16, %v6091_v15  ;;  %v4065_v60 = vmul.f32 %v7723_v19, %v4010_v33  ;;  %v9003_v15 = vadd.f32 %v8987_v16, %v8682_v47 }
 0x59e   : > { %11088 = vst [vmem:[#allocation189_spill] sm:$0xff] %v8990_v38  ;;  %v10774_v53 = vmax.f32 %v8990_v38, 0.0  ;;  %4043 = vadd.xlane.f32.xlu1 %v10772_v56  ;;  %v4096_v49 = vadd.f32 %v4095_v20, %v4065_v60  ;;  %v6092_v9 = vpop.f32.mrb[32].mxu0  ;;  %11091 = vst [vmem:[#allocation190_spill] sm:$0xff] %v9003_v15  ;;  %v9013_v20 = vadd.f32 %v8987_v16, %v8684_v10  ;;  %v11093_v56 = vmax.f32 %v8981_v58, 0.0 }
 0x59f   : > { %v3722_v36 = vpop.xlane.xlu1 %3721  ;;  %v6093_v12 = vpop.f32.mrb[33].mxu0  ;;  %v10777_v38 = vmax.f32 %v9003_v15, 0.0 }
 0x5a0   : > { %v3768_v62 = vmul.f32 %v8114_v63, %v3722_v36  ;;  %4358 = vadd.xlane.f32.xlu0 %v10774_v53  ;;  %v9008_v18 = vadd.f32 %v6093_v12, %v6092_v9  ;;  %v6095_v33 = vpop.f32.mrb[34].mxu0  ;;  %11092 = vst [vmem:[#allocation191_spill] sm:$0xff] %v9013_v20  ;;  %v10778_v12 = vmax.f32 %v9013_v20, 0.0 }
 0x5a1   : > { %v6096_v46 = vpop.f32.mrb[35].mxu0 }
 0x5a2   : > { %v3799_v60 = vadd.f32 %v3798_v44, %v3768_v62  ;;  %4304 = vadd.xlane.f32.xlu1 %v11093_v56  ;;  %v9017_v47 = vadd.f32 %v6096_v46, %v6095_v33  ;;  %v9028_v56 = vadd.f32 %v8987_v16, %v8687_v31  ;;  %v11095_v62 = vld [vmem:[#allocation113_spill] sm:$0xff]  ;;  %v11096_v46 = vld [vmem:[#allocation160_spill] sm:$0xff] }
 0x5a3   : > { %v4012_v36 = vpop.xlane.xlu1 %4011  ;;  %v9033_v53 = vadd.f32 %v8987_v16, %v11096_v46  ;;  %v11100_v46 = vld [vmem:[#allocation161_spill] sm:$0xff] }
 0x5a4   : > { %v4066_v9 = vmul.f32 %v7736_v8, %v4012_v36  ;;  %4209 = vadd.xlane.f32.xlu0 %v10775_v40  ;;  %11094 = vst [vmem:[#allocation192_spill] sm:$0xff] %v9028_v56  ;;  %v10780_v15 = vmax.f32 %v9028_v56, 0.0 }
 0x5a5   : > { %11097 = vst [vmem:[#allocation113_spill] sm:$0xff] %v9033_v53 }
 0x5a6   : > { %4306 = vadd.xlane.f32.xlu1 %v10777_v38  ;;  %v4097_v10 = vadd.f32 %v4096_v49, %v4066_v9  ;;  %v10783_v9 = vmax.f32 %v9033_v53, 0.0  ;;  %v11105_v53 = vld [vmem:[#allocation165_spill] sm:$0xff] }
 0x5a7   : > { %v3724_v44 = vpop.xlane.xlu1 %3723 }
 0x5a8   : > { %v3769_v33 = vmul.f32 %v11095_v62, %v3724_v44  ;;  %v9044_v44 = vadd.f32 %v8987_v16, %v8709_v5 }
 0x5aa   : > { %v3800_v36 = vadd.f32 %v3799_v60, %v3769_v33  ;;  %4045 = vadd.xlane.f32.xlu1 %v10778_v12  ;;  %11098 = vst [vmem:[#allocation160_spill] sm:$0xff] %v9044_v44  ;;  %v11099_v60 = vld [vmem:[#allocation114_spill] sm:$0xff]  ;;  %v9049_v12 = vadd.f32 %v8987_v16, %v11100_v46 }
 0x5ab   : > { %v4014_v40 = vpop.xlane.xlu1 %4013 }
 0x5ac   : > { %v4067_v49 = vmul.f32 %v7761_v30, %v4014_v40  ;;  %11101 = vst [vmem:[#allocation114_spill] sm:$0xff] %v9049_v12 }
 0x5ae   : > { %v4098_v38 = vadd.f32 %v4097_v10, %v4067_v49  ;;  %4047 = vadd.xlane.f32.xlu1 %v10780_v15  ;;  %v10785_v10 = vmax.f32 %v9044_v44, 0.0  ;;  %v10788_v15 = vmax.f32 %v9049_v12, 0.0  ;;  %v11110_v12 = vld [vmem:[#allocation168_spill] sm:$0xff] }
 0x5af   : > { %v3726_v31 = vpop.xlane.xlu1 %3725 }
 0x5b0   : > { %v3770_v33 = vmul.f32 %v11099_v60, %v3726_v31  ;;  %v11102_v31 = vld [vmem:[#allocation163_spill] sm:$0xff] }
 0x5b1   : > { %v9060_v46 = vadd.f32 %v8987_v16, %v11102_v31  ;;  %v11107_v31 = vld [vmem:[#allocation167_spill] sm:$0xff] }
 0x5b2   : > { %v3801_v58 = vadd.f32 %v3800_v36, %v3770_v33  ;;  %4308 = vadd.xlane.f32.xlu1 %v10783_v9  ;;  %v11104_v36 = vld [vmem:[#allocation115_spill] sm:$0xff]  ;;  %v9065_v9 = vadd.f32 %v8987_v16, %v11105_v53  ;;  %v9076_v53 = vadd.f32 %v8987_v16, %v11107_v31 }
 0x5b3   : > { %v4016_v40 = vpop.xlane.xlu1 %4015  ;;  %11103 = vst [vmem:[#allocation161_spill] sm:$0xff] %v9060_v46 }
 0x5b4   : > { %v4068_v49 = vmul.f32 %v10990_v1, %v4016_v40  ;;  %11106 = vst [vmem:[#allocation163_spill] sm:$0xff] %v9065_v9  ;;  %11108 = vst [vmem:[#allocation115_spill] sm:$0xff] %v9076_v53 }
 0x5b6   : > { %v4099_v22 = vadd.f32 %v4098_v38, %v4068_v49  ;;  %4310 = vadd.xlane.f32.xlu1 %v10785_v10  ;;  %v10790_v38 = vmax.f32 %v9060_v46, 0.0  ;;  %v10792_v10 = vmax.f32 %v9065_v9, 0.0 }
 0x5b7   : > { %v3728_v5 = vpop.xlane.xlu1 %3727 }
 0x5b8   : > { %v3771_v33 = vmul.f32 %v11104_v36, %v3728_v5 }
 0x5ba   : > { %v3802_v56 = vadd.f32 %v3801_v58, %v3771_v33  ;;  %4049 = vadd.xlane.f32.xlu1 %v10788_v15  ;;  %v11109_v58 = vld [vmem:[#allocation116_spill] sm:$0xff]  ;;  %v9081_v15 = vadd.f32 %v8987_v16, %v11110_v12  ;;  %v9092_v12 = vadd.f32 %v8987_v16, %v8762_v28 }
 0x5bb   : > { %v4018_v40 = vpop.xlane.xlu1 %4017 }
 0x5bc   : > { %v4069_v49 = vmul.f32 %v10991_v17, %v4018_v40  ;;  %11111 = vst [vmem:[#allocation165_spill] sm:$0xff] %v9081_v15  ;;  %11112 = vst [vmem:[#allocation167_spill] sm:$0xff] %v9092_v12 }
 0x5be   : > { %v4100_v44 = vadd.f32 %v4099_v22, %v4069_v49  ;;  %4051 = vadd.xlane.f32.xlu1 %v10790_v38  ;;  %v10793_v22 = vmax.f32 %v9076_v53, 0.0  ;;  %v10794_v38 = vmax.f32 %v9081_v15, 0.0 }
 0x5bf   : > { %v3730_v5 = vpop.xlane.xlu1 %3729 }
 0x5c0   : > { %v3772_v33 = vmul.f32 %v11109_v58, %v3730_v5 }
 0x5c2   : > { %v3803_v20 = vadd.f32 %v3802_v56, %v3772_v33  ;;  %4312 = vadd.xlane.f32.xlu1 %v10792_v10  ;;  %v11113_v56 = vld [vmem:[#allocation117_spill] sm:$0xff] }
 0x5c3   : > { %v4020_v40 = vpop.xlane.xlu1 %4019 }
 0x5c4   : > { %v4070_v49 = vmul.f32 %v10992_v61, %v4020_v40  ;;  %v10796_v40 = vmax.f32 %v9092_v12, 0.0 }
 0x5c6   : > { %v4101_v46 = vadd.f32 %v4100_v44, %v4070_v49  ;;  %4314 = vadd.xlane.f32.xlu1 %v10793_v22  ;;  %v9100_v44 = vadd.f32 %v8987_v16, %v8769_v4 }
 0x5c7   : > { %v3732_v5 = vpop.xlane.xlu1 %3731 }
 0x5c8   : > { %v3773_v31 = vmul.f32 %v11113_v56, %v3732_v5  ;;  %11114 = vst [vmem:[#allocation168_spill] sm:$0xff] %v9100_v44  ;;  %v10798_v5 = vmax.f32 %v9100_v44, 0.0 }
 0x5ca   : > { %v3804_v33 = vadd.f32 %v3803_v20, %v3773_v31  ;;  %4053 = vadd.xlane.f32.xlu1 %v10794_v38  ;;  %v9108_v20 = vadd.f32 %v8987_v16, %v8789_v35  ;;  %v11116_v31 = vld [vmem:[#allocation118_spill] sm:$0xff] }
 0x5cb   : > { %v4022_v10 = vpop.xlane.xlu1 %4021 }
 0x5cc   : > { %v4071_v49 = vmul.f32 %v10993_v25, %v4022_v10  ;;  %11115 = vst [vmem:[#allocation193_spill] sm:$0xff] %v9108_v20  ;;  %v10800_v10 = vmax.f32 %v9108_v20, 0.0 }
 0x5ce   : > { %v4102_v22 = vadd.f32 %v4101_v46, %v4071_v49  ;;  %4316 = vadd.xlane.f32.xlu1 %v10796_v40  ;;  %v9116_v46 = vadd.f32 %v8987_v16, %v8798_v51  ;;  %v9119_v40 = vpop.xlane.xlu0 %4300 }
 0x5cf   : > { %v3734_v28 = vpop.xlane.xlu1 %3733 }
 0x5d0   : > { %v3774_v38 = vmul.f32 %v11116_v31, %v3734_v28  ;;  %11117 = vst [vmem:[#allocation194_spill] sm:$0xff] %v9116_v46  ;;  %v11119_v28 = vld [vmem:[#allocation119_spill] sm:$0xff] }
 0x5d2   : > { %v3805_v53 = vadd.f32 %v3804_v33, %v3774_v38  ;;  %4318 = vadd.xlane.f32.xlu1 %v10798_v5  ;;  %v10802_v38 = vmax.f32 %v9116_v46, 0.0  ;;  %v9126_v33 = vadd.f32 %v8987_v16, %v8817_v57 }
 0x5d3   : > { %v4024_v4 = vpop.xlane.xlu1 %4023 }
 0x5d4   : > { %v4072_v49 = vmul.f32 %v10994_v32, %v4024_v4  ;;  %11118 = vst [vmem:[#allocation195_spill] sm:$0xff] %v9126_v33  ;;  %v10804_v4 = vmax.f32 %v9126_v33, 0.0 }
 0x5d6   : > { %v4103_v12 = vadd.f32 %v4102_v22, %v4072_v49  ;;  %4320 = vadd.xlane.f32.xlu1 %v10800_v10  ;;  %v9134_v22 = vadd.f32 %v8987_v16, %v8823_v43  ;;  %v9136_v49 = vpop.xlane.xlu0 %4197 }
 0x5d7   : > { %v3736_v35 = vpop.xlane.xlu1 %3735 }
 0x5d8   : > { %v3775_v5 = vmul.f32 %v11119_v28, %v3736_v35  ;;  %11120 = vst [vmem:[#allocation119_spill] sm:$0xff] %v9134_v22  ;;  %v11122_v35 = vld [vmem:[#allocation120_spill] sm:$0xff] }
 0x5da   : > { %v3806_v44 = vadd.f32 %v3805_v53, %v3775_v5  ;;  %4322 = vadd.xlane.f32.xlu1 %v10802_v38  ;;  %v10806_v53 = vmax.f32 %v9134_v22, 0.0  ;;  %v9144_v5 = vadd.f32 %v8987_v16, %v8845_v21  ;;  %v9147_v46 = vpop.xlane.xlu0 %3604 }
 0x5db   : > { %v4026_v51 = vpop.xlane.xlu1 %4025 }
 0x5dc   : > { %v4073_v10 = vmul.f32 %v10995_v34, %v4026_v51  ;;  %11121 = vst [vmem:[#allocation196_spill] sm:$0xff] %v9144_v5 }
 0x5de   : > { %v4104_v20 = vadd.f32 %v4103_v12, %v4073_v10  ;;  %4324 = vadd.xlane.f32.xlu1 %v10804_v4  ;;  %v10809_v12 = vmax.f32 %v9144_v5, 0.0  ;;  %v9154_v10 = vadd.f32 %v8987_v16, %v8853_v14 }
 0x5df   : > { %v3738_v57 = vpop.xlane.xlu1 %3737 }
 0x5e0   : > { %v3776_v38 = vmul.f32 %v11122_v35, %v3738_v57  ;;  %11123 = vst [vmem:[#allocation120_spill] sm:$0xff] %v9154_v10  ;;  %v10810_v57 = vmax.f32 %v9154_v10, 0.0 }
 0x5e2   : > { %v3807_v43 = vadd.f32 %v3806_v44, %v3776_v38  ;;  %4326 = vadd.xlane.f32.xlu1 %v10806_v53  ;;  %v9162_v44 = vadd.f32 %v8987_v16, %v8868_v29  ;;  %v9164_v38 = vpop.xlane.xlu0 %3896  ;;  %v11125_v53 = vld [vmem:[#allocation121_spill] sm:$0xff] }
 0x5e3   : > { %v4028_v51 = vpop.xlane.xlu1 %4027 }
 0x5e4   : > { %v4074_v4 = vmul.f32 %v8114_v63, %v4028_v51  ;;  %11124 = vst [vmem:[#allocation197_spill] sm:$0xff] %v9162_v44 }
 0x5e6   : > { %v4105_v33 = vadd.f32 %v4104_v20, %v4074_v4  ;;  %4328 = vadd.xlane.f32.xlu1 %v10809_v12  ;;  %v10813_v20 = vmax.f32 %v9162_v44, 0.0  ;;  %v9172_v4 = vadd.f32 %v8987_v16, %v8874_v3  ;;  %v9175_v12 = vpop.xlane.xlu0 %4199 }
 0x5e7   : > { %v3740_v21 = vpop.xlane.xlu1 %3739 }
 0x5e8   : > { %v3777_v22 = vmul.f32 %v11125_v53, %v3740_v21  ;;  %11126 = vst [vmem:[#allocation121_spill] sm:$0xff] %v9172_v4 }
 0x5ea   : > { %v3808_v9 = vadd.f32 %v3807_v43, %v3777_v22  ;;  %4330 = vadd.xlane.f32.xlu1 %v10810_v57  ;;  %v10814_v22 = vmax.f32 %v9172_v4, 0.0  ;;  %v9182_v43 = vadd.f32 %v8987_v16, %v8889_v6  ;;  %v11128_v57 = vld [vmem:[#allocation123_spill] sm:$0xff] }
 0x5eb   : > { %v4030_v14 = vpop.xlane.xlu1 %4029 }
 0x5ec   : > { %v4075_v51 = vmul.f32 %v11095_v62, %v4030_v14  ;;  %11127 = vst [vmem:[#allocation198_spill] sm:$0xff] %v9182_v43  ;;  %v10816_v14 = vmax.f32 %v9182_v43, 0.0  ;;  %v9207_v43 = vadd.f32 %v8987_v16, %v8917_v24 }
 0x5ee   : > { %v4106_v29 = vadd.f32 %v4105_v33, %v4075_v51  ;;  %4332 = vadd.xlane.f32.xlu1 %v10813_v20  ;;  %v9190_v33 = vadd.f32 %v8987_v16, %v8894_v0  ;;  %v9192_v51 = vpop.xlane.xlu0 %3606  ;;  %11131 = vst [vmem:[#allocation200_spill] sm:$0xff] %v9207_v43 }
 0x5ef   : > { %v3742_v21 = vpop.xlane.xlu1 %3741 }
 0x5f0   : > { %v3778_v10 = vmul.f32 %v11128_v57, %v3742_v21  ;;  %11129 = vst [vmem:[#allocation123_spill] sm:$0xff] %v9190_v33  ;;  %v10820_v20 = vmax.f32 %v9190_v33, 0.0 }
 0x5f2   : > { %v3809_v5 = vadd.f32 %v3808_v9, %v3778_v10  ;;  %4334 = vadd.xlane.f32.xlu1 %v10814_v22  ;;  %v9199_v9 = vadd.f32 %v8987_v16, %v8909_v2  ;;  %v3899_v10 = vpop.xlane.xlu0 %3898  ;;  %v11132_v2 = vld [vmem:[#allocation70_spill] sm:$0xff] }
 0x5f3   : > { %v4032_v3 = vpop.xlane.xlu1 %4031  ;;  %v3447_v44 = vadd.s32 224, %v11132_v2 }
 0x5f4   : > { %11130 = vst [vmem:[#allocation199_spill] sm:$0xff] %v9199_v9  ;;  %v4076_v21 = vmul.f32 %v11099_v60, %v4032_v3  ;;  %v10824_v22 = vmax.f32 %v9199_v9, 0.0  ;;  %v10826_v3 = vmax.f32 %v9207_v43, 0.0  ;;  %v11135_v9 = vld [vmem:[#allocation73_spill] sm:$0xff]  ;;  %v9267_v43 = vadd.f32 %v8987_v16, %v8958_v11 }
 0x5f5   : > { %vm3480_vm12 = vcmp.lt.s32.totalorder %v3447_v44, %v11135_v9  ;;  %v9241_v44 = vadd.f32 %v8987_v16, %v8944_v42 }
 0x5f6   : > { %4336 = vadd.xlane.f32.xlu1 %v10816_v14  ;;  %v4107_v4 = vadd.f32 %v4106_v29, %v4076_v21  ;;  %v4202_v33 = vpop.xlane.xlu0 %4201  ;;  %v3448_v29 = vadd.s32 232, %v11132_v2 }
 0x5f7   : > { %v3744_v6 = vpop.xlane.xlu1 %3743  ;;  %11137 = vst [vmem:[#allocation73_spill] sm:$0xff] %v9241_v44  ;;  %v10833_v42 = vmax.f32 %v9241_v44, 0.0  ;;  %v10842_v44 = vmax.f32 %v9267_v43, 0.0 }
 0x5f8   : > { %vm3481_vm13 = vcmp.lt.s32.totalorder %v3448_v29, %v11135_v9  ;;  %v3450_v29 = vadd.s32 248, %v11132_v2 }
 0x5fa   : > { %4338 = vadd.xlane.f32.xlu1 %v10820_v20  ;;  %v9216_v20 = vadd.f32 %v8987_v16, %v8929_v59  ;;  %vm3483_vm15 = vcmp.lt.s32.totalorder %v3450_v29, %v11135_v9 }
 0x5fb   : > { %v4034_v0 = vpop.xlane.xlu1 %4033 }
 0x5fc   : > { %v4077_v14 = vmul.f32 %v11104_v36, %v4034_v0  ;;  %11133 = vst [vmem:[#allocation70_spill] sm:$0xff] %v9216_v20  ;;  %v10827_v0 = vmax.f32 %v9216_v20, 0.0 }
 0x5fe   : > { %4340 = vadd.xlane.f32.xlu1 %v10824_v22  ;;  %v4108_v48 = vadd.f32 %v4107_v4, %v4077_v14  ;;  %v9225_v22 = vadd.f32 %v8987_v16, %v8933_v7  ;;  %v9229_v4 = vpop.xlane.xlu0 %3608 }
 0x5ff   : > { %v4036_v15 = vpop.xlane.xlu1 %4035 }
 0x600   : > { %v4078_v24 = vmul.f32 %v11109_v58, %v4036_v15  ;;  %11134 = vst [vmem:[#allocation201_spill] sm:$0xff] %v9225_v22  ;;  %v10830_v7 = vmax.f32 %v9225_v22, 0.0 }
 0x602   : > { %v4109_v37 = vadd.f32 %v4108_v48, %v4078_v24  ;;  %4342 = vadd.xlane.f32.xlu1 %v10826_v3  ;;  %v11136_v48 = vmov 0.0   ;;  %v3449_v24 = vadd.s32 240, %v11132_v2 }
 0x603   : > { %v4038_v21 = vpop.xlane.xlu1 %4037  ;;  %v9234_v14 = vsel %vm3480_vm12, 1.0, %v11136_v48  ;;  %6147 = vmatprep.mubr.msk.f32.mxu1 %vm6631_vm0, %v11136_v48 }
 0x604   : > { %v4079_v59 = vmul.f32 %v11113_v56, %v4038_v21  ;;  %v3779_v21 = vmul.f32 %v9234_v14, %v3744_v6  ;;  %vm3482_vm14 = vcmp.lt.s32.totalorder %v3449_v24, %v11135_v9  ;;  %v9257_v6 = vadd.f32 %v8987_v16, %v8947_v45  ;;  %v11143_v56 = vld [vmem:[#allocation124_spill] sm:$0xff] }
 0x605   : > { %v9270_v45 = vsel %vm3482_vm14, 1.0, %v11136_v48  ;;  %v4236_v9 = vmul.f32 %v11122_v35, %v9136_v49  ;;  %v9290_v49 = vadd.f32 %v8987_v16, %v8965_v52  ;;  %v9302_v52 = vadd.f32 %v8987_v16, %v8976_v13 }
 0x606   : > { %v4110_v15 = vadd.f32 %v4109_v37, %v4079_v59  ;;  %4344 = vadd.xlane.f32.xlu1 %v10827_v0  ;;  %v9251_v0 = vsel %vm3481_vm13, 1.0, %v11136_v48  ;;  %11138 = vst [vmem:[#allocation202_spill] sm:$0xff] %v9257_v6 }
 0x607   : > { %v4040_v3 = vpop.xlane.xlu1 %4039  ;;  %v3933_v11 = vmul.f32 %v9251_v0, %v3899_v10  ;;  %11144 = vst [vmem:[#allocation124_spill] sm:$0xff] %v9302_v52  ;;  %v3643_v13 = vmul.f32 %v9251_v0, %v9229_v4  ;;  %v10841_v4 = vmax.f32 %v9302_v52, 0.0 }
 0x608   : > { %v4080_v37 = vmul.f32 %v11116_v31, %v4040_v3  ;;  %v3901_v3 = vpop.xlane.xlu0 %3900 }
 0x609   : > { %v3934_v10 = vmul.f32 %v9270_v45, %v3901_v3  ;;  %v3642_v3 = vmul.f32 %v9234_v14, %v9192_v51 }
 0x60a   : > { %v9245_v59 = vadd.f32 %v4110_v15, %v4080_v37  ;;  %4346 = vadd.xlane.f32.xlu1 %v10830_v7  ;;  %v3810_v15 = vadd.f32 %v3809_v5, %v3779_v21  ;;  %v11139_v7 = vld [vmem:[#allocation159_spill] sm:$0xff]  ;;  %v10837_v5 = vmax.f32 %v9257_v6, 0.0 }
 0x60b   : > { %v3746_v20 = vpop.xlane.xlu1 %3745  ;;  %v4235_v24 = vmul.f32 %v11119_v28, %v11139_v7  ;;  %11140 = vst [vmem:[#allocation159_spill] sm:$0xff] %v9267_v43  ;;  %v9279_v7 = vsel %vm3483_vm15, 1.0, %v11136_v48 }
 0x60c   : > { %v3780_v37 = vmul.f32 %v9251_v0, %v3746_v20  ;;  %v3932_v20 = vmul.f32 %v9234_v14, %v9164_v38  ;;  %v4204_v29 = vpop.xlane.xlu0 %4203 }
 0x60e   : > { %v3811_v22 = vadd.f32 %v3810_v15, %v3780_v37  ;;  %4348 = vadd.xlane.f32.xlu1 %v10833_v42  ;;  %v11141_v37 = vld [vmem:[#allocation81_spill] sm:$0xff]  ;;  %v3963_v58 = vadd.f32 %v11143_v56, %v3932_v20 }
 0x60f   : > { %v3748_v31 = vpop.xlane.xlu1 %3747  ;;  %v4266_v42 = vadd.f32 %v11141_v37, %v4235_v24  ;;  %11142 = vst [vmem:[#allocation81_spill] sm:$0xff] %v9290_v49  ;;  %v3641_v24 = vmul.f32 %v11128_v57, %v9147_v46  ;;  %v4238_v37 = vmul.f32 %v11128_v57, %v4202_v33  ;;  %v10838_v33 = vmax.f32 %v9290_v49, 0.0 }
 0x610   : > { %v3781_v21 = vmul.f32 %v9270_v45, %v3748_v31  ;;  %v4237_v31 = vmul.f32 %v11125_v53, %v9175_v12  ;;  %v3611_v20 = vpop.xlane.xlu0 %3610 }
 0x612   : > { %v3812_v15 = vadd.f32 %v3811_v22, %v3781_v21  ;;  %4350 = vadd.xlane.f32.xlu1 %v10837_v5  ;;  %v4267_v21 = vadd.f32 %v4266_v42, %v4236_v9  ;;  %v3964_v5 = vadd.f32 %v3963_v58, %v3933_v11  ;;  %v4239_v42 = vmul.f32 %v9234_v14, %v4204_v29 }
 0x613   : > { %v3750_v38 = vpop.xlane.xlu1 %3749 }
 0x614   : > { %v3782_v22 = vmul.f32 %v9279_v7, %v3750_v38  ;;  %v4268_v56 = vadd.f32 %v4267_v21, %v4237_v31  ;;  %v3965_v58 = vadd.f32 %v3964_v5, %v3934_v10  ;;  %v9319_v5 = vadd.f32 %v8987_v16, %v9008_v18  ;;  %v4455_v18 = vld [vmem:[%s9325_s27] sm:$0xff] }
 0x615   : > { %v3644_v21 = vmul.f32 %v9270_v45, %v3611_v20  ;;  %v6630_v20 = vmov 1966171168  }
 0x616   : > { %v3813_v12 = vadd.f32 %v3812_v15, %v3782_v22  ;;  %4352 = vadd.xlane.f32.xlu1 %v10842_v44  ;;  %v11145_v15 = vld [vmem:[#allocation122_spill] sm:$0xff]  ;;  %v4269_v22 = vadd.f32 %v4268_v56, %v4238_v37  ;;  %v6629_v37 = vmov 0.0|0.0  }
 0x617   : > { %v3903_v46 = vpop.xlane.xlu1 %3902  ;;  %v3672_v38 = vadd.f32 %v11145_v15, %v3641_v24  ;;  %11146 = vst [vmem:[#allocation122_spill] sm:$0xff] %v9319_v5  ;;  %6150 = vmatprep.subr.bf16.mxu1 %v6629_v37 }
 0x618   : > { %v3814_v9 = vrot.slane %v3813_v12, 4  ;;  %v3935_v11 = vmul.f32 %v9279_v7, %v3903_v46  ;;  %v4270_v10 = vadd.f32 %v4269_v22, %v4239_v42  ;;  %v9341_v22 = vadd.f32 %v8987_v16, %v9017_v47 }
 0x619   : > { %v3673_v29 = vadd.f32 %v3672_v38, %v3642_v3  ;;  %v10840_v3 = vmax.f32 %v9319_v5, 0.0  ;;  %v3824_v38 = vunpack.c.l.s4 %v6630_v20 }
 0x61a   : > { %v3815_v51 = vadd.f32 %v3814_v9, %v3813_v12  ;;  %v3966_v31 = vadd.f32 %v3965_v58, %v3935_v11  ;;  %4354 = vadd.xlane.f32.xlu1 %v10838_v33  ;;  %v4456_v12 = vld [vmem:[%s9325_s27 + $0x8] sm:$0xff]  ;;  %11147 = vst [vmem:[#allocation203_spill] sm:$0xff] %v9341_v22 }
 0x61b   : > { %v4206_v24 = vpop.xlane.xlu1 %4205  ;;  %v6151_v9 = vpack.c.bf16 %v4456_v12, %v4455_v18  ;;  %v3674_v11 = vadd.f32 %v3673_v29, %v3643_v13  ;;  %v3825_v16 = vunpack.c.0.s8 %v3824_v38 }
 0x61c   : > { %v3816_v56 = vrot.slane %v3815_v51, 2  ;;  %v3967_v46 = vrot.slane %v3966_v31, 4  ;;  %v4240_v58 = vmul.f32 %v9251_v0, %v4206_v24 }
 0x61d   : > { %6152 = vmatpush3.bf16.msra.mxu1 %v6151_v9  ;;  %v3675_v13 = vadd.f32 %v3674_v11, %v3644_v21  ;;  %v9355_v11 = vld [vmem:[%s710_s16] sm:$0xff]  ;;  %s6635_s16 = smov 123  }
 0x61e   : > { %v3817_v15 = vadd.f32 %v3816_v56, %v3815_v51  ;;  %v3968_v33 = vadd.f32 %v3967_v46, %v3966_v31  ;;  %v9334_v42 = vadd.f32 %v4270_v10, %v4240_v58  ;;  %4356 = vadd.xlane.f32.xlu1 %v10841_v4  ;;  %6153 = vmatprep.subr.bf16.mxu1 %v6629_v37  ;;  %v9346_v10 = vstv %s9313_s29  ;;  %s721_s29 = scalar_lea.vmem %s10473_s13, %s6787_s23 }
 0x61f   : > { %v3613_v24 = vpop.xlane.xlu1 %3612  ;;  %v10839_v58 = vmax.f32 %v9341_v22, 0.0 }
 0x620   : > { %v3818_v51 = vrot.slane %v3817_v15, 1  ;;  %v3969_v31 = vrot.slane %v3968_v33, 2  ;;  %v3645_v29 = vmul.f32 %v9279_v7, %v3613_v24 }
 0x622   : > { %v3819_v18 = vadd.f32 %v3818_v51, %v3817_v15  ;;  %v3970_v12 = vadd.f32 %v3969_v31, %v3968_v33  ;;  %v3676_v56 = vadd.f32 %v3675_v13, %v3645_v29  ;;  %4360 = vadd.xlane.f32.xlu1 %v10840_v3  ;;  %v9360_v33 = vsub.s32 %v3825_v16, %v11132_v2 }
 0x623   : > { %v4303_v47 = vpop.xlane.xlu1 %4302 }
 0x624   : > { %v3820_v21 = vmul.f32 %v3819_v18, %v9346_v10  ;;  %v3971_v46 = vrot.slane %v3970_v12, 1  ;;  %v3677_v9 = vrot.slane %v3676_v56, 4 }
 0x626   : > { %v3972_v20 = vadd.f32 %v3971_v46, %v3970_v12  ;;  %v3678_v24 = vadd.f32 %v3677_v9, %v3676_v56  ;;  %4362 = vadd.xlane.f32.xlu1 %v10839_v58  ;;  %v3821_v38 = vmul.f32 %v3820_v21, %v9355_v11  ;;  %v4457_v56 = vld [vmem:[%s9325_s27 + $0x10] sm:$0xff]  ;;  %v4458_v46 = vld [vmem:[%s9325_s27 + $0x18] sm:$0xff]  ;;  %v4365_v21 = vmul.f32 %v7615_v54, %v4303_v47 }
 0x627   : > { %v4042_v15 = vpop.xlane.xlu1 %4041  ;;  %v6154_v58 = vpack.c.bf16 %v4458_v46, %v4457_v56  ;;  %v4208_v56 = vpop.xlane.xlu0 %4207 }
 0x628   : > { %v3973_v13 = vmul.f32 %v3972_v20, %v9346_v10  ;;  %v3679_v51 = vrot.slane %v3678_v24, 2  ;;  %v4081_v31 = vmul.f32 %v11119_v28, %v4042_v15  ;;  %v3829_v2 = vrot.slane %v3821_v38, %v9360_v33 }
 0x629   : > { %6155 = vmatpush3.bf16.msra.mxu1 %v6154_v58  ;;  %v4364_v15 = vmul.f32 %v7628_v27, %v9119_v40 }
 0x62a   : > { %v3974_v29 = vmul.f32 %v3973_v13, %v9355_v11  ;;  %v3680_v18 = vadd.f32 %v3679_v51, %v3678_v24  ;;  %v4112_v12 = vadd.f32 %v9245_v59, %v4081_v31  ;;  %6156 = vmatprep.subr.bf16.mxu1 %v6629_v37  ;;  %v3830_v51 = vcombine.high %v3829_v2, %v3829_v2  ;;  %v3549_v31 = vld [vmem:[%s713_s22] sm:$0x1] }
 0x62b   : > { %v4044_v9 = vpop.xlane.xlu1 %4043  ;;  %v4396_v47 = vadd.f32 %v4365_v21, %v4364_v15 }
 0x62c   : > { %v3681_v16 = vrot.slane %v3680_v18, 1  ;;  %v4082_v20 = vmul.f32 %v11122_v35, %v4044_v9  ;;  %v3982_v13 = vrot.slane %v3974_v29, %v9360_v33 }
 0x62e   : > { %v3682_v59 = vadd.f32 %v3681_v16, %v3680_v18  ;;  %v4113_v24 = vadd.f32 %v4112_v12, %v4082_v20  ;;  %v3989_v27 = vrot.slane %v3982_v13, %v9360_v33  ;;  %v3837_v12 = vrot.slane %v3830_v51, %v9360_v33  ;;  %v4460_v51 = vld [vmem:[%s9325_s27 + $0x28] sm:$0xff] }
 0x62f   : > { %v4305_v38 = vpop.xlane.xlu1 %4304 }
 0x630   : > { %v3684_v54 = vmul.f32 %v9346_v10, %v3682_v59  ;;  %v4366_v58 = vmul.f32 %v7638_v55, %v4305_v38  ;;  %v3990_v2 = vcombine.high %v3989_v27, %v3989_v27  ;;  %v4056_v55 = vpop.xlane.xlu0 %4055 }
 0x632   : > { %v3685_v40 = vmul.f32 %v3684_v54, %v9355_v11  ;;  %v4397_v29 = vadd.f32 %v4396_v47, %v4366_v58  ;;  %v4459_v54 = vld [vmem:[%s9325_s27 + $0x20] sm:$0xff] }
 0x633   : > { %v4307_v18 = vpop.xlane.xlu1 %4306  ;;  %v6157_v47 = vpack.c.bf16 %v4460_v51, %v4459_v54 }
 0x634   : > { %v3686_v46 = vadd.f32 %v3685_v40, %v3549_v31  ;;  %v4367_v9 = vmul.f32 %v7657_v23, %v4307_v18  ;;  %v9394_v58 = vpop.xlane.xlu0 %4358  ;;  %v4461_v40 = vld [vmem:[%s9325_s27 + $0x30] sm:$0xff] }
 0x635   : > { %6158 = vmatpush3.bf16.msra.mxu1 %v6157_v47 }
 0x636   : > { %v3839_v16 = vadd.f32 %v3837_v12, %v3686_v46  ;;  %v9386_v21 = vadd.f32 %v4397_v29, %v4367_v9  ;;  %6159 = vmatprep.subr.bf16.mxu1 %v6629_v37  ;;  %v4463_v46 = vld [vmem:[%s9325_s27 + $0x40] sm:$0xff]  ;;  %v4464_v9 = vld [vmem:[%s9325_s27 + $0x48] sm:$0xff] }
 0x637   : > { %v4046_v20 = vpop.xlane.xlu1 %4045 }
 0x638   : > { %v9388_v15 = vadd.f32 %v3990_v2, %v3839_v16  ;;  %v4083_v13 = vmul.f32 %v11125_v53, %v4046_v20  ;;  %v4210_v18 = vpop.xlane.xlu0 %4209  ;;  %v6163_v2 = vpack.c.bf16 %v4464_v9, %v4463_v46  ;;  %v4241_v16 = vmul.f32 %v9270_v45, %v4208_v56 }
 0x639   : > { %v4242_v20 = vmul.f32 %v9279_v7, %v4210_v18 }
 0x63a   : > { %v4114_v59 = vadd.f32 %v4113_v24, %v4083_v13  ;;  %v4462_v24 = vld [vmem:[%s9325_s27 + $0x38] sm:$0xff]  ;;  %v4272_v54 = vadd.f32 %v9334_v42, %v4241_v16  ;;  %v4469_v16 = vld [vmem:[%s9325_s27 + $0x70] sm:$0xff] }
 0x63b   : > { %v4048_v38 = vpop.xlane.xlu1 %4047  ;;  %v6160_v29 = vpack.c.bf16 %v4462_v24, %v4461_v40  ;;  %v4467_v24 = vld [vmem:[%s9325_s27 + $0x60] sm:$0xff] }
 0x63c   : > { %v4084_v23 = vmul.f32 %v11128_v57, %v4048_v38  ;;  %v4466_v38 = vld [vmem:[%s9325_s27 + $0x58] sm:$0xff]  ;;  %v4273_v47 = vadd.f32 %v4272_v54, %v4242_v20 }
 0x63d   : > { %6161 = vmatpush3.bf16.msra.mxu1 %v6160_v29  ;;  %v4468_v29 = vld [vmem:[%s9325_s27 + $0x68] sm:$0xff] }
 0x63e   : > { %v4115_v31 = vadd.f32 %v4114_v59, %v4084_v23  ;;  %6162 = vmatprep.subr.bf16.mxu1 %v6629_v37  ;;  %v4465_v59 = vld [vmem:[%s9325_s27 + $0x50] sm:$0xff]  ;;  %v6169_v46 = vpack.c.bf16 %v4468_v29, %v4467_v24  ;;  %v4274_v9 = vrot.slane %v4273_v47, 4 }
 0x63f   : > { %v9396_v27 = vpop.xlane.xlu1 %4308  ;;  %v6166_v23 = vpack.c.bf16 %v4466_v38, %v4465_v59 }
 0x640   : > { %v4275_v20 = vadd.f32 %v4274_v9, %v4273_v47 }
 0x641   : > { %6164 = vmatpush3.bf16.msra.mxu1 %v6163_v2 }
 0x642   : > { %6165 = vmatprep.subr.bf16.mxu1 %v6629_v37  ;;  %v4276_v38 = vrot.slane %v4275_v20, 2 }
 0x643   : > { %v9401_v12 = vpop.xlane.xlu1 %4310 }
 0x645   : > { %6167 = vmatpush3.bf16.msra.mxu1 %v6166_v23  ;;  %v4088_v23 = vmul.f32 %v9279_v7, %v4056_v55 }
 0x646   : > { %6168 = vmatprep.subr.bf16.mxu1 %v6629_v37 }
 0x647   : > { %v4050_v13 = vpop.xlane.xlu1 %4049 }
 0x648   : > { %v4085_v51 = vmul.f32 %v9234_v14, %v4050_v13  ;;  %v4470_v13 = vld [vmem:[%s9325_s27 + $0x78] sm:$0xff]  ;;  %s724_s27 = scalar_lea.vmem %s10474_s14, %s6787_s23 }
 0x649   : > { %6170 = vmatpush3.bf16.msra.mxu1 %v6169_v46  ;;  %v6172_v59 = vpack.c.bf16 %v4470_v13, %v4469_v16 }
 0x64a   : > { %v4116_v40 = vadd.f32 %v4115_v31, %v4085_v51  ;;  %6171 = vmatprep.subr.bf16.mxu1 %v6629_v37 }
 0x64b   : > { %v4052_v56 = vpop.xlane.xlu1 %4051 }
 0x64c   : > { %v4086_v18 = vmul.f32 %v9251_v0, %v4052_v56 }
 0x64d   : > { %6173 = vmatpush3.bf16.msra.mxu1 %v6172_v59 }
 0x64e   : > { %v4117_v2 = vadd.f32 %v4116_v40, %v4086_v18  ;;  %v4277_v40 = vadd.f32 %v4276_v38, %v4275_v20 }
 0x64f   : > { %v4313_v42 = vpop.xlane.xlu1 %4312 }
 0x650   : > { %v4278_v37 = vrot.slane %v4277_v40, 1 }
 0x652   : > { %v4279_v47 = vadd.f32 %v4278_v37, %v4277_v40 }
 0x653   : > { %v4315_v31 = vpop.xlane.xlu1 %4314 }
 0x654   : > { %v4280_v48 = vmul.f32 %v4279_v47, %v9346_v10 }
 0x657   : > { %v4054_v54 = vpop.xlane.xlu1 %4053 }
 0x658   : > { %v4087_v51 = vmul.f32 %v9270_v45, %v4054_v54  ;;  %v4281_v54 = vmul.f32 %v4280_v48, %v9355_v11  ;;  %v4369_v48 = vmul.f32 %v7684_v41, %v9401_v12 }
 0x65a   : > { %v4118_v56 = vadd.f32 %v4117_v2, %v4087_v51  ;;  %v4283_v38 = vcombine.high %v4281_v54, %v4281_v54 }
 0x65b   : > { %v4317_v24 = vpop.xlane.xlu1 %4316 }
 0x65c   : > { %v4119_v29 = vadd.f32 %v4118_v56, %v4088_v23  ;;  %v4290_v56 = vrot.slane %v4283_v38, %v9360_v33 }
 0x65e   : > { %v4120_v18 = vrot.slane %v4119_v29, 4 }
 0x65f   : > { %v4319_v46 = vpop.xlane.xlu1 %4318 }
 0x660   : > { %v4121_v16 = vadd.f32 %v4120_v18, %v4119_v29 }
 0x662   : > { %v4122_v9 = vrot.slane %v4121_v16, 2 }
 0x663   : > { %v4321_v13 = vpop.xlane.xlu1 %4320 }
 0x664   : > { %v4123_v59 = vadd.f32 %v4122_v9, %v4121_v16  ;;  %v4368_v9 = vmul.f32 %v7671_v50, %v9396_v27  ;;  %v4374_v27 = vmul.f32 %v7761_v30, %v4321_v13 }
 0x666   : > { %v4124_v3 = vrot.slane %v4123_v59, 1  ;;  %v4399_v54 = vadd.f32 %v9386_v21, %v4368_v9 }
 0x667   : > { %v4323_v4 = vpop.xlane.xlu1 %4322 }
 0x668   : > { %v4125_v44 = vadd.f32 %v4124_v3, %v4123_v59  ;;  %v4297_v3 = vrot.slane %v4290_v56, %v9360_v33  ;;  %v4400_v38 = vadd.f32 %v4399_v54, %v4369_v48  ;;  %v4375_v21 = vmul.f32 %v10990_v1, %v4323_v4 }
 0x66a   : > { %v4126_v55 = vmul.f32 %v4125_v44, %v9346_v10 }
 0x66b   : > { %v4325_v2 = vpop.xlane.xlu1 %4324 }
 0x66c   : > { %v4127_v20 = vmul.f32 %v4126_v55, %v9355_v11  ;;  %v4370_v55 = vmul.f32 %v7697_v26, %v4313_v42  ;;  %v4376_v26 = vmul.f32 %v10991_v17, %v4325_v2 }
 0x66e   : > { %v4135_v51 = vrot.slane %v4127_v20, %v9360_v33 }
 0x66f   : > { %v4327_v23 = vpop.xlane.xlu1 %4326 }
 0x670   : > { %v4136_v40 = vcombine.high %v4135_v51, %v4135_v51  ;;  %v4371_v51 = vmul.f32 %v7710_v39, %v4315_v31  ;;  %v4377_v39 = vmul.f32 %v10992_v61, %v4327_v23 }
 0x672   : > { %v4143_v29 = vrot.slane %v4136_v40, %v9360_v33  ;;  %v4401_v40 = vadd.f32 %v4400_v38, %v4370_v55 }
 0x673   : > { %v4329_v37 = vpop.xlane.xlu1 %4328 }
 0x674   : > { %v4144_v18 = vcombine.high %v4143_v29, %v4143_v29  ;;  %v4402_v29 = vadd.f32 %v4401_v40, %v4371_v51 }
 0x676   : > { %v4146_v16 = vadd.f32 %v4144_v18, %v9388_v15  ;;  %v4372_v15 = vmul.f32 %v7723_v19, %v4317_v24  ;;  %v4373_v18 = vmul.f32 %v7736_v8, %v4319_v46  ;;  %v4378_v19 = vmul.f32 %v10993_v25, %v4329_v37 }
 0x677   : > { %v4331_v47 = vpop.xlane.xlu1 %4330 }
 0x678   : > { %v9432_v44 = vadd.f32 %v4297_v3, %v4146_v16  ;;  %v4403_v50 = vadd.f32 %v4402_v29, %v4372_v15  ;;  %v4379_v8 = vmul.f32 %v10994_v32, %v4331_v47  ;;  %v11148_v32 = vld [vmem:[#allocation116_spill] sm:$0xff] }
 0x67a   : > { %v4404_v41 = vadd.f32 %v4403_v50, %v4373_v18 }
 0x67b   : > { %v4333_v59 = vpop.xlane.xlu1 %4332 }
 0x67c   : > { %v4405_v12 = vadd.f32 %v4404_v41, %v4374_v27  ;;  %v4380_v30 = vmul.f32 %v10995_v34, %v4333_v59  ;;  %v11149_v34 = vld [vmem:[#allocation117_spill] sm:$0xff] }
 0x67e   : > { %v4406_v16 = vadd.f32 %v4405_v12, %v4375_v21 }
 0x67f   : > { %v4335_v20 = vpop.xlane.xlu1 %4334 }
 0x680   : > { %v4407_v31 = vadd.f32 %v4406_v16, %v4376_v26  ;;  %v4381_v1 = vmul.f32 %v8114_v63, %v4335_v20  ;;  %v11150_v63 = vld [vmem:[#allocation118_spill] sm:$0xff] }
 0x682   : > { %v4408_v9 = vadd.f32 %v4407_v31, %v4377_v39 }
 0x683   : > { %v4337_v56 = vpop.xlane.xlu1 %4336 }
 0x684   : > { %v4409_v46 = vadd.f32 %v4408_v9, %v4378_v19  ;;  %v4382_v17 = vmul.f32 %v11095_v62, %v4337_v56 }
 0x686   : > { %v4410_v48 = vadd.f32 %v4409_v46, %v4379_v8 }
 0x687   : > { %v4339_v3 = vpop.xlane.xlu1 %4338 }
 0x688   : > { %v4411_v4 = vadd.f32 %v4410_v48, %v4380_v30  ;;  %v4383_v61 = vmul.f32 %v11099_v60, %v4339_v3 }
 0x68a   : > { %v4412_v54 = vadd.f32 %v4411_v4, %v4381_v1 }
 0x68b   : > { %v4341_v42 = vpop.xlane.xlu1 %4340 }
 0x68c   : > { %v4413_v23 = vadd.f32 %v4412_v54, %v4382_v17  ;;  %v4384_v25 = vmul.f32 %v11104_v36, %v4341_v42  ;;  %v4393_v42 = vmul.f32 %v9251_v0, %v9394_v58  ;;  %v4471_v17 = vld [vmem:[%s721_s29] sm:$0x1] }
 0x68e   : > { %v4414_v55 = vadd.f32 %v4413_v23, %v4383_v61 }
 0x68f   : > { %v4343_v24 = vpop.xlane.xlu1 %4342 }
 0x690   : > { %v4385_v47 = vmul.f32 %v11148_v32, %v4343_v24  ;;  %v4415_v38 = vadd.f32 %v4414_v55, %v4384_v25 }
 0x692   : > { %v4416_v40 = vadd.f32 %v4415_v38, %v4385_v47 }
 0x693   : > { %v4345_v13 = vpop.xlane.xlu1 %4344 }
 0x694   : > { %v4386_v59 = vmul.f32 %v11149_v34, %v4345_v13 }
 0x696   : > { %v4417_v15 = vadd.f32 %v4416_v40, %v4386_v59  ;;  %v11151_v59 = vld [vmem:[#allocation9_spill] sm:$0xff]  ;;  %v11152_v40 = vld [vmem:[#allocation10_spill] sm:$0xff] }
 0x697   : > { %v4347_v2 = vpop.xlane.xlu1 %4346 }
 0x698   : > { %v4387_v20 = vmul.f32 %v11150_v63, %v4347_v2 }
 0x69a   : > { %v4418_v29 = vadd.f32 %v4417_v15, %v4387_v20  ;;  %v11153_v20 = vld [vmem:[#allocation13_spill] sm:$0xff] }
 0x69b   : > { %v4349_v37 = vpop.xlane.xlu1 %4348 }
 0x69c   : > { %v4388_v62 = vmul.f32 %v11119_v28, %v4349_v37 }
 0x69e   : > { %v4419_v18 = vadd.f32 %v4418_v29, %v4388_v62  ;;  %v11154_v62 = vld [vmem:[#allocation14_spill] sm:$0xff]  ;;  %v11155_v29 = vld [vmem:[#allocation16_spill] sm:$0xff] }
 0x69f   : > { %v4351_v51 = vpop.xlane.xlu1 %4350 }
 0x6a0   : > { %v4389_v60 = vmul.f32 %v11122_v35, %v4351_v51 }
 0x6a2   : > { %v4420_v27 = vadd.f32 %v4419_v18, %v4389_v60  ;;  %v11156_v18 = vld [vmem:[#allocation17_spill] sm:$0xff] }
 0x6a3   : > { %v4353_v56 = vpop.xlane.xlu1 %4352 }
 0x6a4   : > { %v4390_v36 = vmul.f32 %v11125_v53, %v4353_v56 }
 0x6a6   : > { %v4421_v41 = vadd.f32 %v4420_v27, %v4390_v36 }
 0x6a7   : > { %v4355_v50 = vpop.xlane.xlu1 %4354 }
 0x6a8   : > { %v4391_v3 = vmul.f32 %v11128_v57, %v4355_v50  ;;  %v11157_v50 = vld [vmem:[#allocation19_spill] sm:$0xff] }
 0x6aa   : > { %v4422_v12 = vadd.f32 %v4421_v41, %v4391_v3  ;;  %v11158_v3 = vld [vmem:[#allocation20_spill] sm:$0xff] }
 0x6ab   : > { %v4357_v21 = vpop.xlane.xlu1 %4356 }
 0x6ac   : > { %v4392_v26 = vmul.f32 %v9234_v14, %v4357_v21  ;;  %v11159_v21 = vld [vmem:[#allocation22_spill] sm:$0xff] }
 0x6ae   : > { %v4423_v28 = vadd.f32 %v4422_v12, %v4392_v26  ;;  %v11160_v26 = vld [vmem:[#allocation23_spill] sm:$0xff] }
 0x6af   : > { %v4361_v16 = vpop.xlane.xlu1 %4360 }
 0x6b0   : > { %v4394_v39 = vmul.f32 %v9270_v45, %v4361_v16  ;;  %v4424_v35 = vadd.f32 %v4423_v28, %v4393_v42  ;;  %v11161_v28 = vld [vmem:[#allocation25_spill] sm:$0xff] }
 0x6b2   : > { %v4425_v19 = vadd.f32 %v4424_v35, %v4394_v39  ;;  %v11162_v39 = vld [vmem:[#allocation26_spill] sm:$0xff] }
 0x6b3   : > { %v4363_v31 = vpop.xlane.xlu1 %4362 }
 0x6b4   : > { %v4395_v53 = vmul.f32 %v9279_v7, %v4363_v31  ;;  %v11163_v31 = vld [vmem:[#allocation28_spill] sm:$0xff] }
 0x6b6   : > { %v4426_v24 = vadd.f32 %v4425_v19, %v4395_v53  ;;  %v11164_v53 = vld [vmem:[#allocation29_spill] sm:$0xff] }
 0x6b8   : > { %v4427_v57 = vrot.slane %v4426_v24, 4 }
 0x6ba   : > { %v4428_v9 = vadd.f32 %v4427_v57, %v4426_v24  ;;  %v11165_v57 = vld [vmem:[#allocation31_spill] sm:$0xff] }
 0x6bc   : > { %v4429_v8 = vrot.slane %v4428_v9, 2 }
 0x6be   : > { %v4430_v46 = vadd.f32 %v4429_v8, %v4428_v9  ;;  %v11166_v8 = vld [vmem:[#allocation32_spill] sm:$0xff] }
 0x6c0   : > { %v4431_v30 = vrot.slane %v4430_v46, 1 }
 0x6c2   : > { %v4432_v14 = vadd.f32 %v4431_v30, %v4430_v46  ;;  %v11167_v30 = vld [vmem:[#allocation35_spill] sm:$0xff] }
 0x6c4   : > { %v4433_v13 = vmul.f32 %v4432_v14, %v9346_v10 }
 0x6c6   : > { %v4434_v0 = vmul.f32 %v4433_v13, %v9355_v11  ;;  %v11168_v13 = vld [vmem:[#allocation36_spill] sm:$0xff] }
 0x6c8   : > { %v4436_v58 = vcombine.high %v4434_v0, %v4434_v0 }
 0x6ca   : > { %v4443_v45 = vrot.slane %v4436_v58, %v9360_v33  ;;  %v11170_v58 = vld [vmem:[#allocation39_spill] sm:$0xff] }
 0x6cc   : > { %v4444_v48 = vcombine.high %v4443_v45, %v4443_v45 }
 0x6ce   : > { %v4451_v1 = vrot.slane %v4444_v48, %v9360_v33  ;;  %v4548_v33 = vld [vmem:[%s724_s27] sm:$0x1]  ;;  %v11172_v48 = vld [vmem:[#allocation40_spill] sm:$0xff]  ;;  %s10387_s27 = scalar_lea.vmem %s10475_s15, %s6790_s25 }
 0x6d0   : > { %v4453_v7 = vadd.f32 %v4451_v1, %v9432_v44 }
 0x6d2   : > { %v4454_v4 = vmax.f32 %v4453_v7, 0.0  ;;  %v11174_v7 = vld [vmem:[#allocation43_spill] sm:$0xff] }
 0x6d4   : > { %6148 = vmatmul.mubr.f32.vlgmr.msra.gmra.mrb[28].mxu1 %v4454_v4 }
 0x7a7   : > { %v4538_v2 = vpop.f32.mrb[28].mxu1 }
 0x7a8   : > { %v4539_v10 = vadd.f32 %v4538_v2, %v4471_v17  ;;  %v6149_v54 = vpop.f32.mrb[29].mxu1  ;;  %v11176_v17 = vld [vmem:[#allocation44_spill] sm:$0xff] }
 0x7aa   : > { %v5415_v11 = vmul.f32 -1.442695, %v4539_v10  ;;  %v11178_v10 = vld [vmem:[#allocation47_spill] sm:$0xff] }
 0x7ac   : > { %6459 = vpow2.f32 %v5415_v11  ;;  %v11180_v11 = vld [vmem:[#allocation48_spill] sm:$0xff] }
 0x7b6   : > { %v6460_v61 = vpop.eup %6459 }
 0x7b7   : > { %v4545_v23 = vadd.f32 1.0, %v6460_v61 }
 0x7b9   : > { %6461 = vrcp.f32 %v4545_v23  ;;  %v11182_v23 = vld [vmem:[#allocation51_spill] sm:$0xff] }
 0x7c3   : > { %v6462_v44 = vpop.eup %6461 }
 0x7c4   : > { %v4549_v25 = vmul.f32 %v6462_v44, %v4548_v33  ;;  %v11184_v44 = vld [vmem:[#allocation52_spill] sm:$0xff] }
 0x7c6   : > { %4655 = vrot.lane.b32.xlu1 %v4549_v25, %s6632_s26  ;;  %4586 = vrot.lane.b32.xlu0 %v4549_v25, %s6633_s28  ;;  %6190 = vpush %v4549_v25 }
 0x7ca   : > { %4724 = vrot.lane.b32.xlu1 %v4549_v25, %s6634_s30  ;;  %4862 = vrot.lane.b32.xlu0 %v4549_v25, %s6635_s16 }
 0x7ce   : > { %4793 = vrot.lane.b32.xlu1 %v4549_v25, %s6636_s20 }
 0x7f7   : > { %s6191_s23 = spop %6190 }
 0x7f8   : > { %v4552_v34 = vstv %s6191_s23 }
 0x7f9   : > { %v9480_v51 = vmul.f32 %v4552_v34, %v11151_v59  ;;  %v9483_v63 = vmul.f32 %v4552_v34, %v11152_v40  ;;  %v9489_v15 = vmul.f32 %v4552_v34, %v11153_v20  ;;  %v9492_v56 = vmul.f32 %v4552_v34, %v11154_v62  ;;  %v11192_v40 = vld [vmem:[#allocation60_spill] sm:$0xff]  ;;  %v11194_v62 = vld [vmem:[#allocation63_spill] sm:$0xff] }
 0x7fa   : > { %v9495_v60 = vmul.f32 %v4552_v34, %v11155_v29  ;;  %v9498_v36 = vmul.f32 %v4552_v34, %v11156_v18  ;;  %v9501_v27 = vmul.f32 %v4552_v34, %v11157_v50  ;;  %v9504_v41 = vmul.f32 %v4552_v34, %v11158_v3  ;;  %v11196_v18 = vld [vmem:[#allocation64_spill] sm:$0xff] }
 0x7fb   : > { %v9507_v12 = vmul.f32 %v4552_v34, %v11159_v21  ;;  %v9510_v42 = vmul.f32 %v4552_v34, %v11160_v26  ;;  %v9513_v16 = vmul.f32 %v4552_v34, %v11161_v28  ;;  %v9516_v35 = vmul.f32 %v4552_v34, %v11162_v39  ;;  %v11199_v26 = vld [vmem:[#allocation86_spill] sm:$0xff] }
 0x7fc   : > { %v9519_v19 = vmul.f32 %v4552_v34, %v11163_v31  ;;  %v9522_v24 = vmul.f32 %v4552_v34, %v11164_v53  ;;  %v9525_v9 = vmul.f32 %v4552_v34, %v11165_v57  ;;  %v9528_v46 = vmul.f32 %v4552_v34, %v11166_v8  ;;  %v11201_v31 = vld [vmem:[#allocation91_spill] sm:$0xff]  ;;  %v11203_v8 = vld [vmem:[#allocation96_spill] sm:$0xff] }
 0x7fd   : > { %v9531_v14 = vmul.f32 %v4552_v34, %v11167_v30  ;;  %v9534_v0 = vmul.f32 %v4552_v34, %v11168_v13  ;;  %v9537_v45 = vmul.f32 %v4552_v34, %v11170_v58  ;;  %v9540_v1 = vmul.f32 %v4552_v34, %v11172_v48  ;;  %v11205_v58 = vld [vmem:[#allocation111_spill] sm:$0xff] }
 0x7fe   : > { %v9543_v4 = vmul.f32 %v4552_v34, %v11174_v7  ;;  %v9546_v2 = vmul.f32 %v4552_v34, %v11176_v17  ;;  %v9549_v54 = vmul.f32 %v4552_v34, %v11178_v10  ;;  %v9552_v61 = vmul.f32 %v4552_v34, %v11180_v11  ;;  %v11207_v17 = vld [vmem:[#allocation112_spill] sm:$0xff] }
 0x7ff   : > { %11169 = vst [vmem:[#allocation116_spill] sm:$0xff] %v9534_v0  ;;  %11171 = vst [vmem:[#allocation117_spill] sm:$0xff] %v9537_v45  ;;  %v9555_v33 = vmul.f32 %v4552_v34, %v11182_v23  ;;  %v9558_v25 = vmul.f32 %v4552_v34, %v11184_v44  ;;  %v9570_v20 = vmul.f32 %v4552_v34, %v11192_v40  ;;  %v9579_v21 = vstv %s9486_s21  ;;  %v11213_v40 = vld [vmem:[#allocation127_spill] sm:$0xff] }
 0x800   : > { %11173 = vst [vmem:[#allocation118_spill] sm:$0xff] %v9540_v1  ;;  %11175 = vst [vmem:[#allocation9_spill] sm:$0xff] %v9543_v4  ;;  %v9573_v29 = vmul.f32 %v4552_v34, %v11194_v62  ;;  %v9576_v50 = vmul.f32 %v4552_v34, %v11196_v18  ;;  %v11200_v28 = vmax.f32 %v11199_v26, 0.0  ;;  %v11202_v53 = vmax.f32 %v11201_v31, 0.0  ;;  %v11215_v26 = vld [vmem:[#allocation128_spill] sm:$0xff] }
 0x801   : > { %11177 = vst [vmem:[#allocation10_spill] sm:$0xff] %v9546_v2  ;;  %11179 = vst [vmem:[#allocation13_spill] sm:$0xff] %v9549_v54  ;;  %v11204_v30 = vmax.f32 %v11203_v8, 0.0  ;;  %v11206_v48 = vmax.f32 %v11205_v58, 0.0  ;;  %v11208_v10 = vmax.f32 %v11207_v17, 0.0  ;;  %v11214_v62 = vmax.f32 %v11213_v40, 0.0 }
 0x802   : > { %11181 = vst [vmem:[#allocation14_spill] sm:$0xff] %v9552_v61  ;;  %11183 = vst [vmem:[#allocation16_spill] sm:$0xff] %v9555_v33  ;;  %v11219_v58 = vld [vmem:[#allocation132_spill] sm:$0xff]  ;;  %v11221_v17 = vld [vmem:[#allocation134_spill] sm:$0xff] }
 0x803   : > { %11185 = vst [vmem:[#allocation17_spill] sm:$0xff] %v9558_v25  ;;  %11193 = vst [vmem:[#allocation23_spill] sm:$0xff] %v9570_v20  ;;  %v11227_v40 = vld [vmem:[#allocation140_spill] sm:$0xff] }
 0x804   : > { %11195 = vst [vmem:[#allocation25_spill] sm:$0xff] %v9573_v29  ;;  %11197 = vst [vmem:[#allocation26_spill] sm:$0xff] %v9576_v50 }
 0x805   : > { %11198 = vst [vmem:[#allocation28_spill] sm:$0xff] %v9579_v21 }
 0x838   : > { %v4656_v37 = vpop.permute.xlu1 %4655  ;;  %v4587_v55 = vpop.permute.xlu0 %4586 }
 0x839   : > { %6192 = vpush %v4587_v55 }
 0x83a   : > { %6194 = vpush %v4656_v37  ;;  %v11186_v37 = vld [vmem:[#allocation55_spill] sm:$0xff] }
 0x83b   : > { %v9561_v55 = vmul.f32 %v4552_v34, %v11186_v37  ;;  %v11211_v37 = vld [vmem:[#allocation126_spill] sm:$0xff] }
 0x83c   : > { %v4725_v32 = vpop.permute.xlu1 %4724  ;;  %v4863_v38 = vpop.permute.xlu0 %4862 }
 0x83d   : > { %6196 = vpush %v4725_v32  ;;  %11187 = vst [vmem:[#allocation19_spill] sm:$0xff] %v9561_v55  ;;  %v11188_v32 = vld [vmem:[#allocation56_spill] sm:$0xff] }
 0x840   : > { %v4794_v47 = vpop.permute.xlu1 %4793 }
 0x841   : > { %6198 = vpush %v4794_v47  ;;  %v9564_v47 = vmul.f32 %v4552_v34, %v11188_v32  ;;  %v11212_v32 = vmax.f32 %v11211_v37, 0.0  ;;  %v11225_v37 = vld [vmem:[#allocation138_spill] sm:$0xff] }
 0x842   : > { %6200 = vpush %v4863_v38  ;;  %v11190_v38 = vld [vmem:[#allocation59_spill] sm:$0xff] }
 0x843   : > { %11189 = vst [vmem:[#allocation20_spill] sm:$0xff] %v9564_v47  ;;  %v9567_v59 = vmul.f32 %v4552_v34, %v11190_v38  ;;  %v11209_v34 = vld [vmem:[#allocation125_spill] sm:$0xff] }
 0x844   : > { %v11210_v23 = vmax.f32 %v11209_v34, 0.0  ;;  %v11223_v34 = vld [vmem:[#allocation136_spill] sm:$0xff] }
 0x845   : > { %11191 = vst [vmem:[#allocation22_spill] sm:$0xff] %v9567_v59 }
 0x86a   : > { %s6193_s19 = spop %6192 }
 0x86b   : > { %v4589_v3 = vstv %s6193_s19  ;;  %s6195_s22 = spop %6194 }
 0x86c   : > { %v4591_v39 = vmul.f32 %v4589_v3, %v11200_v28  ;;  %v4592_v57 = vmul.f32 %v4589_v3, %v11202_v53  ;;  %v4593_v13 = vmul.f32 %v4589_v3, %v11204_v30  ;;  %v4594_v7 = vmul.f32 %v4589_v3, %v11206_v48  ;;  %v11217_v53 = vld [vmem:[#allocation131_spill] sm:$0xff] }
 0x86d   : > { %v4595_v11 = vmul.f32 %v4589_v3, %v11208_v10  ;;  %v4596_v44 = vmul.f32 %v4589_v3, %v11210_v23  ;;  %v4597_v38 = vmul.f32 %v4589_v3, %v11212_v32  ;;  %v4598_v18 = vmul.f32 %v4589_v3, %v11214_v62 }
 0x86e   : > { %v11216_v28 = vmax.f32 %v11215_v26, 0.0  ;;  %v11218_v8 = vmax.f32 %v11217_v53, 0.0  ;;  %v11220_v48 = vmax.f32 %v11219_v58, 0.0  ;;  %v11222_v10 = vmax.f32 %v11221_v17, 0.0  ;;  %v11229_v26 = vld [vmem:[#allocation142_spill] sm:$0xff]  ;;  %v11231_v53 = vld [vmem:[#allocation144_spill] sm:$0xff]  ;;  %s6197_s24 = spop %6196 }
 0x86f   : > { %v11224_v23 = vmax.f32 %v11223_v34, 0.0  ;;  %v11226_v32 = vmax.f32 %v11225_v37, 0.0  ;;  %v11228_v62 = vmax.f32 %v11227_v40, 0.0  ;;  %v11233_v58 = vld [vmem:[#allocation146_spill] sm:$0xff]  ;;  %v11235_v17 = vld [vmem:[#allocation148_spill] sm:$0xff]  ;;  %v11241_v40 = vld [vmem:[#allocation155_spill] sm:$0xff] }
 0x870   : > { %v4599_v31 = vmul.f32 %v4589_v3, %v11216_v28  ;;  %v4600_v30 = vmul.f32 %v4589_v3, %v11218_v8  ;;  %v4601_v21 = vmul.f32 %v4589_v3, %v11220_v48  ;;  %v4602_v22 = vmul.f32 %v4589_v3, %v11222_v10  ;;  %v11237_v34 = vld [vmem:[#allocation150_spill] sm:$0xff]  ;;  %v11239_v37 = vld [vmem:[#allocation152_spill] sm:$0xff] }
 0x871   : > { %v4603_v5 = vmul.f32 %v4589_v3, %v11224_v23  ;;  %v4604_v52 = vmul.f32 %v4589_v3, %v11226_v32  ;;  %v4605_v49 = vmul.f32 %v4589_v3, %v11228_v62  ;;  %v11230_v28 = vmax.f32 %v11229_v26, 0.0  ;;  %v11243_v26 = vld [vmem:[#allocation157_spill] sm:$0xff] }
 0x872   : > { %v11232_v8 = vmax.f32 %v11231_v53, 0.0  ;;  %v11234_v48 = vmax.f32 %v11233_v58, 0.0  ;;  %v11236_v10 = vmax.f32 %v11235_v17, 0.0  ;;  %v11238_v23 = vmax.f32 %v11237_v34, 0.0  ;;  %v11245_v53 = vld [vmem:[#allocation162_spill] sm:$0xff]  ;;  %v11251_v34 = vld [vmem:[#allocation172_spill] sm:$0xff]  ;;  %s6199_s0 = spop %6198 }
 0x873   : > { %v4606_v43 = vmul.f32 %v4589_v3, %v11230_v28  ;;  %v11240_v32 = vmax.f32 %v11239_v37, 0.0  ;;  %v11242_v62 = vmax.f32 %v11241_v40, 0.0  ;;  %v11244_v28 = vmax.f32 %v11243_v26, 0.0  ;;  %v11247_v58 = vld [vmem:[#allocation166_spill] sm:$0xff]  ;;  %v11253_v37 = vld [vmem:[#allocation175_spill] sm:$0xff]  ;;  %v11255_v40 = vld [vmem:[#allocation177_spill] sm:$0xff]  ;;  %s6201_s29 = spop %6200 }
 0x874   : > { %v4607_v6 = vmul.f32 %v4589_v3, %v11232_v8  ;;  %v4608_v50 = vmul.f32 %v4589_v3, %v11234_v48  ;;  %v4609_v29 = vmul.f32 %v4589_v3, %v11236_v10  ;;  %v4610_v20 = vmul.f32 %v4589_v3, %v11238_v23  ;;  %v11249_v17 = vld [vmem:[#allocation170_spill] sm:$0xff] }
 0x875   : > { %v4611_v59 = vmul.f32 %v4589_v3, %v11240_v32  ;;  %v4612_v47 = vmul.f32 %v4589_v3, %v11242_v62  ;;  %v4613_v55 = vmul.f32 %v4589_v3, %v11244_v28  ;;  %v11246_v8 = vmax.f32 %v11245_v53, 0.0  ;;  %v11257_v26 = vld [vmem:[#allocation182_spill] sm:$0xff]  ;;  %v11259_v53 = vld [vmem:[#allocation183_spill] sm:$0xff] }
 0x876   : > { %v11248_v48 = vmax.f32 %v11247_v58, 0.0  ;;  %v11250_v10 = vmax.f32 %v11249_v17, 0.0  ;;  %v11252_v23 = vmax.f32 %v11251_v34, 0.0  ;;  %v11254_v32 = vmax.f32 %v11253_v37, 0.0  ;;  %v11261_v58 = vld [vmem:[#allocation184_spill] sm:$0xff] }
 0x877   : > { %v4614_v25 = vmul.f32 %v4589_v3, %v11246_v8  ;;  %v11256_v62 = vmax.f32 %v11255_v40, 0.0  ;;  %v11258_v28 = vmax.f32 %v11257_v26, 0.0  ;;  %v11260_v8 = vmax.f32 %v11259_v53, 0.0  ;;  %v11294_v26 = vld [vmem:[#allocation15_spill] sm:$0xff] }
 0x878   : > { %v4615_v33 = vmul.f32 %v4589_v3, %v11248_v48  ;;  %v4616_v61 = vmul.f32 %v4589_v3, %v11250_v10  ;;  %v4617_v54 = vmul.f32 %v4589_v3, %v11252_v23  ;;  %v4618_v2 = vmul.f32 %v4589_v3, %v11254_v32 }
 0x879   : > { %v4619_v4 = vmul.f32 %v4589_v3, %v11256_v62  ;;  %v4620_v1 = vmul.f32 %v4589_v3, %v11258_v28  ;;  %v4621_v45 = vmul.f32 %v4589_v3, %v11260_v8  ;;  %v11262_v48 = vmax.f32 %v11261_v58, 0.0  ;;  %v11295_v28 = vld [vmem:[#allocation18_spill] sm:$0xff]  ;;  %v11297_v58 = vld [vmem:[#allocation24_spill] sm:$0xff] }
 0x87a   : > { %v9646_v17 = vadd.f32 %v4591_v39, %v9480_v51  ;;  %v9649_v10 = vadd.f32 %v4592_v57, %v9483_v63  ;;  %v9652_v34 = vadd.f32 %v4593_v13, %v9489_v15  ;;  %v9655_v23 = vadd.f32 %v4594_v7, %v9492_v56 }
 0x87b   : > { %v4622_v0 = vmul.f32 %v4589_v3, %v11262_v48  ;;  %v9658_v37 = vadd.f32 %v4595_v11, %v9495_v60  ;;  %v9661_v32 = vadd.f32 %v4596_v44, %v9498_v36  ;;  %v9664_v3 = vadd.f32 %v4597_v38, %v9501_v27  ;;  %v11298_v48 = vld [vmem:[#allocation27_spill] sm:$0xff] }
 0x87c   : > { %v9667_v51 = vadd.f32 %v4598_v18, %v9504_v41  ;;  %v9670_v63 = vadd.f32 %v4599_v31, %v9507_v12  ;;  %v9673_v15 = vadd.f32 %v4600_v30, %v9510_v42  ;;  %v9676_v56 = vadd.f32 %v4601_v21, %v9513_v16  ;;  %v11263_v16 = vld [vmem:[#allocation116_spill] sm:$0xff] }
 0x87d   : > { %v9679_v60 = vadd.f32 %v4602_v22, %v9516_v35  ;;  %v9682_v36 = vadd.f32 %v4603_v5, %v9519_v19  ;;  %v9685_v27 = vadd.f32 %v4604_v52, %v9522_v24  ;;  %v9688_v41 = vadd.f32 %v4605_v49, %v9525_v9  ;;  %v11264_v35 = vld [vmem:[#allocation117_spill] sm:$0xff]  ;;  %v11265_v5 = vld [vmem:[#allocation118_spill] sm:$0xff] }
 0x87e   : > { %v9691_v12 = vadd.f32 %v4606_v43, %v9528_v46  ;;  %v9694_v42 = vadd.f32 %v4607_v6, %v9531_v14  ;;  %v9697_v22 = vadd.f32 %v4608_v50, %v11263_v16  ;;  %v9700_v21 = vadd.f32 %v4609_v29, %v11264_v35  ;;  %v11266_v52 = vld [vmem:[#allocation9_spill] sm:$0xff]  ;;  %v11267_v49 = vld [vmem:[#allocation10_spill] sm:$0xff]  ;;  %v11273_v50 = vld [vmem:[#allocation16_spill] sm:$0xff] }
 0x87f   : > { %v9703_v19 = vadd.f32 %v4610_v20, %v11265_v5  ;;  %v9706_v24 = vadd.f32 %v4611_v59, %v11266_v52  ;;  %v9709_v9 = vadd.f32 %v4612_v47, %v11267_v49  ;;  %v11269_v43 = vld [vmem:[#allocation13_spill] sm:$0xff]  ;;  %v11271_v6 = vld [vmem:[#allocation14_spill] sm:$0xff]  ;;  %v9718_v39 = vadd.f32 %v4615_v33, %v11273_v50  ;;  %v11277_v20 = vld [vmem:[#allocation19_spill] sm:$0xff] }
 0x880   : > { %v9712_v46 = vadd.f32 %v4613_v55, %v11269_v43  ;;  %v9715_v14 = vadd.f32 %v4614_v25, %v11271_v6  ;;  %v11275_v29 = vld [vmem:[#allocation17_spill] sm:$0xff]  ;;  %v9724_v13 = vadd.f32 %v4617_v54, %v11277_v20  ;;  %v11279_v59 = vld [vmem:[#allocation20_spill] sm:$0xff]  ;;  %v11281_v47 = vld [vmem:[#allocation22_spill] sm:$0xff]  ;;  %v9741_v31 = vstv %s6197_s24 }
 0x881   : > { %11268 = vst [vmem:[#allocation29_spill] sm:$0xff] %v9709_v9  ;;  %11274 = vst [vmem:[#allocation35_spill] sm:$0xff] %v9718_v39  ;;  %v9721_v57 = vadd.f32 %v4616_v61, %v11275_v29  ;;  %v9727_v7 = vadd.f32 %v4618_v2, %v11279_v59  ;;  %v9730_v11 = vadd.f32 %v4619_v4, %v11281_v47  ;;  %v11283_v55 = vld [vmem:[#allocation23_spill] sm:$0xff]  ;;  %v11285_v25 = vld [vmem:[#allocation25_spill] sm:$0xff]  ;;  %v4658_v61 = vstv %s6195_s22 }
 0x882   : > { %11270 = vst [vmem:[#allocation31_spill] sm:$0xff] %v9712_v46  ;;  %11272 = vst [vmem:[#allocation32_spill] sm:$0xff] %v9715_v14  ;;  %v9733_v44 = vadd.f32 %v4620_v1, %v11283_v55  ;;  %v9736_v38 = vadd.f32 %v4621_v45, %v11285_v25  ;;  %v11287_v33 = vld [vmem:[#allocation26_spill] sm:$0xff]  ;;  %v9743_v54 = vstv %s6199_s0  ;;  %v9745_v30 = vstv %s6201_s29  ;;  %v11292_v2 = vld [vmem:[#allocation11_spill] sm:$0xff] }
 0x883   : > { %11276 = vst [vmem:[#allocation36_spill] sm:$0xff] %v9721_v57  ;;  %11278 = vst [vmem:[#allocation39_spill] sm:$0xff] %v9724_v13  ;;  %v9739_v18 = vadd.f32 %v4622_v0, %v11287_v33  ;;  %v4660_v40 = vmul.f32 %v4658_v61, %v11292_v2  ;;  %v11293_v4 = vld [vmem:[#allocation12_spill] sm:$0xff]  ;;  %v4662_v1 = vmul.f32 %v4658_v61, %v11294_v26  ;;  %v11296_v45 = vld [vmem:[#allocation21_spill] sm:$0xff] }
 0x884   : > { %11280 = vst [vmem:[#allocation40_spill] sm:$0xff] %v9727_v7  ;;  %11282 = vst [vmem:[#allocation43_spill] sm:$0xff] %v9730_v11  ;;  %v4661_v62 = vmul.f32 %v4658_v61, %v11293_v4  ;;  %v4663_v53 = vmul.f32 %v4658_v61, %v11295_v28  ;;  %v4664_v8 = vmul.f32 %v4658_v61, %v11296_v45  ;;  %v11299_v35 = vld [vmem:[#allocation30_spill] sm:$0xff]  ;;  %v11300_v52 = vld [vmem:[#allocation33_spill] sm:$0xff] }
 0x885   : > { %11284 = vst [vmem:[#allocation44_spill] sm:$0xff] %v9733_v44  ;;  %11286 = vst [vmem:[#allocation47_spill] sm:$0xff] %v9736_v38  ;;  %v4665_v0 = vmul.f32 %v4658_v61, %v11297_v58  ;;  %v4666_v16 = vmul.f32 %v4658_v61, %v11298_v48  ;;  %v4667_v5 = vmul.f32 %v4658_v61, %v11299_v35  ;;  %v11301_v43 = vld [vmem:[#allocation34_spill] sm:$0xff]  ;;  %v11302_v50 = vld [vmem:[#allocation37_spill] sm:$0xff] }
 0x886   : > { %11288 = vst [vmem:[#allocation48_spill] sm:$0xff] %v9739_v18  ;;  %11289 = vst [vmem:[#allocation51_spill] sm:$0xff] %v9741_v31  ;;  %v4668_v49 = vmul.f32 %v4658_v61, %v11300_v52  ;;  %v4669_v6 = vmul.f32 %v4658_v61, %v11301_v43  ;;  %v4670_v29 = vmul.f32 %v4658_v61, %v11302_v50  ;;  %v11303_v20 = vld [vmem:[#allocation38_spill] sm:$0xff]  ;;  %v11304_v47 = vld [vmem:[#allocation41_spill] sm:$0xff] }
 0x887   : > { %11290 = vst [vmem:[#allocation52_spill] sm:$0xff] %v9743_v54  ;;  %11291 = vst [vmem:[#allocation55_spill] sm:$0xff] %v9745_v30  ;;  %v4671_v59 = vmul.f32 %v4658_v61, %v11303_v20  ;;  %v4672_v55 = vmul.f32 %v4658_v61, %v11304_v47  ;;  %v11305_v25 = vld [vmem:[#allocation42_spill] sm:$0xff]  ;;  %v11306_v2 = vld [vmem:[#allocation45_spill] sm:$0xff] }
 0x888   : > { %v4673_v33 = vmul.f32 %v4658_v61, %v11305_v25  ;;  %v4674_v4 = vmul.f32 %v4658_v61, %v11306_v2  ;;  %v11307_v26 = vld [vmem:[#allocation46_spill] sm:$0xff]  ;;  %v11308_v45 = vld [vmem:[#allocation49_spill] sm:$0xff]  ;;  %v11318_v13 = vld [vmem:[#allocation68_spill] sm:$0xff] }
 0x889   : > { %v4675_v28 = vmul.f32 %v4658_v61, %v11307_v26  ;;  %v4676_v58 = vmul.f32 %v4658_v61, %v11308_v45  ;;  %v11309_v48 = vld [vmem:[#allocation50_spill] sm:$0xff]  ;;  %v11310_v30 = vld [vmem:[#allocation53_spill] sm:$0xff]  ;;  %v4686_v45 = vmul.f32 %v4658_v61, %v11318_v13  ;;  %v11320_v39 = vld [vmem:[#allocation71_spill] sm:$0xff]  ;;  %v9789_v13 = vadd.f32 %v4663_v53, %v9655_v23 }
 0x88a   : > { %v4677_v35 = vmul.f32 %v4658_v61, %v11309_v48  ;;  %v4678_v52 = vmul.f32 %v4658_v61, %v11310_v30  ;;  %v11311_v54 = vld [vmem:[#allocation54_spill] sm:$0xff]  ;;  %v11312_v31 = vld [vmem:[#allocation57_spill] sm:$0xff]  ;;  %v4688_v30 = vmul.f32 %v4658_v61, %v11320_v39  ;;  %v11321_v14 = vld [vmem:[#allocation72_spill] sm:$0xff]  ;;  %v9792_v39 = vadd.f32 %v4664_v8, %v9658_v37 }
 0x88b   : > { %v4679_v43 = vmul.f32 %v4658_v61, %v11311_v54  ;;  %v4680_v50 = vmul.f32 %v4658_v61, %v11312_v31  ;;  %v11313_v18 = vld [vmem:[#allocation58_spill] sm:$0xff]  ;;  %v11314_v38 = vld [vmem:[#allocation61_spill] sm:$0xff]  ;;  %v4689_v54 = vmul.f32 %v4658_v61, %v11321_v14  ;;  %v11323_v9 = vld [vmem:[#allocation75_spill] sm:$0xff]  ;;  %v9795_v14 = vadd.f32 %v4665_v0, %v9661_v32 }
 0x88c   : > { %v4681_v20 = vmul.f32 %v4658_v61, %v11313_v18  ;;  %v4682_v47 = vmul.f32 %v4658_v61, %v11314_v38  ;;  %v11315_v44 = vld [vmem:[#allocation62_spill] sm:$0xff]  ;;  %v11316_v11 = vld [vmem:[#allocation65_spill] sm:$0xff]  ;;  %v4691_v18 = vmul.f32 %v4658_v61, %v11323_v9  ;;  %v9780_v38 = vadd.f32 %v4660_v40, %v9646_v17  ;;  %v11338_v53 = vld [vmem:[#allocation43_spill] sm:$0xff] }
 0x88d   : > { %v4683_v25 = vmul.f32 %v4658_v61, %v11315_v44  ;;  %v4684_v2 = vmul.f32 %v4658_v61, %v11316_v11  ;;  %v11317_v7 = vld [vmem:[#allocation66_spill] sm:$0xff]  ;;  %v11319_v57 = vld [vmem:[#allocation69_spill] sm:$0xff]  ;;  %v9783_v44 = vadd.f32 %v4661_v62, %v9649_v10  ;;  %v9798_v9 = vadd.f32 %v4666_v16, %v9664_v3  ;;  %v11340_v0 = vld [vmem:[#allocation44_spill] sm:$0xff] }
 0x88e   : > { %v4685_v26 = vmul.f32 %v4658_v61, %v11317_v7  ;;  %v4687_v48 = vmul.f32 %v4658_v61, %v11319_v57  ;;  %v11322_v46 = vld [vmem:[#allocation74_spill] sm:$0xff]  ;;  %v9786_v7 = vadd.f32 %v4662_v1, %v9652_v34  ;;  %v9801_v17 = vadd.f32 %v4667_v5, %v9667_v51  ;;  %v11342_v5 = vld [vmem:[#allocation47_spill] sm:$0xff] }
 0x88f   : > { %v4690_v31 = vmul.f32 %v4658_v61, %v11322_v46  ;;  %v9804_v10 = vadd.f32 %v4668_v49, %v9670_v63  ;;  %v9807_v34 = vadd.f32 %v4669_v6, %v9673_v15  ;;  %v9810_v23 = vadd.f32 %v4670_v29, %v9676_v56  ;;  %v11344_v6 = vld [vmem:[#allocation48_spill] sm:$0xff] }
 0x890   : > { %v9813_v37 = vadd.f32 %v4671_v59, %v9679_v60  ;;  %v9816_v32 = vadd.f32 %v4672_v55, %v9682_v36  ;;  %v9819_v3 = vadd.f32 %v4673_v33, %v9685_v27  ;;  %v9822_v51 = vadd.f32 %v4674_v4, %v9688_v41  ;;  %v11324_v41 = vld [vmem:[#allocation29_spill] sm:$0xff]  ;;  %v11348_v33 = vld [vmem:[#allocation51_spill] sm:$0xff] }
 0x891   : > { %v9825_v63 = vadd.f32 %v4675_v28, %v9691_v12  ;;  %v9828_v15 = vadd.f32 %v4676_v58, %v9694_v42  ;;  %v9831_v56 = vadd.f32 %v4677_v35, %v9697_v22  ;;  %v9834_v60 = vadd.f32 %v4678_v52, %v9700_v21  ;;  %v11326_v12 = vld [vmem:[#allocation31_spill] sm:$0xff]  ;;  %v11328_v42 = vld [vmem:[#allocation32_spill] sm:$0xff]  ;;  %v11346_v59 = vld [vmem:[#allocation129_spill] sm:$0xff] }
 0x892   : > { %v9837_v36 = vadd.f32 %v4679_v43, %v9703_v19  ;;  %v9840_v27 = vadd.f32 %v4680_v50, %v9706_v24  ;;  %v9843_v46 = vadd.f32 %v4681_v20, %v11324_v41  ;;  %v9846_v57 = vadd.f32 %v4682_v47, %v11326_v12  ;;  %v11330_v22 = vld [vmem:[#allocation35_spill] sm:$0xff]  ;;  %v11332_v21 = vld [vmem:[#allocation36_spill] sm:$0xff]  ;;  %v11349_v28 = vld [vmem:[#allocation130_spill] sm:$0xff] }
 0x893   : > { %v9849_v11 = vadd.f32 %v4683_v25, %v11328_v42  ;;  %v9852_v61 = vadd.f32 %v4684_v2, %v11330_v22  ;;  %v9855_v40 = vadd.f32 %v4685_v26, %v11332_v21  ;;  %v11334_v19 = vld [vmem:[#allocation39_spill] sm:$0xff]  ;;  %v11336_v24 = vld [vmem:[#allocation40_spill] sm:$0xff]  ;;  %v9864_v8 = vadd.f32 %v4688_v30, %v11338_v53  ;;  %v11351_v52 = vld [vmem:[#allocation133_spill] sm:$0xff] }
 0x894   : > { %11325 = vst [vmem:[#allocation56_spill] sm:$0xff] %v9843_v46  ;;  %11327 = vst [vmem:[#allocation59_spill] sm:$0xff] %v9846_v57  ;;  %v9858_v62 = vadd.f32 %v4686_v45, %v11334_v19  ;;  %v9861_v1 = vadd.f32 %v4687_v48, %v11336_v24  ;;  %v9867_v16 = vadd.f32 %v4689_v54, %v11340_v0  ;;  %v11347_v55 = vmax.f32 %v11346_v59, 0.0  ;;  %v11353_v20 = vld [vmem:[#allocation135_spill] sm:$0xff]  ;;  %v11355_v2 = vld [vmem:[#allocation137_spill] sm:$0xff] }
 0x895   : > { %11329 = vst [vmem:[#allocation60_spill] sm:$0xff] %v9849_v11  ;;  %11331 = vst [vmem:[#allocation63_spill] sm:$0xff] %v9852_v61  ;;  %v9870_v49 = vadd.f32 %v4690_v31, %v11342_v5  ;;  %v9873_v29 = vadd.f32 %v4691_v18, %v11344_v6  ;;  %v11350_v58 = vmax.f32 %v11349_v28, 0.0  ;;  %v11352_v43 = vmax.f32 %v11351_v52, 0.0  ;;  %v11357_v48 = vld [vmem:[#allocation139_spill] sm:$0xff]  ;;  %v11359_v31 = vld [vmem:[#allocation141_spill] sm:$0xff] }
 0x896   : > { %11333 = vst [vmem:[#allocation64_spill] sm:$0xff] %v9855_v40  ;;  %11335 = vst [vmem:[#allocation86_spill] sm:$0xff] %v9858_v62  ;;  %v4729_v4 = vmul.f32 %v11348_v33, %v11347_v55  ;;  %v11354_v47 = vmax.f32 %v11353_v20, 0.0  ;;  %v11356_v26 = vmax.f32 %v11355_v2, 0.0  ;;  %v11358_v30 = vmax.f32 %v11357_v48, 0.0  ;;  %v11361_v12 = vld [vmem:[#allocation143_spill] sm:$0xff] }
 0x897   : > { %11337 = vst [vmem:[#allocation91_spill] sm:$0xff] %v9861_v1  ;;  %11339 = vst [vmem:[#allocation96_spill] sm:$0xff] %v9864_v8  ;;  %v4730_v35 = vmul.f32 %v11348_v33, %v11350_v58  ;;  %v4731_v50 = vmul.f32 %v11348_v33, %v11352_v43  ;;  %v11360_v18 = vmax.f32 %v11359_v31, 0.0  ;;  %v11362_v42 = vmax.f32 %v11361_v12, 0.0  ;;  %v11363_v21 = vld [vmem:[#allocation145_spill] sm:$0xff]  ;;  %v11365_v53 = vld [vmem:[#allocation147_spill] sm:$0xff] }
 0x898   : > { %11341 = vst [vmem:[#allocation111_spill] sm:$0xff] %v9867_v16  ;;  %11343 = vst [vmem:[#allocation112_spill] sm:$0xff] %v9870_v49  ;;  %v4732_v25 = vmul.f32 %v11348_v33, %v11354_v47  ;;  %v4733_v45 = vmul.f32 %v11348_v33, %v11356_v26  ;;  %v4734_v54 = vmul.f32 %v11348_v33, %v11358_v30  ;;  %v11364_v19 = vmax.f32 %v11363_v21, 0.0  ;;  %v11367_v6 = vld [vmem:[#allocation149_spill] sm:$0xff]  ;;  %v11369_v28 = vld [vmem:[#allocation151_spill] sm:$0xff] }
 0x899   : > { %11345 = vst [vmem:[#allocation125_spill] sm:$0xff] %v9873_v29  ;;  %v4735_v41 = vmul.f32 %v11348_v33, %v11360_v18  ;;  %v4736_v22 = vmul.f32 %v11348_v33, %v11362_v42  ;;  %v11366_v0 = vmax.f32 %v11365_v53, 0.0  ;;  %v11368_v59 = vmax.f32 %v11367_v6, 0.0  ;;  %v11371_v43 = vld [vmem:[#allocation153_spill] sm:$0xff]  ;;  %v11373_v2 = vld [vmem:[#allocation156_spill] sm:$0xff]  ;;  %v11375_v30 = vld [vmem:[#allocation158_spill] sm:$0xff] }
 0x89a   : > { %v4737_v24 = vmul.f32 %v11348_v33, %v11364_v19  ;;  %v11370_v58 = vmax.f32 %v11369_v28, 0.0  ;;  %v11372_v20 = vmax.f32 %v11371_v43, 0.0  ;;  %v11374_v26 = vmax.f32 %v11373_v2, 0.0  ;;  %v11377_v12 = vld [vmem:[#allocation164_spill] sm:$0xff]  ;;  %v11379_v19 = vld [vmem:[#allocation169_spill] sm:$0xff]  ;;  %v11381_v6 = vld [vmem:[#allocation171_spill] sm:$0xff] }
 0x89b   : > { %v4738_v5 = vmul.f32 %v11348_v33, %v11366_v0  ;;  %v4739_v55 = vmul.f32 %v11348_v33, %v11368_v59  ;;  %v11376_v31 = vmax.f32 %v11375_v30, 0.0  ;;  %v11378_v42 = vmax.f32 %v11377_v12, 0.0  ;;  %v11385_v2 = vld [vmem:[#allocation176_spill] sm:$0xff]  ;;  %v11389_v29 = vld [vmem:[#allocation179_spill] sm:$0xff]  ;;  %v11393_v16 = vld [vmem:[#allocation181_spill] sm:$0xff] }
 0x89c   : > { %v4740_v52 = vmul.f32 %v11348_v33, %v11370_v58  ;;  %v4741_v47 = vmul.f32 %v11348_v33, %v11372_v20  ;;  %v4742_v48 = vmul.f32 %v11348_v33, %v11374_v26  ;;  %v11380_v53 = vmax.f32 %v11379_v19, 0.0  ;;  %v11383_v58 = vld [vmem:[#allocation173_spill] sm:$0xff]  ;;  %v11391_v49 = vld [vmem:[#allocation180_spill] sm:$0xff]  ;;  %v11395_v8 = vld [vmem:[#allocation186_spill] sm:$0xff] }
 0x89d   : > { %v4743_v18 = vmul.f32 %v11348_v33, %v11376_v31  ;;  %v4744_v21 = vmul.f32 %v11348_v33, %v11378_v42  ;;  %v11382_v59 = vmax.f32 %v11381_v6, 0.0  ;;  %v11384_v43 = vmax.f32 %v11383_v58, 0.0  ;;  %v11387_v31 = vld [vmem:[#allocation178_spill] sm:$0xff]  ;;  %v11397_v1 = vld [vmem:[#allocation187_spill] sm:$0xff]  ;;  %v11401_v40 = vld [vmem:[#allocation192_spill] sm:$0xff] }
 0x89e   : > { %v4745_v0 = vmul.f32 %v11348_v33, %v11380_v53  ;;  %v11386_v26 = vmax.f32 %v11385_v2, 0.0  ;;  %v11388_v12 = vmax.f32 %v11387_v31, 0.0  ;;  %v11390_v19 = vmax.f32 %v11389_v29, 0.0  ;;  %v11399_v62 = vld [vmem:[#allocation191_spill] sm:$0xff]  ;;  %v11403_v61 = vld [vmem:[#allocation114_spill] sm:$0xff]  ;;  %v11405_v11 = vld [vmem:[#allocation161_spill] sm:$0xff] }
 0x89f   : > { %v4746_v28 = vmul.f32 %v11348_v33, %v11382_v59  ;;  %v4747_v20 = vmul.f32 %v11348_v33, %v11384_v43  ;;  %v11392_v6 = vmax.f32 %v11391_v49, 0.0  ;;  %v11394_v58 = vmax.f32 %v11393_v16, 0.0  ;;  %v11407_v57 = vld [vmem:[#allocation165_spill] sm:$0xff]  ;;  %v11409_v46 = vld [vmem:[#allocation174_spill] sm:$0xff] }
 0x8a0   : > { %v4748_v30 = vmul.f32 %v11348_v33, %v11386_v26  ;;  %v4749_v42 = vmul.f32 %v11348_v33, %v11388_v12  ;;  %v4750_v53 = vmul.f32 %v11348_v33, %v11390_v19  ;;  %v11396_v2 = vmax.f32 %v11395_v8, 0.0 }
 0x8a1   : > { %v4751_v59 = vmul.f32 %v11348_v33, %v11392_v6  ;;  %v4752_v43 = vmul.f32 %v11348_v33, %v11394_v58  ;;  %v11398_v31 = vmax.f32 %v11397_v1, 0.0  ;;  %v11400_v29 = vmax.f32 %v11399_v62, 0.0 }
 0x8a2   : > { %v4753_v26 = vmul.f32 %v11348_v33, %v11396_v2  ;;  %v11402_v49 = vmax.f32 %v11401_v40, 0.0  ;;  %v11404_v16 = vmax.f32 %v11403_v61, 0.0  ;;  %v11406_v8 = vmax.f32 %v11405_v11, 0.0 }
 0x8a3   : > { %v4754_v12 = vmul.f32 %v11348_v33, %v11398_v31  ;;  %v4755_v19 = vmul.f32 %v11348_v33, %v11400_v29  ;;  %v11408_v1 = vmax.f32 %v11407_v57, 0.0  ;;  %v11410_v62 = vmax.f32 %v11409_v46, 0.0 }
 0x8a4   : > { %v4756_v6 = vmul.f32 %v11348_v33, %v11402_v49  ;;  %v4757_v58 = vmul.f32 %v11348_v33, %v11404_v16  ;;  %v4758_v2 = vmul.f32 %v11348_v33, %v11406_v8  ;;  %v9972_v40 = vadd.f32 %v4729_v4, %v9780_v38 }
 0x8a5   : > { %v4759_v31 = vmul.f32 %v11348_v33, %v11408_v1  ;;  %v4760_v29 = vmul.f32 %v11348_v33, %v11410_v62  ;;  %v9975_v49 = vadd.f32 %v4730_v35, %v9783_v44  ;;  %v9978_v61 = vadd.f32 %v4731_v50, %v9786_v7  ;;  %v11446_v62 = vld [vmem:[#allocation84_spill] sm:$0xff] }
 0x8a6   : > { %v9981_v11 = vadd.f32 %v4732_v25, %v9789_v13  ;;  %v9984_v57 = vadd.f32 %v4733_v45, %v9792_v39  ;;  %v9987_v16 = vadd.f32 %v4734_v54, %v9795_v14  ;;  %v9990_v46 = vadd.f32 %v4735_v41, %v9798_v9  ;;  %v11425_v41 = vld [vmem:[#allocation96_spill] sm:$0xff] }
 0x8a7   : > { %v9993_v38 = vadd.f32 %v4736_v22, %v9801_v17  ;;  %v9996_v44 = vadd.f32 %v4737_v24, %v9804_v10  ;;  %v9999_v7 = vadd.f32 %v4738_v5, %v9807_v34  ;;  %v10002_v13 = vadd.f32 %v4739_v55, %v9810_v23  ;;  %v11427_v24 = vld [vmem:[#allocation111_spill] sm:$0xff]  ;;  %v11429_v55 = vld [vmem:[#allocation112_spill] sm:$0xff] }
 0x8a8   : > { %v10005_v39 = vadd.f32 %v4740_v52, %v9813_v37  ;;  %v10008_v14 = vadd.f32 %v4741_v47, %v9816_v32  ;;  %v10011_v9 = vadd.f32 %v4742_v48, %v9819_v3  ;;  %v10014_v17 = vadd.f32 %v4743_v18, %v9822_v51  ;;  %v11411_v51 = vld [vmem:[#allocation56_spill] sm:$0xff]  ;;  %v11431_v47 = vld [vmem:[#allocation125_spill] sm:$0xff] }
 0x8a9   : > { %v10017_v10 = vadd.f32 %v4744_v21, %v9825_v63  ;;  %v10020_v34 = vadd.f32 %v4745_v0, %v9828_v15  ;;  %v10023_v23 = vadd.f32 %v4746_v28, %v9831_v56  ;;  %v10026_v37 = vadd.f32 %v4747_v20, %v9834_v60  ;;  %v11413_v63 = vld [vmem:[#allocation59_spill] sm:$0xff]  ;;  %v11415_v15 = vld [vmem:[#allocation60_spill] sm:$0xff] }
 0x8aa   : > { %v10029_v32 = vadd.f32 %v4748_v30, %v9837_v36  ;;  %v10032_v3 = vadd.f32 %v4749_v42, %v9840_v27  ;;  %v10035_v33 = vadd.f32 %v4750_v53, %v11411_v51  ;;  %v10038_v4 = vadd.f32 %v4751_v59, %v11413_v63  ;;  %v11417_v56 = vld [vmem:[#allocation63_spill] sm:$0xff]  ;;  %v11419_v60 = vld [vmem:[#allocation64_spill] sm:$0xff]  ;;  %v11421_v36 = vld [vmem:[#allocation86_spill] sm:$0xff] }
 0x8ab   : > { %v10041_v35 = vadd.f32 %v4752_v43, %v11415_v15  ;;  %v10044_v50 = vadd.f32 %v4753_v26, %v11417_v56  ;;  %v10047_v25 = vadd.f32 %v4754_v12, %v11419_v60  ;;  %v10050_v45 = vadd.f32 %v4755_v19, %v11421_v36  ;;  %v11423_v27 = vld [vmem:[#allocation91_spill] sm:$0xff]  ;;  %v11433_v18 = vld [vmem:[#allocation76_spill] sm:$0xff]  ;;  %v11438_v53 = vld [vmem:[#allocation77_spill] sm:$0xff] }
 0x8ac   : > { %11412 = vst [vmem:[#allocation126_spill] sm:$0xff] %v10035_v33  ;;  %11414 = vst [vmem:[#allocation127_spill] sm:$0xff] %v10038_v4  ;;  %v10053_v54 = vadd.f32 %v4756_v6, %v11423_v27  ;;  %v10056_v22 = vadd.f32 %v4757_v58, %v11425_v41  ;;  %v10059_v5 = vadd.f32 %v4758_v2, %v11427_v24  ;;  %v11434_v21 = vmax.f32 %v11433_v18, 0.0  ;;  %v11435_v0 = vld [vmem:[#allocation52_spill] sm:$0xff]  ;;  %v11436_v20 = vld [vmem:[#allocation67_spill] sm:$0xff] }
 0x8ad   : > { %11416 = vst [vmem:[#allocation128_spill] sm:$0xff] %v10041_v35  ;;  %11418 = vst [vmem:[#allocation131_spill] sm:$0xff] %v10044_v50  ;;  %v10062_v52 = vadd.f32 %v4759_v31, %v11429_v55  ;;  %v10065_v48 = vadd.f32 %v4760_v29, %v11431_v47  ;;  %v11437_v30 = vmax.f32 %v11436_v20, 0.0  ;;  %v11439_v59 = vmax.f32 %v11438_v53, 0.0  ;;  %v11440_v26 = vld [vmem:[#allocation78_spill] sm:$0xff]  ;;  %v11442_v6 = vld [vmem:[#allocation79_spill] sm:$0xff] }
 0x8ae   : > { %11420 = vst [vmem:[#allocation132_spill] sm:$0xff] %v10047_v25  ;;  %11422 = vst [vmem:[#allocation134_spill] sm:$0xff] %v10050_v45  ;;  %v4798_v28 = vmul.f32 %v11435_v0, %v11434_v21  ;;  %v11441_v12 = vmax.f32 %v11440_v26, 0.0  ;;  %v11443_v58 = vmax.f32 %v11442_v6, 0.0  ;;  %v11444_v2 = vld [vmem:[#allocation82_spill] sm:$0xff]  ;;  %v11447_v29 = vmax.f32 %v11446_v62, 0.0 }
 0x8af   : > { %11424 = vst [vmem:[#allocation136_spill] sm:$0xff] %v10053_v54  ;;  %11426 = vst [vmem:[#allocation138_spill] sm:$0xff] %v10056_v22  ;;  %v4799_v42 = vmul.f32 %v11435_v0, %v11437_v30  ;;  %v4800_v43 = vmul.f32 %v11435_v0, %v11439_v59  ;;  %v11445_v1 = vmax.f32 %v11444_v2, 0.0  ;;  %v11448_v63 = vld [vmem:[#allocation87_spill] sm:$0xff]  ;;  %v11450_v60 = vld [vmem:[#allocation89_spill] sm:$0xff] }
 0x8b0   : > { %11428 = vst [vmem:[#allocation140_spill] sm:$0xff] %v10059_v5  ;;  %11430 = vst [vmem:[#allocation142_spill] sm:$0xff] %v10062_v52  ;;  %v4801_v19 = vmul.f32 %v11435_v0, %v11441_v12  ;;  %v4802_v8 = vmul.f32 %v11435_v0, %v11443_v58  ;;  %v4804_v51 = vmul.f32 %v11435_v0, %v11447_v29  ;;  %v11449_v15 = vmax.f32 %v11448_v63, 0.0  ;;  %v11452_v41 = vld [vmem:[#allocation92_spill] sm:$0xff]  ;;  %v11454_v47 = vld [vmem:[#allocation94_spill] sm:$0xff] }
 0x8b1   : > { %11432 = vst [vmem:[#allocation144_spill] sm:$0xff] %v10065_v48  ;;  %v4803_v31 = vmul.f32 %v11435_v0, %v11445_v1  ;;  %v11451_v36 = vmax.f32 %v11450_v60, 0.0  ;;  %v11453_v24 = vmax.f32 %v11452_v41, 0.0  ;;  %v11455_v18 = vmax.f32 %v11454_v47, 0.0  ;;  %v11456_v20 = vld [vmem:[#allocation97_spill] sm:$0xff]  ;;  %v11458_v59 = vld [vmem:[#allocation98_spill] sm:$0xff] }
 0x8b2   : > { %v4805_v56 = vmul.f32 %v11435_v0, %v11449_v15  ;;  %v11457_v30 = vmax.f32 %v11456_v20, 0.0  ;;  %v11459_v26 = vmax.f32 %v11458_v59, 0.0  ;;  %v11460_v6 = vld [vmem:[#allocation99_spill] sm:$0xff]  ;;  %v11462_v1 = vld [vmem:[#allocation100_spill] sm:$0xff]  ;;  %v11464_v63 = vld [vmem:[#allocation101_spill] sm:$0xff] }
 0x8b3   : > { %v4806_v27 = vmul.f32 %v11435_v0, %v11451_v36  ;;  %v4807_v55 = vmul.f32 %v11435_v0, %v11453_v24  ;;  %v4808_v21 = vmul.f32 %v11435_v0, %v11455_v18  ;;  %v11461_v58 = vmax.f32 %v11460_v6, 0.0  ;;  %v11466_v36 = vld [vmem:[#allocation102_spill] sm:$0xff]  ;;  %v11468_v47 = vld [vmem:[#allocation103_spill] sm:$0xff]  ;;  %v11472_v6 = vld [vmem:[#allocation105_spill] sm:$0xff] }
 0x8b4   : > { %v4809_v53 = vmul.f32 %v11435_v0, %v11457_v30  ;;  %v4810_v12 = vmul.f32 %v11435_v0, %v11459_v26  ;;  %v11463_v62 = vmax.f32 %v11462_v1, 0.0  ;;  %v11465_v15 = vmax.f32 %v11464_v63, 0.0  ;;  %v11470_v30 = vld [vmem:[#allocation104_spill] sm:$0xff]  ;;  %v11476_v48 = vld [vmem:[#allocation107_spill] sm:$0xff]  ;;  %v11480_v5 = vld [vmem:[#allocation109_spill] sm:$0xff] }
 0x8b5   : > { %v4811_v2 = vmul.f32 %v11435_v0, %v11461_v58  ;;  %v11467_v41 = vmax.f32 %v11466_v36, 0.0  ;;  %v11469_v18 = vmax.f32 %v11468_v47, 0.0  ;;  %v11471_v59 = vmax.f32 %v11470_v30, 0.0  ;;  %v11478_v52 = vld [vmem:[#allocation108_spill] sm:$0xff]  ;;  %v11482_v22 = vld [vmem:[#allocation110_spill] sm:$0xff]  ;;  %v11486_v45 = vld [vmem:[#allocation83_spill] sm:$0xff] }
 0x8b6   : > { %v4812_v29 = vmul.f32 %v11435_v0, %v11463_v62  ;;  %v4813_v60 = vmul.f32 %v11435_v0, %v11465_v15  ;;  %v11473_v58 = vmax.f32 %v11472_v6, 0.0  ;;  %v11474_v62 = vld [vmem:[#allocation106_spill] sm:$0xff]  ;;  %v11477_v36 = vmax.f32 %v11476_v48, 0.0  ;;  %v11484_v54 = vld [vmem:[#allocation80_spill] sm:$0xff]  ;;  %v11488_v25 = vld [vmem:[#allocation85_spill] sm:$0xff] }
 0x8b7   : > { %v4814_v24 = vmul.f32 %v11435_v0, %v11467_v41  ;;  %v4815_v20 = vmul.f32 %v11435_v0, %v11469_v18  ;;  %v4816_v26 = vmul.f32 %v11435_v0, %v11471_v59  ;;  %v11475_v63 = vmax.f32 %v11474_v62, 0.0  ;;  %v11490_v50 = vld [vmem:[#allocation88_spill] sm:$0xff]  ;;  %v11492_v35 = vld [vmem:[#allocation90_spill] sm:$0xff]  ;;  %v11494_v4 = vld [vmem:[#allocation93_spill] sm:$0xff] }
 0x8b8   : > { %v4817_v1 = vmul.f32 %v11435_v0, %v11473_v58  ;;  %v4819_v41 = vmul.f32 %v11435_v0, %v11477_v36  ;;  %v11479_v47 = vmax.f32 %v11478_v52, 0.0  ;;  %v11481_v30 = vmax.f32 %v11480_v5, 0.0  ;;  %v11496_v33 = vld [vmem:[#allocation95_spill] sm:$0xff] }
 0x8b9   : > { %v4818_v15 = vmul.f32 %v11435_v0, %v11475_v63  ;;  %v11483_v6 = vmax.f32 %v11482_v22, 0.0  ;;  %v11485_v62 = vmax.f32 %v11484_v54, 0.0  ;;  %v11487_v48 = vmax.f32 %v11486_v45, 0.0 }
 0x8ba   : > { %v4820_v18 = vmul.f32 %v11435_v0, %v11479_v47  ;;  %v4821_v59 = vmul.f32 %v11435_v0, %v11481_v30  ;;  %v11489_v52 = vmax.f32 %v11488_v25, 0.0  ;;  %v11491_v5 = vmax.f32 %v11490_v50, 0.0 }
 0x8bb   : > { %v4822_v58 = vmul.f32 %v11435_v0, %v11483_v6  ;;  %v4823_v63 = vmul.f32 %v11435_v0, %v11485_v62  ;;  %v4824_v36 = vmul.f32 %v11435_v0, %v11487_v48  ;;  %v11493_v22 = vmax.f32 %v11492_v35, 0.0 }
 0x8bc   : > { %v4825_v47 = vmul.f32 %v11435_v0, %v11489_v52  ;;  %v4826_v30 = vmul.f32 %v11435_v0, %v11491_v5  ;;  %v11495_v54 = vmax.f32 %v11494_v4, 0.0  ;;  %v11497_v45 = vmax.f32 %v11496_v33, 0.0 }
 0x8bd   : > { %v4827_v6 = vmul.f32 %v11435_v0, %v11493_v22  ;;  %v10164_v25 = vadd.f32 %v4798_v28, %v9972_v40  ;;  %v10167_v52 = vadd.f32 %v4799_v42, %v9975_v49  ;;  %v10170_v50 = vadd.f32 %v4800_v43, %v9978_v61 }
 0x8be   : > { %v4828_v62 = vmul.f32 %v11435_v0, %v11495_v54  ;;  %v4829_v48 = vmul.f32 %v11435_v0, %v11497_v45  ;;  %v10173_v35 = vadd.f32 %v4801_v19, %v9981_v11  ;;  %v10176_v4 = vadd.f32 %v4802_v8, %v9984_v57  ;;  %v11533_v45 = vld [vmem:[#allocation163_spill] sm:$0xff] }
 0x8bf   : > { %v10179_v5 = vadd.f32 %v4803_v31, %v9987_v16  ;;  %v10182_v33 = vadd.f32 %v4804_v51, %v9990_v46  ;;  %v10185_v40 = vadd.f32 %v4805_v56, %v9993_v38  ;;  %v10188_v49 = vadd.f32 %v4806_v27, %v9996_v44  ;;  %v11512_v51 = vld [vmem:[#allocation138_spill] sm:$0xff]  ;;  %v11514_v27 = vld [vmem:[#allocation140_spill] sm:$0xff] }
 0x8c0   : > { %v10191_v61 = vadd.f32 %v4807_v55, %v9999_v7  ;;  %v10194_v11 = vadd.f32 %v4808_v21, %v10002_v13  ;;  %v10197_v57 = vadd.f32 %v4809_v53, %v10005_v39  ;;  %v10200_v16 = vadd.f32 %v4810_v12, %v10008_v14  ;;  %v11516_v21 = vld [vmem:[#allocation142_spill] sm:$0xff]  ;;  %v11518_v12 = vld [vmem:[#allocation144_spill] sm:$0xff] }
 0x8c1   : > { %v10203_v46 = vadd.f32 %v4811_v2, %v10011_v9  ;;  %v10206_v38 = vadd.f32 %v4812_v29, %v10014_v17  ;;  %v10209_v44 = vadd.f32 %v4813_v60, %v10017_v10  ;;  %v10212_v7 = vadd.f32 %v4814_v24, %v10020_v34  ;;  %v11498_v17 = vld [vmem:[#allocation126_spill] sm:$0xff]  ;;  %v11500_v10 = vld [vmem:[#allocation127_spill] sm:$0xff]  ;;  %v11502_v34 = vld [vmem:[#allocation128_spill] sm:$0xff] }
 0x8c2   : > { %v10215_v13 = vadd.f32 %v4815_v20, %v10023_v23  ;;  %v10218_v39 = vadd.f32 %v4816_v26, %v10026_v37  ;;  %v10221_v14 = vadd.f32 %v4817_v1, %v10029_v32  ;;  %v10224_v9 = vadd.f32 %v4818_v15, %v10032_v3  ;;  %v11504_v23 = vld [vmem:[#allocation131_spill] sm:$0xff]  ;;  %v11506_v37 = vld [vmem:[#allocation132_spill] sm:$0xff]  ;;  %v11508_v32 = vld [vmem:[#allocation134_spill] sm:$0xff] }
 0x8c3   : > { %v10227_v0 = vadd.f32 %v4819_v41, %v11498_v17  ;;  %v10230_v28 = vadd.f32 %v4820_v18, %v11500_v10  ;;  %v10233_v42 = vadd.f32 %v4821_v59, %v11502_v34  ;;  %v10236_v43 = vadd.f32 %v4822_v58, %v11504_v23  ;;  %v11510_v3 = vld [vmem:[#allocation136_spill] sm:$0xff]  ;;  %v11520_v29 = vld [vmem:[#allocation154_spill] sm:$0xff]  ;;  %v11522_v24 = vld [vmem:[#allocation55_spill] sm:$0xff] }
 0x8c4   : > { %v10239_v19 = vadd.f32 %v4823_v63, %v11506_v37  ;;  %v10242_v8 = vadd.f32 %v4824_v36, %v11508_v32  ;;  %v10245_v31 = vadd.f32 %v4825_v47, %v11510_v3  ;;  %v10248_v56 = vadd.f32 %v4826_v30, %v11512_v51  ;;  %v11523_v26 = vld [vmem:[#allocation185_spill] sm:$0xff]  ;;  %v11525_v41 = vld [vmem:[#allocation188_spill] sm:$0xff]  ;;  %v11527_v58 = vld [vmem:[#allocation190_spill] sm:$0xff] }
 0x8c5   : > { %11499 = vst [vmem:[#allocation146_spill] sm:$0xff] %v10227_v0  ;;  %11501 = vst [vmem:[#allocation148_spill] sm:$0xff] %v10230_v28  ;;  %v10251_v55 = vadd.f32 %v4827_v6, %v11514_v27  ;;  %v10254_v53 = vadd.f32 %v4828_v62, %v11516_v21  ;;  %v10257_v2 = vadd.f32 %v4829_v48, %v11518_v12  ;;  %v11521_v60 = vmax.f32 %v11520_v29, 0.0  ;;  %v11529_v47 = vld [vmem:[#allocation113_spill] sm:$0xff]  ;;  %v11531_v6 = vld [vmem:[#allocation160_spill] sm:$0xff] }
 0x8c6   : > { %11503 = vst [vmem:[#allocation150_spill] sm:$0xff] %v10233_v42  ;;  %11505 = vst [vmem:[#allocation152_spill] sm:$0xff] %v10236_v43  ;;  %v11524_v1 = vmax.f32 %v11523_v26, 0.0  ;;  %v11526_v18 = vmax.f32 %v11525_v41, 0.0  ;;  %v11528_v63 = vmax.f32 %v11527_v58, 0.0  ;;  %v11530_v30 = vmax.f32 %v11529_v47, 0.0 }
 0x8c7   : > { %11507 = vst [vmem:[#allocation155_spill] sm:$0xff] %v10239_v19  ;;  %11509 = vst [vmem:[#allocation157_spill] sm:$0xff] %v10242_v8  ;;  %v4867_v20 = vmul.f32 %v11522_v24, %v11521_v60  ;;  %v11532_v54 = vmax.f32 %v11531_v6, 0.0  ;;  %v11534_v48 = vmax.f32 %v11533_v45, 0.0  ;;  %v11535_v10 = vld [vmem:[#allocation115_spill] sm:$0xff]  ;;  %v11539_v51 = vld [vmem:[#allocation168_spill] sm:$0xff] }
 0x8c8   : > { %11511 = vst [vmem:[#allocation162_spill] sm:$0xff] %v10245_v31  ;;  %11513 = vst [vmem:[#allocation166_spill] sm:$0xff] %v10248_v56  ;;  %v4868_v15 = vmul.f32 %v11522_v24, %v11524_v1  ;;  %v4869_v59 = vmul.f32 %v11522_v24, %v11526_v18  ;;  %v4870_v36 = vmul.f32 %v11522_v24, %v11528_v63  ;;  %v11536_v34 = vmax.f32 %v11535_v10, 0.0  ;;  %v11537_v37 = vld [vmem:[#allocation167_spill] sm:$0xff]  ;;  %v11541_v12 = vld [vmem:[#allocation193_spill] sm:$0xff] }
 0x8c9   : > { %11515 = vst [vmem:[#allocation170_spill] sm:$0xff] %v10251_v55  ;;  %11517 = vst [vmem:[#allocation172_spill] sm:$0xff] %v10254_v53  ;;  %v4871_v22 = vmul.f32 %v11522_v24, %v11530_v30  ;;  %v4872_v62 = vmul.f32 %v11522_v24, %v11532_v54  ;;  %v4873_v17 = vmul.f32 %v11522_v24, %v11534_v48  ;;  %v11538_v32 = vmax.f32 %v11537_v37, 0.0  ;;  %v11543_v26 = vld [vmem:[#allocation194_spill] sm:$0xff]  ;;  %v11545_v18 = vld [vmem:[#allocation195_spill] sm:$0xff] }
 0x8ca   : > { %11519 = vst [vmem:[#allocation175_spill] sm:$0xff] %v10257_v2  ;;  %v4874_v23 = vmul.f32 %v11522_v24, %v11536_v34  ;;  %v11540_v27 = vmax.f32 %v11539_v51, 0.0  ;;  %v11542_v29 = vmax.f32 %v11541_v12, 0.0  ;;  %v11544_v1 = vmax.f32 %v11543_v26, 0.0  ;;  %v11547_v47 = vld [vmem:[#allocation119_spill] sm:$0xff]  ;;  %v11549_v54 = vld [vmem:[#allocation196_spill] sm:$0xff] }
 0x8cb   : > { %v4875_v3 = vmul.f32 %v11522_v24, %v11538_v32  ;;  %v11546_v58 = vmax.f32 %v11545_v18, 0.0  ;;  %v11548_v30 = vmax.f32 %v11547_v47, 0.0  ;;  %v11550_v45 = vmax.f32 %v11549_v54, 0.0  ;;  %v11551_v10 = vld [vmem:[#allocation120_spill] sm:$0xff]  ;;  %v11553_v32 = vld [vmem:[#allocation197_spill] sm:$0xff]  ;;  %v11559_v47 = vld [vmem:[#allocation123_spill] sm:$0xff] }
 0x8cc   : > { %v4876_v21 = vmul.f32 %v11522_v24, %v11540_v27  ;;  %v4877_v60 = vmul.f32 %v11522_v24, %v11542_v29  ;;  %v4878_v41 = vmul.f32 %v11522_v24, %v11544_v1  ;;  %v11552_v34 = vmax.f32 %v11551_v10, 0.0  ;;  %v11555_v12 = vld [vmem:[#allocation121_spill] sm:$0xff]  ;;  %v11557_v1 = vld [vmem:[#allocation198_spill] sm:$0xff]  ;;  %v11563_v2 = vld [vmem:[#allocation200_spill] sm:$0xff] }
 0x8cd   : > { %v4879_v63 = vmul.f32 %v11522_v24, %v11546_v58  ;;  %v4880_v6 = vmul.f32 %v11522_v24, %v11548_v30  ;;  %v4881_v48 = vmul.f32 %v11522_v24, %v11550_v45  ;;  %v11554_v51 = vmax.f32 %v11553_v32, 0.0  ;;  %v11561_v45 = vld [vmem:[#allocation199_spill] sm:$0xff]  ;;  %v11565_v53 = vld [vmem:[#allocation70_spill] sm:$0xff]  ;;  %v11567_v55 = vld [vmem:[#allocation201_spill] sm:$0xff] }
 0x8ce   : > { %v4882_v37 = vmul.f32 %v11522_v24, %v11552_v34  ;;  %v11556_v29 = vmax.f32 %v11555_v12, 0.0  ;;  %v11558_v18 = vmax.f32 %v11557_v1, 0.0  ;;  %v11560_v30 = vmax.f32 %v11559_v47, 0.0  ;;  %v11569_v56 = vld [vmem:[#allocation73_spill] sm:$0xff]  ;;  %v11571_v31 = vld [vmem:[#allocation202_spill] sm:$0xff]  ;;  %v11573_v8 = vld [vmem:[#allocation159_spill] sm:$0xff] }
 0x8cf   : > { %v4883_v27 = vmul.f32 %v11522_v24, %v11554_v51  ;;  %v11562_v10 = vmax.f32 %v11561_v45, 0.0  ;;  %v11564_v32 = vmax.f32 %v11563_v2, 0.0  ;;  %v11566_v12 = vmax.f32 %v11565_v53, 0.0  ;;  %v11575_v19 = vld [vmem:[#allocation81_spill] sm:$0xff]  ;;  %v11577_v43 = vld [vmem:[#allocation124_spill] sm:$0xff]  ;;  %v11581_v28 = vld [vmem:[#allocation122_spill] sm:$0xff] }
 0x8d0   : > { %v4884_v26 = vmul.f32 %v11522_v24, %v11556_v29  ;;  %v4885_v58 = vmul.f32 %v11522_v24, %v11558_v18  ;;  %v4886_v54 = vmul.f32 %v11522_v24, %v11560_v30  ;;  %v11568_v1 = vmax.f32 %v11567_v55, 0.0  ;;  %v11579_v42 = vld [vmem:[#allocation189_spill] sm:$0xff]  ;;  %v11583_v0 = vld [vmem:[#allocation203_spill] sm:$0xff] }
 0x8d1   : > { %v4887_v34 = vmul.f32 %v11522_v24, %v11562_v10  ;;  %v4888_v51 = vmul.f32 %v11522_v24, %v11564_v32  ;;  %v4889_v29 = vmul.f32 %v11522_v24, %v11566_v12  ;;  %v11570_v47 = vmax.f32 %v11569_v56, 0.0 }
 0x8d2   : > { %v4890_v18 = vmul.f32 %v11522_v24, %v11568_v1  ;;  %v11572_v45 = vmax.f32 %v11571_v31, 0.0  ;;  %v11574_v2 = vmax.f32 %v11573_v8, 0.0  ;;  %v11576_v53 = vmax.f32 %v11575_v19, 0.0 }
 0x8d3   : > { %v4891_v30 = vmul.f32 %v11522_v24, %v11570_v47  ;;  %v11578_v55 = vmax.f32 %v11577_v43, 0.0  ;;  %v11580_v56 = vmax.f32 %v11579_v42, 0.0  ;;  %v11582_v31 = vmax.f32 %v11581_v28, 0.0 }
 0x8d4   : > { %v4892_v10 = vmul.f32 %v11522_v24, %v11572_v45  ;;  %v4893_v32 = vmul.f32 %v11522_v24, %v11574_v2  ;;  %v4894_v12 = vmul.f32 %v11522_v24, %v11576_v53  ;;  %v11584_v8 = vmax.f32 %v11583_v0, 0.0 }
 0x8d5   : > { %v4895_v1 = vmul.f32 %v11522_v24, %v11578_v55  ;;  %v4896_v47 = vmul.f32 %v11522_v24, %v11580_v56  ;;  %v4897_v45 = vmul.f32 %v11522_v24, %v11582_v31  ;;  %v4899_v19 = vadd.f32 %v4867_v20, %v10164_v25 }
 0x8d6   : > { %v4898_v2 = vmul.f32 %v11522_v24, %v11584_v8  ;;  %v4900_v53 = vadd.f32 %v4868_v15, %v10167_v52  ;;  %v4901_v43 = vadd.f32 %v4869_v59, %v10170_v50  ;;  %v4902_v55 = vadd.f32 %v4870_v36, %v10173_v35  ;;  %v11587_v59 = vld [vmem:[#allocation150_spill] sm:$0xff]  ;;  %v11588_v36 = vld [vmem:[#allocation152_spill] sm:$0xff] }
 0x8d7   : > { %v4903_v42 = vadd.f32 %v4871_v22, %v10176_v4  ;;  %v4904_v56 = vadd.f32 %v4872_v62, %v10179_v5  ;;  %v4905_v28 = vadd.f32 %v4873_v17, %v10182_v33  ;;  %v4906_v31 = vadd.f32 %v4874_v23, %v10185_v40  ;;  %v11589_v22 = vld [vmem:[#allocation155_spill] sm:$0xff]  ;;  %v11590_v62 = vld [vmem:[#allocation157_spill] sm:$0xff]  ;;  %v11591_v17 = vld [vmem:[#allocation162_spill] sm:$0xff] }
 0x8d8   : > { %v4907_v0 = vadd.f32 %v4875_v3, %v10188_v49  ;;  %v4908_v24 = vadd.f32 %v4876_v21, %v10191_v61  ;;  %v4909_v25 = vadd.f32 %v4877_v60, %v10194_v11  ;;  %v4910_v52 = vadd.f32 %v4878_v41, %v10197_v57  ;;  %v11585_v57 = vld [vmem:[#allocation146_spill] sm:$0xff]  ;;  %v11594_v3 = vld [vmem:[#allocation172_spill] sm:$0xff]  ;;  %v11595_v60 = vld [vmem:[#allocation175_spill] sm:$0xff] }
 0x8d9   : > { %v4911_v50 = vadd.f32 %v4879_v63, %v10200_v16  ;;  %v4912_v35 = vadd.f32 %v4880_v6, %v10203_v46  ;;  %v4913_v4 = vadd.f32 %v4881_v48, %v10206_v38  ;;  %v4914_v5 = vadd.f32 %v4882_v37, %v10209_v44  ;;  %v11586_v16 = vld [vmem:[#allocation148_spill] sm:$0xff] }
 0x8da   : > { %v4915_v33 = vadd.f32 %v4883_v27, %v10212_v7  ;;  %v4916_v40 = vadd.f32 %v4884_v26, %v10215_v13  ;;  %v4917_v49 = vadd.f32 %v4885_v58, %v10218_v39  ;;  %v4918_v61 = vadd.f32 %v4886_v54, %v10221_v14  ;;  %v11592_v39 = vld [vmem:[#allocation166_spill] sm:$0xff]  ;;  %v11596_v63 = vld [vmem:[#allocation28_spill] sm:$0xff] }
 0x8db   : > { %v4919_v11 = vadd.f32 %v4887_v34, %v10224_v9  ;;  %v4920_v20 = vadd.f32 %v4888_v51, %v11585_v57  ;;  %v4921_v15 = vadd.f32 %v4889_v29, %v11586_v16  ;;  %v4922_v46 = vadd.f32 %v4890_v18, %v11587_v59  ;;  %v11593_v9 = vld [vmem:[#allocation170_spill] sm:$0xff] }
 0x8dc   : > { %v4923_v38 = vadd.f32 %v4891_v30, %v11588_v36  ;;  %v4924_v44 = vadd.f32 %v4892_v10, %v11589_v22  ;;  %v4925_v7 = vadd.f32 %v4893_v32, %v11590_v62  ;;  %v4926_v13 = vadd.f32 %v4894_v12, %v11591_v17 }
 0x8dd   : > { %v4927_v14 = vadd.f32 %v4895_v1, %v11592_v39  ;;  %v4928_v23 = vadd.f32 %v4896_v47, %v11593_v9  ;;  %v4929_v21 = vadd.f32 %v4897_v45, %v11594_v3  ;;  %v4930_v41 = vadd.f32 %v4898_v2, %v11595_v60 }
 0x8de   : > { %v4933_v6 = vadd.f32 %v11596_v63, %v4899_v19  ;;  %v4934_v48 = vadd.f32 %v11596_v63, %v4900_v53  ;;  %v4935_v37 = vadd.f32 %v11596_v63, %v4901_v43  ;;  %v4936_v27 = vadd.f32 %v11596_v63, %v4902_v55 }
 0x8df   : > { %v4937_v26 = vadd.f32 %v11596_v63, %v4903_v42  ;;  %v4938_v58 = vadd.f32 %v11596_v63, %v4904_v56  ;;  %v4939_v54 = vadd.f32 %v11596_v63, %v4905_v28  ;;  %v4940_v34 = vadd.f32 %v11596_v63, %v4906_v31 }
 0x8e0   : > { %v4941_v51 = vadd.f32 %v11596_v63, %v4907_v0  ;;  %v4942_v29 = vadd.f32 %v11596_v63, %v4908_v24  ;;  %v4943_v18 = vadd.f32 %v11596_v63, %v4909_v25  ;;  %v4944_v30 = vadd.f32 %v11596_v63, %v4910_v52  ;;  %4965 = vst [vmem:[%s10387_s27] sm:$0xff] %v4933_v6 }
 0x8e1   : > { %4966 = vst [vmem:[%s10387_s27 + $0x8] sm:$0xff] %v4934_v48  ;;  %4967 = vst [vmem:[%s10387_s27 + $0x10] sm:$0xff] %v4935_v37  ;;  %v4945_v10 = vadd.f32 %v11596_v63, %v4911_v50  ;;  %v4946_v32 = vadd.f32 %v11596_v63, %v4912_v35  ;;  %v4947_v12 = vadd.f32 %v11596_v63, %v4913_v4 }
 0x8e2   : > { %4968 = vst [vmem:[%s10387_s27 + $0x18] sm:$0xff] %v4936_v27  ;;  %v4948_v1 = vadd.f32 %v11596_v63, %v4914_v5  ;;  %4969 = vst [vmem:[%s10387_s27 + $0x20] sm:$0xff] %v4937_v26  ;;  %v4949_v47 = vadd.f32 %v11596_v63, %v4915_v33  ;;  %v4950_v45 = vadd.f32 %v11596_v63, %v4916_v40 }
 0x8e3   : > { %4970 = vst [vmem:[%s10387_s27 + $0x28] sm:$0xff] %v4938_v58  ;;  %4971 = vst [vmem:[%s10387_s27 + $0x30] sm:$0xff] %v4939_v54  ;;  %v4951_v8 = vadd.f32 %v11596_v63, %v4917_v49  ;;  %v4952_v2 = vadd.f32 %v11596_v63, %v4918_v61  ;;  %v4953_v19 = vadd.f32 %v11596_v63, %v4919_v11 }
 0x8e4   : > { %4972 = vst [vmem:[%s10387_s27 + $0x38] sm:$0xff] %v4940_v34  ;;  %4973 = vst [vmem:[%s10387_s27 + $0x40] sm:$0xff] %v4941_v51  ;;  %v4954_v53 = vadd.f32 %v11596_v63, %v4920_v20  ;;  %v4955_v43 = vadd.f32 %v11596_v63, %v4921_v15  ;;  %v4956_v55 = vadd.f32 %v11596_v63, %v4922_v46 }
 0x8e5   : > { %4974 = vst [vmem:[%s10387_s27 + $0x48] sm:$0xff] %v4942_v29  ;;  %4975 = vst [vmem:[%s10387_s27 + $0x50] sm:$0xff] %v4943_v18  ;;  %v4957_v42 = vadd.f32 %v11596_v63, %v4923_v38  ;;  %v4958_v56 = vadd.f32 %v11596_v63, %v4924_v44  ;;  %v4959_v28 = vadd.f32 %v11596_v63, %v4925_v7 }
 0x8e6   : > { %4976 = vst [vmem:[%s10387_s27 + $0x58] sm:$0xff] %v4944_v30  ;;  %4977 = vst [vmem:[%s10387_s27 + $0x60] sm:$0xff] %v4945_v10  ;;  %v4960_v31 = vadd.f32 %v11596_v63, %v4926_v13  ;;  %v4961_v0 = vadd.f32 %v11596_v63, %v4927_v14  ;;  %v4962_v24 = vadd.f32 %v11596_v63, %v4928_v23 }
 0x8e7   : > { %4978 = vst [vmem:[%s10387_s27 + $0x68] sm:$0xff] %v4946_v32  ;;  %4979 = vst [vmem:[%s10387_s27 + $0x70] sm:$0xff] %v4947_v12  ;;  %v4963_v25 = vadd.f32 %v11596_v63, %v4929_v21  ;;  %v4964_v52 = vadd.f32 %v11596_v63, %v4930_v41 }
 0x8e8   : > { %4980 = vst [vmem:[%s10387_s27 + $0x78] sm:$0xff] %v4948_v1  ;;  %4981 = vst [vmem:[%s10387_s27 + $0x80] sm:$0xff] %v4949_v47 }
 0x8e9   : > { %4982 = vst [vmem:[%s10387_s27 + $0x88] sm:$0xff] %v4950_v45  ;;  %4983 = vst [vmem:[%s10387_s27 + $0x90] sm:$0xff] %v4951_v8 }
 0x8ea   : > { %4984 = vst [vmem:[%s10387_s27 + $0x98] sm:$0xff] %v4952_v2  ;;  %4985 = vst [vmem:[%s10387_s27 + $0xa0] sm:$0xff] %v4953_v19 }
 0x8eb   : > { %4986 = vst [vmem:[%s10387_s27 + $0xa8] sm:$0xff] %v4954_v53  ;;  %4987 = vst [vmem:[%s10387_s27 + $0xb0] sm:$0xff] %v4955_v43 }
 0x8ec   : > { %4988 = vst [vmem:[%s10387_s27 + $0xb8] sm:$0xff] %v4956_v55  ;;  %4989 = vst [vmem:[%s10387_s27 + $0xc0] sm:$0xff] %v4957_v42 }
 0x8ed   : > { %4990 = vst [vmem:[%s10387_s27 + $0xc8] sm:$0xff] %v4958_v56  ;;  %4991 = vst [vmem:[%s10387_s27 + $0xd0] sm:$0xff] %v4959_v28 }
 0x8ee   : > { %4992 = vst [vmem:[%s10387_s27 + $0xd8] sm:$0xff] %v4960_v31  ;;  %4993 = vst [vmem:[%s10387_s27 + $0xe0] sm:$0xff] %v4961_v0 }
 0x8ef   : > { %4994 = vst [vmem:[%s10387_s27 + $0xe8] sm:$0xff] %v4962_v24  ;;  %4995 = vst [vmem:[%s10387_s27 + $0xf0] sm:$0xff] %v4963_v25 }
 0x8f0   : > { %4996 = vst [vmem:[%s10387_s27 + $0xf8] sm:$0xff] %v4964_v52 }
 0x8f1 PF: > { %s27_s18 = sadd.s32 1, %s6622_s18  }
 0x8f2   : > { %p24_p5 = scmp.ge.s32.totalorder %s27_s18, 4  }
 0x8f4   :  { %26 = sbr.rel (!%p24_p5) target bundleno = 5 (0x5), region = 156 }
 0x8fb   :  { %5018 = vsyncpa [#allocation3], 1 }
 0x8fc   :  { %5020 = vsyncpa [#allocation3 + $0x1], 1 }
 0x8fd   :  { %5021 = vsyncpa [#allocation5], 1 }

</bundles_post_ra>
